<compile_context>
chip_gen: v7x
topology: tpu7x:2x2x1
jax: 0.10.0
libtpu: 0.0.40
codegen_flags: <defaults>
</compile_context>

<pallas_src>
import functools
import math

import jax
import jax.numpy as jnp
from jax import lax
from jax.experimental import pallas as pl
from jax.experimental.pallas import tpu as pltpu
from jax.custom_derivatives import SymbolicZero

MXU_DTYPE = jnp.bfloat16           # MXU input dtype (accumulation stays f32)


def _vmem_capacity_bytes():
    try:
        cap = int(getattr(pltpu.get_tpu_info(), "vmem_capacity_bytes", 0))
        if cap > 0:
            return cap
    except Exception:
        pass
    return 64 * 1024 * 1024        # conservative default (v7x per-TC VMEM)


_VMEM_CAP = _vmem_capacity_bytes()
_IS_SMALL_VMEM = _VMEM_CAP <= 96 * 1024 * 1024          # v7x (64 MiB, 2 TCs)
_VMEM_LIMIT = min(int(0.65 * _VMEM_CAP), 96 * 1024 * 1024)

if _IS_SMALL_VMEM:                                      # v7x
    _TM_CAP, _TN_CAP, _TK_CAP = 256, 512, 512
else:                                                   # v5e / v6e (128 MiB VMEM)
    _TM_CAP, _TN_CAP, _TK_CAP = 512, 1024, 1024

# Prefer 512/256-multiple tiles (v6e/v7x MXU is 2x256^2); 128 still legal (v5e).
_MN_ALIGNS = (512, 256, 128)
_M_ALIGNS = (512, 256, 128, 64, 32, 16, 8)


def _round_up(x, m):
    return ((x + m - 1) // m) * m


def _pick_tile(dim, cap, aligns):
    """Largest aligned tile <= cap that exactly divides dim; full dim if it fits."""
    if dim <= cap:
        return dim
    for align in aligns:
        t = (cap // align) * align
        while t >= align:
            if dim % t == 0:
                return t
            t -= align
    # Unreachable for the padded dims produced by linear(); kept as a safety net.
    return dim


# ----------------------------------------------------------------------------
# Tiled linear kernels (primal and fused-JVP), bias fused in the epilogue
# ----------------------------------------------------------------------------

def _dot_f32(a, b, trans_b):
    dn = (((1,), (1,)), ((), ())) if trans_b else (((1,), (0,)), ((), ()))
    return lax.dot_general(a, b, dn, preferred_element_type=jnp.float32)


def _linear_kernel(trans_b, x_ref, w_ref, b_ref, o_ref, acc_ref):
    k = pl.program_id(2)

    @pl.when(k == 0)
    def _():
        acc_ref[...] = jnp.zeros_like(acc_ref)

    acc_ref[...] += _dot_f32(x_ref[...], w_ref[...], trans_b)

    @pl.when(k == pl.num_programs(2) - 1)
    def _():
        o_ref[...] = (acc_ref[...] + b_ref[...]).astype(o_ref.dtype)


def _linear_jvp_kernel(trans_b, x_ref, dx_ref, w_ref, dw_ref, b_ref, db_ref,
                       y_ref, dy_ref, acc_y, acc_dy):
    k = pl.program_id(2)

    @pl.when(k == 0)
    def _():
        acc_y[...] = jnp.zeros_like(acc_y)
        acc_dy[...] = jnp.zeros_like(acc_dy)

    x, dx, w = x_ref[...], dx_ref[...], w_ref[...]
    # The two matmuls against the same W tile are issued back-to-back so Mosaic
    # can keep W staged in the MXU weight registers between them.
    y_w = _dot_f32(x, w, trans_b)
    dy_w = _dot_f32(dx, w, trans_b)
    dy_dw = _dot_f32(x, dw_ref[...], trans_b)
    acc_y[...] += y_w
    acc_dy[...] += dy_w + dy_dw

    @pl.when(k == pl.num_programs(2) - 1)
    def _():
        y_ref[...] = (acc_y[...] + b_ref[...]).astype(y_ref.dtype)
        dy_ref[...] = (acc_dy[...] + db_ref[...]).astype(dy_ref.dtype)


def _linear_call_cfg(M, K, N, trans_b):
    tm = _pick_tile(M, _TM_CAP, _M_ALIGNS)
    tn = _pick_tile(N, _TN_CAP, _MN_ALIGNS)
    tk = _pick_tile(K, _TK_CAP, _MN_ALIGNS)
    grid = (M // tm, N // tn, K // tk)
    x_spec = pl.BlockSpec((tm, tk), lambda i, j, k: (i, k))
    if trans_b:
        w_spec = pl.BlockSpec((tn, tk), lambda i, j, k: (j, k))
    else:
        w_spec = pl.BlockSpec((tk, tn), lambda i, j, k: (k, j))
    b_spec = pl.BlockSpec((1, tn), lambda i, j, k: (0, j))
    o_spec = pl.BlockSpec((tm, tn), lambda i, j, k: (i, j))
    cp = pltpu.CompilerParams(
        dimension_semantics=("parallel", "parallel", "arbitrary"),
        vmem_limit_bytes=_VMEM_LIMIT,
    )
    return grid, x_spec, w_spec, b_spec, o_spec, (tm, tn), cp


def _pallas_linear(x, w, b, trans_b, out_dtype):
    M, K = x.shape
    N = w.shape[0] if trans_b else w.shape[1]
    grid, x_spec, w_spec, b_spec, o_spec, (tm, tn), cp = _linear_call_cfg(M, K, N, trans_b)
    return pl.pallas_call(
        functools.partial(_linear_kernel, trans_b),
        out_shape=jax.ShapeDtypeStruct((M, N), out_dtype),
        grid=grid,
        in_specs=[x_spec, w_spec, b_spec],
        out_specs=o_spec,
        scratch_shapes=[pltpu.VMEM((tm, tn), jnp.float32)],
        compiler_params=cp,
    )(x, w, b)


def _pallas_linear_jvp(x, dx, w, dw, b, db, trans_b, out_dtype):
    M, K = x.shape
    N = w.shape[0] if trans_b else w.shape[1]
    grid, x_spec, w_spec, b_spec, o_spec, (tm, tn), cp = _linear_call_cfg(M, K, N, trans_b)
    out_shape = (jax.ShapeDtypeStruct((M, N), out_dtype),
                 jax.ShapeDtypeStruct((M, N), out_dtype))
    return pl.pallas_call(
        functools.partial(_linear_jvp_kernel, trans_b),
        out_shape=out_shape,
        grid=grid,
        in_specs=[x_spec, x_spec, w_spec, w_spec, b_spec, b_spec],
        out_specs=(o_spec, o_spec),
        scratch_shapes=[pltpu.VMEM((tm, tn), jnp.float32),
                        pltpu.VMEM((tm, tn), jnp.float32)],
        compiler_params=cp,
    )(x, dx, w, dw, b, db)


@functools.lru_cache(maxsize=None)
def _get_fused_linear(trans_b, out_dtype_name):
    out_dtype = jnp.dtype(out_dtype_name)

    @jax.custom_jvp
    def f(x, w, b):
        return _pallas_linear(x, w, b, trans_b, out_dtype)

    def f_jvp(primals, tangents):
        x, w, b = primals
        dx, dw, db = tangents
        zx = isinstance(dx, SymbolicZero)
        zw = isinstance(dw, SymbolicZero)
        zb = isinstance(db, SymbolicZero)
        db_m = jnp.zeros_like(b) if zb else db
        if zx and zw:
            y = _pallas_linear(x, w, b, trans_b, out_dtype)
            dy = jnp.broadcast_to(db_m, y.shape).astype(y.dtype)
        elif zx:
            y = _pallas_linear(x, w, b, trans_b, out_dtype)
            dy = _pallas_linear(x, dw, db_m, trans_b, out_dtype)
        elif zw:
            y = _pallas_linear(x, w, b, trans_b, out_dtype)
            dy = _pallas_linear(dx, w, db_m, trans_b, out_dtype)
        else:
            y, dy = _pallas_linear_jvp(x, dx, w, dw, b, db_m, trans_b, out_dtype)
        return y, dy

    f.defjvp(f_jvp, symbolic_zeros=True)
    return f


def _pad_axis(a, axis, new_size):
    old = a.shape[axis]
    if new_size == old:
        return a
    pads = [(0, 0)] * a.ndim
    pads[axis] = (0, new_size - old)
    return jnp.pad(a, pads)


def linear(x, w, b=None, trans_b=False, out_dtype=jnp.float32):
    """y = x @ w (+ b), or x @ w.T if trans_b. bf16 MXU inputs, f32 accumulation.

    Ragged dims are zero-padded so the Pallas grid tiles exactly: big ragged N
    (e.g. tied lm_head vocab=50257) is padded to a multiple of 512 so tiles stay
    lane-dense ~512 wide; small ragged dims use a full-dim block. Padding is
    zero-filled so the result (after slicing) is exact.
    """
    lead = x.shape[:-1]
    K = x.shape[-1]
    N = w.shape[0] if trans_b else w.shape[-1]
    x2 = x.reshape(-1, K)
    M = x2.shape[0]

    Mp = _round_up(M, 8)
    Kp = K if (K <= _TK_CAP or K % 128 == 0) else _round_up(K, 128)
    Np = N if (N <= _TN_CAP or N % 128 == 0) else _round_up(N, 512)

    x2 = _pad_axis(_pad_axis(x2, 0, Mp), 1, Kp).astype(MXU_DTYPE)
    w2 = w.astype(MXU_DTYPE)
    if trans_b:
        w2 = _pad_axis(_pad_axis(w2, 0, Np), 1, Kp)
    else:
        w2 = _pad_axis(_pad_axis(w2, 0, Kp), 1, Np)
    if b is None:
        b2 = jnp.zeros((1, Np), jnp.float32)
    else:
        b2 = _pad_axis(b.reshape(1, N).astype(jnp.float32), 1, Np)

    f = _get_fused_linear(bool(trans_b), jnp.dtype(out_dtype).name)
    y = f(x2, w2, b2)
    if Mp != M or Np != N:
        y = y[:M, :N]
    return y.reshape(lead + (N,))


# ----------------------------------------------------------------------------
# Fused causal attention straight from the (B, T, 3D) qkv projection
# (scores + mask + softmax + PV) with an analytic-JVP twin kernel.
# No split_heads / merge_heads transposes: head blocks are addressed by the
# BlockSpec over the qkv last dim, and the output is written in (B, T, D).
# ----------------------------------------------------------------------------

def _attn_fwd_kernel(q_ref, k_ref, v_ref, o_ref, *, heads, d, scale):
    t = q_ref.shape[1]
    row = lax.broadcasted_iota(jnp.int32, (t, t), 0)
    col = lax.broadcasted_iota(jnp.int32, (t, t), 1)
    mask = col <= row                                   # one (T,T) mask per grid step
    neg = jnp.float32(-1e9)
    dnT = (((1,), (1,)), ((), ()))                      # contract last dims (q @ k^T)
    dnN = (((1,), (0,)), ((), ()))
    outs = []
    for h in range(heads):
        sl = slice(h * d, (h + 1) * d)
        q = q_ref[0, :, sl]
        k = k_ref[0, :, sl]
        v = v_ref[0, :, sl]
        s = lax.dot_general(q, k, dnT, preferred_element_type=jnp.float32) * scale
        s = jnp.where(mask, s, neg)
        m = jnp.max(s, axis=-1, keepdims=True)
        e = jnp.exp(s - m)
        p = e * pl.reciprocal(jnp.sum(e, axis=-1, keepdims=True), approx=True)
        o = lax.dot_general(p.astype(v.dtype), v, dnN,
                            preferred_element_type=jnp.float32)
        outs.append(o.astype(o_ref.dtype))
    o_ref[0] = jnp.concatenate(outs, axis=-1) if heads > 1 else outs[0]


def _attn_jvp_kernel(q_ref, k_ref, v_ref, dq_ref, dk_ref, dv_ref,
                     o_ref, do_ref, *, heads, d, scale):
    t = q_ref.shape[1]
    row = lax.broadcasted_iota(jnp.int32, (t, t), 0)
    col = lax.broadcasted_iota(jnp.int32, (t, t), 1)
    mask = col <= row
    neg = jnp.float32(-1e9)
    dnT = (((1,), (1,)), ((), ()))
    dnN = (((1,), (0,)), ((), ()))
    outs, douts = [], []
    for h in range(heads):
        sl = slice(h * d, (h + 1) * d)
        q, k, v = q_ref[0, :, sl], k_ref[0, :, sl], v_ref[0, :, sl]
        dq, dk, dv = dq_ref[0, :, sl], dk_ref[0, :, sl], dv_ref[0, :, sl]
        s = lax.dot_general(q, k, dnT, preferred_element_type=jnp.float32) * scale
        ds = (lax.dot_general(dq, k, dnT, preferred_element_type=jnp.float32)
              + lax.dot_general(q, dk, dnT, preferred_element_type=jnp.float32)) * scale
        s = jnp.where(mask, s, neg)
        ds = jnp.where(mask, ds, jnp.float32(0.0))
        m = jnp.max(s, axis=-1, keepdims=True)
        e = jnp.exp(s - m)
        p = e * pl.reciprocal(jnp.sum(e, axis=-1, keepdims=True), approx=True)
        # d softmax: dP = P * (dS - rowsum(P * dS))
        dp = p * (ds - jnp.sum(p * ds, axis=-1, keepdims=True))
        o = lax.dot_general(p.astype(v.dtype), v, dnN,
                            preferred_element_type=jnp.float32)
        do = (lax.dot_general(dp.astype(v.dtype), v, dnN,
                              preferred_element_type=jnp.float32)
              + lax.dot_general(p.astype(dv.dtype), dv, dnN,
                                preferred_element_type=jnp.float32))
        outs.append(o.astype(o_ref.dtype))
        douts.append(do.astype(do_ref.dtype))
    o_ref[0] = jnp.concatenate(outs, axis=-1) if heads > 1 else outs[0]
    do_ref[0] = jnp.concatenate(douts, axis=-1) if heads > 1 else douts[0]


def _attn_head_block(batch, n_head, d, t, is_jvp):
    """Heads per grid step: 128-lane-aligned head blocks, VMEM-budgeted T^2 temps."""
    cands = [hb for hb in range(1, n_head + 1)
             if n_head % hb == 0 and (hb * d) % 128 == 0]
    if not cands:
        # TODO(synk): add an XLA split-heads fallback for head layouts with no
        # 128-lane-aligned head block (e.g. GPT2-XL: n_head=25, d=64).
        raise NotImplementedError(
            f"no 128-lane-aligned head block for n_head={n_head}, head_dim={d}")
    # Budget accounts for the live (T,T) f32 temporaries per head inside the
    # kernel (~3 forward, ~6 in the JVP kernel) plus the per-head I/O slices.
    # TODO(synk): flash-style q-tiling inside the kernel for very long T where
    # even the smallest legal head block exceeds the budget.
    live = 6 if is_jvp else 3
    per_head = live * t * t * 4 + (12 if is_jvp else 6) * t * d * 2
    budget = max(_VMEM_LIMIT // 3, 2 * 1024 * 1024)
    fit = [hb for hb in cands if hb * per_head <= budget]
    hb = max(fit) if fit else min(cands)
    if _IS_SMALL_VMEM and batch * (n_head // hb) < 2:
        # v7x has 2 TensorCores: keep >= 2 grid steps so megacore can shard.
        smaller = [c for c in cands if batch * (n_head // c) >= 2]
        if smaller:
            hb = max(smaller)
    return hb


def _attn_specs(B, T, n_head, d, hb):
    nhb = n_head // hb
    blk = (1, T, hb * d)
    q_spec = pl.BlockSpec(blk, lambda b, j: (b, 0, j))
    k_spec = pl.BlockSpec(blk, lambda b, j: (b, 0, nhb + j))
    v_spec = pl.BlockSpec(blk, lambda b, j: (b, 0, 2 * nhb + j))
    o_spec = pl.BlockSpec(blk, lambda b, j: (b, 0, j))
    grid = (B, nhb)
    cp = pltpu.CompilerParams(dimension_semantics=("parallel", "parallel"),
                              vmem_limit_bytes=_VMEM_LIMIT)
    return grid, (q_spec, k_spec, v_spec), o_spec, cp


def _attn_dims(qkv_shape, n_head):
    B, T, three_d = qkv_shape
    D = three_d // 3
    d = D // n_head
    return B, T, D, d


def _pallas_attention(qkv, n_head):
    B, T, D, d = _attn_dims(qkv.shape, n_head)
    hb = _attn_head_block(B, n_head, d, T, is_jvp=False)
    grid, (qs, ks, vs), os, cp = _attn_specs(B, T, n_head, d, hb)
    return pl.pallas_call(
        functools.partial(_attn_fwd_kernel, heads=hb, d=d, scale=1.0 / math.sqrt(d)),
        out_shape=jax.ShapeDtypeStruct((B, T, D), MXU_DTYPE),
        grid=grid,
        in_specs=[qs, ks, vs],
        out_specs=os,
        compiler_params=cp,
    )(qkv, qkv, qkv)


def _pallas_attention_jvp(qkv, dqkv, n_head):
    B, T, D, d = _attn_dims(qkv.shape, n_head)
    hb = _attn_head_block(B, n_head, d, T, is_jvp=True)
    grid, (qs, ks, vs), os, cp = _attn_specs(B, T, n_head, d, hb)
    out_shape = (jax.ShapeDtypeStruct((B, T, D), MXU_DTYPE),
                 jax.ShapeDtypeStruct((B, T, D), MXU_DTYPE))
    return pl.pallas_call(
        functools.partial(_attn_jvp_kernel, heads=hb, d=d, scale=1.0 / math.sqrt(d)),
        out_shape=out_shape,
        grid=grid,
        in_specs=[qs, ks, vs, qs, ks, vs],
        out_specs=(os, os),
        compiler_params=cp,
    )(qkv, qkv, qkv, dqkv, dqkv, dqkv)


@functools.lru_cache(maxsize=None)
def _get_fused_attention(n_head):
    @jax.custom_jvp
    def f(qkv):
        return _pallas_attention(qkv, n_head)

    def f_jvp(primals, tangents):
        (qkv,) = primals
        (dqkv,) = tangents
        if isinstance(dqkv, SymbolicZero):
            o = _pallas_attention(qkv, n_head)
            return o, jnp.zeros_like(o)
        o, do = _pallas_attention_jvp(qkv, dqkv, n_head)
        return o, do

    f.defjvp(f_jvp, symbolic_zeros=True)
    return f


def fused_attention(qkv, n_head):
    return _get_fused_attention(int(n_head))(qkv)


# ----------------------------------------------------------------------------
# GPT-2 forward (elementwise glue in XLA, all matmuls / attention in Pallas)
# ----------------------------------------------------------------------------

def layer_norm(x, g, b, eps=1e-5):
    mu = jnp.mean(x, axis=-1, keepdims=True)
    var = jnp.mean((x - mu) ** 2, axis=-1, keepdims=True)
    return (x - mu) / jnp.sqrt(var + eps) * g + b


def gelu_new(x):
    return 0.5 * x * (1.0 + jnp.tanh(jnp.sqrt(2.0 / jnp.pi) * (x + 0.044715 * x ** 3)))


def gpt2_logits(params, input_ids, n_head):
    B, T = input_ids.shape
    wte, wpe = params["wte"], params["wpe"]

    h = wte[input_ids] + wpe[None, :T, :]

    for blk in params["blocks"]:
        # --- self-attention (qkv projection emitted bf16, consumed directly) ---
        x = layer_norm(h, blk["ln1_g"], blk["ln1_b"])
        qkv = linear(x, blk["attn_w"], blk["attn_b"], out_dtype=MXU_DTYPE)  # (B,T,3D)
        o = fused_attention(qkv, n_head)                                    # (B,T,D) bf16
        h = h + linear(o, blk["proj_w"], blk["proj_b"])

        # --- MLP ---
        x = layer_norm(h, blk["ln2_g"], blk["ln2_b"])
        x = gelu_new(linear(x, blk["fc_w"], blk["fc_b"]))
        h = h + linear(x, blk["mlp_proj_w"], blk["mlp_proj_b"])

    h = layer_norm(h, params["lnf_g"], params["lnf_b"])
    # tied lm_head: logits = h @ wte.T — vocab is the tiled (and, for real GPT-2
    # vocab=50257, zero-padded) N axis; wte is never transposed/materialized.
    return linear(h, wte, b=None, trans_b=True)


# ----------------------------------------------------------------------------
# Linearized wrapper forward (LinearizedGPT2Wrapper semantics)
# ----------------------------------------------------------------------------

@functools.partial(jax.jit, static_argnames=("n_head", "compute_penalty"))
def linearized_forward(params, params0, input_ids, penalty_input_ids,
                       n_head, compute_penalty):
    dparams = jax.tree_util.tree_map(lambda p, p0: p - p0, params, params0)

    f = lambda p: gpt2_logits(p, input_ids, n_head)
    out, dp = jax.jvp(f, (params0,), (dparams,))
    logits = out + dp

    penalty = None
    if compute_penalty:
        g = lambda p: gpt2_logits(p, penalty_input_ids, n_head)
        _, dp_pen = jax.jvp(g, (params0,), (dparams,))
        penalty = jnp.mean(jnp.linalg.norm(dp_pen, axis=-1))
    return logits, penalty


# ----------------------------------------------------------------------------
# Deterministic parameter initialization (synthetic tiny GPT-2 config)
# ----------------------------------------------------------------------------

def init_gpt2_params(key, vocab_size, n_positions, n_embd, n_layer):
    std = 0.02
    ki = iter(jax.random.split(key, 2 + 4 * n_layer))

    def nrm(shape):
        return std * jax.random.normal(next(ki), shape, jnp.float32)

    p = {
        "wte": nrm((vocab_size, n_embd)),
        "wpe": nrm((n_positions, n_embd)),
        "lnf_g": jnp.ones((n_embd,), jnp.float32),
        "lnf_b": jnp.zeros((n_embd,), jnp.float32),
        "blocks": [],
    }
    for _ in range(n_layer):
        p["blocks"].append({
            "ln1_g": jnp.ones((n_embd,), jnp.float32),
            "ln1_b": jnp.zeros((n_embd,), jnp.float32),
            "attn_w": nrm((n_embd, 3 * n_embd)),
            "attn_b": jnp.zeros((3 * n_embd,), jnp.float32),
            "proj_w": nrm((n_embd, n_embd)),
            "proj_b": jnp.zeros((n_embd,), jnp.float32),
            "ln2_g": jnp.ones((n_embd,), jnp.float32),
            "ln2_b": jnp.zeros((n_embd,), jnp.float32),
            "fc_w": nrm((n_embd, 4 * n_embd)),
            "fc_b": jnp.zeros((4 * n_embd,), jnp.float32),
            "mlp_proj_w": nrm((4 * n_embd, n_embd)),
            "mlp_proj_b": jnp.zeros((n_embd,), jnp.float32),
        })
    return p


def perturb_params(key, params0, scale=0.01):
    leaves, treedef = jax.tree_util.tree_flatten(params0)
    keys = jax.random.split(key, len(leaves))
    new_leaves = [l + scale * jax.random.normal(k, l.shape, l.dtype)
                  for l, k in zip(leaves, keys)]
    return jax.tree_util.tree_unflatten(treedef, new_leaves)


# ----------------------------------------------------------------------------

if __name__ == "__main__":
    # tiny GPT-2 config (head_dim = 128 so head blocks are 128-lane aligned;
    # vocab intentionally ragged to exercise the ragged-N handling)
    VOCAB = 347
    N_POS = 64
    N_EMBD = 256
    N_LAYER = 2
    N_HEAD = 2
    B, T = 2, 8

    root = jax.random.PRNGKey(0)
    k_init, k_delta, k_ids, k_pen = jax.random.split(root, 4)

    params0 = init_gpt2_params(k_init, VOCAB, N_POS, N_EMBD, N_LAYER)  # "init_model"
    params = perturb_params(k_delta, params0)                          # "current"

    input_ids = jax.random.randint(k_ids, (B, T), 0, VOCAB, dtype=jnp.int32)
    penalty_input_ids = jax.random.randint(k_pen, (B, T), 0, VOCAB, dtype=jnp.int32)

    logits, penalty = linearized_forward(
        params, params0, input_ids, penalty_input_ids,
        n_head=N_HEAD, compute_penalty=True,
    )
    logits = jax.block_until_ready(logits)
    penalty = jax.block_until_ready(penalty)

    assert logits.shape == (B, T, VOCAB)
    assert penalty.shape == ()
    assert bool(jnp.all(jnp.isfinite(logits)))
    assert bool(jnp.isfinite(penalty))

    # TODO(synk): generate() (autoregressive decoding loop) is orchestration, not a kernel; omitted.
    print("KERNEL_OK")
</pallas_src>

<mosaic_0001>
module attributes {stable_mosaic.version = 11 : i64} {
  func.func @_linear_jvp_kernel(%arg0: i32, %arg1: i32, %arg2: i32, %arg3: memref<16x256xbf16, #tpu.memory_space<vmem>>, %arg4: memref<16x256xbf16, #tpu.memory_space<vmem>>, %arg5: memref<256x256xbf16, #tpu.memory_space<vmem>>, %arg6: memref<256x256xbf16, #tpu.memory_space<vmem>>, %arg7: memref<1x256xf32, #tpu.memory_space<vmem>>, %arg8: memref<1x256xf32, #tpu.memory_space<vmem>>, %arg9: memref<16x256xbf16, #tpu.memory_space<vmem>>, %arg10: memref<16x256xbf16, #tpu.memory_space<vmem>>, %arg11: memref<16x256xf32, #tpu.memory_space<vmem>>, %arg12: memref<16x256xf32, #tpu.memory_space<vmem>>) attributes {dimension_semantics = [#tpu.dimension_semantics<parallel>, #tpu.dimension_semantics<parallel>, #tpu.dimension_semantics<arbitrary>], iteration_bounds = array<i64: 1, 3, 1>, scalar_prefetch = 0 : i64, scratch_operands = 2 : i64, tpu.core_type = #tpu.core_type<tc>, window_params = [{transform_indices = @transform_0, window_bounds = array<i64: 16, 256>}, {transform_indices = @transform_1, window_bounds = array<i64: 16, 256>}, {transform_indices = @transform_2, window_bounds = array<i64: 256, 256>}, {transform_indices = @transform_3, window_bounds = array<i64: 256, 256>}, {transform_indices = @transform_4, window_bounds = array<i64: 1, 256>}, {transform_indices = @transform_5, window_bounds = array<i64: 1, 256>}, {transform_indices = @transform_6, window_bounds = array<i64: 16, 256>}, {transform_indices = @transform_7, window_bounds = array<i64: 16, 256>}]} {
    %c0_i32 = arith.constant 0 : i32
    %0 = arith.cmpi eq, %arg2, %c0_i32 : i32
    %1 = arith.extui %0 : i1 to i32
    %c0_i32_0 = arith.constant 0 : i32
    %2 = arith.cmpi ne, %1, %c0_i32_0 : i32
    scf.if %2 {
      %cst_20 = arith.constant 0.000000e+00 : f32
      %20 = vector.broadcast %cst_20 : f32 to vector<16x256xf32>
      %c0_21 = arith.constant 0 : index
      %c0_22 = arith.constant 0 : index
      %21 = vector.load %arg11[%c0_21, %c0_22] : memref<16x256xf32, #tpu.memory_space<vmem>>, vector<16x256xf32>
      tpu.vector_store %arg11[%c0_21, %c0_22], %20 {strides = array<i32>} : memref<16x256xf32, #tpu.memory_space<vmem>>, vector<16x256xf32>,
      %cst_23 = arith.constant 0.000000e+00 : f32
      %22 = vector.broadcast %cst_23 : f32 to vector<16x256xf32>
      %c0_24 = arith.constant 0 : index
      %c0_25 = arith.constant 0 : index
      %23 = vector.load %arg12[%c0_24, %c0_25] : memref<16x256xf32, #tpu.memory_space<vmem>>, vector<16x256xf32>
      tpu.vector_store %arg12[%c0_24, %c0_25], %22 {strides = array<i32>} : memref<16x256xf32, #tpu.memory_space<vmem>>, vector<16x256xf32>,
    } else {
    }
    %c0 = arith.constant 0 : index
    %c0_1 = arith.constant 0 : index
    %3 = vector.load %arg3[%c0, %c0_1] : memref<16x256xbf16, #tpu.memory_space<vmem>>, vector<16x256xbf16>
    %c0_2 = arith.constant 0 : index
    %c0_3 = arith.constant 0 : index
    %4 = vector.load %arg4[%c0_2, %c0_3] : memref<16x256xbf16, #tpu.memory_space<vmem>>, vector<16x256xbf16>
    %c0_4 = arith.constant 0 : index
    %c0_5 = arith.constant 0 : index
    %5 = vector.load %arg5[%c0_4, %c0_5] : memref<256x256xbf16, #tpu.memory_space<vmem>>, vector<256x256xbf16>
    %cst = arith.constant dense<0.000000e+00> : vector<16x256xf32>
    %6 = tpu.matmul %3, %5, %cst {dimension_numbers = #tpu.dot_dimension_numbers<[1], [0], [0], [1], [0, 0, 1, 1], [], []>} : vector<16x256xbf16>, vector<256x256xbf16>, vector<16x256xf32> -> vector<16x256xf32>
    %cst_6 = arith.constant dense<0.000000e+00> : vector<16x256xf32>
    %7 = tpu.matmul %4, %5, %cst_6 {dimension_numbers = #tpu.dot_dimension_numbers<[1], [0], [0], [1], [0, 0, 1, 1], [], []>} : vector<16x256xbf16>, vector<256x256xbf16>, vector<16x256xf32> -> vector<16x256xf32>
    %c0_7 = arith.constant 0 : index
    %c0_8 = arith.constant 0 : index
    %8 = vector.load %arg6[%c0_7, %c0_8] : memref<256x256xbf16, #tpu.memory_space<vmem>>, vector<256x256xbf16>
    %cst_9 = arith.constant dense<0.000000e+00> : vector<16x256xf32>
    %9 = tpu.matmul %3, %8, %cst_9 {dimension_numbers = #tpu.dot_dimension_numbers<[1], [0], [0], [1], [0, 0, 1, 1], [], []>} : vector<16x256xbf16>, vector<256x256xbf16>, vector<16x256xf32> -> vector<16x256xf32>
    %c0_10 = arith.constant 0 : index
    %c0_11 = arith.constant 0 : index
    %10 = vector.load %arg11[%c0_10, %c0_11] : memref<16x256xf32, #tpu.memory_space<vmem>>, vector<16x256xf32>
    %11 = arith.addf %10, %6 : vector<16x256xf32>
    %c0_12 = arith.constant 0 : index
    %c0_13 = arith.constant 0 : index
    %12 = vector.load %arg11[%c0_12, %c0_13] : memref<16x256xf32, #tpu.memory_space<vmem>>, vector<16x256xf32>
    tpu.vector_store %arg11[%c0_12, %c0_13], %11 {strides = array<i32>} : memref<16x256xf32, #tpu.memory_space<vmem>>, vector<16x256xf32>,
    %c0_14 = arith.constant 0 : index
    %c0_15 = arith.constant 0 : index
    %13 = vector.load %arg12[%c0_14, %c0_15] : memref<16x256xf32, #tpu.memory_space<vmem>>, vector<16x256xf32>
    %14 = arith.addf %7, %9 : vector<16x256xf32>
    %15 = arith.addf %13, %14 : vector<16x256xf32>
    %c0_16 = arith.constant 0 : index
    %c0_17 = arith.constant 0 : index
    %16 = vector.load %arg12[%c0_16, %c0_17] : memref<16x256xf32, #tpu.memory_space<vmem>>, vector<16x256xf32>
    tpu.vector_store %arg12[%c0_16, %c0_17], %15 {strides = array<i32>} : memref<16x256xf32, #tpu.memory_space<vmem>>, vector<16x256xf32>,
    %c0_i32_18 = arith.constant 0 : i32
    %17 = arith.cmpi eq, %arg2, %c0_i32_18 : i32
    %18 = arith.extui %17 : i1 to i32
    %c0_i32_19 = arith.constant 0 : i32
    %19 = arith.cmpi ne, %18, %c0_i32_19 : i32
    scf.if %19 {
      %c0_20 = arith.constant 0 : index
      %c0_21 = arith.constant 0 : index
      %20 = vector.load %arg11[%c0_20, %c0_21] : memref<16x256xf32, #tpu.memory_space<vmem>>, vector<16x256xf32>
      %c0_22 = arith.constant 0 : index
      %c0_23 = arith.constant 0 : index
      %21 = vector.load %arg7[%c0_22, %c0_23] : memref<1x256xf32, #tpu.memory_space<vmem>>, vector<1x256xf32>
      %22 = vector.broadcast %21 : vector<1x256xf32> to vector<16x256xf32>
      %23 = arith.addf %20, %22 : vector<16x256xf32>
      %24 = arith.truncf %23 : vector<16x256xf32> to vector<16x256xbf16>
      %c0_24 = arith.constant 0 : index
      %c0_25 = arith.constant 0 : index
      %25 = vector.load %arg9[%c0_24, %c0_25] : memref<16x256xbf16, #tpu.memory_space<vmem>>, vector<16x256xbf16>
      tpu.vector_store %arg9[%c0_24, %c0_25], %24 {strides = array<i32>} : memref<16x256xbf16, #tpu.memory_space<vmem>>, vector<16x256xbf16>,
      %c0_26 = arith.constant 0 : index
      %c0_27 = arith.constant 0 : index
      %26 = vector.load %arg12[%c0_26, %c0_27] : memref<16x256xf32, #tpu.memory_space<vmem>>, vector<16x256xf32>
      %c0_28 = arith.constant 0 : index
      %c0_29 = arith.constant 0 : index
      %27 = vector.load %arg8[%c0_28, %c0_29] : memref<1x256xf32, #tpu.memory_space<vmem>>, vector<1x256xf32>
      %28 = vector.broadcast %27 : vector<1x256xf32> to vector<16x256xf32>
      %29 = arith.addf %26, %28 : vector<16x256xf32>
      %30 = arith.truncf %29 : vector<16x256xf32> to vector<16x256xbf16>
      %c0_30 = arith.constant 0 : index
      %c0_31 = arith.constant 0 : index
      %31 = vector.load %arg10[%c0_30, %c0_31] : memref<16x256xbf16, #tpu.memory_space<vmem>>, vector<16x256xbf16>
      tpu.vector_store %arg10[%c0_30, %c0_31], %30 {strides = array<i32>} : memref<16x256xbf16, #tpu.memory_space<vmem>>, vector<16x256xbf16>,
    } else {
    }
    return
  }
  func.func @transform_0(%arg0: i32, %arg1: i32, %arg2: i32) -> (i32, i32) {
    %c0_i32 = arith.constant 0 : i32
    return %arg0, %arg2 : i32, i32
  }
  func.func @transform_1(%arg0: i32, %arg1: i32, %arg2: i32) -> (i32, i32) {
    %c0_i32 = arith.constant 0 : i32
    return %arg0, %arg2 : i32, i32
  }
  func.func @transform_2(%arg0: i32, %arg1: i32, %arg2: i32) -> (i32, i32) {
    %c0_i32 = arith.constant 0 : i32
    return %arg2, %arg1 : i32, i32
  }
  func.func @transform_3(%arg0: i32, %arg1: i32, %arg2: i32) -> (i32, i32) {
    %c0_i32 = arith.constant 0 : i32
    return %arg2, %arg1 : i32, i32
  }
  func.func @transform_4(%arg0: i32, %arg1: i32, %arg2: i32) -> (i32, i32) {
    %c0_i32 = arith.constant 0 : i32
    %c0_i32_0 = arith.constant 0 : i32
    return %c0_i32, %arg1 : i32, i32
  }
  func.func @transform_5(%arg0: i32, %arg1: i32, %arg2: i32) -> (i32, i32) {
    %c0_i32 = arith.constant 0 : i32
    %c0_i32_0 = arith.constant 0 : i32
    return %c0_i32, %arg1 : i32, i32
  }
  func.func @transform_6(%arg0: i32, %arg1: i32, %arg2: i32) -> (i32, i32) {
    %c0_i32 = arith.constant 0 : i32
    return %arg0, %arg1 : i32, i32
  }
  func.func @transform_7(%arg0: i32, %arg1: i32, %arg2: i32) -> (i32, i32) {
    %c0_i32 = arith.constant 0 : i32
    return %arg0, %arg1 : i32, i32
  }
}

module attributes {stable_mosaic.version = 11 : i64} {
  func.func @_attn_jvp_kernel(%arg0: i32, %arg1: i32, %arg2: memref<1x8x256xbf16, #tpu.memory_space<vmem>>, %arg3: memref<1x8x256xbf16, #tpu.memory_space<vmem>>, %arg4: memref<1x8x256xbf16, #tpu.memory_space<vmem>>, %arg5: memref<1x8x256xbf16, #tpu.memory_space<vmem>>, %arg6: memref<1x8x256xbf16, #tpu.memory_space<vmem>>, %arg7: memref<1x8x256xbf16, #tpu.memory_space<vmem>>, %arg8: memref<1x8x256xbf16, #tpu.memory_space<vmem>>, %arg9: memref<1x8x256xbf16, #tpu.memory_space<vmem>>) attributes {dimension_semantics = [#tpu.dimension_semantics<parallel>, #tpu.dimension_semantics<parallel>], iteration_bounds = array<i64: 2, 1>, scalar_prefetch = 0 : i64, scratch_operands = 0 : i64, tpu.core_type = #tpu.core_type<tc>, window_params = [{transform_indices = @transform_0, window_bounds = array<i64: 1, 8, 256>}, {transform_indices = @transform_1, window_bounds = array<i64: 1, 8, 256>}, {transform_indices = @transform_2, window_bounds = array<i64: 1, 8, 256>}, {transform_indices = @transform_3, window_bounds = array<i64: 1, 8, 256>}, {transform_indices = @transform_4, window_bounds = array<i64: 1, 8, 256>}, {transform_indices = @transform_5, window_bounds = array<i64: 1, 8, 256>}, {transform_indices = @transform_6, window_bounds = array<i64: 1, 8, 256>}, {transform_indices = @transform_7, window_bounds = array<i64: 1, 8, 256>}]} {
    %0 = tpu.iota {dimensions = array<i32: 0>} : vector<8x8xi32>
    %1 = tpu.iota {dimensions = array<i32: 1>} : vector<8x8xi32>
    %2 = arith.cmpi sle, %1, %0 : vector<8x8xi32>
    %c0 = arith.constant 0 : index
    %c0_0 = arith.constant 0 : index
    %c0_1 = arith.constant 0 : index
    %3 = vector.load %arg2[%c0, %c0_0, %c0_1] : memref<1x8x256xbf16, #tpu.memory_space<vmem>>, vector<1x8x128xbf16>
    %4 = vector.shape_cast %3 : vector<1x8x128xbf16> to vector<8x128xbf16>
    %c0_2 = arith.constant 0 : index
    %c0_3 = arith.constant 0 : index
    %c0_4 = arith.constant 0 : index
    %5 = vector.load %arg3[%c0_2, %c0_3, %c0_4] : memref<1x8x256xbf16, #tpu.memory_space<vmem>>, vector<1x8x128xbf16>
    %6 = vector.shape_cast %5 : vector<1x8x128xbf16> to vector<8x128xbf16>
    %c0_5 = arith.constant 0 : index
    %c0_6 = arith.constant 0 : index
    %c0_7 = arith.constant 0 : index
    %7 = vector.load %arg4[%c0_5, %c0_6, %c0_7] : memref<1x8x256xbf16, #tpu.memory_space<vmem>>, vector<1x8x128xbf16>
    %8 = vector.shape_cast %7 : vector<1x8x128xbf16> to vector<8x128xbf16>
    %c0_8 = arith.constant 0 : index
    %c0_9 = arith.constant 0 : index
    %c0_10 = arith.constant 0 : index
    %9 = vector.load %arg5[%c0_8, %c0_9, %c0_10] : memref<1x8x256xbf16, #tpu.memory_space<vmem>>, vector<1x8x128xbf16>
    %10 = vector.shape_cast %9 : vector<1x8x128xbf16> to vector<8x128xbf16>
    %c0_11 = arith.constant 0 : index
    %c0_12 = arith.constant 0 : index
    %c0_13 = arith.constant 0 : index
    %11 = vector.load %arg6[%c0_11, %c0_12, %c0_13] : memref<1x8x256xbf16, #tpu.memory_space<vmem>>, vector<1x8x128xbf16>
    %12 = vector.shape_cast %11 : vector<1x8x128xbf16> to vector<8x128xbf16>
    %c0_14 = arith.constant 0 : index
    %c0_15 = arith.constant 0 : index
    %c0_16 = arith.constant 0 : index
    %13 = vector.load %arg7[%c0_14, %c0_15, %c0_16] : memref<1x8x256xbf16, #tpu.memory_space<vmem>>, vector<1x8x128xbf16>
    %14 = vector.shape_cast %13 : vector<1x8x128xbf16> to vector<8x128xbf16>
    %cst = arith.constant dense<0.000000e+00> : vector<8x8xf32>
    %15 = tpu.matmul %4, %6, %cst {dimension_numbers = #tpu.dot_dimension_numbers<[1], [1], [0], [0], [0, 0, 1, 0], [], []>} : vector<8x128xbf16>, vector<8x128xbf16>, vector<8x8xf32> -> vector<8x8xf32>
    %cst_17 = arith.constant 0.0883883461 : f32
    %16 = vector.broadcast %cst_17 : f32 to vector<8x8xf32>
    %17 = arith.mulf %15, %16 : vector<8x8xf32>
    %cst_18 = arith.constant dense<0.000000e+00> : vector<8x8xf32>
    %18 = tpu.matmul %10, %6, %cst_18 {dimension_numbers = #tpu.dot_dimension_numbers<[1], [1], [0], [0], [0, 0, 1, 0], [], []>} : vector<8x128xbf16>, vector<8x128xbf16>, vector<8x8xf32> -> vector<8x8xf32>
    %cst_19 = arith.constant dense<0.000000e+00> : vector<8x8xf32>
    %19 = tpu.matmul %4, %12, %cst_19 {dimension_numbers = #tpu.dot_dimension_numbers<[1], [1], [0], [0], [0, 0, 1, 0], [], []>} : vector<8x128xbf16>, vector<8x128xbf16>, vector<8x8xf32> -> vector<8x8xf32>
    %20 = arith.addf %18, %19 : vector<8x8xf32>
    %cst_20 = arith.constant 0.0883883461 : f32
    %21 = vector.broadcast %cst_20 : f32 to vector<8x8xf32>
    %22 = arith.mulf %20, %21 : vector<8x8xf32>
    %cst_21 = arith.constant -1.000000e+09 : f32
    %23 = vector.broadcast %cst_21 : f32 to vector<8x8xf32>
    %24 = arith.select %2, %17, %23 : vector<8x8xi1>, vector<8x8xf32>
    %cst_22 = arith.constant 0.000000e+00 : f32
    %25 = vector.broadcast %cst_22 : f32 to vector<8x8xf32>
    %26 = arith.select %2, %22, %25 : vector<8x8xi1>, vector<8x8xf32>
    %cst_23 = arith.constant dense<0xFF800000> : vector<8xf32>
    %27 = vector.multi_reduction <maximumf>, %24, %cst_23 [1] : vector<8x8xf32> to vector<8xf32>
    %28 = vector.shape_cast %27 : vector<8xf32> to vector<8x1xf32>
    %29 = vector.broadcast %28 : vector<8x1xf32> to vector<8x8xf32>
    %30 = arith.subf %24, %29 : vector<8x8xf32>
    %31 = math.exp %30 : vector<8x8xf32>
    %cst_24 = arith.constant dense<0.000000e+00> : vector<8xf32>
    %32 = vector.multi_reduction <add>, %31, %cst_24 [1] : vector<8x8xf32> to vector<8xf32>
    %33 = vector.shape_cast %32 : vector<8xf32> to vector<8x1xf32>
    %34 = tpu.reciprocal %33 {approx = true} : vector<8x1xf32> -> vector<8x1xf32>
    %35 = vector.broadcast %34 : vector<8x1xf32> to vector<8x8xf32>
    %36 = arith.mulf %31, %35 : vector<8x8xf32>
    %37 = arith.mulf %36, %26 : vector<8x8xf32>
    %cst_25 = arith.constant dense<0.000000e+00> : vector<8xf32>
    %38 = vector.multi_reduction <add>, %37, %cst_25 [1] : vector<8x8xf32> to vector<8xf32>
    %39 = vector.shape_cast %38 : vector<8xf32> to vector<8x1xf32>
    %40 = vector.broadcast %39 : vector<8x1xf32> to vector<8x8xf32>
    %41 = arith.subf %26, %40 : vector<8x8xf32>
    %42 = arith.mulf %36, %41 : vector<8x8xf32>
    %43 = arith.truncf %36 : vector<8x8xf32> to vector<8x8xbf16>
    %cst_26 = arith.constant dense<0.000000e+00> : vector<8x128xf32>
    %44 = tpu.matmul %43, %8, %cst_26 {dimension_numbers = #tpu.dot_dimension_numbers<[1], [0], [0], [1], [0, 0, 1, 1], [], []>} : vector<8x8xbf16>, vector<8x128xbf16>, vector<8x128xf32> -> vector<8x128xf32>
    %45 = arith.truncf %42 : vector<8x8xf32> to vector<8x8xbf16>
    %cst_27 = arith.constant dense<0.000000e+00> : vector<8x128xf32>
    %46 = tpu.matmul %45, %8, %cst_27 {dimension_numbers = #tpu.dot_dimension_numbers<[1], [0], [0], [1], [0, 0, 1, 1], [], []>} : vector<8x8xbf16>, vector<8x128xbf16>, vector<8x128xf32> -> vector<8x128xf32>
    %47 = arith.truncf %36 : vector<8x8xf32> to vector<8x8xbf16>
    %cst_28 = arith.constant dense<0.000000e+00> : vector<8x128xf32>
    %48 = tpu.matmul %47, %14, %cst_28 {dimension_numbers = #tpu.dot_dimension_numbers<[1], [0], [0], [1], [0, 0, 1, 1], [], []>} : vector<8x8xbf16>, vector<8x128xbf16>, vector<8x128xf32> -> vector<8x128xf32>
    %49 = arith.addf %46, %48 : vector<8x128xf32>
    %50 = arith.truncf %44 : vector<8x128xf32> to vector<8x128xbf16>
    %51 = arith.truncf %49 : vector<8x128xf32> to vector<8x128xbf16>
    %c0_29 = arith.constant 0 : index
    %c0_30 = arith.constant 0 : index
    %c128 = arith.constant 128 : index
    %52 = vector.load %arg2[%c0_29, %c0_30, %c128] : memref<1x8x256xbf16, #tpu.memory_space<vmem>>, vector<1x8x128xbf16>
    %53 = vector.shape_cast %52 : vector<1x8x128xbf16> to vector<8x128xbf16>
    %c0_31 = arith.constant 0 : index
    %c0_32 = arith.constant 0 : index
    %c128_33 = arith.constant 128 : index
    %54 = vector.load %arg3[%c0_31, %c0_32, %c128_33] : memref<1x8x256xbf16, #tpu.memory_space<vmem>>, vector<1x8x128xbf16>
    %55 = vector.shape_cast %54 : vector<1x8x128xbf16> to vector<8x128xbf16>
    %c0_34 = arith.constant 0 : index
    %c0_35 = arith.constant 0 : index
    %c128_36 = arith.constant 128 : index
    %56 = vector.load %arg4[%c0_34, %c0_35, %c128_36] : memref<1x8x256xbf16, #tpu.memory_space<vmem>>, vector<1x8x128xbf16>
    %57 = vector.shape_cast %56 : vector<1x8x128xbf16> to vector<8x128xbf16>
    %c0_37 = arith.constant 0 : index
    %c0_38 = arith.constant 0 : index
    %c128_39 = arith.constant 128 : index
    %58 = vector.load %arg5[%c0_37, %c0_38, %c128_39] : memref<1x8x256xbf16, #tpu.memory_space<vmem>>, vector<1x8x128xbf16>
    %59 = vector.shape_cast %58 : vector<1x8x128xbf16> to vector<8x128xbf16>
    %c0_40 = arith.constant 0 : index
    %c0_41 = arith.constant 0 : index
    %c128_42 = arith.constant 128 : index
    %60 = vector.load %arg6[%c0_40, %c0_41, %c128_42] : memref<1x8x256xbf16, #tpu.memory_space<vmem>>, vector<1x8x128xbf16>
    %61 = vector.shape_cast %60 : vector<1x8x128xbf16> to vector<8x128xbf16>
    %c0_43 = arith.constant 0 : index
    %c0_44 = arith.constant 0 : index
    %c128_45 = arith.constant 128 : index
    %62 = vector.load %arg7[%c0_43, %c0_44, %c128_45] : memref<1x8x256xbf16, #tpu.memory_space<vmem>>, vector<1x8x128xbf16>
    %63 = vector.shape_cast %62 : vector<1x8x128xbf16> to vector<8x128xbf16>
    %cst_46 = arith.constant dense<0.000000e+00> : vector<8x8xf32>
    %64 = tpu.matmul %53, %55, %cst_46 {dimension_numbers = #tpu.dot_dimension_numbers<[1], [1], [0], [0], [0, 0, 1, 0], [], []>} : vector<8x128xbf16>, vector<8x128xbf16>, vector<8x8xf32> -> vector<8x8xf32>
    %cst_47 = arith.constant 0.0883883461 : f32
    %65 = vector.broadcast %cst_47 : f32 to vector<8x8xf32>
    %66 = arith.mulf %64, %65 : vector<8x8xf32>
    %cst_48 = arith.constant dense<0.000000e+00> : vector<8x8xf32>
    %67 = tpu.matmul %59, %55, %cst_48 {dimension_numbers = #tpu.dot_dimension_numbers<[1], [1], [0], [0], [0, 0, 1, 0], [], []>} : vector<8x128xbf16>, vector<8x128xbf16>, vector<8x8xf32> -> vector<8x8xf32>
    %cst_49 = arith.constant dense<0.000000e+00> : vector<8x8xf32>
    %68 = tpu.matmul %53, %61, %cst_49 {dimension_numbers = #tpu.dot_dimension_numbers<[1], [1], [0], [0], [0, 0, 1, 0], [], []>} : vector<8x128xbf16>, vector<8x128xbf16>, vector<8x8xf32> -> vector<8x8xf32>
    %69 = arith.addf %67, %68 : vector<8x8xf32>
    %cst_50 = arith.constant 0.0883883461 : f32
    %70 = vector.broadcast %cst_50 : f32 to vector<8x8xf32>
    %71 = arith.mulf %69, %70 : vector<8x8xf32>
    %cst_51 = arith.constant -1.000000e+09 : f32
    %72 = vector.broadcast %cst_51 : f32 to vector<8x8xf32>
    %73 = arith.select %2, %66, %72 : vector<8x8xi1>, vector<8x8xf32>
    %cst_52 = arith.constant 0.000000e+00 : f32
    %74 = vector.broadcast %cst_52 : f32 to vector<8x8xf32>
    %75 = arith.select %2, %71, %74 : vector<8x8xi1>, vector<8x8xf32>
    %cst_53 = arith.constant dense<0xFF800000> : vector<8xf32>
    %76 = vector.multi_reduction <maximumf>, %73, %cst_53 [1] : vector<8x8xf32> to vector<8xf32>
    %77 = vector.shape_cast %76 : vector<8xf32> to vector<8x1xf32>
    %78 = vector.broadcast %77 : vector<8x1xf32> to vector<8x8xf32>
    %79 = arith.subf %73, %78 : vector<8x8xf32>
    %80 = math.exp %79 : vector<8x8xf32>
    %cst_54 = arith.constant dense<0.000000e+00> : vector<8xf32>
    %81 = vector.multi_reduction <add>, %80, %cst_54 [1] : vector<8x8xf32> to vector<8xf32>
    %82 = vector.shape_cast %81 : vector<8xf32> to vector<8x1xf32>
    %83 = tpu.reciprocal %82 {approx = true} : vector<8x1xf32> -> vector<8x1xf32>
    %84 = vector.broadcast %83 : vector<8x1xf32> to vector<8x8xf32>
    %85 = arith.mulf %80, %84 : vector<8x8xf32>
    %86 = arith.mulf %85, %75 : vector<8x8xf32>
    %cst_55 = arith.constant dense<0.000000e+00> : vector<8xf32>
    %87 = vector.multi_reduction <add>, %86, %cst_55 [1] : vector<8x8xf32> to vector<8xf32>
    %88 = vector.shape_cast %87 : vector<8xf32> to vector<8x1xf32>
    %89 = vector.broadcast %88 : vector<8x1xf32> to vector<8x8xf32>
    %90 = arith.subf %75, %89 : vector<8x8xf32>
    %91 = arith.mulf %85, %90 : vector<8x8xf32>
    %92 = arith.truncf %85 : vector<8x8xf32> to vector<8x8xbf16>
    %cst_56 = arith.constant dense<0.000000e+00> : vector<8x128xf32>
    %93 = tpu.matmul %92, %57, %cst_56 {dimension_numbers = #tpu.dot_dimension_numbers<[1], [0], [0], [1], [0, 0, 1, 1], [], []>} : vector<8x8xbf16>, vector<8x128xbf16>, vector<8x128xf32> -> vector<8x128xf32>
    %94 = arith.truncf %91 : vector<8x8xf32> to vector<8x8xbf16>
    %cst_57 = arith.constant dense<0.000000e+00> : vector<8x128xf32>
    %95 = tpu.matmul %94, %57, %cst_57 {dimension_numbers = #tpu.dot_dimension_numbers<[1], [0], [0], [1], [0, 0, 1, 1], [], []>} : vector<8x8xbf16>, vector<8x128xbf16>, vector<8x128xf32> -> vector<8x128xf32>
    %96 = arith.truncf %85 : vector<8x8xf32> to vector<8x8xbf16>
    %cst_58 = arith.constant dense<0.000000e+00> : vector<8x128xf32>
    %97 = tpu.matmul %96, %63, %cst_58 {dimension_numbers = #tpu.dot_dimension_numbers<[1], [0], [0], [1], [0, 0, 1, 1], [], []>} : vector<8x8xbf16>, vector<8x128xbf16>, vector<8x128xf32> -> vector<8x128xf32>
    %98 = arith.addf %95, %97 : vector<8x128xf32>
    %99 = arith.truncf %93 : vector<8x128xf32> to vector<8x128xbf16>
    %100 = arith.truncf %98 : vector<8x128xf32> to vector<8x128xbf16>
    %101 = tpu.concatenate %50, %99 in 1 : vector<8x128xbf16>, vector<8x128xbf16> -> vector<8x256xbf16>
    %c0_59 = arith.constant 0 : index
    %c0_60 = arith.constant 0 : index
    %c0_61 = arith.constant 0 : index
    %102 = vector.load %arg8[%c0_59, %c0_60, %c0_61] : memref<1x8x256xbf16, #tpu.memory_space<vmem>>, vector<1x8x256xbf16>
    %103 = vector.shape_cast %102 : vector<1x8x256xbf16> to vector<8x256xbf16>
    %104 = vector.shape_cast %101 : vector<8x256xbf16> to vector<1x8x256xbf16>
    tpu.vector_store %arg8[%c0_59, %c0_60, %c0_61], %104 {strides = array<i32>} : memref<1x8x256xbf16, #tpu.memory_space<vmem>>, vector<1x8x256xbf16>,
    %105 = tpu.concatenate %51, %100 in 1 : vector<8x128xbf16>, vector<8x128xbf16> -> vector<8x256xbf16>
    %c0_62 = arith.constant 0 : index
    %c0_63 = arith.constant 0 : index
    %c0_64 = arith.constant 0 : index
    %106 = vector.load %arg9[%c0_62, %c0_63, %c0_64] : memref<1x8x256xbf16, #tpu.memory_space<vmem>>, vector<1x8x256xbf16>
    %107 = vector.shape_cast %106 : vector<1x8x256xbf16> to vector<8x256xbf16>
    %108 = vector.shape_cast %105 : vector<8x256xbf16> to vector<1x8x256xbf16>
    tpu.vector_store %arg9[%c0_62, %c0_63, %c0_64], %108 {strides = array<i32>} : memref<1x8x256xbf16, #tpu.memory_space<vmem>>, vector<1x8x256xbf16>,
    return
  }
  func.func @transform_0(%arg0: i32, %arg1: i32) -> (i32, i32, i32) {
    %c0_i32 = arith.constant 0 : i32
    %c0_i32_0 = arith.constant 0 : i32
    return %arg0, %c0_i32, %arg1 : i32, i32, i32
  }
  func.func @transform_1(%arg0: i32, %arg1: i32) -> (i32, i32, i32) {
    %c1_i32 = arith.constant 1 : i32
    %0 = arith.addi %c1_i32, %arg1 : i32
    %c0_i32 = arith.constant 0 : i32
    %c0_i32_0 = arith.constant 0 : i32
    return %arg0, %c0_i32, %0 : i32, i32, i32
  }
  func.func @transform_2(%arg0: i32, %arg1: i32) -> (i32, i32, i32) {
    %c2_i32 = arith.constant 2 : i32
    %0 = arith.addi %c2_i32, %arg1 : i32
    %c0_i32 = arith.constant 0 : i32
    %c0_i32_0 = arith.constant 0 : i32
    return %arg0, %c0_i32, %0 : i32, i32, i32
  }
  func.func @transform_3(%arg0: i32, %arg1: i32) -> (i32, i32, i32) {
    %c0_i32 = arith.constant 0 : i32
    %c0_i32_0 = arith.constant 0 : i32
    return %arg0, %c0_i32, %arg1 : i32, i32, i32
  }
  func.func @transform_4(%arg0: i32, %arg1: i32) -> (i32, i32, i32) {
    %c1_i32 = arith.constant 1 : i32
    %0 = arith.addi %c1_i32, %arg1 : i32
    %c0_i32 = arith.constant 0 : i32
    %c0_i32_0 = arith.constant 0 : i32
    return %arg0, %c0_i32, %0 : i32, i32, i32
  }
  func.func @transform_5(%arg0: i32, %arg1: i32) -> (i32, i32, i32) {
    %c2_i32 = arith.constant 2 : i32
    %0 = arith.addi %c2_i32, %arg1 : i32
    %c0_i32 = arith.constant 0 : i32
    %c0_i32_0 = arith.constant 0 : i32
    return %arg0, %c0_i32, %0 : i32, i32, i32
  }
  func.func @transform_6(%arg0: i32, %arg1: i32) -> (i32, i32, i32) {
    %c0_i32 = arith.constant 0 : i32
    %c0_i32_0 = arith.constant 0 : i32
    return %arg0, %c0_i32, %arg1 : i32, i32, i32
  }
  func.func @transform_7(%arg0: i32, %arg1: i32) -> (i32, i32, i32) {
    %c0_i32 = arith.constant 0 : i32
    %c0_i32_0 = arith.constant 0 : i32
    return %arg0, %c0_i32, %arg1 : i32, i32, i32
  }
}

module attributes {stable_mosaic.version = 11 : i64} {
  func.func @_linear_jvp_kernel(%arg0: i32, %arg1: i32, %arg2: i32, %arg3: memref<16x256xbf16, #tpu.memory_space<vmem>>, %arg4: memref<16x256xbf16, #tpu.memory_space<vmem>>, %arg5: memref<256x256xbf16, #tpu.memory_space<vmem>>, %arg6: memref<256x256xbf16, #tpu.memory_space<vmem>>, %arg7: memref<1x256xf32, #tpu.memory_space<vmem>>, %arg8: memref<1x256xf32, #tpu.memory_space<vmem>>, %arg9: memref<16x256xf32, #tpu.memory_space<vmem>>, %arg10: memref<16x256xf32, #tpu.memory_space<vmem>>, %arg11: memref<16x256xf32, #tpu.memory_space<vmem>>, %arg12: memref<16x256xf32, #tpu.memory_space<vmem>>) attributes {dimension_semantics = [#tpu.dimension_semantics<parallel>, #tpu.dimension_semantics<parallel>, #tpu.dimension_semantics<arbitrary>], iteration_bounds = array<i64: 1, 1, 1>, scalar_prefetch = 0 : i64, scratch_operands = 2 : i64, tpu.core_type = #tpu.core_type<tc>, window_params = [{transform_indices = @transform_0, window_bounds = array<i64: 16, 256>}, {transform_indices = @transform_1, window_bounds = array<i64: 16, 256>}, {transform_indices = @transform_2, window_bounds = array<i64: 256, 256>}, {transform_indices = @transform_3, window_bounds = array<i64: 256, 256>}, {transform_indices = @transform_4, window_bounds = array<i64: 1, 256>}, {transform_indices = @transform_5, window_bounds = array<i64: 1, 256>}, {transform_indices = @transform_6, window_bounds = array<i64: 16, 256>}, {transform_indices = @transform_7, window_bounds = array<i64: 16, 256>}]} {
    %c0_i32 = arith.constant 0 : i32
    %0 = arith.cmpi eq, %arg2, %c0_i32 : i32
    %1 = arith.extui %0 : i1 to i32
    %c0_i32_0 = arith.constant 0 : i32
    %2 = arith.cmpi ne, %1, %c0_i32_0 : i32
    scf.if %2 {
      %cst_20 = arith.constant 0.000000e+00 : f32
      %20 = vector.broadcast %cst_20 : f32 to vector<16x256xf32>
      %c0_21 = arith.constant 0 : index
      %c0_22 = arith.constant 0 : index
      %21 = vector.load %arg11[%c0_21, %c0_22] : memref<16x256xf32, #tpu.memory_space<vmem>>, vector<16x256xf32>
      tpu.vector_store %arg11[%c0_21, %c0_22], %20 {strides = array<i32>} : memref<16x256xf32, #tpu.memory_space<vmem>>, vector<16x256xf32>,
      %cst_23 = arith.constant 0.000000e+00 : f32
      %22 = vector.broadcast %cst_23 : f32 to vector<16x256xf32>
      %c0_24 = arith.constant 0 : index
      %c0_25 = arith.constant 0 : index
      %23 = vector.load %arg12[%c0_24, %c0_25] : memref<16x256xf32, #tpu.memory_space<vmem>>, vector<16x256xf32>
      tpu.vector_store %arg12[%c0_24, %c0_25], %22 {strides = array<i32>} : memref<16x256xf32, #tpu.memory_space<vmem>>, vector<16x256xf32>,
    } else {
    }
    %c0 = arith.constant 0 : index
    %c0_1 = arith.constant 0 : index
    %3 = vector.load %arg3[%c0, %c0_1] : memref<16x256xbf16, #tpu.memory_space<vmem>>, vector<16x256xbf16>
    %c0_2 = arith.constant 0 : index
    %c0_3 = arith.constant 0 : index
    %4 = vector.load %arg4[%c0_2, %c0_3] : memref<16x256xbf16, #tpu.memory_space<vmem>>, vector<16x256xbf16>
    %c0_4 = arith.constant 0 : index
    %c0_5 = arith.constant 0 : index
    %5 = vector.load %arg5[%c0_4, %c0_5] : memref<256x256xbf16, #tpu.memory_space<vmem>>, vector<256x256xbf16>
    %cst = arith.constant dense<0.000000e+00> : vector<16x256xf32>
    %6 = tpu.matmul %3, %5, %cst {dimension_numbers = #tpu.dot_dimension_numbers<[1], [0], [0], [1], [0, 0, 1, 1], [], []>} : vector<16x256xbf16>, vector<256x256xbf16>, vector<16x256xf32> -> vector<16x256xf32>
    %cst_6 = arith.constant dense<0.000000e+00> : vector<16x256xf32>
    %7 = tpu.matmul %4, %5, %cst_6 {dimension_numbers = #tpu.dot_dimension_numbers<[1], [0], [0], [1], [0, 0, 1, 1], [], []>} : vector<16x256xbf16>, vector<256x256xbf16>, vector<16x256xf32> -> vector<16x256xf32>
    %c0_7 = arith.constant 0 : index
    %c0_8 = arith.constant 0 : index
    %8 = vector.load %arg6[%c0_7, %c0_8] : memref<256x256xbf16, #tpu.memory_space<vmem>>, vector<256x256xbf16>
    %cst_9 = arith.constant dense<0.000000e+00> : vector<16x256xf32>
    %9 = tpu.matmul %3, %8, %cst_9 {dimension_numbers = #tpu.dot_dimension_numbers<[1], [0], [0], [1], [0, 0, 1, 1], [], []>} : vector<16x256xbf16>, vector<256x256xbf16>, vector<16x256xf32> -> vector<16x256xf32>
    %c0_10 = arith.constant 0 : index
    %c0_11 = arith.constant 0 : index
    %10 = vector.load %arg11[%c0_10, %c0_11] : memref<16x256xf32, #tpu.memory_space<vmem>>, vector<16x256xf32>
    %11 = arith.addf %10, %6 : vector<16x256xf32>
    %c0_12 = arith.constant 0 : index
    %c0_13 = arith.constant 0 : index
    %12 = vector.load %arg11[%c0_12, %c0_13] : memref<16x256xf32, #tpu.memory_space<vmem>>, vector<16x256xf32>
    tpu.vector_store %arg11[%c0_12, %c0_13], %11 {strides = array<i32>} : memref<16x256xf32, #tpu.memory_space<vmem>>, vector<16x256xf32>,
    %c0_14 = arith.constant 0 : index
    %c0_15 = arith.constant 0 : index
    %13 = vector.load %arg12[%c0_14, %c0_15] : memref<16x256xf32, #tpu.memory_space<vmem>>, vector<16x256xf32>
    %14 = arith.addf %7, %9 : vector<16x256xf32>
    %15 = arith.addf %13, %14 : vector<16x256xf32>
    %c0_16 = arith.constant 0 : index
    %c0_17 = arith.constant 0 : index
    %16 = vector.load %arg12[%c0_16, %c0_17] : memref<16x256xf32, #tpu.memory_space<vmem>>, vector<16x256xf32>
    tpu.vector_store %arg12[%c0_16, %c0_17], %15 {strides = array<i32>} : memref<16x256xf32, #tpu.memory_space<vmem>>, vector<16x256xf32>,
    %c0_i32_18 = arith.constant 0 : i32
    %17 = arith.cmpi eq, %arg2, %c0_i32_18 : i32
    %18 = arith.extui %17 : i1 to i32
    %c0_i32_19 = arith.constant 0 : i32
    %19 = arith.cmpi ne, %18, %c0_i32_19 : i32
    scf.if %19 {
      %c0_20 = arith.constant 0 : index
      %c0_21 = arith.constant 0 : index
      %20 = vector.load %arg11[%c0_20, %c0_21] : memref<16x256xf32, #tpu.memory_space<vmem>>, vector<16x256xf32>
      %c0_22 = arith.constant 0 : index
      %c0_23 = arith.constant 0 : index
      %21 = vector.load %arg7[%c0_22, %c0_23] : memref<1x256xf32, #tpu.memory_space<vmem>>, vector<1x256xf32>
      %22 = vector.broadcast %21 : vector<1x256xf32> to vector<16x256xf32>
      %23 = arith.addf %20, %22 : vector<16x256xf32>
      %c0_24 = arith.constant 0 : index
      %c0_25 = arith.constant 0 : index
      %24 = vector.load %arg9[%c0_24, %c0_25] : memref<16x256xf32, #tpu.memory_space<vmem>>, vector<16x256xf32>
      tpu.vector_store %arg9[%c0_24, %c0_25], %23 {strides = array<i32>} : memref<16x256xf32, #tpu.memory_space<vmem>>, vector<16x256xf32>,
      %c0_26 = arith.constant 0 : index
      %c0_27 = arith.constant 0 : index
      %25 = vector.load %arg12[%c0_26, %c0_27] : memref<16x256xf32, #tpu.memory_space<vmem>>, vector<16x256xf32>
      %c0_28 = arith.constant 0 : index
      %c0_29 = arith.constant 0 : index
      %26 = vector.load %arg8[%c0_28, %c0_29] : memref<1x256xf32, #tpu.memory_space<vmem>>, vector<1x256xf32>
      %27 = vector.broadcast %26 : vector<1x256xf32> to vector<16x256xf32>
      %28 = arith.addf %25, %27 : vector<16x256xf32>
      %c0_30 = arith.constant 0 : index
      %c0_31 = arith.constant 0 : index
      %29 = vector.load %arg10[%c0_30, %c0_31] : memref<16x256xf32, #tpu.memory_space<vmem>>, vector<16x256xf32>
      tpu.vector_store %arg10[%c0_30, %c0_31], %28 {strides = array<i32>} : memref<16x256xf32, #tpu.memory_space<vmem>>, vector<16x256xf32>,
    } else {
    }
    return
  }
  func.func @transform_0(%arg0: i32, %arg1: i32, %arg2: i32) -> (i32, i32) {
    %c0_i32 = arith.constant 0 : i32
    return %arg0, %arg2 : i32, i32
  }
  func.func @transform_1(%arg0: i32, %arg1: i32, %arg2: i32) -> (i32, i32) {
    %c0_i32 = arith.constant 0 : i32
    return %arg0, %arg2 : i32, i32
  }
  func.func @transform_2(%arg0: i32, %arg1: i32, %arg2: i32) -> (i32, i32) {
    %c0_i32 = arith.constant 0 : i32
    return %arg2, %arg1 : i32, i32
  }
  func.func @transform_3(%arg0: i32, %arg1: i32, %arg2: i32) -> (i32, i32) {
    %c0_i32 = arith.constant 0 : i32
    return %arg2, %arg1 : i32, i32
  }
  func.func @transform_4(%arg0: i32, %arg1: i32, %arg2: i32) -> (i32, i32) {
    %c0_i32 = arith.constant 0 : i32
    %c0_i32_0 = arith.constant 0 : i32
    return %c0_i32, %arg1 : i32, i32
  }
  func.func @transform_5(%arg0: i32, %arg1: i32, %arg2: i32) -> (i32, i32) {
    %c0_i32 = arith.constant 0 : i32
    %c0_i32_0 = arith.constant 0 : i32
    return %c0_i32, %arg1 : i32, i32
  }
  func.func @transform_6(%arg0: i32, %arg1: i32, %arg2: i32) -> (i32, i32) {
    %c0_i32 = arith.constant 0 : i32
    return %arg0, %arg1 : i32, i32
  }
  func.func @transform_7(%arg0: i32, %arg1: i32, %arg2: i32) -> (i32, i32) {
    %c0_i32 = arith.constant 0 : i32
    return %arg0, %arg1 : i32, i32
  }
}

module attributes {stable_mosaic.version = 11 : i64} {
  func.func @_linear_jvp_kernel(%arg0: i32, %arg1: i32, %arg2: i32, %arg3: memref<16x256xbf16, #tpu.memory_space<vmem>>, %arg4: memref<16x256xbf16, #tpu.memory_space<vmem>>, %arg5: memref<256x512xbf16, #tpu.memory_space<vmem>>, %arg6: memref<256x512xbf16, #tpu.memory_space<vmem>>, %arg7: memref<1x512xf32, #tpu.memory_space<vmem>>, %arg8: memref<1x512xf32, #tpu.memory_space<vmem>>, %arg9: memref<16x512xf32, #tpu.memory_space<vmem>>, %arg10: memref<16x512xf32, #tpu.memory_space<vmem>>, %arg11: memref<16x512xf32, #tpu.memory_space<vmem>>, %arg12: memref<16x512xf32, #tpu.memory_space<vmem>>) attributes {dimension_semantics = [#tpu.dimension_semantics<parallel>, #tpu.dimension_semantics<parallel>, #tpu.dimension_semantics<arbitrary>], iteration_bounds = array<i64: 1, 2, 1>, scalar_prefetch = 0 : i64, scratch_operands = 2 : i64, tpu.core_type = #tpu.core_type<tc>, window_params = [{transform_indices = @transform_0, window_bounds = array<i64: 16, 256>}, {transform_indices = @transform_1, window_bounds = array<i64: 16, 256>}, {transform_indices = @transform_2, window_bounds = array<i64: 256, 512>}, {transform_indices = @transform_3, window_bounds = array<i64: 256, 512>}, {transform_indices = @transform_4, window_bounds = array<i64: 1, 512>}, {transform_indices = @transform_5, window_bounds = array<i64: 1, 512>}, {transform_indices = @transform_6, window_bounds = array<i64: 16, 512>}, {transform_indices = @transform_7, window_bounds = array<i64: 16, 512>}]} {
    %c0_i32 = arith.constant 0 : i32
    %0 = arith.cmpi eq, %arg2, %c0_i32 : i32
    %1 = arith.extui %0 : i1 to i32
    %c0_i32_0 = arith.constant 0 : i32
    %2 = arith.cmpi ne, %1, %c0_i32_0 : i32
    scf.if %2 {
      %cst_20 = arith.constant 0.000000e+00 : f32
      %20 = vector.broadcast %cst_20 : f32 to vector<16x512xf32>
      %c0_21 = arith.constant 0 : index
      %c0_22 = arith.constant 0 : index
      %21 = vector.load %arg11[%c0_21, %c0_22] : memref<16x512xf32, #tpu.memory_space<vmem>>, vector<16x512xf32>
      tpu.vector_store %arg11[%c0_21, %c0_22], %20 {strides = array<i32>} : memref<16x512xf32, #tpu.memory_space<vmem>>, vector<16x512xf32>,
      %cst_23 = arith.constant 0.000000e+00 : f32
      %22 = vector.broadcast %cst_23 : f32 to vector<16x512xf32>
      %c0_24 = arith.constant 0 : index
      %c0_25 = arith.constant 0 : index
      %23 = vector.load %arg12[%c0_24, %c0_25] : memref<16x512xf32, #tpu.memory_space<vmem>>, vector<16x512xf32>
      tpu.vector_store %arg12[%c0_24, %c0_25], %22 {strides = array<i32>} : memref<16x512xf32, #tpu.memory_space<vmem>>, vector<16x512xf32>,
    } else {
    }
    %c0 = arith.constant 0 : index
    %c0_1 = arith.constant 0 : index
    %3 = vector.load %arg3[%c0, %c0_1] : memref<16x256xbf16, #tpu.memory_space<vmem>>, vector<16x256xbf16>
    %c0_2 = arith.constant 0 : index
    %c0_3 = arith.constant 0 : index
    %4 = vector.load %arg4[%c0_2, %c0_3] : memref<16x256xbf16, #tpu.memory_space<vmem>>, vector<16x256xbf16>
    %c0_4 = arith.constant 0 : index
    %c0_5 = arith.constant 0 : index
    %5 = vector.load %arg5[%c0_4, %c0_5] : memref<256x512xbf16, #tpu.memory_space<vmem>>, vector<256x512xbf16>
    %cst = arith.constant dense<0.000000e+00> : vector<16x512xf32>
    %6 = tpu.matmul %3, %5, %cst {dimension_numbers = #tpu.dot_dimension_numbers<[1], [0], [0], [1], [0, 0, 1, 1], [], []>} : vector<16x256xbf16>, vector<256x512xbf16>, vector<16x512xf32> -> vector<16x512xf32>
    %cst_6 = arith.constant dense<0.000000e+00> : vector<16x512xf32>
    %7 = tpu.matmul %4, %5, %cst_6 {dimension_numbers = #tpu.dot_dimension_numbers<[1], [0], [0], [1], [0, 0, 1, 1], [], []>} : vector<16x256xbf16>, vector<256x512xbf16>, vector<16x512xf32> -> vector<16x512xf32>
    %c0_7 = arith.constant 0 : index
    %c0_8 = arith.constant 0 : index
    %8 = vector.load %arg6[%c0_7, %c0_8] : memref<256x512xbf16, #tpu.memory_space<vmem>>, vector<256x512xbf16>
    %cst_9 = arith.constant dense<0.000000e+00> : vector<16x512xf32>
    %9 = tpu.matmul %3, %8, %cst_9 {dimension_numbers = #tpu.dot_dimension_numbers<[1], [0], [0], [1], [0, 0, 1, 1], [], []>} : vector<16x256xbf16>, vector<256x512xbf16>, vector<16x512xf32> -> vector<16x512xf32>
    %c0_10 = arith.constant 0 : index
    %c0_11 = arith.constant 0 : index
    %10 = vector.load %arg11[%c0_10, %c0_11] : memref<16x512xf32, #tpu.memory_space<vmem>>, vector<16x512xf32>
    %11 = arith.addf %10, %6 : vector<16x512xf32>
    %c0_12 = arith.constant 0 : index
    %c0_13 = arith.constant 0 : index
    %12 = vector.load %arg11[%c0_12, %c0_13] : memref<16x512xf32, #tpu.memory_space<vmem>>, vector<16x512xf32>
    tpu.vector_store %arg11[%c0_12, %c0_13], %11 {strides = array<i32>} : memref<16x512xf32, #tpu.memory_space<vmem>>, vector<16x512xf32>,
    %c0_14 = arith.constant 0 : index
    %c0_15 = arith.constant 0 : index
    %13 = vector.load %arg12[%c0_14, %c0_15] : memref<16x512xf32, #tpu.memory_space<vmem>>, vector<16x512xf32>
    %14 = arith.addf %7, %9 : vector<16x512xf32>
    %15 = arith.addf %13, %14 : vector<16x512xf32>
    %c0_16 = arith.constant 0 : index
    %c0_17 = arith.constant 0 : index
    %16 = vector.load %arg12[%c0_16, %c0_17] : memref<16x512xf32, #tpu.memory_space<vmem>>, vector<16x512xf32>
    tpu.vector_store %arg12[%c0_16, %c0_17], %15 {strides = array<i32>} : memref<16x512xf32, #tpu.memory_space<vmem>>, vector<16x512xf32>,
    %c0_i32_18 = arith.constant 0 : i32
    %17 = arith.cmpi eq, %arg2, %c0_i32_18 : i32
    %18 = arith.extui %17 : i1 to i32
    %c0_i32_19 = arith.constant 0 : i32
    %19 = arith.cmpi ne, %18, %c0_i32_19 : i32
    scf.if %19 {
      %c0_20 = arith.constant 0 : index
      %c0_21 = arith.constant 0 : index
      %20 = vector.load %arg11[%c0_20, %c0_21] : memref<16x512xf32, #tpu.memory_space<vmem>>, vector<16x512xf32>
      %c0_22 = arith.constant 0 : index
      %c0_23 = arith.constant 0 : index
      %21 = vector.load %arg7[%c0_22, %c0_23] : memref<1x512xf32, #tpu.memory_space<vmem>>, vector<1x512xf32>
      %22 = vector.broadcast %21 : vector<1x512xf32> to vector<16x512xf32>
      %23 = arith.addf %20, %22 : vector<16x512xf32>
      %c0_24 = arith.constant 0 : index
      %c0_25 = arith.constant 0 : index
      %24 = vector.load %arg9[%c0_24, %c0_25] : memref<16x512xf32, #tpu.memory_space<vmem>>, vector<16x512xf32>
      tpu.vector_store %arg9[%c0_24, %c0_25], %23 {strides = array<i32>} : memref<16x512xf32, #tpu.memory_space<vmem>>, vector<16x512xf32>,
      %c0_26 = arith.constant 0 : index
      %c0_27 = arith.constant 0 : index
      %25 = vector.load %arg12[%c0_26, %c0_27] : memref<16x512xf32, #tpu.memory_space<vmem>>, vector<16x512xf32>
      %c0_28 = arith.constant 0 : index
      %c0_29 = arith.constant 0 : index
      %26 = vector.load %arg8[%c0_28, %c0_29] : memref<1x512xf32, #tpu.memory_space<vmem>>, vector<1x512xf32>
      %27 = vector.broadcast %26 : vector<1x512xf32> to vector<16x512xf32>
      %28 = arith.addf %25, %27 : vector<16x512xf32>
      %c0_30 = arith.constant 0 : index
      %c0_31 = arith.constant 0 : index
      %29 = vector.load %arg10[%c0_30, %c0_31] : memref<16x512xf32, #tpu.memory_space<vmem>>, vector<16x512xf32>
      tpu.vector_store %arg10[%c0_30, %c0_31], %28 {strides = array<i32>} : memref<16x512xf32, #tpu.memory_space<vmem>>, vector<16x512xf32>,
    } else {
    }
    return
  }
  func.func @transform_0(%arg0: i32, %arg1: i32, %arg2: i32) -> (i32, i32) {
    %c0_i32 = arith.constant 0 : i32
    return %arg0, %arg2 : i32, i32
  }
  func.func @transform_1(%arg0: i32, %arg1: i32, %arg2: i32) -> (i32, i32) {
    %c0_i32 = arith.constant 0 : i32
    return %arg0, %arg2 : i32, i32
  }
  func.func @transform_2(%arg0: i32, %arg1: i32, %arg2: i32) -> (i32, i32) {
    %c0_i32 = arith.constant 0 : i32
    return %arg2, %arg1 : i32, i32
  }
  func.func @transform_3(%arg0: i32, %arg1: i32, %arg2: i32) -> (i32, i32) {
    %c0_i32 = arith.constant 0 : i32
    return %arg2, %arg1 : i32, i32
  }
  func.func @transform_4(%arg0: i32, %arg1: i32, %arg2: i32) -> (i32, i32) {
    %c0_i32 = arith.constant 0 : i32
    %c0_i32_0 = arith.constant 0 : i32
    return %c0_i32, %arg1 : i32, i32
  }
  func.func @transform_5(%arg0: i32, %arg1: i32, %arg2: i32) -> (i32, i32) {
    %c0_i32 = arith.constant 0 : i32
    %c0_i32_0 = arith.constant 0 : i32
    return %c0_i32, %arg1 : i32, i32
  }
  func.func @transform_6(%arg0: i32, %arg1: i32, %arg2: i32) -> (i32, i32) {
    %c0_i32 = arith.constant 0 : i32
    return %arg0, %arg1 : i32, i32
  }
  func.func @transform_7(%arg0: i32, %arg1: i32, %arg2: i32) -> (i32, i32) {
    %c0_i32 = arith.constant 0 : i32
    return %arg0, %arg1 : i32, i32
  }
}

module attributes {stable_mosaic.version = 11 : i64} {
  func.func @_linear_jvp_kernel(%arg0: i32, %arg1: i32, %arg2: i32, %arg3: memref<16x512xbf16, #tpu.memory_space<vmem>>, %arg4: memref<16x512xbf16, #tpu.memory_space<vmem>>, %arg5: memref<512x256xbf16, #tpu.memory_space<vmem>>, %arg6: memref<512x256xbf16, #tpu.memory_space<vmem>>, %arg7: memref<1x256xf32, #tpu.memory_space<vmem>>, %arg8: memref<1x256xf32, #tpu.memory_space<vmem>>, %arg9: memref<16x256xf32, #tpu.memory_space<vmem>>, %arg10: memref<16x256xf32, #tpu.memory_space<vmem>>, %arg11: memref<16x256xf32, #tpu.memory_space<vmem>>, %arg12: memref<16x256xf32, #tpu.memory_space<vmem>>) attributes {dimension_semantics = [#tpu.dimension_semantics<parallel>, #tpu.dimension_semantics<parallel>, #tpu.dimension_semantics<arbitrary>], iteration_bounds = array<i64: 1, 1, 2>, scalar_prefetch = 0 : i64, scratch_operands = 2 : i64, tpu.core_type = #tpu.core_type<tc>, window_params = [{transform_indices = @transform_0, window_bounds = array<i64: 16, 512>}, {transform_indices = @transform_1, window_bounds = array<i64: 16, 512>}, {transform_indices = @transform_2, window_bounds = array<i64: 512, 256>}, {transform_indices = @transform_3, window_bounds = array<i64: 512, 256>}, {transform_indices = @transform_4, window_bounds = array<i64: 1, 256>}, {transform_indices = @transform_5, window_bounds = array<i64: 1, 256>}, {transform_indices = @transform_6, window_bounds = array<i64: 16, 256>}, {transform_indices = @transform_7, window_bounds = array<i64: 16, 256>}]} {
    %c0_i32 = arith.constant 0 : i32
    %0 = arith.cmpi eq, %arg2, %c0_i32 : i32
    %1 = arith.extui %0 : i1 to i32
    %c0_i32_0 = arith.constant 0 : i32
    %2 = arith.cmpi ne, %1, %c0_i32_0 : i32
    scf.if %2 {
      %cst_19 = arith.constant 0.000000e+00 : f32
      %20 = vector.broadcast %cst_19 : f32 to vector<16x256xf32>
      %c0_20 = arith.constant 0 : index
      %c0_21 = arith.constant 0 : index
      %21 = vector.load %arg11[%c0_20, %c0_21] : memref<16x256xf32, #tpu.memory_space<vmem>>, vector<16x256xf32>
      tpu.vector_store %arg11[%c0_20, %c0_21], %20 {strides = array<i32>} : memref<16x256xf32, #tpu.memory_space<vmem>>, vector<16x256xf32>,
      %cst_22 = arith.constant 0.000000e+00 : f32
      %22 = vector.broadcast %cst_22 : f32 to vector<16x256xf32>
      %c0_23 = arith.constant 0 : index
      %c0_24 = arith.constant 0 : index
      %23 = vector.load %arg12[%c0_23, %c0_24] : memref<16x256xf32, #tpu.memory_space<vmem>>, vector<16x256xf32>
      tpu.vector_store %arg12[%c0_23, %c0_24], %22 {strides = array<i32>} : memref<16x256xf32, #tpu.memory_space<vmem>>, vector<16x256xf32>,
    } else {
    }
    %c0 = arith.constant 0 : index
    %c0_1 = arith.constant 0 : index
    %3 = vector.load %arg3[%c0, %c0_1] : memref<16x512xbf16, #tpu.memory_space<vmem>>, vector<16x512xbf16>
    %c0_2 = arith.constant 0 : index
    %c0_3 = arith.constant 0 : index
    %4 = vector.load %arg4[%c0_2, %c0_3] : memref<16x512xbf16, #tpu.memory_space<vmem>>, vector<16x512xbf16>
    %c0_4 = arith.constant 0 : index
    %c0_5 = arith.constant 0 : index
    %5 = vector.load %arg5[%c0_4, %c0_5] : memref<512x256xbf16, #tpu.memory_space<vmem>>, vector<512x256xbf16>
    %cst = arith.constant dense<0.000000e+00> : vector<16x256xf32>
    %6 = tpu.matmul %3, %5, %cst {dimension_numbers = #tpu.dot_dimension_numbers<[1], [0], [0], [1], [0, 0, 1, 1], [], []>} : vector<16x512xbf16>, vector<512x256xbf16>, vector<16x256xf32> -> vector<16x256xf32>
    %cst_6 = arith.constant dense<0.000000e+00> : vector<16x256xf32>
    %7 = tpu.matmul %4, %5, %cst_6 {dimension_numbers = #tpu.dot_dimension_numbers<[1], [0], [0], [1], [0, 0, 1, 1], [], []>} : vector<16x512xbf16>, vector<512x256xbf16>, vector<16x256xf32> -> vector<16x256xf32>
    %c0_7 = arith.constant 0 : index
    %c0_8 = arith.constant 0 : index
    %8 = vector.load %arg6[%c0_7, %c0_8] : memref<512x256xbf16, #tpu.memory_space<vmem>>, vector<512x256xbf16>
    %cst_9 = arith.constant dense<0.000000e+00> : vector<16x256xf32>
    %9 = tpu.matmul %3, %8, %cst_9 {dimension_numbers = #tpu.dot_dimension_numbers<[1], [0], [0], [1], [0, 0, 1, 1], [], []>} : vector<16x512xbf16>, vector<512x256xbf16>, vector<16x256xf32> -> vector<16x256xf32>
    %c0_10 = arith.constant 0 : index
    %c0_11 = arith.constant 0 : index
    %10 = vector.load %arg11[%c0_10, %c0_11] : memref<16x256xf32, #tpu.memory_space<vmem>>, vector<16x256xf32>
    %11 = arith.addf %10, %6 : vector<16x256xf32>
    %c0_12 = arith.constant 0 : index
    %c0_13 = arith.constant 0 : index
    %12 = vector.load %arg11[%c0_12, %c0_13] : memref<16x256xf32, #tpu.memory_space<vmem>>, vector<16x256xf32>
    tpu.vector_store %arg11[%c0_12, %c0_13], %11 {strides = array<i32>} : memref<16x256xf32, #tpu.memory_space<vmem>>, vector<16x256xf32>,
    %c0_14 = arith.constant 0 : index
    %c0_15 = arith.constant 0 : index
    %13 = vector.load %arg12[%c0_14, %c0_15] : memref<16x256xf32, #tpu.memory_space<vmem>>, vector<16x256xf32>
    %14 = arith.addf %7, %9 : vector<16x256xf32>
    %15 = arith.addf %13, %14 : vector<16x256xf32>
    %c0_16 = arith.constant 0 : index
    %c0_17 = arith.constant 0 : index
    %16 = vector.load %arg12[%c0_16, %c0_17] : memref<16x256xf32, #tpu.memory_space<vmem>>, vector<16x256xf32>
    tpu.vector_store %arg12[%c0_16, %c0_17], %15 {strides = array<i32>} : memref<16x256xf32, #tpu.memory_space<vmem>>, vector<16x256xf32>,
    %c1_i32 = arith.constant 1 : i32
    %17 = arith.cmpi eq, %arg2, %c1_i32 : i32
    %18 = arith.extui %17 : i1 to i32
    %c0_i32_18 = arith.constant 0 : i32
    %19 = arith.cmpi ne, %18, %c0_i32_18 : i32
    scf.if %19 {
      %c0_19 = arith.constant 0 : index
      %c0_20 = arith.constant 0 : index
      %20 = vector.load %arg11[%c0_19, %c0_20] : memref<16x256xf32, #tpu.memory_space<vmem>>, vector<16x256xf32>
      %c0_21 = arith.constant 0 : index
      %c0_22 = arith.constant 0 : index
      %21 = vector.load %arg7[%c0_21, %c0_22] : memref<1x256xf32, #tpu.memory_space<vmem>>, vector<1x256xf32>
      %22 = vector.broadcast %21 : vector<1x256xf32> to vector<16x256xf32>
      %23 = arith.addf %20, %22 : vector<16x256xf32>
      %c0_23 = arith.constant 0 : index
      %c0_24 = arith.constant 0 : index
      %24 = vector.load %arg9[%c0_23, %c0_24] : memref<16x256xf32, #tpu.memory_space<vmem>>, vector<16x256xf32>
      tpu.vector_store %arg9[%c0_23, %c0_24], %23 {strides = array<i32>} : memref<16x256xf32, #tpu.memory_space<vmem>>, vector<16x256xf32>,
      %c0_25 = arith.constant 0 : index
      %c0_26 = arith.constant 0 : index
      %25 = vector.load %arg12[%c0_25, %c0_26] : memref<16x256xf32, #tpu.memory_space<vmem>>, vector<16x256xf32>
      %c0_27 = arith.constant 0 : index
      %c0_28 = arith.constant 0 : index
      %26 = vector.load %arg8[%c0_27, %c0_28] : memref<1x256xf32, #tpu.memory_space<vmem>>, vector<1x256xf32>
      %27 = vector.broadcast %26 : vector<1x256xf32> to vector<16x256xf32>
      %28 = arith.addf %25, %27 : vector<16x256xf32>
      %c0_29 = arith.constant 0 : index
      %c0_30 = arith.constant 0 : index
      %29 = vector.load %arg10[%c0_29, %c0_30] : memref<16x256xf32, #tpu.memory_space<vmem>>, vector<16x256xf32>
      tpu.vector_store %arg10[%c0_29, %c0_30], %28 {strides = array<i32>} : memref<16x256xf32, #tpu.memory_space<vmem>>, vector<16x256xf32>,
    } else {
    }
    return
  }
  func.func @transform_0(%arg0: i32, %arg1: i32, %arg2: i32) -> (i32, i32) {
    %c0_i32 = arith.constant 0 : i32
    return %arg0, %arg2 : i32, i32
  }
  func.func @transform_1(%arg0: i32, %arg1: i32, %arg2: i32) -> (i32, i32) {
    %c0_i32 = arith.constant 0 : i32
    return %arg0, %arg2 : i32, i32
  }
  func.func @transform_2(%arg0: i32, %arg1: i32, %arg2: i32) -> (i32, i32) {
    %c0_i32 = arith.constant 0 : i32
    return %arg2, %arg1 : i32, i32
  }
  func.func @transform_3(%arg0: i32, %arg1: i32, %arg2: i32) -> (i32, i32) {
    %c0_i32 = arith.constant 0 : i32
    return %arg2, %arg1 : i32, i32
  }
  func.func @transform_4(%arg0: i32, %arg1: i32, %arg2: i32) -> (i32, i32) {
    %c0_i32 = arith.constant 0 : i32
    %c0_i32_0 = arith.constant 0 : i32
    return %c0_i32, %arg1 : i32, i32
  }
  func.func @transform_5(%arg0: i32, %arg1: i32, %arg2: i32) -> (i32, i32) {
    %c0_i32 = arith.constant 0 : i32
    %c0_i32_0 = arith.constant 0 : i32
    return %c0_i32, %arg1 : i32, i32
  }
  func.func @transform_6(%arg0: i32, %arg1: i32, %arg2: i32) -> (i32, i32) {
    %c0_i32 = arith.constant 0 : i32
    return %arg0, %arg1 : i32, i32
  }
  func.func @transform_7(%arg0: i32, %arg1: i32, %arg2: i32) -> (i32, i32) {
    %c0_i32 = arith.constant 0 : i32
    return %arg0, %arg1 : i32, i32
  }
}

module attributes {stable_mosaic.version = 11 : i64} {
  func.func @_linear_jvp_kernel(%arg0: i32, %arg1: i32, %arg2: i32, %arg3: memref<16x256xbf16, #tpu.memory_space<vmem>>, %arg4: memref<16x256xbf16, #tpu.memory_space<vmem>>, %arg5: memref<347x256xbf16, #tpu.memory_space<vmem>>, %arg6: memref<347x256xbf16, #tpu.memory_space<vmem>>, %arg7: memref<1x347xf32, #tpu.memory_space<vmem>>, %arg8: memref<1x347xf32, #tpu.memory_space<vmem>>, %arg9: memref<16x347xf32, #tpu.memory_space<vmem>>, %arg10: memref<16x347xf32, #tpu.memory_space<vmem>>, %arg11: memref<16x347xf32, #tpu.memory_space<vmem>>, %arg12: memref<16x347xf32, #tpu.memory_space<vmem>>) attributes {dimension_semantics = [#tpu.dimension_semantics<parallel>, #tpu.dimension_semantics<parallel>, #tpu.dimension_semantics<arbitrary>], iteration_bounds = array<i64: 1, 1, 1>, scalar_prefetch = 0 : i64, scratch_operands = 2 : i64, tpu.core_type = #tpu.core_type<tc>, window_params = [{transform_indices = @transform_0, window_bounds = array<i64: 16, 256>}, {transform_indices = @transform_1, window_bounds = array<i64: 16, 256>}, {transform_indices = @transform_2, window_bounds = array<i64: 347, 256>}, {transform_indices = @transform_3, window_bounds = array<i64: 347, 256>}, {transform_indices = @transform_4, window_bounds = array<i64: 1, 347>}, {transform_indices = @transform_5, window_bounds = array<i64: 1, 347>}, {transform_indices = @transform_6, window_bounds = array<i64: 16, 347>}, {transform_indices = @transform_7, window_bounds = array<i64: 16, 347>}]} {
    %c0_i32 = arith.constant 0 : i32
    %0 = arith.cmpi eq, %arg2, %c0_i32 : i32
    %1 = arith.extui %0 : i1 to i32
    %c0_i32_0 = arith.constant 0 : i32
    %2 = arith.cmpi ne, %1, %c0_i32_0 : i32
    scf.if %2 {
      %cst_20 = arith.constant 0.000000e+00 : f32
      %20 = vector.broadcast %cst_20 : f32 to vector<16x347xf32>
      %c0_21 = arith.constant 0 : index
      %c0_22 = arith.constant 0 : index
      %21 = vector.load %arg11[%c0_21, %c0_22] : memref<16x347xf32, #tpu.memory_space<vmem>>, vector<16x347xf32>
      tpu.vector_store %arg11[%c0_21, %c0_22], %20 {strides = array<i32>} : memref<16x347xf32, #tpu.memory_space<vmem>>, vector<16x347xf32>,
      %cst_23 = arith.constant 0.000000e+00 : f32
      %22 = vector.broadcast %cst_23 : f32 to vector<16x347xf32>
      %c0_24 = arith.constant 0 : index
      %c0_25 = arith.constant 0 : index
      %23 = vector.load %arg12[%c0_24, %c0_25] : memref<16x347xf32, #tpu.memory_space<vmem>>, vector<16x347xf32>
      tpu.vector_store %arg12[%c0_24, %c0_25], %22 {strides = array<i32>} : memref<16x347xf32, #tpu.memory_space<vmem>>, vector<16x347xf32>,
    } else {
    }
    %c0 = arith.constant 0 : index
    %c0_1 = arith.constant 0 : index
    %3 = vector.load %arg3[%c0, %c0_1] : memref<16x256xbf16, #tpu.memory_space<vmem>>, vector<16x256xbf16>
    %c0_2 = arith.constant 0 : index
    %c0_3 = arith.constant 0 : index
    %4 = vector.load %arg4[%c0_2, %c0_3] : memref<16x256xbf16, #tpu.memory_space<vmem>>, vector<16x256xbf16>
    %c0_4 = arith.constant 0 : index
    %c0_5 = arith.constant 0 : index
    %5 = vector.load %arg5[%c0_4, %c0_5] : memref<347x256xbf16, #tpu.memory_space<vmem>>, vector<347x256xbf16>
    %cst = arith.constant dense<0.000000e+00> : vector<16x347xf32>
    %6 = tpu.matmul %3, %5, %cst {dimension_numbers = #tpu.dot_dimension_numbers<[1], [1], [0], [0], [0, 0, 1, 0], [], []>} : vector<16x256xbf16>, vector<347x256xbf16>, vector<16x347xf32> -> vector<16x347xf32>
    %cst_6 = arith.constant dense<0.000000e+00> : vector<16x347xf32>
    %7 = tpu.matmul %4, %5, %cst_6 {dimension_numbers = #tpu.dot_dimension_numbers<[1], [1], [0], [0], [0, 0, 1, 0], [], []>} : vector<16x256xbf16>, vector<347x256xbf16>, vector<16x347xf32> -> vector<16x347xf32>
    %c0_7 = arith.constant 0 : index
    %c0_8 = arith.constant 0 : index
    %8 = vector.load %arg6[%c0_7, %c0_8] : memref<347x256xbf16, #tpu.memory_space<vmem>>, vector<347x256xbf16>
    %cst_9 = arith.constant dense<0.000000e+00> : vector<16x347xf32>
    %9 = tpu.matmul %3, %8, %cst_9 {dimension_numbers = #tpu.dot_dimension_numbers<[1], [1], [0], [0], [0, 0, 1, 0], [], []>} : vector<16x256xbf16>, vector<347x256xbf16>, vector<16x347xf32> -> vector<16x347xf32>
    %c0_10 = arith.constant 0 : index
    %c0_11 = arith.constant 0 : index
    %10 = vector.load %arg11[%c0_10, %c0_11] : memref<16x347xf32, #tpu.memory_space<vmem>>, vector<16x347xf32>
    %11 = arith.addf %10, %6 : vector<16x347xf32>
    %c0_12 = arith.constant 0 : index
    %c0_13 = arith.constant 0 : index
    %12 = vector.load %arg11[%c0_12, %c0_13] : memref<16x347xf32, #tpu.memory_space<vmem>>, vector<16x347xf32>
    tpu.vector_store %arg11[%c0_12, %c0_13], %11 {strides = array<i32>} : memref<16x347xf32, #tpu.memory_space<vmem>>, vector<16x347xf32>,
    %c0_14 = arith.constant 0 : index
    %c0_15 = arith.constant 0 : index
    %13 = vector.load %arg12[%c0_14, %c0_15] : memref<16x347xf32, #tpu.memory_space<vmem>>, vector<16x347xf32>
    %14 = arith.addf %7, %9 : vector<16x347xf32>
    %15 = arith.addf %13, %14 : vector<16x347xf32>
    %c0_16 = arith.constant 0 : index
    %c0_17 = arith.constant 0 : index
    %16 = vector.load %arg12[%c0_16, %c0_17] : memref<16x347xf32, #tpu.memory_space<vmem>>, vector<16x347xf32>
    tpu.vector_store %arg12[%c0_16, %c0_17], %15 {strides = array<i32>} : memref<16x347xf32, #tpu.memory_space<vmem>>, vector<16x347xf32>,
    %c0_i32_18 = arith.constant 0 : i32
    %17 = arith.cmpi eq, %arg2, %c0_i32_18 : i32
    %18 = arith.extui %17 : i1 to i32
    %c0_i32_19 = arith.constant 0 : i32
    %19 = arith.cmpi ne, %18, %c0_i32_19 : i32
    scf.if %19 {
      %c0_20 = arith.constant 0 : index
      %c0_21 = arith.constant 0 : index
      %20 = vector.load %arg11[%c0_20, %c0_21] : memref<16x347xf32, #tpu.memory_space<vmem>>, vector<16x347xf32>
      %c0_22 = arith.constant 0 : index
      %c0_23 = arith.constant 0 : index
      %21 = vector.load %arg7[%c0_22, %c0_23] : memref<1x347xf32, #tpu.memory_space<vmem>>, vector<1x347xf32>
      %22 = vector.broadcast %21 : vector<1x347xf32> to vector<16x347xf32>
      %23 = arith.addf %20, %22 : vector<16x347xf32>
      %c0_24 = arith.constant 0 : index
      %c0_25 = arith.constant 0 : index
      %24 = vector.load %arg9[%c0_24, %c0_25] : memref<16x347xf32, #tpu.memory_space<vmem>>, vector<16x347xf32>
      tpu.vector_store %arg9[%c0_24, %c0_25], %23 {strides = array<i32>} : memref<16x347xf32, #tpu.memory_space<vmem>>, vector<16x347xf32>,
      %c0_26 = arith.constant 0 : index
      %c0_27 = arith.constant 0 : index
      %25 = vector.load %arg12[%c0_26, %c0_27] : memref<16x347xf32, #tpu.memory_space<vmem>>, vector<16x347xf32>
      %c0_28 = arith.constant 0 : index
      %c0_29 = arith.constant 0 : index
      %26 = vector.load %arg8[%c0_28, %c0_29] : memref<1x347xf32, #tpu.memory_space<vmem>>, vector<1x347xf32>
      %27 = vector.broadcast %26 : vector<1x347xf32> to vector<16x347xf32>
      %28 = arith.addf %25, %27 : vector<16x347xf32>
      %c0_30 = arith.constant 0 : index
      %c0_31 = arith.constant 0 : index
      %29 = vector.load %arg10[%c0_30, %c0_31] : memref<16x347xf32, #tpu.memory_space<vmem>>, vector<16x347xf32>
      tpu.vector_store %arg10[%c0_30, %c0_31], %28 {strides = array<i32>} : memref<16x347xf32, #tpu.memory_space<vmem>>, vector<16x347xf32>,
    } else {
    }
    return
  }
  func.func @transform_0(%arg0: i32, %arg1: i32, %arg2: i32) -> (i32, i32) {
    %c0_i32 = arith.constant 0 : i32
    return %arg0, %arg2 : i32, i32
  }
  func.func @transform_1(%arg0: i32, %arg1: i32, %arg2: i32) -> (i32, i32) {
    %c0_i32 = arith.constant 0 : i32
    return %arg0, %arg2 : i32, i32
  }
  func.func @transform_2(%arg0: i32, %arg1: i32, %arg2: i32) -> (i32, i32) {
    %c0_i32 = arith.constant 0 : i32
    return %arg1, %arg2 : i32, i32
  }
  func.func @transform_3(%arg0: i32, %arg1: i32, %arg2: i32) -> (i32, i32) {
    %c0_i32 = arith.constant 0 : i32
    return %arg1, %arg2 : i32, i32
  }
  func.func @transform_4(%arg0: i32, %arg1: i32, %arg2: i32) -> (i32, i32) {
    %c0_i32 = arith.constant 0 : i32
    %c0_i32_0 = arith.constant 0 : i32
    return %c0_i32, %arg1 : i32, i32
  }
  func.func @transform_5(%arg0: i32, %arg1: i32, %arg2: i32) -> (i32, i32) {
    %c0_i32 = arith.constant 0 : i32
    %c0_i32_0 = arith.constant 0 : i32
    return %c0_i32, %arg1 : i32, i32
  }
  func.func @transform_6(%arg0: i32, %arg1: i32, %arg2: i32) -> (i32, i32) {
    %c0_i32 = arith.constant 0 : i32
    return %arg0, %arg1 : i32, i32
  }
  func.func @transform_7(%arg0: i32, %arg1: i32, %arg2: i32) -> (i32, i32) {
    %c0_i32 = arith.constant 0 : i32
    return %arg0, %arg1 : i32, i32
  }
}

module attributes {stable_mosaic.version = 11 : i64} {
  func.func @_linear_jvp_kernel(%arg0: i32, %arg1: i32, %arg2: i32, %arg3: memref<16x256xbf16, #tpu.memory_space<vmem>>, %arg4: memref<16x256xbf16, #tpu.memory_space<vmem>>, %arg5: memref<347x256xbf16, #tpu.memory_space<vmem>>, %arg6: memref<347x256xbf16, #tpu.memory_space<vmem>>, %arg7: memref<1x347xf32, #tpu.memory_space<vmem>>, %arg8: memref<1x347xf32, #tpu.memory_space<vmem>>, %arg9: memref<16x347xf32, #tpu.memory_space<vmem>>, %arg10: memref<16x347xf32, #tpu.memory_space<vmem>>, %arg11: memref<16x347xf32, #tpu.memory_space<vmem>>, %arg12: memref<16x347xf32, #tpu.memory_space<vmem>>) attributes {dimension_semantics = [#tpu.dimension_semantics<parallel>, #tpu.dimension_semantics<parallel>, #tpu.dimension_semantics<arbitrary>], iteration_bounds = array<i64: 1, 1, 1>, scalar_prefetch = 0 : i64, scratch_operands = 2 : i64, tpu.core_type = #tpu.core_type<tc>, window_params = [{transform_indices = @transform_0, window_bounds = array<i64: 16, 256>}, {transform_indices = @transform_1, window_bounds = array<i64: 16, 256>}, {transform_indices = @transform_2, window_bounds = array<i64: 347, 256>}, {transform_indices = @transform_3, window_bounds = array<i64: 347, 256>}, {transform_indices = @transform_4, window_bounds = array<i64: 1, 347>}, {transform_indices = @transform_5, window_bounds = array<i64: 1, 347>}, {transform_indices = @transform_6, window_bounds = array<i64: 16, 347>}, {transform_indices = @transform_7, window_bounds = array<i64: 16, 347>}]} {
    %c0_i32 = arith.constant 0 : i32
    %0 = arith.cmpi eq, %arg2, %c0_i32 : i32
    %1 = arith.extui %0 : i1 to i32
    %c0_i32_0 = arith.constant 0 : i32
    %2 = arith.cmpi ne, %1, %c0_i32_0 : i32
    scf.if %2 {
      %cst_20 = arith.constant 0.000000e+00 : f32
      %20 = vector.broadcast %cst_20 : f32 to vector<16x347xf32>
      %c0_21 = arith.constant 0 : index
      %c0_22 = arith.constant 0 : index
      %21 = vector.load %arg11[%c0_21, %c0_22] : memref<16x347xf32, #tpu.memory_space<vmem>>, vector<16x347xf32>
      tpu.vector_store %arg11[%c0_21, %c0_22], %20 {strides = array<i32>} : memref<16x347xf32, #tpu.memory_space<vmem>>, vector<16x347xf32>,
      %cst_23 = arith.constant 0.000000e+00 : f32
      %22 = vector.broadcast %cst_23 : f32 to vector<16x347xf32>
      %c0_24 = arith.constant 0 : index
      %c0_25 = arith.constant 0 : index
      %23 = vector.load %arg12[%c0_24, %c0_25] : memref<16x347xf32, #tpu.memory_space<vmem>>, vector<16x347xf32>
      tpu.vector_store %arg12[%c0_24, %c0_25], %22 {strides = array<i32>} : memref<16x347xf32, #tpu.memory_space<vmem>>, vector<16x347xf32>,
    } else {
    }
    %c0 = arith.constant 0 : index
    %c0_1 = arith.constant 0 : index
    %3 = vector.load %arg3[%c0, %c0_1] : memref<16x256xbf16, #tpu.memory_space<vmem>>, vector<16x256xbf16>
    %c0_2 = arith.constant 0 : index
    %c0_3 = arith.constant 0 : index
    %4 = vector.load %arg4[%c0_2, %c0_3] : memref<16x256xbf16, #tpu.memory_space<vmem>>, vector<16x256xbf16>
    %c0_4 = arith.constant 0 : index
    %c0_5 = arith.constant 0 : index
    %5 = vector.load %arg5[%c0_4, %c0_5] : memref<347x256xbf16, #tpu.memory_space<vmem>>, vector<347x256xbf16>
    %cst = arith.constant dense<0.000000e+00> : vector<16x347xf32>
    %6 = tpu.matmul %3, %5, %cst {dimension_numbers = #tpu.dot_dimension_numbers<[1], [1], [0], [0], [0, 0, 1, 0], [], []>} : vector<16x256xbf16>, vector<347x256xbf16>, vector<16x347xf32> -> vector<16x347xf32>
    %cst_6 = arith.constant dense<0.000000e+00> : vector<16x347xf32>
    %7 = tpu.matmul %4, %5, %cst_6 {dimension_numbers = #tpu.dot_dimension_numbers<[1], [1], [0], [0], [0, 0, 1, 0], [], []>} : vector<16x256xbf16>, vector<347x256xbf16>, vector<16x347xf32> -> vector<16x347xf32>
    %c0_7 = arith.constant 0 : index
    %c0_8 = arith.constant 0 : index
    %8 = vector.load %arg6[%c0_7, %c0_8] : memref<347x256xbf16, #tpu.memory_space<vmem>>, vector<347x256xbf16>
    %cst_9 = arith.constant dense<0.000000e+00> : vector<16x347xf32>
    %9 = tpu.matmul %3, %8, %cst_9 {dimension_numbers = #tpu.dot_dimension_numbers<[1], [1], [0], [0], [0, 0, 1, 0], [], []>} : vector<16x256xbf16>, vector<347x256xbf16>, vector<16x347xf32> -> vector<16x347xf32>
    %c0_10 = arith.constant 0 : index
    %c0_11 = arith.constant 0 : index
    %10 = vector.load %arg11[%c0_10, %c0_11] : memref<16x347xf32, #tpu.memory_space<vmem>>, vector<16x347xf32>
    %11 = arith.addf %10, %6 : vector<16x347xf32>
    %c0_12 = arith.constant 0 : index
    %c0_13 = arith.constant 0 : index
    %12 = vector.load %arg11[%c0_12, %c0_13] : memref<16x347xf32, #tpu.memory_space<vmem>>, vector<16x347xf32>
    tpu.vector_store %arg11[%c0_12, %c0_13], %11 {strides = array<i32>} : memref<16x347xf32, #tpu.memory_space<vmem>>, vector<16x347xf32>,
    %c0_14 = arith.constant 0 : index
    %c0_15 = arith.constant 0 : index
    %13 = vector.load %arg12[%c0_14, %c0_15] : memref<16x347xf32, #tpu.memory_space<vmem>>, vector<16x347xf32>
    %14 = arith.addf %7, %9 : vector<16x347xf32>
    %15 = arith.addf %13, %14 : vector<16x347xf32>
    %c0_16 = arith.constant 0 : index
    %c0_17 = arith.constant 0 : index
    %16 = vector.load %arg12[%c0_16, %c0_17] : memref<16x347xf32, #tpu.memory_space<vmem>>, vector<16x347xf32>
    tpu.vector_store %arg12[%c0_16, %c0_17], %15 {strides = array<i32>} : memref<16x347xf32, #tpu.memory_space<vmem>>, vector<16x347xf32>,
    %c0_i32_18 = arith.constant 0 : i32
    %17 = arith.cmpi eq, %arg2, %c0_i32_18 : i32
    %18 = arith.extui %17 : i1 to i32
    %c0_i32_19 = arith.constant 0 : i32
    %19 = arith.cmpi ne, %18, %c0_i32_19 : i32
    scf.if %19 {
      %c0_20 = arith.constant 0 : index
      %c0_21 = arith.constant 0 : index
      %20 = vector.load %arg11[%c0_20, %c0_21] : memref<16x347xf32, #tpu.memory_space<vmem>>, vector<16x347xf32>
      %c0_22 = arith.constant 0 : index
      %c0_23 = arith.constant 0 : index
      %21 = vector.load %arg7[%c0_22, %c0_23] : memref<1x347xf32, #tpu.memory_space<vmem>>, vector<1x347xf32>
      %22 = vector.broadcast %21 : vector<1x347xf32> to vector<16x347xf32>
      %23 = arith.addf %20, %22 : vector<16x347xf32>
      %c0_24 = arith.constant 0 : index
      %c0_25 = arith.constant 0 : index
      %24 = vector.load %arg9[%c0_24, %c0_25] : memref<16x347xf32, #tpu.memory_space<vmem>>, vector<16x347xf32>
      tpu.vector_store %arg9[%c0_24, %c0_25], %23 {strides = array<i32>} : memref<16x347xf32, #tpu.memory_space<vmem>>, vector<16x347xf32>,
      %c0_26 = arith.constant 0 : index
      %c0_27 = arith.constant 0 : index
      %25 = vector.load %arg12[%c0_26, %c0_27] : memref<16x347xf32, #tpu.memory_space<vmem>>, vector<16x347xf32>
      %c0_28 = arith.constant 0 : index
      %c0_29 = arith.constant 0 : index
      %26 = vector.load %arg8[%c0_28, %c0_29] : memref<1x347xf32, #tpu.memory_space<vmem>>, vector<1x347xf32>
      %27 = vector.broadcast %26 : vector<1x347xf32> to vector<16x347xf32>
      %28 = arith.addf %25, %27 : vector<16x347xf32>
      %c0_30 = arith.constant 0 : index
      %c0_31 = arith.constant 0 : index
      %29 = vector.load %arg10[%c0_30, %c0_31] : memref<16x347xf32, #tpu.memory_space<vmem>>, vector<16x347xf32>
      tpu.vector_store %arg10[%c0_30, %c0_31], %28 {strides = array<i32>} : memref<16x347xf32, #tpu.memory_space<vmem>>, vector<16x347xf32>,
    } else {
    }
    return
  }
  func.func @transform_0(%arg0: i32, %arg1: i32, %arg2: i32) -> (i32, i32) {
    %c0_i32 = arith.constant 0 : i32
    return %arg0, %arg2 : i32, i32
  }
  func.func @transform_1(%arg0: i32, %arg1: i32, %arg2: i32) -> (i32, i32) {
    %c0_i32 = arith.constant 0 : i32
    return %arg0, %arg2 : i32, i32
  }
  func.func @transform_2(%arg0: i32, %arg1: i32, %arg2: i32) -> (i32, i32) {
    %c0_i32 = arith.constant 0 : i32
    return %arg1, %arg2 : i32, i32
  }
  func.func @transform_3(%arg0: i32, %arg1: i32, %arg2: i32) -> (i32, i32) {
    %c0_i32 = arith.constant 0 : i32
    return %arg1, %arg2 : i32, i32
  }
  func.func @transform_4(%arg0: i32, %arg1: i32, %arg2: i32) -> (i32, i32) {
    %c0_i32 = arith.constant 0 : i32
    %c0_i32_0 = arith.constant 0 : i32
    return %c0_i32, %arg1 : i32, i32
  }
  func.func @transform_5(%arg0: i32, %arg1: i32, %arg2: i32) -> (i32, i32) {
    %c0_i32 = arith.constant 0 : i32
    %c0_i32_0 = arith.constant 0 : i32
    return %c0_i32, %arg1 : i32, i32
  }
  func.func @transform_6(%arg0: i32, %arg1: i32, %arg2: i32) -> (i32, i32) {
    %c0_i32 = arith.constant 0 : i32
    return %arg0, %arg1 : i32, i32
  }
  func.func @transform_7(%arg0: i32, %arg1: i32, %arg2: i32) -> (i32, i32) {
    %c0_i32 = arith.constant 0 : i32
    return %arg0, %arg1 : i32, i32
  }
}

</mosaic_0001>

<bundles_post_ra>
// kernel: sub.196
= control target key start
LH: loop header
LB: loop body
LE: loop exit
PB: predicated region body
PF: predicated region fallthrough
CT: control target
= control target key end

     0   :  { %s34_s0 = inlined_call_operand.vmem [shape: f32[256], index: 0, kind: input, shape index: {}]   ;;  %s35_s1 = inlined_call_operand.vmem [shape: f32[256], index: 1, kind: input, shape index: {}]   ;;  %s36_s2 = inlined_call_operand.vmem [shape: f32[256], index: 2, kind: output, shape index: {}]  }
   0x1   :  { %v3_v0 = vld [vmem:[%s34_s0] sm:$0x3] }
   0x2   :  { %v4_v1 = vld [vmem:[%s35_s1] sm:$0x3] }
   0x3   :  { %v7_v2 = vsub.f32 %v3_v0, %v4_v1 }
   0x5   :  { %9 = vst [vmem:[%s36_s2] sm:$0x3] %v7_v2 }

// kernel: sub.192
= control target key start
LH: loop header
LB: loop body
LE: loop exit
PB: predicated region body
PF: predicated region fallthrough
CT: control target
= control target key end

     0   :  { %s34_s0 = inlined_call_operand.vmem [shape: f32[768], index: 0, kind: input, shape index: {}]   ;;  %s35_s1 = inlined_call_operand.vmem [shape: f32[768], index: 1, kind: input, shape index: {}]   ;;  %s36_s2 = inlined_call_operand.vmem [shape: f32[768], index: 2, kind: output, shape index: {}]  }
   0x1   :  { %v3_v0 = vld [vmem:[%s34_s0] sm:$0x3f] }
   0x2   :  { %v4_v1 = vld [vmem:[%s35_s1] sm:$0x3f] }
   0x3   :  { %v7_v2 = vsub.f32 %v3_v0, %v4_v1 }
   0x5   :  { %9 = vst [vmem:[%s36_s2] sm:$0xff] %v7_v2 }

// kernel: jvp__.34
= control target key start
LH: loop header
LB: loop body
LE: loop exit
PB: predicated region body
PF: predicated region fallthrough
CT: control target
= control target key end

     0   :  { %s1617_s24 = smov 0   ;;  %s1619_s25 = smov 0   ;;  %s1756_s0 = inlined_call_operand.vmem [shape: bf16[2,8,768], index: 0, kind: input, shape index: {}, may-alias: {0,1,2}]   ;;  %s1757_s1 = inlined_call_operand.vmem [shape: bf16[2,8,768], index: 1, kind: input, shape index: {}, may-alias: {0,1,2}]   ;;  %s1758_s2 = inlined_call_operand.vmem [shape: bf16[2,8,768], index: 2, kind: input, shape index: {}, may-alias: {0,1,2}]   ;;  %s1759_s3 = inlined_call_operand.vmem [shape: bf16[2,8,768], index: 3, kind: input, shape index: {}, may-alias: {3,4,5}]   ;;  %s1760_s4 = inlined_call_operand.vmem [shape: bf16[2,8,768], index: 4, kind: input, shape index: {}, may-alias: {3,4,5}]   ;;  %s1761_s5 = inlined_call_operand.vmem [shape: bf16[2,8,768], index: 5, kind: input, shape index: {}, may-alias: {3,4,5}]   ;;  %s1762_s6 = inlined_call_operand.vmem [shape: bf16[2,8,256], index: 6, kind: output, shape index: {0}]   ;;  %s1763_s7 = inlined_call_operand.vmem [shape: bf16[2,8,256], index: 7, kind: output, shape index: {1}]  }
   0x1   :  { %s1621_s26 = smov 0  }
   0x2 LB: > { %s30_s27 = sadd.s32 1, %s1569_s25  ;;  %p1369_p0 = scmp.ge.s32.totalorder %s1573_s26, 1  ;;  %s1573_s26 = sphi %s1621_s26, %s18_s26   ;;  %s1569_s25 = sphi %s1619_s25, %s1765_s25   ;;  %s1565_s24 = sphi %s1617_s24, %s1764_s24  }
   0x3   : > { %p32_p1 = scmp.ge.s32.totalorder %s30_s27, 2  ;;  %p364_p2 = scmp.lt.s32.totalorder %s1573_s26, 3 }
   0x5   : > { %s1767_s27 = smov (%p32_p1, %s30_s27), 0  ;;  %p365_p3 = pnand %p1369_p0, %p364_p2 }
   0x6   : > { %p463_p4 = scmp.lt.s32.totalorder (!%p365_p3), %s1565_s24, 1  ;;  %v1575_v0 = vmov (!%p365_p3), 0.0   ;;  %vm1576_vm0 = vmmov (!%p365_p3), 0   ;;  %v551_v9 = vlaneseq (!%p365_p3)  ;;  %vm686_vm2 = vcmask (!%p365_p3), 64512  }
   0x7   : > { %368 = sbr.rel (%p365_p3) target bundleno = 950 (0x3b6), region = 44  ;;  %1426 = vmatprep.subr.bf16.mxu1 (!%p365_p3), %v1575_v0  ;;  %1428 = vmatprep.mubr.msk.bf16.mxu1 (!%p365_p3), %vm1576_vm0, %v1575_v0  ;;  %vm708_vm3 = vcmask (!%p365_p3), 1043456  }
   0x8   : > { %1444 = vmatprep.subr.bf16.mxu0 (!%p365_p3), %v1575_v0  ;;  %1446 = vmatprep.mubr.msk.bf16.mxu0 (!%p365_p3), %vm1576_vm0, %v1575_v0  ;;  %v1676_v10 = vshrl.u32 (!%p365_p3), %v551_v9, 7  ;;  %v1678_v11 = vand.u32 (!%p365_p3), 127, %v551_v9 }
   0xa   : > { %vm555_vm1 = vcmp.le.s32.totalorder (!%p365_p3), %v1678_v11, %v1676_v10 }
   0xe   : > { %s1769_s24 = smov (!%p463_p4, %s1565_s24), 1 }
   0xf   : > { %s1644_s28 = smul.u32 24, %s1769_s24  ;;  %s1398_s30 = sshll.u32 %s1769_s24, 3 }
  0x10   : > { %s538_s10 = scalar_lea.vmem %s1762_s6, %s1398_s30  ;;  %s548_s13 = scalar_lea.vmem %s1763_s7, %s1398_s30 }
  0x11   : > { %s1391_s29 = sadd.s32 8, %s1644_s28  ;;  %s470_s12 = scalar_lea.vmem %s1756_s0, %s1644_s28 }
  0x12   : > { %s481_s9 = scalar_lea.vmem %s1757_s1, %s1391_s29  ;;  %s515_s15 = scalar_lea.vmem %s1760_s4, %s1391_s29  ;;  %v556_v2 = vld [vmem:[%s470_s12] sm:$0xf]  ;;  %v841_v6 = vld [vmem:[%s470_s12 + $0x4] sm:$0xf] }
  0x13   : > { %v557_v1 = vld [vmem:[%s481_s9] sm:$0xf]  ;;  %s504_s18 = scalar_lea.vmem %s1759_s3, %s1644_s28  ;;  %v842_v5 = vld [vmem:[%s481_s9 + $0x4] sm:$0xf]  ;;  %s1393_s19 = sadd.s32 16, %s1644_s28 }
  0x14   : > { %1427 = vmatpush3.bf16.xpose.msra.mxu1 %v557_v1  ;;  %v560_v3 = vld [vmem:[%s515_s15] sm:$0xf]  ;;  %v845_v7 = vld [vmem:[%s515_s15 + $0x4] sm:$0xf]  ;;  %s1695_s22 = scalar_lea.vmem %s1758_s2, %s1393_s19  ;;  %s1704_s29 = scalar_lea.vmem %s1761_s5, %s1393_s19 }
  0x15   : > { %1432 = vmatprep.subr.bf16.mxu1 %v1575_v0  ;;  %v559_v4 = vld [vmem:[%s504_s18] sm:$0xf]  ;;  %v844_v8 = vld [vmem:[%s504_s18 + $0x4] sm:$0xf] }
  0x16   : > { %v558_v38 = vld [vmem:[%s1695_s22] sm:$0xf] }
  0x17   : > { %v710_v39 = vsel %vm708_vm3, %v558_v38, 0  ;;  %v561_v49 = vld [vmem:[%s1704_s29] sm:$0xf] }
  0x18   : > { %1445 = vmatpush3.bf16.msra.mxu0 %v710_v39  ;;  %v754_v54 = vsel %vm708_vm3, %v561_v49, 0 }
  0x19   : > { %1450 = vmatprep.subr.bf16.mxu0 %v1575_v0 }
  0x1b   : > { %1429 = vmatmul.mubr.bf16.vlgmr.msra.gmra.mrb[0].mxu1 %v556_v2 }
  0x1c   : > { %1433 = vmatpush3.bf16.xpose.msra.mxu1 %v560_v3  ;;  %1434 = vmatprep.mubr.msk.bf16.mxu1 %vm1576_vm0, %v1575_v0 }
  0x1d   : > { %1438 = vmatprep.subr.bf16.mxu1 %v1575_v0 }
  0x23   : > { %1435 = vmatmul.mubr.bf16.vlgmr.msra.gmra.mrb[4].mxu1 %v556_v2  ;;  %v843_v2 = vld [vmem:[%s1695_s22 + $0x4] sm:$0xf] }
  0x24   : > { %1439 = vmatpush3.bf16.xpose.msra.mxu1 %v557_v1  ;;  %1440 = vmatprep.mubr.msk.bf16.mxu1 %vm1576_vm0, %v1575_v0 }
  0x25   : > { %1462 = vmatprep.subr.bf16.mxu1 %v1575_v0 }
  0x2f   : > { %1441 = vmatmul.mubr.bf16.vlgmr.msra.gmra.mrb[4].mxu1 %v559_v4 }
  0x30   : > { %1463 = vmatpush3.bf16.xpose.msra.mxu1 %v842_v5  ;;  %1464 = vmatprep.mubr.msk.bf16.mxu1 %vm1576_vm0, %v1575_v0 }
  0x31   : > { %1468 = vmatprep.subr.bf16.mxu1 %v1575_v0 }
  0x37   : > { %1465 = vmatmul.mubr.bf16.vlgmr.msra.gmra.mrb[8].mxu1 %v841_v6 }
  0x38   : > { %1470 = vmatprep.mubr.msk.bf16.mxu1 %vm1576_vm0, %v1575_v0  ;;  %1469 = vmatpush3.bf16.xpose.msra.mxu1 %v845_v7 }
  0x39   : > { %1474 = vmatprep.subr.bf16.mxu1 %v1575_v0 }
  0x3f   : > { %1471 = vmatmul.mubr.bf16.vlgmr.msra.gmra.mrb[12].mxu1 %v841_v6  ;;  %v846_v6 = vld [vmem:[%s1704_s29 + $0x4] sm:$0xf] }
  0x40   : > { %1475 = vmatpush3.bf16.xpose.msra.mxu1 %v842_v5  ;;  %1476 = vmatprep.mubr.msk.bf16.mxu1 %vm1576_vm0, %v1575_v0  ;;  %v993_v5 = vsel %vm708_vm3, %v843_v2, 0 }
  0x4b   : > { %1477 = vmatmul.mubr.bf16.vlgmr.msra.gmra.mrb[12].mxu1 %v844_v8  ;;  %v1037_v8 = vsel %vm708_vm3, %v846_v6, 0 }
  0xee   : > { %v596_v12 = vpop.f32.mrb[0].mxu1 }
  0xef   : > { %v602_v13 = vmul.f32 0.088388346, %v596_v12  ;;  %v1430_v14 = vpop.f32.mrb[1].mxu1 }
  0xf0   : > { %v599_v15 = vpop.f32.mrb[2].mxu1 }
  0xf1   : > { %v1431_v16 = vpop.f32.mrb[3].mxu1  ;;  %v684_v17 = vsel %vm555_vm1, %v602_v13, -1e+09 }
  0xf2   : > { %v687_v18 = vsel %vm686_vm2, %v684_v17, -inf }
  0xf3   : > { %688 = vmax.xlane.f32.xlu0 %v687_v18 }
 0x102   : > { %v677_v19 = vpop.f32.mrb[4].mxu1 }
 0x103   : > { %v1442_v20 = vpop.f32.mrb[5].mxu1  ;;  %v683_v47 = vmul.f32 0.088388346, %v677_v19 }
 0x104   : > { %v680_v21 = vpop.f32.mrb[6].mxu1 }
 0x105   : > { %v1443_v22 = vpop.f32.mrb[7].mxu1  ;;  %v685_v51 = vsel %vm555_vm1, %v683_v47, 0.0 }
 0x10a   : > { %v881_v23 = vpop.f32.mrb[8].mxu1 }
 0x10b   : > { %v887_v24 = vmul.f32 0.088388346, %v881_v23  ;;  %v1466_v25 = vpop.f32.mrb[9].mxu1 }
 0x10c   : > { %v884_v26 = vpop.f32.mrb[10].mxu1 }
 0x10d   : > { %v1467_v27 = vpop.f32.mrb[11].mxu1  ;;  %v969_v28 = vsel %vm555_vm1, %v887_v24, -1e+09 }
 0x10e   : > { %v971_v29 = vsel %vm686_vm2, %v969_v28, -inf }
 0x10f   : > { %972 = vmax.xlane.f32.xlu0 %v971_v29 }
 0x11e   : > { %v962_v42 = vpop.f32.mrb[12].mxu1 }
 0x11f   : > { %v1478_v43 = vpop.f32.mrb[13].mxu1  ;;  %v968_v57 = vmul.f32 0.088388346, %v962_v42 }
 0x120   : > { %v965_v44 = vpop.f32.mrb[14].mxu1 }
 0x121   : > { %v1479_v45 = vpop.f32.mrb[15].mxu1  ;;  %v970_v60 = vsel %vm555_vm1, %v968_v57, 0.0 }
 0x180   : > { %v689_v30 = vpop.xlane.xlu0 %688 }
 0x181   : > { %v690_v31 = vsub.f32 %v684_v17, %v689_v30 }
 0x183   : > { %v691_v32 = vmul.f32 1.442695, %v690_v31 }
 0x185   : > { %1543 = vpow2.f32 %v691_v32 }
 0x18f   : > { %v1544_v33 = vpop.eup %1543 }
 0x190   : > { %v693_v34 = vsel %vm686_vm2, %v1544_v33, 0.0 }
 0x191   : > { %694 = vadd.xlane.f32.xlu1 %v693_v34 }
 0x19c   : > { %v973_v35 = vpop.xlane.xlu0 %972 }
 0x19d   : > { %v974_v36 = vsub.f32 %v969_v28, %v973_v35 }
 0x19f   : > { %v975_v37 = vmul.f32 1.442695, %v974_v36 }
 0x1a1   : > { %1545 = vpow2.f32 %v975_v37 }
 0x1ab   : > { %v1546_v40 = vpop.eup %1545 }
 0x1ac   : > { %v977_v41 = vsel %vm686_vm2, %v1546_v40, 0.0 }
 0x1ad   : > { %978 = vadd.xlane.f32.xlu1 %v977_v41 }
 0x21e   : > { %v695_v46 = vpop.xlane.xlu1 %694 }
 0x21f   : > { %1547 = vrcp.f32 %v695_v46 }
 0x229   : > { %v1548_v48 = vpop.eup %1547 }
 0x22a   : > { %v697_v50 = vmul.f32 %v1548_v48, %v1544_v33 }
 0x22c   : > { %v704_v52 = vpack.c.bf16 %v697_v50, %v697_v50  ;;  %v698_v53 = vmul.f32 %v697_v50, %v685_v51 }
 0x22e   : > { %1447 = vmatmul.mubr.msk.bf16.vlgmr.msra.gmra.mrb[0].mxu0 %vm686_vm2, %v704_v52  ;;  %v699_v55 = vsel %vm686_vm2, %v698_v53, 0.0 }
 0x22f   : > { %700 = vadd.xlane.f32.xlu0 %v699_v55  ;;  %1451 = vmatpush3.bf16.msra.mxu0 %v754_v54 }
 0x230   : > { %1452 = vmatprep.mubr.msk.bf16.mxu0 %vm1576_vm0, %v1575_v0  ;;  %1456 = vmatprep.subr.bf16.mxu0 %v1575_v0 }
 0x236   : > { %1453 = vmatmul.mubr.msk.bf16.vlgmr.msra.gmra.mrb[4].mxu0 %vm686_vm2, %v704_v52 }
 0x237   : > { %1457 = vmatpush3.bf16.msra.mxu0 %v710_v39  ;;  %1458 = vmatprep.mubr.msk.bf16.mxu0 %vm1576_vm0, %v1575_v0 }
 0x238   : > { %1480 = vmatprep.subr.bf16.mxu0 %v1575_v0 }
 0x23a   : > { %v979_v56 = vpop.xlane.xlu1 %978 }
 0x23b   : > { %1549 = vrcp.f32 %v979_v56 }
 0x245   : > { %v1550_v58 = vpop.eup %1549 }
 0x246   : > { %v981_v59 = vmul.f32 %v1550_v58, %v1546_v40 }
 0x248   : > { %v982_v61 = vmul.f32 %v981_v59, %v970_v60  ;;  %v988_v7 = vpack.c.bf16 %v981_v59, %v981_v59 }
 0x24a   : > { %v983_v62 = vsel %vm686_vm2, %v982_v61, 0.0 }
 0x24b   : > { %984 = vadd.xlane.f32.xlu1 %v983_v62 }
 0x2bc   : > { %v701_v63 = vpop.xlane.xlu0 %700 }
 0x2bd   : > { %v702_v1 = vsub.f32 %v685_v51, %v701_v63 }
 0x2bf   : > { %v703_v3 = vmul.f32 %v702_v1, %v697_v50 }
 0x2c1   : > { %v752_v4 = vpack.c.bf16 %v703_v3, %v703_v3 }
 0x2c3   : > { %1459 = vmatmul.mubr.msk.bf16.vlgmr.msra.gmra.mrb[4].mxu0 %vm686_vm2, %v752_v4 }
 0x2c4   : > { %1481 = vmatpush3.bf16.msra.mxu0 %v993_v5  ;;  %1482 = vmatprep.mubr.msk.bf16.mxu0 %vm1576_vm0, %v1575_v0 }
 0x2c5   : > { %1486 = vmatprep.subr.bf16.mxu0 %v1575_v0 }
 0x2cb   : > { %1483 = vmatmul.mubr.msk.bf16.vlgmr.msra.gmra.mrb[8].mxu0 %vm686_vm2, %v988_v7 }
 0x2cc   : > { %1487 = vmatpush3.bf16.msra.mxu0 %v1037_v8  ;;  %1488 = vmatprep.mubr.msk.bf16.mxu0 %vm1576_vm0, %v1575_v0 }
 0x2cd   : > { %1492 = vmatprep.subr.bf16.mxu0 %v1575_v0 }
 0x2d3   : > { %1489 = vmatmul.mubr.msk.bf16.vlgmr.msra.gmra.mrb[12].mxu0 %vm686_vm2, %v988_v7 }
 0x2d4   : > { %1493 = vmatpush3.bf16.msra.mxu0 %v993_v5  ;;  %1494 = vmatprep.mubr.msk.bf16.mxu0 %vm1576_vm0, %v1575_v0 }
 0x2d8   : > { %v985_v9 = vpop.xlane.xlu1 %984 }
 0x2d9   : > { %v986_v10 = vsub.f32 %v970_v60, %v985_v9 }
 0x2db   : > { %v987_v11 = vmul.f32 %v986_v10, %v981_v59 }
 0x2dd   : > { %v1035_v12 = vpack.c.bf16 %v987_v11, %v987_v11 }
 0x2df   : > { %1495 = vmatmul.mubr.msk.bf16.vlgmr.msra.gmra.mrb[12].mxu0 %vm686_vm2, %v1035_v12 }
 0x301   : > { %v746_v13 = vpop.f32.mrb[0].mxu0 }
 0x302   : > { %v1448_v14 = vpop.f32.mrb[1].mxu0 }
 0x303   : > { %v749_v15 = vpop.f32.mrb[2].mxu0 }
 0x304   : > { %v1449_v16 = vpop.f32.mrb[3].mxu0 }
 0x396   : > { %v833_v17 = vpop.f32.mrb[4].mxu0 }
 0x397   : > { %v1460_v18 = vpop.f32.mrb[5].mxu0 }
 0x398   : > { %v836_v19 = vpop.f32.mrb[6].mxu0 }
 0x399   : > { %v1461_v20 = vpop.f32.mrb[7].mxu0 }
 0x39e   : > { %v1029_v0 = vpop.f32.mrb[8].mxu0 }
 0x39f   : > { %v1400_v21 = vpack.c.bf16 %v1029_v0, %v746_v13  ;;  %v1484_v22 = vpop.f32.mrb[9].mxu0 }
 0x3a0   : > { %v1032_v23 = vpop.f32.mrb[10].mxu0 }
 0x3a1   : > { %1130 = vst [vmem:[%s538_s10] sm:$0xff] %v1400_v21  ;;  %v1485_v24 = vpop.f32.mrb[11].mxu0 }
 0x3b2   : > { %v1116_v25 = vpop.f32.mrb[12].mxu0 }
 0x3b3   : > { %v1401_v26 = vpack.c.bf16 %v1116_v25, %v833_v17  ;;  %v1496_v27 = vpop.f32.mrb[13].mxu0 }
 0x3b4   : > { %v1119_v28 = vpop.f32.mrb[14].mxu0 }
 0x3b5   : > { %1137 = vst [vmem:[%s548_s13] sm:$0xff] %v1401_v26  ;;  %v1497_v29 = vpop.f32.mrb[15].mxu0 }
 0x3b6 PF: > { %s18_s26 = sadd.s32 1, %s1573_s26   ;;  %s1764_s24 = smov %s1569_s25 }
 0x3b7   : > { %p15_p5 = scmp.ge.s32.totalorder %s18_s26, 4   ;;  %s1765_s25 = smov %s1767_s27 }
 0x3b9   :  { %17 = sbr.rel (!%p15_p5) target bundleno = 2 (0x2), region = 101 }

// kernel: jvp__.33
= control target key start
LH: loop header
LB: loop body
LE: loop exit
PB: predicated region body
PF: predicated region fallthrough
CT: control target
= control target key end

     0   :  { %s2040_s24 = smov 0   ;;  %s2042_s25 = smov 0   ;;  %s2426_s0 = inlined_call_operand.vmem [shape: bf16[16,256], index: 0, kind: input, shape index: {}]   ;;  %s2427_s1 = inlined_call_operand.vmem [shape: bf16[16,256], index: 1, kind: input, shape index: {}]   ;;  %s2428_s2 = inlined_call_operand.vmem [shape: bf16[256,768], index: 2, kind: input, shape index: {}]   ;;  %s2429_s3 = inlined_call_operand.vmem [shape: bf16[256,768], index: 3, kind: input, shape index: {}]   ;;  %s2430_s4 = inlined_call_operand.vmem [shape: f32[1,768], index: 4, kind: input, shape index: {}]   ;;  %s2431_s5 = inlined_call_operand.vmem [shape: f32[1,768], index: 5, kind: input, shape index: {}]   ;;  %s2432_s6 = inlined_call_operand.vmem [shape: bf16[16,768], index: 6, kind: output, shape index: {0}]   ;;  %s2433_s7 = inlined_call_operand.vmem [shape: bf16[16,768], index: 7, kind: output, shape index: {1}]  }
   0x1   :  { %s2044_s26 = smov 0   ;;  %s2046_s27 = smov 0  }
   0x2   :  { %s2048_s28 = smov 0  }
   0x3 LB: > { %s33_s29 = sadd.s32 1, %s1994_s27  ;;  %s1707_s30 = sadd.s32 4294967295, %s1998_s28   ;;  %s1998_s28 = sphi %s2048_s28, %s18_s28   ;;  %s1994_s27 = sphi %s2046_s27, %s2439_s27   ;;  %s1990_s26 = sphi %s2044_s26, %s2438_s26   ;;  %s1986_s25 = sphi %s2042_s25, %s2437_s25   ;;  %s1982_s24 = sphi %s2040_s24, %s2436_s24  }
   0x4   : > { %p35_p0 = scmp.ge.s32.totalorder %s33_s29, 3  ;;  %p109_p1 = scmp.ne.s32.totalorder %s1986_s25, %s1982_s24 }
   0x5   : > { %p110_p2 = scmp.eq.s32.totalorder %s1998_s28, 0  ;;  %p221_p4 = scmp.eq.s32.totalorder %s1707_s30, 2 }
   0x6   : > { %s2441_s29 = smov (%p35_p0, %s33_s29), 0  ;;  %s102_s10 = sadd.s32 1, %s1986_s25 }
   0x7   : > { %p2072_p3 = por %p110_p2, %p109_p1  ;;  %s98_s9 = ssub.s32 %s1994_s27, %s2441_s29 }
   0x8   : > { %p100_p5 = scmp.eq.s32.totalorder %s98_s9, 0  ;;  %p2079_p6 = por %p221_p4, %p109_p1 }
   0x9   : > { %p1712_p7 = scmp.ge.s32.totalorder %s1998_s28, 3 }
   0xa   : > { %s2084_s12 = scalar_select %p100_p5, %s1986_s25, %s102_s10  }
   0xb   : > { %301 = sbr.rel (%p1712_p7) target bundleno = 58 (0x3a), region = 24 }
  0x12   : > { %304 = sbr.rel (!%p2072_p3) target bundleno = 38 (0x26), region = 28  ;;  %s306_s13 = sand.u32 (%p2072_p3), 1, %s1986_s25  }
  0x13   : > { %s1806_s14 = sshll.u32 (%p2072_p3), %s1994_s27, 3  ;;  %s1713_s15 = sshll.u32 (%p2072_p3), %s306_s13, 8 }
  0x14   : > { %s2094_s18 = scalar_lea.vmem (%p2072_p3), %s2428_s2, %s1806_s14  ;;  %s2099_s19 = scalar_lea.vmem (%p2072_p3), [#allocation4], %s1713_s15 }
  0x15   : > { %v404_v0 = vld [vmem:[%s2094_s18] sm:$0xff] (%p2072_p3)  ;;  %v406_v1 = vld [vmem:[%s2094_s18 + $0x18] sm:$0xff] (%p2072_p3)  ;;  %v408_v2 = vld [vmem:[%s2094_s18 + $0x30] sm:$0xff] (%p2072_p3) }
  0x16   : > { %405 = vst [vmem:[%s2099_s19] sm:$0xff] (%p2072_p3), %v404_v0  ;;  %407 = vst [vmem:[%s2099_s19 + $0x8] sm:$0xff] (%p2072_p3), %v406_v1  ;;  %v410_v3 = vld [vmem:[%s2094_s18 + $0x48] sm:$0xff] (%p2072_p3)  ;;  %v412_v4 = vld [vmem:[%s2094_s18 + $0x60] sm:$0xff] (%p2072_p3) }
  0x17   : > { %409 = vst [vmem:[%s2099_s19 + $0x10] sm:$0xff] (%p2072_p3), %v408_v2  ;;  %v414_v5 = vld [vmem:[%s2094_s18 + $0x78] sm:$0xff] (%p2072_p3)  ;;  %411 = vst [vmem:[%s2099_s19 + $0x18] sm:$0xff] (%p2072_p3), %v410_v3  ;;  %v416_v6 = vld [vmem:[%s2094_s18 + $0x90] sm:$0xff] (%p2072_p3) }
  0x18   : > { %413 = vst [vmem:[%s2099_s19 + $0x20] sm:$0xff] (%p2072_p3), %v412_v4  ;;  %415 = vst [vmem:[%s2099_s19 + $0x28] sm:$0xff] (%p2072_p3), %v414_v5  ;;  %v418_v7 = vld [vmem:[%s2094_s18 + $0xa8] sm:$0xff] (%p2072_p3)  ;;  %v420_v8 = vld [vmem:[%s2094_s18 + $0xc0] sm:$0xff] (%p2072_p3) }
  0x19   : > { %417 = vst [vmem:[%s2099_s19 + $0x30] sm:$0xff] %v416_v6  ;;  %419 = vst [vmem:[%s2099_s19 + $0x38] sm:$0xff] %v418_v7  ;;  %v422_v9 = vld [vmem:[%s2094_s18 + $0xd8] sm:$0xff]  ;;  %v424_v10 = vld [vmem:[%s2094_s18 + $0xf0] sm:$0xff] }
  0x1a   : > { %421 = vst [vmem:[%s2099_s19 + $0x40] sm:$0xff] %v420_v8  ;;  %v426_v11 = vld [vmem:[%s2094_s18 + $0x108] sm:$0xff]  ;;  %423 = vst [vmem:[%s2099_s19 + $0x48] sm:$0xff] %v422_v9  ;;  %v428_v12 = vld [vmem:[%s2094_s18 + $0x120] sm:$0xff] }
  0x1b   : > { %425 = vst [vmem:[%s2099_s19 + $0x50] sm:$0xff] %v424_v10  ;;  %427 = vst [vmem:[%s2099_s19 + $0x58] sm:$0xff] %v426_v11  ;;  %v430_v13 = vld [vmem:[%s2094_s18 + $0x138] sm:$0xff]  ;;  %v432_v14 = vld [vmem:[%s2094_s18 + $0x150] sm:$0xff] }
  0x1c   : > { %429 = vst [vmem:[%s2099_s19 + $0x60] sm:$0xff] %v428_v12  ;;  %431 = vst [vmem:[%s2099_s19 + $0x68] sm:$0xff] %v430_v13  ;;  %v434_v15 = vld [vmem:[%s2094_s18 + $0x168] sm:$0xff]  ;;  %v436_v16 = vld [vmem:[%s2094_s18 + $0x180] sm:$0xff] }
  0x1d   : > { %433 = vst [vmem:[%s2099_s19 + $0x70] sm:$0xff] %v432_v14  ;;  %v438_v17 = vld [vmem:[%s2094_s18 + $0x198] sm:$0xff]  ;;  %435 = vst [vmem:[%s2099_s19 + $0x78] sm:$0xff] %v434_v15  ;;  %v440_v18 = vld [vmem:[%s2094_s18 + $0x1b0] sm:$0xff] }
  0x1e   : > { %437 = vst [vmem:[%s2099_s19 + $0x80] sm:$0xff] %v436_v16  ;;  %439 = vst [vmem:[%s2099_s19 + $0x88] sm:$0xff] %v438_v17  ;;  %v442_v19 = vld [vmem:[%s2094_s18 + $0x1c8] sm:$0xff]  ;;  %v444_v20 = vld [vmem:[%s2094_s18 + $0x1e0] sm:$0xff] }
  0x1f   : > { %441 = vst [vmem:[%s2099_s19 + $0x90] sm:$0xff] %v440_v18  ;;  %443 = vst [vmem:[%s2099_s19 + $0x98] sm:$0xff] %v442_v19  ;;  %v446_v21 = vld [vmem:[%s2094_s18 + $0x1f8] sm:$0xff]  ;;  %v448_v22 = vld [vmem:[%s2094_s18 + $0x210] sm:$0xff] }
  0x20   : > { %445 = vst [vmem:[%s2099_s19 + $0xa0] sm:$0xff] %v444_v20  ;;  %v450_v23 = vld [vmem:[%s2094_s18 + $0x228] sm:$0xff]  ;;  %447 = vst [vmem:[%s2099_s19 + $0xa8] sm:$0xff] %v446_v21  ;;  %v452_v24 = vld [vmem:[%s2094_s18 + $0x240] sm:$0xff] }
  0x21   : > { %449 = vst [vmem:[%s2099_s19 + $0xb0] sm:$0xff] %v448_v22  ;;  %451 = vst [vmem:[%s2099_s19 + $0xb8] sm:$0xff] %v450_v23  ;;  %v454_v25 = vld [vmem:[%s2094_s18 + $0x258] sm:$0xff]  ;;  %v456_v26 = vld [vmem:[%s2094_s18 + $0x270] sm:$0xff] }
  0x22   : > { %453 = vst [vmem:[%s2099_s19 + $0xc0] sm:$0xff] %v452_v24  ;;  %455 = vst [vmem:[%s2099_s19 + $0xc8] sm:$0xff] %v454_v25  ;;  %v458_v27 = vld [vmem:[%s2094_s18 + $0x288] sm:$0xff]  ;;  %v460_v28 = vld [vmem:[%s2094_s18 + $0x2a0] sm:$0xff] }
  0x23   : > { %457 = vst [vmem:[%s2099_s19 + $0xd0] sm:$0xff] %v456_v26  ;;  %v462_v29 = vld [vmem:[%s2094_s18 + $0x2b8] sm:$0xff]  ;;  %459 = vst [vmem:[%s2099_s19 + $0xd8] sm:$0xff] %v458_v27  ;;  %v464_v30 = vld [vmem:[%s2094_s18 + $0x2d0] sm:$0xff] }
  0x24   : > { %461 = vst [vmem:[%s2099_s19 + $0xe0] sm:$0xff] %v460_v28  ;;  %463 = vst [vmem:[%s2099_s19 + $0xe8] sm:$0xff] %v462_v29  ;;  %v466_v31 = vld [vmem:[%s2094_s18 + $0x2e8] sm:$0xff] }
  0x25   : > { %465 = vst [vmem:[%s2099_s19 + $0xf0] sm:$0xff] %v464_v30  ;;  %467 = vst [vmem:[%s2099_s19 + $0xf8] sm:$0xff] %v466_v31 }
  0x26 PF: > { %473 = sbr.rel (!%p2072_p3) target bundleno = 58 (0x3a), region = 66  ;;  %s475_s20 = sand.u32 (%p2072_p3), 1, %s1986_s25  }
  0x27   : > { %s1807_s21 = sshll.u32 (%p2072_p3), %s1994_s27, 3  ;;  %s1716_s22 = sshll.u32 (%p2072_p3), %s475_s20, 8 }
  0x28   : > { %s2169_s9 = scalar_lea.vmem (%p2072_p3), %s2429_s3, %s1807_s21  ;;  %s2174_s8 = scalar_lea.vmem (%p2072_p3), [#allocation5], %s1716_s22 }
  0x29   : > { %v573_v32 = vld [vmem:[%s2169_s9] sm:$0xff] (%p2072_p3)  ;;  %v575_v33 = vld [vmem:[%s2169_s9 + $0x18] sm:$0xff] (%p2072_p3)  ;;  %v577_v34 = vld [vmem:[%s2169_s9 + $0x30] sm:$0xff] (%p2072_p3) }
  0x2a   : > { %574 = vst [vmem:[%s2174_s8] sm:$0xff] (%p2072_p3), %v573_v32  ;;  %576 = vst [vmem:[%s2174_s8 + $0x8] sm:$0xff] (%p2072_p3), %v575_v33  ;;  %v579_v35 = vld [vmem:[%s2169_s9 + $0x48] sm:$0xff] (%p2072_p3)  ;;  %v581_v36 = vld [vmem:[%s2169_s9 + $0x60] sm:$0xff] (%p2072_p3) }
  0x2b   : > { %578 = vst [vmem:[%s2174_s8 + $0x10] sm:$0xff] (%p2072_p3), %v577_v34  ;;  %v583_v37 = vld [vmem:[%s2169_s9 + $0x78] sm:$0xff] (%p2072_p3)  ;;  %580 = vst [vmem:[%s2174_s8 + $0x18] sm:$0xff] (%p2072_p3), %v579_v35  ;;  %v585_v38 = vld [vmem:[%s2169_s9 + $0x90] sm:$0xff] (%p2072_p3) }
  0x2c   : > { %582 = vst [vmem:[%s2174_s8 + $0x20] sm:$0xff] (%p2072_p3), %v581_v36  ;;  %584 = vst [vmem:[%s2174_s8 + $0x28] sm:$0xff] (%p2072_p3), %v583_v37  ;;  %v587_v39 = vld [vmem:[%s2169_s9 + $0xa8] sm:$0xff] (%p2072_p3)  ;;  %v589_v40 = vld [vmem:[%s2169_s9 + $0xc0] sm:$0xff] (%p2072_p3) }
  0x2d   : > { %586 = vst [vmem:[%s2174_s8 + $0x30] sm:$0xff] %v585_v38  ;;  %588 = vst [vmem:[%s2174_s8 + $0x38] sm:$0xff] %v587_v39  ;;  %v591_v41 = vld [vmem:[%s2169_s9 + $0xd8] sm:$0xff]  ;;  %v593_v42 = vld [vmem:[%s2169_s9 + $0xf0] sm:$0xff] }
  0x2e   : > { %590 = vst [vmem:[%s2174_s8 + $0x40] sm:$0xff] %v589_v40  ;;  %v595_v43 = vld [vmem:[%s2169_s9 + $0x108] sm:$0xff]  ;;  %592 = vst [vmem:[%s2174_s8 + $0x48] sm:$0xff] %v591_v41  ;;  %v597_v44 = vld [vmem:[%s2169_s9 + $0x120] sm:$0xff] }
  0x2f   : > { %594 = vst [vmem:[%s2174_s8 + $0x50] sm:$0xff] %v593_v42  ;;  %596 = vst [vmem:[%s2174_s8 + $0x58] sm:$0xff] %v595_v43  ;;  %v599_v45 = vld [vmem:[%s2169_s9 + $0x138] sm:$0xff]  ;;  %v601_v46 = vld [vmem:[%s2169_s9 + $0x150] sm:$0xff] }
  0x30   : > { %598 = vst [vmem:[%s2174_s8 + $0x60] sm:$0xff] %v597_v44  ;;  %600 = vst [vmem:[%s2174_s8 + $0x68] sm:$0xff] %v599_v45  ;;  %v603_v47 = vld [vmem:[%s2169_s9 + $0x168] sm:$0xff]  ;;  %v605_v48 = vld [vmem:[%s2169_s9 + $0x180] sm:$0xff] }
  0x31   : > { %602 = vst [vmem:[%s2174_s8 + $0x70] sm:$0xff] %v601_v46  ;;  %v607_v49 = vld [vmem:[%s2169_s9 + $0x198] sm:$0xff]  ;;  %604 = vst [vmem:[%s2174_s8 + $0x78] sm:$0xff] %v603_v47  ;;  %v609_v50 = vld [vmem:[%s2169_s9 + $0x1b0] sm:$0xff] }
  0x32   : > { %606 = vst [vmem:[%s2174_s8 + $0x80] sm:$0xff] %v605_v48  ;;  %608 = vst [vmem:[%s2174_s8 + $0x88] sm:$0xff] %v607_v49  ;;  %v611_v51 = vld [vmem:[%s2169_s9 + $0x1c8] sm:$0xff]  ;;  %v613_v52 = vld [vmem:[%s2169_s9 + $0x1e0] sm:$0xff] }
  0x33   : > { %610 = vst [vmem:[%s2174_s8 + $0x90] sm:$0xff] %v609_v50  ;;  %612 = vst [vmem:[%s2174_s8 + $0x98] sm:$0xff] %v611_v51  ;;  %v615_v53 = vld [vmem:[%s2169_s9 + $0x1f8] sm:$0xff]  ;;  %v617_v54 = vld [vmem:[%s2169_s9 + $0x210] sm:$0xff] }
  0x34   : > { %614 = vst [vmem:[%s2174_s8 + $0xa0] sm:$0xff] %v613_v52  ;;  %v619_v55 = vld [vmem:[%s2169_s9 + $0x228] sm:$0xff]  ;;  %616 = vst [vmem:[%s2174_s8 + $0xa8] sm:$0xff] %v615_v53  ;;  %v621_v56 = vld [vmem:[%s2169_s9 + $0x240] sm:$0xff] }
  0x35   : > { %618 = vst [vmem:[%s2174_s8 + $0xb0] sm:$0xff] %v617_v54  ;;  %620 = vst [vmem:[%s2174_s8 + $0xb8] sm:$0xff] %v619_v55  ;;  %v623_v57 = vld [vmem:[%s2169_s9 + $0x258] sm:$0xff]  ;;  %v625_v58 = vld [vmem:[%s2169_s9 + $0x270] sm:$0xff] }
  0x36   : > { %622 = vst [vmem:[%s2174_s8 + $0xc0] sm:$0xff] %v621_v56  ;;  %624 = vst [vmem:[%s2174_s8 + $0xc8] sm:$0xff] %v623_v57  ;;  %v627_v59 = vld [vmem:[%s2169_s9 + $0x288] sm:$0xff]  ;;  %v629_v60 = vld [vmem:[%s2169_s9 + $0x2a0] sm:$0xff] }
  0x37   : > { %626 = vst [vmem:[%s2174_s8 + $0xd0] sm:$0xff] %v625_v58  ;;  %v631_v61 = vld [vmem:[%s2169_s9 + $0x2b8] sm:$0xff]  ;;  %628 = vst [vmem:[%s2174_s8 + $0xd8] sm:$0xff] %v627_v59  ;;  %v633_v62 = vld [vmem:[%s2169_s9 + $0x2d0] sm:$0xff] }
  0x38   : > { %630 = vst [vmem:[%s2174_s8 + $0xe0] sm:$0xff] %v629_v60  ;;  %632 = vst [vmem:[%s2174_s8 + $0xe8] sm:$0xff] %v631_v61  ;;  %v635_v63 = vld [vmem:[%s2169_s9 + $0x2e8] sm:$0xff] }
  0x39   : > { %634 = vst [vmem:[%s2174_s8 + $0xf0] sm:$0xff] %v633_v62  ;;  %636 = vst [vmem:[%s2174_s8 + $0xf8] sm:$0xff] %v635_v63 }
  0x3a PF: > { %p1719_p8 = scmp.ge.s32.totalorder %s1998_s28, 1  ;;  %p657_p9 = scmp.lt.s32.totalorder %s1998_s28, 4 }
  0x3c   : > { %p658_p10 = pnand %p1719_p8, %p657_p9 }
  0x3d   : > { %s664_s10 = sand.u32 (!%p658_p10), 1, %s1982_s24   ;;  %v1911_v0 = vld [vmem:[%s2426_s0 + $0x4] ss:$8 sps:$4 sm:$0xff] (!%p658_p10)   ;;  %v1909_v56 = vld [vmem:[%s2426_s0] ss:$8 sps:$4 sm:$0xff] (!%p658_p10)   ;;  %s1724_s30 = sshll.u32 (!%p658_p10), %s1990_s26, 1 }
  0x3e   : > { %661 = sbr.rel (%p658_p10) target bundleno = 421 (0x1a5), region = 112  ;;  %s1720_s13 = sshll.u32 (!%p658_p10), %s664_s10, 8  ;;  %1264 = vmatprep.mubr.bf16.mxu1 (!%p658_p10), %v1911_v0  ;;  %1029 = vmatprep.mubr.bf16.mxu0 (!%p658_p10), %v1911_v0  ;;  %v1959_v57 = vld [vmem:[%s2427_s1 + $0x4] ss:$8 sps:$4 sm:$0xff] (!%p658_p10)  }
  0x3f   : > { %s2245_s16 = scalar_lea.vmem (!%p658_p10), [#allocation5], %s1720_s13  ;;  %s2260_s17 = scalar_lea.vmem (!%p658_p10), [#allocation4], %s1720_s13 }
  0x40   : > { %v1858_v1 = vld [vmem:[%s2245_s16 + $0x4] ss:$8 sps:$4 sm:$0xff] (!%p658_p10)   ;;  %v1860_v2 = vld [vmem:[%s2245_s16] ss:$8 sps:$4 sm:$0xff] (!%p658_p10)   ;;  %v1861_v3 = vld [vmem:[%s2245_s16 + $0x14] ss:$8 sps:$4 sm:$0xff] (!%p658_p10)  }
  0x41   : > { %1232 = vmatprep.subr.bf16.mxu1 (!%p658_p10), %v1858_v1  ;;  %v1863_v4 = vld [vmem:[%s2245_s16 + $0x10] ss:$8 sps:$4 sm:$0xff] (!%p658_p10)   ;;  %v1864_v5 = vld [vmem:[%s2245_s16 + $0x24] ss:$8 sps:$4 sm:$0xff] (!%p658_p10)   ;;  %v1866_v6 = vld [vmem:[%s2245_s16 + $0x20] ss:$8 sps:$4 sm:$0xff] (!%p658_p10)  }
  0x42   : > { %1233 = vmatpush1.bf16.msra.mxu1 (!%p658_p10), %v1860_v2  ;;  %v1867_v7 = vld [vmem:[%s2245_s16 + $0x34] ss:$8 sps:$4 sm:$0xff] (!%p658_p10)   ;;  %v1869_v8 = vld [vmem:[%s2245_s16 + $0x30] ss:$8 sps:$4 sm:$0xff] (!%p658_p10)   ;;  %v1870_v9 = vld [vmem:[%s2245_s16 + $0x44] ss:$8 sps:$4 sm:$0xff] (!%p658_p10)  }
  0x43   : > { %1234 = vmatprep.subr.bf16.mxu1 (!%p658_p10), %v1861_v3  ;;  %v1872_v10 = vld [vmem:[%s2245_s16 + $0x40] ss:$8 sps:$4 sm:$0xff] (!%p658_p10)   ;;  %v1873_v11 = vld [vmem:[%s2245_s16 + $0x54] ss:$8 sps:$4 sm:$0xff] (!%p658_p10)   ;;  %v1875_v12 = vld [vmem:[%s2245_s16 + $0x50] ss:$8 sps:$4 sm:$0xff] (!%p658_p10)  }
  0x44   : > { %v1876_v13 = vld [vmem:[%s2245_s16 + $0x64] ss:$8 sps:$4 sm:$0xff] (!%p658_p10)   ;;  %v1878_v15 = vld [vmem:[%s2245_s16 + $0x60] ss:$8 sps:$4 sm:$0xff] (!%p658_p10)   ;;  %v1879_v17 = vld [vmem:[%s2245_s16 + $0x74] ss:$8 sps:$4 sm:$0xff] (!%p658_p10)  }
  0x45   : > { %v2263_v14 = vld [vmem:[%s2260_s17 + $0x4] ss:$8 sps:$4 sm:$0xff]   ;;  %v2267_v16 = vld [vmem:[%s2260_s17] ss:$8 sps:$4 sm:$0xff]   ;;  %v2272_v18 = vld [vmem:[%s2260_s17 + $0x14] ss:$8 sps:$4 sm:$0xff]  }
  0x46   : > { %1235 = vmatpush1.bf16.msra.mxu1 %v1863_v4  ;;  %997 = vmatprep.subr.bf16.mxu0 %v2263_v14  ;;  %v2276_v19 = vld [vmem:[%s2260_s17 + $0x10] ss:$8 sps:$4 sm:$0xff]   ;;  %v2280_v20 = vld [vmem:[%s2260_s17 + $0x24] ss:$8 sps:$4 sm:$0xff]   ;;  %v2286_v23 = vld [vmem:[%s2260_s17 + $0x20] ss:$8 sps:$4 sm:$0xff]   ;;  %v1361_v4 = vlaneseq }
  0x47   : > { %1236 = vmatprep.subr.bf16.mxu1 %v1864_v5  ;;  %998 = vmatpush1.bf16.msra.mxu0 %v2267_v16  ;;  %v1881_v21 = vld [vmem:[%s2245_s16 + $0x70] ss:$8 sps:$4 sm:$0xff]   ;;  %v1882_v22 = vld [vmem:[%s2245_s16 + $0x84] ss:$8 sps:$4 sm:$0xff]   ;;  %v2290_v24 = vld [vmem:[%s2260_s17 + $0x34] ss:$8 sps:$4 sm:$0xff]  }
  0x48   : > { %999 = vmatprep.subr.bf16.mxu0 %v2272_v18  ;;  %v1884_v25 = vld [vmem:[%s2245_s16 + $0x80] ss:$8 sps:$4 sm:$0xff]   ;;  %v1885_v26 = vld [vmem:[%s2245_s16 + $0x94] ss:$8 sps:$4 sm:$0xff]   ;;  %v2296_v27 = vld [vmem:[%s2260_s17 + $0x30] ss:$8 sps:$4 sm:$0xff]  }
  0x49   : > { %v2300_v28 = vld [vmem:[%s2260_s17 + $0x44] ss:$8 sps:$4 sm:$0xff]   ;;  %v1887_v29 = vld [vmem:[%s2245_s16 + $0x90] ss:$8 sps:$4 sm:$0xff]   ;;  %v2306_v31 = vld [vmem:[%s2260_s17 + $0x40] ss:$8 sps:$4 sm:$0xff]  }
  0x4a   : > { %1237 = vmatpush1.bf16.msra.mxu1 %v1866_v6  ;;  %v1888_v30 = vld [vmem:[%s2245_s16 + $0xa4] ss:$8 sps:$4 sm:$0xff]   ;;  %v2310_v32 = vld [vmem:[%s2260_s17 + $0x54] ss:$8 sps:$4 sm:$0xff]   ;;  %v1890_v33 = vld [vmem:[%s2245_s16 + $0xa0] ss:$8 sps:$4 sm:$0xff]  }
  0x4b   : > { %1238 = vmatprep.subr.bf16.mxu1 %v1867_v7  ;;  %1000 = vmatpush1.bf16.msra.mxu0 %v2276_v19  ;;  %v1891_v34 = vld [vmem:[%s2245_s16 + $0xb4] ss:$8 sps:$4 sm:$0xff]   ;;  %v2316_v35 = vld [vmem:[%s2260_s17 + $0x50] ss:$8 sps:$4 sm:$0xff]   ;;  %v2320_v36 = vld [vmem:[%s2260_s17 + $0x64] ss:$8 sps:$4 sm:$0xff]  }
  0x4c   : > { %1001 = vmatprep.subr.bf16.mxu0 %v2280_v20  ;;  %v1893_v37 = vld [vmem:[%s2245_s16 + $0xb0] ss:$8 sps:$4 sm:$0xff]   ;;  %v1894_v38 = vld [vmem:[%s2245_s16 + $0xc4] ss:$8 sps:$4 sm:$0xff]   ;;  %v2326_v39 = vld [vmem:[%s2260_s17 + $0x60] ss:$8 sps:$4 sm:$0xff]  }
  0x4d   : > { %v2330_v40 = vld [vmem:[%s2260_s17 + $0x74] ss:$8 sps:$4 sm:$0xff]   ;;  %v1896_v41 = vld [vmem:[%s2245_s16 + $0xc0] ss:$8 sps:$4 sm:$0xff]   ;;  %v2336_v43 = vld [vmem:[%s2260_s17 + $0x70] ss:$8 sps:$4 sm:$0xff]  }
  0x4e   : > { %1239 = vmatpush1.bf16.msra.mxu1 %v1869_v8  ;;  %v1897_v42 = vld [vmem:[%s2245_s16 + $0xd4] ss:$8 sps:$4 sm:$0xff]   ;;  %v2340_v44 = vld [vmem:[%s2260_s17 + $0x84] ss:$8 sps:$4 sm:$0xff]   ;;  %v1899_v45 = vld [vmem:[%s2245_s16 + $0xd0] ss:$8 sps:$4 sm:$0xff]  }
  0x4f   : > { %1240 = vmatprep.subr.bf16.mxu1 %v1870_v9  ;;  %1002 = vmatpush1.bf16.msra.mxu0 %v2286_v23  ;;  %v1900_v46 = vld [vmem:[%s2245_s16 + $0xe4] ss:$8 sps:$4 sm:$0xff]   ;;  %v1935_v47 = vld [vmem:[%s2260_s17 + $0x80] ss:$8 sps:$4 sm:$0xff]   ;;  %v1936_v48 = vld [vmem:[%s2260_s17 + $0x94] ss:$8 sps:$4 sm:$0xff]  }
  0x50   : > { %1003 = vmatprep.subr.bf16.mxu0 %v2290_v24  ;;  %v1902_v49 = vld [vmem:[%s2245_s16 + $0xe0] ss:$8 sps:$4 sm:$0xff]   ;;  %v1903_v50 = vld [vmem:[%s2245_s16 + $0xf4] ss:$8 sps:$4 sm:$0xff]   ;;  %v1938_v51 = vld [vmem:[%s2260_s17 + $0x90] ss:$8 sps:$4 sm:$0xff]  }
  0x51   : > { %v1939_v52 = vld [vmem:[%s2260_s17 + $0xa4] ss:$8 sps:$4 sm:$0xff]   ;;  %v1907_v53 = vld [vmem:[%s2245_s16 + $0xf0] ss:$8 sps:$4 sm:$0xff]   ;;  %v1941_v54 = vld [vmem:[%s2260_s17 + $0xa0] ss:$8 sps:$4 sm:$0xff]  }
  0x52   : > { %1241 = vmatpush1.bf16.msra.mxu1 %v1872_v10  ;;  %v1942_v55 = vld [vmem:[%s2260_s17 + $0xb4] ss:$8 sps:$4 sm:$0xff]   ;;  %v1944_v58 = vld [vmem:[%s2260_s17 + $0xb0] ss:$8 sps:$4 sm:$0xff]   ;;  %v1945_v59 = vld [vmem:[%s2260_s17 + $0xc4] ss:$8 sps:$4 sm:$0xff]  }
  0x53   : > { %1242 = vmatprep.subr.bf16.mxu1 %v1873_v11  ;;  %1004 = vmatpush1.bf16.msra.mxu0 %v2296_v27  ;;  %v1947_v60 = vld [vmem:[%s2260_s17 + $0xc0] ss:$8 sps:$4 sm:$0xff]   ;;  %v1948_v61 = vld [vmem:[%s2260_s17 + $0xd4] ss:$8 sps:$4 sm:$0xff]   ;;  %v1950_v62 = vld [vmem:[%s2260_s17 + $0xd0] ss:$8 sps:$4 sm:$0xff]  }
  0x54   : > { %1005 = vmatprep.subr.bf16.mxu0 %v2300_v28  ;;  %v1951_v63 = vld [vmem:[%s2260_s17 + $0xe4] ss:$8 sps:$4 sm:$0xff]   ;;  %v1953_v0 = vld [vmem:[%s2260_s17 + $0xe0] ss:$8 sps:$4 sm:$0xff]   ;;  %v1954_v1 = vld [vmem:[%s2260_s17 + $0xf4] ss:$8 sps:$4 sm:$0xff]  }
  0x55   : > { %v1956_v2 = vld [vmem:[%s2260_s17 + $0xf0] ss:$8 sps:$4 sm:$0xff]   ;;  %v1957_v3 = vld [vmem:[%s2427_s1] ss:$8 sps:$4 sm:$0xff]   ;;  %p766_p11 = scmp.lt.s32.totalorder %s1724_s30, 5  ;;  %v1362_v5 = vshrl.u32 %v1361_v4, 7 }
  0x56   : > { %1243 = vmatpush1.bf16.msra.mxu1 %v1875_v12  ;;  %s1722_s14 = sshll.u32 %s664_s10, 4  ;;  %s1812_s10 = sshll.u32 (%p2079_p6), %s1990_s26, 3 }
  0x57   : > { %1244 = vmatprep.subr.bf16.mxu1 %v1876_v13  ;;  %1006 = vmatpush1.bf16.msra.mxu0 %v2306_v31  ;;  %s2443_s30 = smov (!%p766_p11, %s1724_s30), 5  ;;  %v1363_v6 = vsub.s32 0, %v1362_v5  ;;  %v1367_v8 = vsub.s32 1, %v1362_v5  ;;  %s730_s15 = scalar_lea.vmem [#allocation6], %s1722_s14 }
  0x58   : > { %1007 = vmatprep.subr.bf16.mxu0 %v2310_v32  ;;  %s768_s13 = scalar_lea.vmem %s2430_s4, %s2443_s30  ;;  %s773_s18 = scalar_lea.vmem %s2431_s5, %s2443_s30 }
  0x59   : > { %v1359_v7 = vld [vmem:[%s768_s13] sm:$0x3]  ;;  %s736_s24 = scalar_lea.vmem [#allocation7], %s1722_s14  ;;  %s1439_s21 = scalar_lea.vmem (%p2079_p6), %s2432_s6, %s1812_s10 }
  0x5a   : > { %1245 = vmatpush1.bf16.msra.mxu1 %v1878_v15  ;;  %v1364_v9 = vrot.slane %v1359_v7, %v1363_v6  ;;  %v1368_v10 = vrot.slane %v1359_v7, %v1367_v8 }
  0x5b   : > { %1246 = vmatprep.subr.bf16.mxu1 %v1879_v17  ;;  %1008 = vmatpush1.bf16.msra.mxu0 %v2316_v35 }
  0x5c   : > { %1009 = vmatprep.subr.bf16.mxu0 %v2320_v36 }
  0x5e   : > { %1247 = vmatpush1.bf16.msra.mxu1 %v1881_v21  ;;  %v1393_v21 = vld [vmem:[%s773_s18] sm:$0x3] }
  0x5f   : > { %1248 = vmatprep.subr.bf16.mxu1 %v1882_v22  ;;  %1010 = vmatpush1.bf16.msra.mxu0 %v2326_v39  ;;  %v1398_v22 = vrot.slane %v1393_v21, %v1363_v6 }
  0x60   : > { %1011 = vmatprep.subr.bf16.mxu0 %v2330_v40 }
  0x62   : > { %1249 = vmatpush1.bf16.msra.mxu1 %v1884_v25 }
  0x63   : > { %1250 = vmatprep.subr.bf16.mxu1 %v1885_v26  ;;  %1012 = vmatpush1.bf16.msra.mxu0 %v2336_v43 }
  0x64   : > { %1013 = vmatprep.subr.bf16.mxu0 %v2340_v44 }
  0x66   : > { %1251 = vmatpush1.bf16.msra.mxu1 %v1887_v29 }
  0x67   : > { %1252 = vmatprep.subr.bf16.mxu1 %v1888_v30  ;;  %1014 = vmatpush1.bf16.msra.mxu0 %v1935_v47 }
  0x68   : > { %1015 = vmatprep.subr.bf16.mxu0 %v1936_v48 }
  0x6a   : > { %1253 = vmatpush1.bf16.msra.mxu1 %v1890_v33 }
  0x6b   : > { %1254 = vmatprep.subr.bf16.mxu1 %v1891_v34  ;;  %1016 = vmatpush1.bf16.msra.mxu0 %v1938_v51 }
  0x6c   : > { %1017 = vmatprep.subr.bf16.mxu0 %v1939_v52 }
  0x6e   : > { %1255 = vmatpush1.bf16.msra.mxu1 %v1893_v37 }
  0x6f   : > { %1256 = vmatprep.subr.bf16.mxu1 %v1894_v38  ;;  %1018 = vmatpush1.bf16.msra.mxu0 %v1941_v54 }
  0x70   : > { %1019 = vmatprep.subr.bf16.mxu0 %v1942_v55 }
  0x72   : > { %1257 = vmatpush1.bf16.msra.mxu1 %v1896_v41 }
  0x73   : > { %1258 = vmatprep.subr.bf16.mxu1 %v1897_v42  ;;  %1020 = vmatpush1.bf16.msra.mxu0 %v1944_v58 }
  0x74   : > { %1021 = vmatprep.subr.bf16.mxu0 %v1945_v59 }
  0x76   : > { %1259 = vmatpush1.bf16.msra.mxu1 %v1899_v45 }
  0x77   : > { %1260 = vmatprep.subr.bf16.mxu1 %v1900_v46  ;;  %1022 = vmatpush1.bf16.msra.mxu0 %v1947_v60 }
  0x78   : > { %1023 = vmatprep.subr.bf16.mxu0 %v1948_v61 }
  0x7a   : > { %1261 = vmatpush1.bf16.msra.mxu1 %v1902_v49 }
  0x7b   : > { %1262 = vmatprep.subr.bf16.mxu1 %v1903_v50  ;;  %1024 = vmatpush1.bf16.msra.mxu0 %v1950_v62 }
  0x7c   : > { %1025 = vmatprep.subr.bf16.mxu0 %v1951_v63 }
  0x7e   : > { %1263 = vmatpush1.bf16.msra.mxu1 %v1907_v53 }
  0x7f   : > { %1301 = vmatprep.subr.bf16.mxu1 %v2263_v14  ;;  %1026 = vmatpush1.bf16.msra.mxu0 %v1953_v0 }
  0x80   : > { %1027 = vmatprep.subr.bf16.mxu0 %v1954_v1 }
  0x81   : > { %1265 = vmatmul.mubr.bf16.vlgmr.msra.gmra.mrb[0].mxu1 %v1909_v56 }
  0x82   : > { %1302 = vmatpush1.bf16.msra.mxu1 %v2267_v16  ;;  %1333 = vmatprep.mubr.bf16.mxu1 %v1959_v57 }
  0x83   : > { %1303 = vmatprep.subr.bf16.mxu1 %v2272_v18  ;;  %1028 = vmatpush1.bf16.msra.mxu0 %v1956_v2 }
  0x86   : > { %1304 = vmatpush1.bf16.msra.mxu1 %v2276_v19  ;;  %1030 = vmatmul.mubr.bf16.vlgmr.msra.gmra.mrb[0].mxu0 %v1909_v56 }
  0x87   : > { %1305 = vmatprep.subr.bf16.mxu1 %v2280_v20 }
  0x8a   : > { %1306 = vmatpush1.bf16.msra.mxu1 %v2286_v23  ;;  %v1402_v23 = vrot.slane %v1393_v21, %v1367_v8 }
  0x8b   : > { %1307 = vmatprep.subr.bf16.mxu1 %v2290_v24 }
  0x8e   : > { %1308 = vmatpush1.bf16.msra.mxu1 %v2296_v27 }
  0x8f   : > { %1309 = vmatprep.subr.bf16.mxu1 %v2300_v28 }
  0x92   : > { %1310 = vmatpush1.bf16.msra.mxu1 %v2306_v31 }
  0x93   : > { %1311 = vmatprep.subr.bf16.mxu1 %v2310_v32 }
  0x96   : > { %1312 = vmatpush1.bf16.msra.mxu1 %v2316_v35 }
  0x97   : > { %1313 = vmatprep.subr.bf16.mxu1 %v2320_v36 }
  0x9a   : > { %1314 = vmatpush1.bf16.msra.mxu1 %v2326_v39 }
  0x9b   : > { %1315 = vmatprep.subr.bf16.mxu1 %v2330_v40 }
  0x9e   : > { %1316 = vmatpush1.bf16.msra.mxu1 %v2336_v43 }
  0x9f   : > { %1317 = vmatprep.subr.bf16.mxu1 %v2340_v44 }
  0xa2   : > { %1318 = vmatpush1.bf16.msra.mxu1 %v1935_v47 }
  0xa3   : > { %1319 = vmatprep.subr.bf16.mxu1 %v1936_v48 }
  0xa6   : > { %1320 = vmatpush1.bf16.msra.mxu1 %v1938_v51 }
  0xa7   : > { %1321 = vmatprep.subr.bf16.mxu1 %v1939_v52 }
  0xaa   : > { %1322 = vmatpush1.bf16.msra.mxu1 %v1941_v54 }
  0xab   : > { %1323 = vmatprep.subr.bf16.mxu1 %v1942_v55 }
  0xae   : > { %1324 = vmatpush1.bf16.msra.mxu1 %v1944_v58 }
  0xaf   : > { %1325 = vmatprep.subr.bf16.mxu1 %v1945_v59 }
  0xb2   : > { %1326 = vmatpush1.bf16.msra.mxu1 %v1947_v60 }
  0xb3   : > { %1327 = vmatprep.subr.bf16.mxu1 %v1948_v61 }
  0xb6   : > { %1328 = vmatpush1.bf16.msra.mxu1 %v1950_v62 }
  0xb7   : > { %1329 = vmatprep.subr.bf16.mxu1 %v1951_v63 }
  0xba   : > { %1330 = vmatpush1.bf16.msra.mxu1 %v1953_v0 }
  0xbb   : > { %1331 = vmatprep.subr.bf16.mxu1 %v1954_v1 }
  0xbe   : > { %1332 = vmatpush1.bf16.msra.mxu1 %v1956_v2 }
  0xc1   : > { %1334 = vmatmul.mubr.bf16.vlgmr.msra.gmra.mrb[0].mxu1 %v1957_v3 }
 0x159   : > { %v1031_v11 = vpop.f32.mrb[0].mxu0 }
 0x15a   : > { %v1371_v12 = vadd.f32 %v1364_v9, %v1031_v11  ;;  %v1033_v13 = vpop.f32.mrb[1].mxu0 }
 0x15b   : > { %v1372_v14 = vadd.f32 %v1368_v10, %v1033_v13  ;;  %v1035_v15 = vpop.f32.mrb[2].mxu0 }
 0x15c   : > { %v1373_v16 = vadd.f32 %v1364_v9, %v1035_v15  ;;  %v1037_v17 = vpop.f32.mrb[3].mxu0 }
 0x15d   : > { %v1808_v18 = vpack.c.bf16 %v1372_v14, %v1371_v12  ;;  %v1374_v19 = vadd.f32 %v1368_v10, %v1037_v17 }
 0x15f   : > { %1387 = vst [vmem:[%s730_s15] sm:$0xff] %v1808_v18  ;;  %v1809_v20 = vpack.c.bf16 %v1374_v19, %v1373_v16 }
 0x161   : > { %1388 = vst [vmem:[%s730_s15 + $0x8] sm:$0xff] %v1809_v20 }
 0x166   : > { %v1469_v34 = vld [vmem:[%s730_s15] sm:$0xff] (%p2079_p6) }
 0x167   : > { %1470 = vst [vmem:[%s1439_s21] sm:$0xff] (%p2079_p6), %v1469_v34 }
 0x168   : > { %v1471_v35 = vld [vmem:[%s730_s15 + $0x8] sm:$0xff] (%p2079_p6) }
 0x169   : > { %1472 = vst [vmem:[%s1439_s21 + $0x18] sm:$0xff] (%p2079_p6), %v1471_v35 }
 0x194   : > { %v1335_v24 = vpop.f32.mrb[0].mxu1 }
 0x195   : > { %v1405_v25 = vadd.f32 %v1398_v22, %v1335_v24  ;;  %v1337_v26 = vpop.f32.mrb[1].mxu1 }
 0x196   : > { %v1406_v27 = vadd.f32 %v1402_v23, %v1337_v26  ;;  %v1339_v28 = vpop.f32.mrb[2].mxu1  ;;  %1433 = sbr.rel (!%p2079_p6) target bundleno = 413 (0x19d), region = 132 }
 0x197   : > { %v1407_v29 = vadd.f32 %v1398_v22, %v1339_v28  ;;  %v1341_v30 = vpop.f32.mrb[3].mxu1 }
 0x198   : > { %v1810_v31 = vpack.c.bf16 %v1406_v27, %v1405_v25  ;;  %v1408_v32 = vadd.f32 %v1402_v23, %v1341_v30 }
 0x19a   : > { %1421 = vst [vmem:[%s736_s24] sm:$0xff] %v1810_v31  ;;  %v1811_v33 = vpack.c.bf16 %v1408_v32, %v1407_v29 }
 0x19c   : > { %1422 = vst [vmem:[%s736_s24 + $0x8] sm:$0xff] %v1811_v33 }
 0x19d PF: > { %1478 = sbr.rel (!%p2079_p6) target bundleno = 421 (0x1a5), region = 170  ;;  %s1813_s22 = sshll.u32 (%p2079_p6), %s1990_s26, 3 }
 0x19e   : > { %s1484_s9 = scalar_lea.vmem (%p2079_p6), %s2433_s7, %s1813_s22 }
 0x1a1   : > { %v1514_v36 = vld [vmem:[%s736_s24] sm:$0xff] (%p2079_p6) }
 0x1a2   : > { %1515 = vst [vmem:[%s1484_s9] sm:$0xff] (%p2079_p6), %v1514_v36 }
 0x1a3   : > { %v1516_v37 = vld [vmem:[%s736_s24 + $0x8] sm:$0xff] (%p2079_p6) }
 0x1a4   : > { %1517 = vst [vmem:[%s1484_s9 + $0x18] sm:$0xff] %v1516_v37 }
 0x1a5 PF: > { %s18_s28 = sadd.s32 1, %s1998_s28   ;;  %s2436_s24 = smov %s1986_s25 }
 0x1a6   : > { %p15_p12 = scmp.ge.s32.totalorder %s18_s28, 5   ;;  %s2437_s25 = smov %s2084_s12 }
 0x1a7   : > { %s2438_s26 = smov %s1994_s27  ;;  %s2439_s27 = smov %s2441_s29 }
 0x1a8   :  { %17 = sbr.rel (!%p15_p12) target bundleno = 3 (0x3), region = 271 }

// kernel: jvp__.35
= control target key start
LH: loop header
LB: loop body
LE: loop exit
PB: predicated region body
PF: predicated region fallthrough
CT: control target
= control target key end

     0   :  { %s1173_s3 = inlined_call_operand.vmem [shape: bf16[256,256], index: 3, kind: input, shape index: {}]   ;;  %s1174_s2 = inlined_call_operand.vmem [shape: bf16[256,256], index: 2, kind: input, shape index: {}]   ;;  %s1175_s0 = inlined_call_operand.vmem [shape: bf16[16,256], index: 0, kind: input, shape index: {}]   ;;  %s1176_s1 = inlined_call_operand.vmem [shape: bf16[16,256], index: 1, kind: input, shape index: {}]   ;;  %s1177_s4 = inlined_call_operand.vmem [shape: f32[1,256], index: 4, kind: input, shape index: {}]   ;;  %s1178_s6 = inlined_call_operand.vmem [shape: f32[16,256], index: 6, kind: output, shape index: {0}]   ;;  %s1179_s5 = inlined_call_operand.vmem [shape: f32[1,256], index: 5, kind: input, shape index: {}]   ;;  %s1180_s7 = inlined_call_operand.vmem [shape: f32[16,256], index: 7, kind: output, shape index: {1}]  }
   0x1   :  { %v729_v0 = vld [vmem:[%s1173_s3 + $0x4] ss:$8 sps:$4 sm:$0xff]   ;;  %v731_v1 = vld [vmem:[%s1173_s3] ss:$8 sps:$4 sm:$0xff]   ;;  %v732_v2 = vld [vmem:[%s1173_s3 + $0x14] ss:$8 sps:$4 sm:$0xff]  }
   0x2   :  { %478 = vmatprep.subr.bf16.mxu1 %v729_v0  ;;  %v734_v3 = vld [vmem:[%s1173_s3 + $0x10] ss:$8 sps:$4 sm:$0xff]   ;;  %v735_v4 = vld [vmem:[%s1173_s3 + $0x24] ss:$8 sps:$4 sm:$0xff]   ;;  %v737_v5 = vld [vmem:[%s1173_s3 + $0x20] ss:$8 sps:$4 sm:$0xff]  }
   0x3   :  { %479 = vmatpush1.bf16.msra.mxu1 %v731_v1  ;;  %v738_v6 = vld [vmem:[%s1173_s3 + $0x34] ss:$8 sps:$4 sm:$0xff]   ;;  %v740_v7 = vld [vmem:[%s1173_s3 + $0x30] ss:$8 sps:$4 sm:$0xff]   ;;  %v741_v8 = vld [vmem:[%s1173_s3 + $0x44] ss:$8 sps:$4 sm:$0xff]  }
   0x4   :  { %480 = vmatprep.subr.bf16.mxu1 %v732_v2  ;;  %v743_v9 = vld [vmem:[%s1173_s3 + $0x40] ss:$8 sps:$4 sm:$0xff]   ;;  %v744_v10 = vld [vmem:[%s1173_s3 + $0x54] ss:$8 sps:$4 sm:$0xff]   ;;  %v746_v11 = vld [vmem:[%s1173_s3 + $0x50] ss:$8 sps:$4 sm:$0xff]  }
   0x5   :  { %v747_v12 = vld [vmem:[%s1173_s3 + $0x64] ss:$8 sps:$4 sm:$0xff]   ;;  %v749_v14 = vld [vmem:[%s1173_s3 + $0x60] ss:$8 sps:$4 sm:$0xff]   ;;  %v750_v16 = vld [vmem:[%s1173_s3 + $0x74] ss:$8 sps:$4 sm:$0xff]  }
   0x6   :  { %v913_v13 = vld [vmem:[%s1174_s2 + $0x4] ss:$8 sps:$4 sm:$0xff]   ;;  %v921_v15 = vld [vmem:[%s1174_s2] ss:$8 sps:$4 sm:$0xff]   ;;  %v934_v18 = vld [vmem:[%s1174_s2 + $0x14] ss:$8 sps:$4 sm:$0xff]  }
   0x7   :  { %481 = vmatpush1.bf16.msra.mxu1 %v734_v3  ;;  %243 = vmatprep.subr.bf16.mxu0 %v913_v13  ;;  %v782_v17 = vld [vmem:[%s1175_s0 + $0x4] ss:$8 sps:$4 sm:$0xff]   ;;  %v939_v19 = vld [vmem:[%s1174_s2 + $0x10] ss:$8 sps:$4 sm:$0xff]   ;;  %v957_v23 = vld [vmem:[%s1174_s2 + $0x20] ss:$8 sps:$4 sm:$0xff]  }
   0x8   :  { %482 = vmatprep.subr.bf16.mxu1 %v735_v4  ;;  %244 = vmatpush1.bf16.msra.mxu0 %v921_v15  ;;  %v945_v20 = vld [vmem:[%s1174_s2 + $0x24] ss:$8 sps:$4 sm:$0xff]   ;;  %v752_v21 = vld [vmem:[%s1173_s3 + $0x70] ss:$8 sps:$4 sm:$0xff]   ;;  %v963_v24 = vld [vmem:[%s1174_s2 + $0x34] ss:$8 sps:$4 sm:$0xff]   ;;  %v607_v4 = vlaneseq }
   0x9   :  { %510 = vmatprep.mubr.bf16.mxu1 %v782_v17  ;;  %275 = vmatprep.mubr.bf16.mxu0 %v782_v17  ;;  %v753_v22 = vld [vmem:[%s1173_s3 + $0x84] ss:$8 sps:$4 sm:$0xff]   ;;  %v755_v25 = vld [vmem:[%s1173_s3 + $0x80] ss:$8 sps:$4 sm:$0xff]   ;;  %v756_v26 = vld [vmem:[%s1173_s3 + $0x94] ss:$8 sps:$4 sm:$0xff]  }
   0xa   :  { %245 = vmatprep.subr.bf16.mxu0 %v934_v18  ;;  %v975_v27 = vld [vmem:[%s1174_s2 + $0x30] ss:$8 sps:$4 sm:$0xff]   ;;  %v981_v28 = vld [vmem:[%s1174_s2 + $0x44] ss:$8 sps:$4 sm:$0xff]   ;;  %v993_v31 = vld [vmem:[%s1174_s2 + $0x40] ss:$8 sps:$4 sm:$0xff]  }
   0xb   :  { %483 = vmatpush1.bf16.msra.mxu1 %v737_v5  ;;  %v758_v29 = vld [vmem:[%s1173_s3 + $0x90] ss:$8 sps:$4 sm:$0xff]   ;;  %v759_v30 = vld [vmem:[%s1173_s3 + $0xa4] ss:$8 sps:$4 sm:$0xff]   ;;  %v999_v32 = vld [vmem:[%s1174_s2 + $0x54] ss:$8 sps:$4 sm:$0xff]  }
   0xc   :  { %484 = vmatprep.subr.bf16.mxu1 %v738_v6  ;;  %246 = vmatpush1.bf16.msra.mxu0 %v939_v19  ;;  %v761_v33 = vld [vmem:[%s1173_s3 + $0xa0] ss:$8 sps:$4 sm:$0xff]   ;;  %v762_v34 = vld [vmem:[%s1173_s3 + $0xb4] ss:$8 sps:$4 sm:$0xff]   ;;  %v1011_v35 = vld [vmem:[%s1174_s2 + $0x50] ss:$8 sps:$4 sm:$0xff]  }
   0xd   :  { %247 = vmatprep.subr.bf16.mxu0 %v945_v20  ;;  %v1017_v36 = vld [vmem:[%s1174_s2 + $0x64] ss:$8 sps:$4 sm:$0xff]   ;;  %v764_v37 = vld [vmem:[%s1173_s3 + $0xb0] ss:$8 sps:$4 sm:$0xff]   ;;  %v1029_v39 = vld [vmem:[%s1174_s2 + $0x60] ss:$8 sps:$4 sm:$0xff]  }
   0xe   :  { %v765_v38 = vld [vmem:[%s1173_s3 + $0xc4] ss:$8 sps:$4 sm:$0xff]   ;;  %v1035_v40 = vld [vmem:[%s1174_s2 + $0x74] ss:$8 sps:$4 sm:$0xff]   ;;  %v767_v41 = vld [vmem:[%s1173_s3 + $0xc0] ss:$8 sps:$4 sm:$0xff]  }
   0xf   :  { %485 = vmatpush1.bf16.msra.mxu1 %v740_v7  ;;  %v768_v42 = vld [vmem:[%s1173_s3 + $0xd4] ss:$8 sps:$4 sm:$0xff]   ;;  %v1047_v43 = vld [vmem:[%s1174_s2 + $0x70] ss:$8 sps:$4 sm:$0xff]   ;;  %v1053_v44 = vld [vmem:[%s1174_s2 + $0x84] ss:$8 sps:$4 sm:$0xff]  }
  0x10   :  { %486 = vmatprep.subr.bf16.mxu1 %v741_v8  ;;  %248 = vmatpush1.bf16.msra.mxu0 %v957_v23  ;;  %v770_v45 = vld [vmem:[%s1173_s3 + $0xd0] ss:$8 sps:$4 sm:$0xff]   ;;  %v771_v46 = vld [vmem:[%s1173_s3 + $0xe4] ss:$8 sps:$4 sm:$0xff]   ;;  %v806_v47 = vld [vmem:[%s1174_s2 + $0x80] ss:$8 sps:$4 sm:$0xff]  }
  0x11   :  { %249 = vmatprep.subr.bf16.mxu0 %v963_v24  ;;  %v807_v48 = vld [vmem:[%s1174_s2 + $0x94] ss:$8 sps:$4 sm:$0xff]   ;;  %v773_v49 = vld [vmem:[%s1173_s3 + $0xe0] ss:$8 sps:$4 sm:$0xff]   ;;  %v809_v51 = vld [vmem:[%s1174_s2 + $0x90] ss:$8 sps:$4 sm:$0xff]  }
  0x12   :  { %v774_v50 = vld [vmem:[%s1173_s3 + $0xf4] ss:$8 sps:$4 sm:$0xff]   ;;  %v810_v52 = vld [vmem:[%s1174_s2 + $0xa4] ss:$8 sps:$4 sm:$0xff]   ;;  %v778_v53 = vld [vmem:[%s1173_s3 + $0xf0] ss:$8 sps:$4 sm:$0xff]  }
  0x13   :  { %487 = vmatpush1.bf16.msra.mxu1 %v743_v9  ;;  %v812_v54 = vld [vmem:[%s1174_s2 + $0xa0] ss:$8 sps:$4 sm:$0xff]   ;;  %v813_v55 = vld [vmem:[%s1174_s2 + $0xb4] ss:$8 sps:$4 sm:$0xff]   ;;  %v830_v57 = vld [vmem:[%s1176_s1 + $0x4] ss:$8 sps:$4 sm:$0xff]  }
  0x14   :  { %488 = vmatprep.subr.bf16.mxu1 %v744_v10  ;;  %250 = vmatpush1.bf16.msra.mxu0 %v975_v27  ;;  %v780_v56 = vld [vmem:[%s1175_s0] ss:$8 sps:$4 sm:$0xff]   ;;  %v815_v58 = vld [vmem:[%s1174_s2 + $0xb0] ss:$8 sps:$4 sm:$0xff]   ;;  %v816_v59 = vld [vmem:[%s1174_s2 + $0xc4] ss:$8 sps:$4 sm:$0xff]  }
  0x15   :  { %251 = vmatprep.subr.bf16.mxu0 %v981_v28  ;;  %v818_v60 = vld [vmem:[%s1174_s2 + $0xc0] ss:$8 sps:$4 sm:$0xff]   ;;  %v819_v61 = vld [vmem:[%s1174_s2 + $0xd4] ss:$8 sps:$4 sm:$0xff]   ;;  %v821_v62 = vld [vmem:[%s1174_s2 + $0xd0] ss:$8 sps:$4 sm:$0xff]  }
  0x16   :  { %v822_v63 = vld [vmem:[%s1174_s2 + $0xe4] ss:$8 sps:$4 sm:$0xff]   ;;  %v824_v0 = vld [vmem:[%s1174_s2 + $0xe0] ss:$8 sps:$4 sm:$0xff]   ;;  %v825_v1 = vld [vmem:[%s1174_s2 + $0xf4] ss:$8 sps:$4 sm:$0xff]  }
  0x17   :  { %489 = vmatpush1.bf16.msra.mxu1 %v746_v11  ;;  %v827_v2 = vld [vmem:[%s1174_s2 + $0xf0] ss:$8 sps:$4 sm:$0xff]   ;;  %v828_v3 = vld [vmem:[%s1176_s1] ss:$8 sps:$4 sm:$0xff]   ;;  %v608_v5 = vshrl.u32 %v607_v4, 7 }
  0x18   :  { %490 = vmatprep.subr.bf16.mxu1 %v747_v12  ;;  %252 = vmatpush1.bf16.msra.mxu0 %v993_v31  ;;  %v605_v7 = vld [vmem:[%s1177_s4] sm:$0x3] }
  0x19   :  { %253 = vmatprep.subr.bf16.mxu0 %v999_v32  ;;  %v609_v6 = vsub.s32 0, %v608_v5  ;;  %v613_v8 = vsub.s32 1, %v608_v5 }
  0x1b   :  { %491 = vmatpush1.bf16.msra.mxu1 %v749_v14  ;;  %v610_v9 = vrot.slane %v605_v7, %v609_v6  ;;  %v614_v10 = vrot.slane %v605_v7, %v613_v8 }
  0x1c   :  { %492 = vmatprep.subr.bf16.mxu1 %v750_v16  ;;  %254 = vmatpush1.bf16.msra.mxu0 %v1011_v35 }
  0x1d   :  { %255 = vmatprep.subr.bf16.mxu0 %v1017_v36 }
  0x1f   :  { %493 = vmatpush1.bf16.msra.mxu1 %v752_v21 }
  0x20   :  { %494 = vmatprep.subr.bf16.mxu1 %v753_v22  ;;  %256 = vmatpush1.bf16.msra.mxu0 %v1029_v39 }
  0x21   :  { %257 = vmatprep.subr.bf16.mxu0 %v1035_v40 }
  0x23   :  { %495 = vmatpush1.bf16.msra.mxu1 %v755_v25 }
  0x24   :  { %496 = vmatprep.subr.bf16.mxu1 %v756_v26  ;;  %258 = vmatpush1.bf16.msra.mxu0 %v1047_v43 }
  0x25   :  { %259 = vmatprep.subr.bf16.mxu0 %v1053_v44 }
  0x27   :  { %497 = vmatpush1.bf16.msra.mxu1 %v758_v29 }
  0x28   :  { %498 = vmatprep.subr.bf16.mxu1 %v759_v30  ;;  %260 = vmatpush1.bf16.msra.mxu0 %v806_v47 }
  0x29   :  { %261 = vmatprep.subr.bf16.mxu0 %v807_v48 }
  0x2b   :  { %499 = vmatpush1.bf16.msra.mxu1 %v761_v33 }
  0x2c   :  { %500 = vmatprep.subr.bf16.mxu1 %v762_v34  ;;  %262 = vmatpush1.bf16.msra.mxu0 %v809_v51 }
  0x2d   :  { %263 = vmatprep.subr.bf16.mxu0 %v810_v52 }
  0x2f   :  { %501 = vmatpush1.bf16.msra.mxu1 %v764_v37 }
  0x30   :  { %502 = vmatprep.subr.bf16.mxu1 %v765_v38  ;;  %264 = vmatpush1.bf16.msra.mxu0 %v812_v54 }
  0x31   :  { %265 = vmatprep.subr.bf16.mxu0 %v813_v55 }
  0x33   :  { %503 = vmatpush1.bf16.msra.mxu1 %v767_v41 }
  0x34   :  { %504 = vmatprep.subr.bf16.mxu1 %v768_v42  ;;  %266 = vmatpush1.bf16.msra.mxu0 %v815_v58 }
  0x35   :  { %267 = vmatprep.subr.bf16.mxu0 %v816_v59 }
  0x37   :  { %505 = vmatpush1.bf16.msra.mxu1 %v770_v45 }
  0x38   :  { %506 = vmatprep.subr.bf16.mxu1 %v771_v46  ;;  %268 = vmatpush1.bf16.msra.mxu0 %v818_v60 }
  0x39   :  { %269 = vmatprep.subr.bf16.mxu0 %v819_v61 }
  0x3b   :  { %507 = vmatpush1.bf16.msra.mxu1 %v773_v49 }
  0x3c   :  { %508 = vmatprep.subr.bf16.mxu1 %v774_v50  ;;  %270 = vmatpush1.bf16.msra.mxu0 %v821_v62 }
  0x3d   :  { %271 = vmatprep.subr.bf16.mxu0 %v822_v63 }
  0x3f   :  { %509 = vmatpush1.bf16.msra.mxu1 %v778_v53 }
  0x40   :  { %547 = vmatprep.subr.bf16.mxu1 %v913_v13  ;;  %272 = vmatpush1.bf16.msra.mxu0 %v824_v0 }
  0x41   :  { %273 = vmatprep.subr.bf16.mxu0 %v825_v1 }
  0x42   :  { %511 = vmatmul.mubr.bf16.vlgmr.msra.gmra.mrb[0].mxu1 %v780_v56 }
  0x43   :  { %548 = vmatpush1.bf16.msra.mxu1 %v921_v15  ;;  %579 = vmatprep.mubr.bf16.mxu1 %v830_v57 }
  0x44   :  { %549 = vmatprep.subr.bf16.mxu1 %v934_v18  ;;  %274 = vmatpush1.bf16.msra.mxu0 %v827_v2 }
  0x47   :  { %550 = vmatpush1.bf16.msra.mxu1 %v939_v19  ;;  %276 = vmatmul.mubr.bf16.vlgmr.msra.gmra.mrb[0].mxu0 %v780_v56  ;;  %v629_v19 = vld [vmem:[%s1179_s5] sm:$0x3] }
  0x48   :  { %551 = vmatprep.subr.bf16.mxu1 %v945_v20  ;;  %v634_v20 = vrot.slane %v629_v19, %v609_v6  ;;  %v638_v21 = vrot.slane %v629_v19, %v613_v8 }
  0x4b   :  { %552 = vmatpush1.bf16.msra.mxu1 %v957_v23 }
  0x4c   :  { %553 = vmatprep.subr.bf16.mxu1 %v963_v24 }
  0x4f   :  { %554 = vmatpush1.bf16.msra.mxu1 %v975_v27 }
  0x50   :  { %555 = vmatprep.subr.bf16.mxu1 %v981_v28 }
  0x53   :  { %556 = vmatpush1.bf16.msra.mxu1 %v993_v31 }
  0x54   :  { %557 = vmatprep.subr.bf16.mxu1 %v999_v32 }
  0x57   :  { %558 = vmatpush1.bf16.msra.mxu1 %v1011_v35 }
  0x58   :  { %559 = vmatprep.subr.bf16.mxu1 %v1017_v36 }
  0x5b   :  { %560 = vmatpush1.bf16.msra.mxu1 %v1029_v39 }
  0x5c   :  { %561 = vmatprep.subr.bf16.mxu1 %v1035_v40 }
  0x5f   :  { %562 = vmatpush1.bf16.msra.mxu1 %v1047_v43 }
  0x60   :  { %563 = vmatprep.subr.bf16.mxu1 %v1053_v44 }
  0x63   :  { %564 = vmatpush1.bf16.msra.mxu1 %v806_v47 }
  0x64   :  { %565 = vmatprep.subr.bf16.mxu1 %v807_v48 }
  0x67   :  { %566 = vmatpush1.bf16.msra.mxu1 %v809_v51 }
  0x68   :  { %567 = vmatprep.subr.bf16.mxu1 %v810_v52 }
  0x6b   :  { %568 = vmatpush1.bf16.msra.mxu1 %v812_v54 }
  0x6c   :  { %569 = vmatprep.subr.bf16.mxu1 %v813_v55 }
  0x6f   :  { %570 = vmatpush1.bf16.msra.mxu1 %v815_v58 }
  0x70   :  { %571 = vmatprep.subr.bf16.mxu1 %v816_v59 }
  0x73   :  { %572 = vmatpush1.bf16.msra.mxu1 %v818_v60 }
  0x74   :  { %573 = vmatprep.subr.bf16.mxu1 %v819_v61 }
  0x77   :  { %574 = vmatpush1.bf16.msra.mxu1 %v821_v62 }
  0x78   :  { %575 = vmatprep.subr.bf16.mxu1 %v822_v63 }
  0x7b   :  { %576 = vmatpush1.bf16.msra.mxu1 %v824_v0 }
  0x7c   :  { %577 = vmatprep.subr.bf16.mxu1 %v825_v1 }
  0x7f   :  { %578 = vmatpush1.bf16.msra.mxu1 %v827_v2 }
  0x82   :  { %580 = vmatmul.mubr.bf16.vlgmr.msra.gmra.mrb[0].mxu1 %v828_v3 }
 0x11a   :  { %v277_v11 = vpop.f32.mrb[0].mxu0 }
 0x11b   :  { %v617_v12 = vadd.f32 %v610_v9, %v277_v11  ;;  %v279_v13 = vpop.f32.mrb[1].mxu0 }
 0x11c   :  { %v618_v14 = vadd.f32 %v614_v10, %v279_v13  ;;  %v281_v15 = vpop.f32.mrb[2].mxu0 }
 0x11d   :  { %621 = vst [vmem:[%s1178_s6] sm:$0xff] %v617_v12  ;;  %v619_v16 = vadd.f32 %v610_v9, %v281_v15  ;;  %v283_v17 = vpop.f32.mrb[3].mxu0 }
 0x11e   :  { %622 = vst [vmem:[%s1178_s6 + $0x8] sm:$0xff] %v618_v14  ;;  %v620_v18 = vadd.f32 %v614_v10, %v283_v17 }
 0x11f   :  { %623 = vst [vmem:[%s1178_s6 + $0x10] sm:$0xff] %v619_v16 }
 0x120   :  { %624 = vst [vmem:[%s1178_s6 + $0x18] sm:$0xff] %v620_v18 }
 0x155   :  { %v581_v22 = vpop.f32.mrb[0].mxu1 }
 0x156   :  { %v641_v23 = vadd.f32 %v634_v20, %v581_v22  ;;  %v583_v24 = vpop.f32.mrb[1].mxu1 }
 0x157   :  { %v642_v25 = vadd.f32 %v638_v21, %v583_v24  ;;  %v585_v26 = vpop.f32.mrb[2].mxu1 }
 0x158   :  { %645 = vst [vmem:[%s1180_s7] sm:$0xff] %v641_v23  ;;  %v643_v27 = vadd.f32 %v634_v20, %v585_v26  ;;  %v587_v28 = vpop.f32.mrb[3].mxu1 }
 0x159   :  { %646 = vst [vmem:[%s1180_s7 + $0x8] sm:$0xff] %v642_v25  ;;  %v644_v29 = vadd.f32 %v638_v21, %v587_v28 }
 0x15a   :  { %647 = vst [vmem:[%s1180_s7 + $0x10] sm:$0xff] %v643_v27 }
 0x15b   :  { %648 = vst [vmem:[%s1180_s7 + $0x18] sm:$0xff] %v644_v29 }

// kernel: sub.194
= control target key start
LH: loop header
LB: loop body
LE: loop exit
PB: predicated region body
PF: predicated region fallthrough
CT: control target
= control target key end

     0   :  { %s34_s0 = inlined_call_operand.vmem [shape: f32[1024], index: 0, kind: input, shape index: {}]   ;;  %s35_s1 = inlined_call_operand.vmem [shape: f32[1024], index: 1, kind: input, shape index: {}]   ;;  %s36_s2 = inlined_call_operand.vmem [shape: f32[1024], index: 2, kind: output, shape index: {}]  }
   0x1   :  { %v3_v0 = vld [vmem:[%s34_s0] sm:$0xff] }
   0x2   :  { %v4_v1 = vld [vmem:[%s35_s1] sm:$0xff] }
   0x3   :  { %v7_v2 = vsub.f32 %v3_v0, %v4_v1 }
   0x5   :  { %9 = vst [vmem:[%s36_s2] sm:$0xff] %v7_v2 }

// kernel: jvp__.36
= control target key start
LH: loop header
LB: loop body
LE: loop exit
PB: predicated region body
PF: predicated region fallthrough
CT: control target
= control target key end

     0   :  { %s2729_s24 = smov 0   ;;  %s2731_s25 = smov 0   ;;  %s3555_s0 = inlined_call_operand.vmem [shape: bf16[16,256], index: 0, kind: input, shape index: {}]   ;;  %s3556_s1 = inlined_call_operand.vmem [shape: bf16[16,256], index: 1, kind: input, shape index: {}]   ;;  %s3557_s2 = inlined_call_operand.vmem [shape: bf16[256,1024], index: 2, kind: input, shape index: {}]   ;;  %s3558_s3 = inlined_call_operand.vmem [shape: bf16[256,1024], index: 3, kind: input, shape index: {}]   ;;  %s3559_s4 = inlined_call_operand.vmem [shape: f32[1,1024], index: 4, kind: input, shape index: {}]   ;;  %s3560_s5 = inlined_call_operand.vmem [shape: f32[1,1024], index: 5, kind: input, shape index: {}]   ;;  %s3561_s6 = inlined_call_operand.vmem [shape: f32[16,1024], index: 6, kind: output, shape index: {0}]   ;;  %s3562_s7 = inlined_call_operand.vmem [shape: f32[16,1024], index: 7, kind: output, shape index: {1}]  }
   0x1   :  { %s2733_s26 = smov 0   ;;  %s2735_s27 = smov 0  }
   0x2   :  { %s2737_s28 = smov 0  }
   0x3 LB: > { %s33_s29 = sadd.s32 1, %s2683_s27  ;;  %s2240_s30 = sadd.s32 4294967295, %s2687_s28   ;;  %s2687_s28 = sphi %s2737_s28, %s18_s28   ;;  %s2683_s27 = sphi %s2735_s27, %s3607_s27   ;;  %s2679_s26 = sphi %s2733_s26, %s3606_s26   ;;  %s2675_s25 = sphi %s2731_s25, %s3605_s25   ;;  %s2671_s24 = sphi %s2729_s24, %s3604_s24  }
   0x4   : > { %p35_p0 = scmp.ge.s32.totalorder %s33_s29, 2  ;;  %p109_p1 = scmp.ne.s32.totalorder %s2675_s25, %s2671_s24 }
   0x5   : > { %p110_p2 = scmp.eq.s32.totalorder %s2687_s28, 0  ;;  %p221_p4 = scmp.eq.s32.totalorder %s2240_s30, 1 }
   0x6   : > { %s3609_s29 = smov (%p35_p0, %s33_s29), 0  ;;  %s102_s10 = sadd.s32 1, %s2675_s25 }
   0x7   : > { %p2761_p3 = por %p110_p2, %p109_p1  ;;  %s98_s9 = ssub.s32 %s2683_s27, %s3609_s29 }
   0x8   : > { %p100_p5 = scmp.eq.s32.totalorder %s98_s9, 0  ;;  %p2768_p6 = por %p221_p4, %p109_p1 }
   0x9   : > { %p2245_p7 = scmp.ge.s32.totalorder %s2687_s28, 2 }
   0xa   : > { %s2773_s12 = scalar_select %p100_p5, %s2675_s25, %s102_s10  }
   0xb   : > { %301 = sbr.rel (%p2245_p7) target bundleno = 90 (0x5a), region = 24 }
  0x12   : > { %304 = sbr.rel (!%p2761_p3) target bundleno = 54 (0x36), region = 28  ;;  %s306_s13 = sand.u32 (%p2761_p3), 1, %s2675_s25  }
  0x13   : > { %s2399_s14 = sshll.u32 (%p2761_p3), %s2683_s27, 4  ;;  %s2246_s15 = sshll.u32 (%p2761_p3), %s306_s13, 9 }
  0x14   : > { %s2783_s18 = scalar_lea.vmem (%p2761_p3), %s3557_s2, %s2399_s14  ;;  %s2788_s19 = scalar_lea.vmem (%p2761_p3), [#allocation4], %s2246_s15 }
  0x15   : > { %v327_v0 = vld [vmem:[%s2783_s18] sm:$0xff] (%p2761_p3)  ;;  %v329_v1 = vld [vmem:[%s2783_s18 + $0x8] sm:$0xff] (%p2761_p3) }
  0x16   : > { %v331_v2 = vld [vmem:[%s2783_s18 + $0x20] sm:$0xff] (%p2761_p3)  ;;  %328 = vst [vmem:[%s2788_s19] sm:$0xff] (%p2761_p3), %v327_v0  ;;  %330 = vst [vmem:[%s2788_s19 + $0x8] sm:$0xff] (%p2761_p3), %v329_v1  ;;  %v333_v3 = vld [vmem:[%s2783_s18 + $0x28] sm:$0xff] (%p2761_p3) }
  0x17   : > { %332 = vst [vmem:[%s2788_s19 + $0x10] sm:$0xff] (%p2761_p3), %v331_v2  ;;  %v335_v4 = vld [vmem:[%s2783_s18 + $0x40] sm:$0xff] (%p2761_p3)  ;;  %v337_v5 = vld [vmem:[%s2783_s18 + $0x48] sm:$0xff] (%p2761_p3)  ;;  %334 = vst [vmem:[%s2788_s19 + $0x18] sm:$0xff] (%p2761_p3), %v333_v3 }
  0x18   : > { %336 = vst [vmem:[%s2788_s19 + $0x20] sm:$0xff] (%p2761_p3), %v335_v4  ;;  %338 = vst [vmem:[%s2788_s19 + $0x28] sm:$0xff] (%p2761_p3), %v337_v5  ;;  %v339_v6 = vld [vmem:[%s2783_s18 + $0x60] sm:$0xff] (%p2761_p3)  ;;  %v341_v7 = vld [vmem:[%s2783_s18 + $0x68] sm:$0xff] (%p2761_p3) }
  0x19   : > { %v343_v8 = vld [vmem:[%s2783_s18 + $0x80] sm:$0xff]  ;;  %340 = vst [vmem:[%s2788_s19 + $0x30] sm:$0xff] %v339_v6  ;;  %342 = vst [vmem:[%s2788_s19 + $0x38] sm:$0xff] %v341_v7  ;;  %v345_v9 = vld [vmem:[%s2783_s18 + $0x88] sm:$0xff] }
  0x1a   : > { %344 = vst [vmem:[%s2788_s19 + $0x40] sm:$0xff] %v343_v8  ;;  %v347_v10 = vld [vmem:[%s2783_s18 + $0xa0] sm:$0xff]  ;;  %v349_v11 = vld [vmem:[%s2783_s18 + $0xa8] sm:$0xff]  ;;  %346 = vst [vmem:[%s2788_s19 + $0x48] sm:$0xff] %v345_v9 }
  0x1b   : > { %348 = vst [vmem:[%s2788_s19 + $0x50] sm:$0xff] %v347_v10  ;;  %350 = vst [vmem:[%s2788_s19 + $0x58] sm:$0xff] %v349_v11  ;;  %v351_v12 = vld [vmem:[%s2783_s18 + $0xc0] sm:$0xff]  ;;  %v353_v13 = vld [vmem:[%s2783_s18 + $0xc8] sm:$0xff] }
  0x1c   : > { %v355_v14 = vld [vmem:[%s2783_s18 + $0xe0] sm:$0xff]  ;;  %352 = vst [vmem:[%s2788_s19 + $0x60] sm:$0xff] %v351_v12  ;;  %354 = vst [vmem:[%s2788_s19 + $0x68] sm:$0xff] %v353_v13  ;;  %v357_v15 = vld [vmem:[%s2783_s18 + $0xe8] sm:$0xff] }
  0x1d   : > { %356 = vst [vmem:[%s2788_s19 + $0x70] sm:$0xff] %v355_v14  ;;  %v359_v16 = vld [vmem:[%s2783_s18 + $0x100] sm:$0xff]  ;;  %v361_v17 = vld [vmem:[%s2783_s18 + $0x108] sm:$0xff]  ;;  %358 = vst [vmem:[%s2788_s19 + $0x78] sm:$0xff] %v357_v15 }
  0x1e   : > { %360 = vst [vmem:[%s2788_s19 + $0x80] sm:$0xff] %v359_v16  ;;  %362 = vst [vmem:[%s2788_s19 + $0x88] sm:$0xff] %v361_v17  ;;  %v363_v18 = vld [vmem:[%s2783_s18 + $0x120] sm:$0xff]  ;;  %v365_v19 = vld [vmem:[%s2783_s18 + $0x128] sm:$0xff] }
  0x1f   : > { %v367_v20 = vld [vmem:[%s2783_s18 + $0x140] sm:$0xff]  ;;  %364 = vst [vmem:[%s2788_s19 + $0x90] sm:$0xff] %v363_v18  ;;  %366 = vst [vmem:[%s2788_s19 + $0x98] sm:$0xff] %v365_v19  ;;  %v369_v21 = vld [vmem:[%s2783_s18 + $0x148] sm:$0xff] }
  0x20   : > { %368 = vst [vmem:[%s2788_s19 + $0xa0] sm:$0xff] %v367_v20  ;;  %v371_v22 = vld [vmem:[%s2783_s18 + $0x160] sm:$0xff]  ;;  %v373_v23 = vld [vmem:[%s2783_s18 + $0x168] sm:$0xff]  ;;  %370 = vst [vmem:[%s2788_s19 + $0xa8] sm:$0xff] %v369_v21 }
  0x21   : > { %372 = vst [vmem:[%s2788_s19 + $0xb0] sm:$0xff] %v371_v22  ;;  %374 = vst [vmem:[%s2788_s19 + $0xb8] sm:$0xff] %v373_v23  ;;  %v375_v24 = vld [vmem:[%s2783_s18 + $0x180] sm:$0xff]  ;;  %v377_v25 = vld [vmem:[%s2783_s18 + $0x188] sm:$0xff] }
  0x22   : > { %v379_v26 = vld [vmem:[%s2783_s18 + $0x1a0] sm:$0xff]  ;;  %376 = vst [vmem:[%s2788_s19 + $0xc0] sm:$0xff] %v375_v24  ;;  %378 = vst [vmem:[%s2788_s19 + $0xc8] sm:$0xff] %v377_v25  ;;  %v381_v27 = vld [vmem:[%s2783_s18 + $0x1a8] sm:$0xff] }
  0x23   : > { %380 = vst [vmem:[%s2788_s19 + $0xd0] sm:$0xff] %v379_v26  ;;  %v383_v28 = vld [vmem:[%s2783_s18 + $0x1c0] sm:$0xff]  ;;  %v385_v29 = vld [vmem:[%s2783_s18 + $0x1c8] sm:$0xff]  ;;  %382 = vst [vmem:[%s2788_s19 + $0xd8] sm:$0xff] %v381_v27 }
  0x24   : > { %384 = vst [vmem:[%s2788_s19 + $0xe0] sm:$0xff] %v383_v28  ;;  %386 = vst [vmem:[%s2788_s19 + $0xe8] sm:$0xff] %v385_v29  ;;  %v387_v30 = vld [vmem:[%s2783_s18 + $0x1e0] sm:$0xff]  ;;  %v389_v31 = vld [vmem:[%s2783_s18 + $0x1e8] sm:$0xff] }
  0x25   : > { %v391_v32 = vld [vmem:[%s2783_s18 + $0x200] sm:$0xff]  ;;  %388 = vst [vmem:[%s2788_s19 + $0xf0] sm:$0xff] %v387_v30  ;;  %390 = vst [vmem:[%s2788_s19 + $0xf8] sm:$0xff] %v389_v31  ;;  %v393_v33 = vld [vmem:[%s2783_s18 + $0x208] sm:$0xff] }
  0x26   : > { %392 = vst [vmem:[%s2788_s19 + $0x100] sm:$0xff] %v391_v32  ;;  %v395_v34 = vld [vmem:[%s2783_s18 + $0x220] sm:$0xff]  ;;  %v397_v35 = vld [vmem:[%s2783_s18 + $0x228] sm:$0xff]  ;;  %394 = vst [vmem:[%s2788_s19 + $0x108] sm:$0xff] %v393_v33 }
  0x27   : > { %396 = vst [vmem:[%s2788_s19 + $0x110] sm:$0xff] %v395_v34  ;;  %398 = vst [vmem:[%s2788_s19 + $0x118] sm:$0xff] %v397_v35  ;;  %v399_v36 = vld [vmem:[%s2783_s18 + $0x240] sm:$0xff]  ;;  %v401_v37 = vld [vmem:[%s2783_s18 + $0x248] sm:$0xff] }
  0x28   : > { %v403_v38 = vld [vmem:[%s2783_s18 + $0x260] sm:$0xff]  ;;  %400 = vst [vmem:[%s2788_s19 + $0x120] sm:$0xff] %v399_v36  ;;  %402 = vst [vmem:[%s2788_s19 + $0x128] sm:$0xff] %v401_v37  ;;  %v405_v39 = vld [vmem:[%s2783_s18 + $0x268] sm:$0xff] }
  0x29   : > { %404 = vst [vmem:[%s2788_s19 + $0x130] sm:$0xff] %v403_v38  ;;  %v407_v40 = vld [vmem:[%s2783_s18 + $0x280] sm:$0xff]  ;;  %v409_v41 = vld [vmem:[%s2783_s18 + $0x288] sm:$0xff]  ;;  %406 = vst [vmem:[%s2788_s19 + $0x138] sm:$0xff] %v405_v39 }
  0x2a   : > { %408 = vst [vmem:[%s2788_s19 + $0x140] sm:$0xff] %v407_v40  ;;  %410 = vst [vmem:[%s2788_s19 + $0x148] sm:$0xff] %v409_v41  ;;  %v411_v42 = vld [vmem:[%s2783_s18 + $0x2a0] sm:$0xff]  ;;  %v413_v43 = vld [vmem:[%s2783_s18 + $0x2a8] sm:$0xff] }
  0x2b   : > { %v415_v44 = vld [vmem:[%s2783_s18 + $0x2c0] sm:$0xff]  ;;  %412 = vst [vmem:[%s2788_s19 + $0x150] sm:$0xff] %v411_v42  ;;  %414 = vst [vmem:[%s2788_s19 + $0x158] sm:$0xff] %v413_v43  ;;  %v417_v45 = vld [vmem:[%s2783_s18 + $0x2c8] sm:$0xff] }
  0x2c   : > { %416 = vst [vmem:[%s2788_s19 + $0x160] sm:$0xff] %v415_v44  ;;  %v419_v46 = vld [vmem:[%s2783_s18 + $0x2e0] sm:$0xff]  ;;  %v421_v47 = vld [vmem:[%s2783_s18 + $0x2e8] sm:$0xff]  ;;  %418 = vst [vmem:[%s2788_s19 + $0x168] sm:$0xff] %v417_v45 }
  0x2d   : > { %420 = vst [vmem:[%s2788_s19 + $0x170] sm:$0xff] %v419_v46  ;;  %422 = vst [vmem:[%s2788_s19 + $0x178] sm:$0xff] %v421_v47  ;;  %v423_v48 = vld [vmem:[%s2783_s18 + $0x300] sm:$0xff]  ;;  %v425_v49 = vld [vmem:[%s2783_s18 + $0x308] sm:$0xff] }
  0x2e   : > { %v427_v50 = vld [vmem:[%s2783_s18 + $0x320] sm:$0xff]  ;;  %424 = vst [vmem:[%s2788_s19 + $0x180] sm:$0xff] %v423_v48  ;;  %426 = vst [vmem:[%s2788_s19 + $0x188] sm:$0xff] %v425_v49  ;;  %v429_v51 = vld [vmem:[%s2783_s18 + $0x328] sm:$0xff] }
  0x2f   : > { %428 = vst [vmem:[%s2788_s19 + $0x190] sm:$0xff] %v427_v50  ;;  %v431_v52 = vld [vmem:[%s2783_s18 + $0x340] sm:$0xff]  ;;  %v433_v53 = vld [vmem:[%s2783_s18 + $0x348] sm:$0xff]  ;;  %430 = vst [vmem:[%s2788_s19 + $0x198] sm:$0xff] %v429_v51 }
  0x30   : > { %432 = vst [vmem:[%s2788_s19 + $0x1a0] sm:$0xff] %v431_v52  ;;  %434 = vst [vmem:[%s2788_s19 + $0x1a8] sm:$0xff] %v433_v53  ;;  %v435_v54 = vld [vmem:[%s2783_s18 + $0x360] sm:$0xff]  ;;  %v437_v55 = vld [vmem:[%s2783_s18 + $0x368] sm:$0xff] }
  0x31   : > { %v439_v56 = vld [vmem:[%s2783_s18 + $0x380] sm:$0xff]  ;;  %436 = vst [vmem:[%s2788_s19 + $0x1b0] sm:$0xff] %v435_v54  ;;  %438 = vst [vmem:[%s2788_s19 + $0x1b8] sm:$0xff] %v437_v55  ;;  %v441_v57 = vld [vmem:[%s2783_s18 + $0x388] sm:$0xff] }
  0x32   : > { %440 = vst [vmem:[%s2788_s19 + $0x1c0] sm:$0xff] %v439_v56  ;;  %v443_v58 = vld [vmem:[%s2783_s18 + $0x3a0] sm:$0xff]  ;;  %v445_v59 = vld [vmem:[%s2783_s18 + $0x3a8] sm:$0xff]  ;;  %442 = vst [vmem:[%s2788_s19 + $0x1c8] sm:$0xff] %v441_v57 }
  0x33   : > { %444 = vst [vmem:[%s2788_s19 + $0x1d0] sm:$0xff] %v443_v58  ;;  %446 = vst [vmem:[%s2788_s19 + $0x1d8] sm:$0xff] %v445_v59  ;;  %v447_v60 = vld [vmem:[%s2783_s18 + $0x3c0] sm:$0xff]  ;;  %v449_v61 = vld [vmem:[%s2783_s18 + $0x3c8] sm:$0xff] }
  0x34   : > { %v451_v62 = vld [vmem:[%s2783_s18 + $0x3e0] sm:$0xff]  ;;  %448 = vst [vmem:[%s2788_s19 + $0x1e0] sm:$0xff] %v447_v60  ;;  %450 = vst [vmem:[%s2788_s19 + $0x1e8] sm:$0xff] %v449_v61  ;;  %v453_v63 = vld [vmem:[%s2783_s18 + $0x3e8] sm:$0xff] }
  0x35   : > { %452 = vst [vmem:[%s2788_s19 + $0x1f0] sm:$0xff] %v451_v62  ;;  %454 = vst [vmem:[%s2788_s19 + $0x1f8] sm:$0xff] %v453_v63 }
  0x36 PF: > { %460 = sbr.rel (!%p2761_p3) target bundleno = 90 (0x5a), region = 51  ;;  %s462_s20 = sand.u32 (%p2761_p3), 1, %s2675_s25  }
  0x37   : > { %s2400_s21 = sshll.u32 (%p2761_p3), %s2683_s27, 4  ;;  %s2249_s22 = sshll.u32 (%p2761_p3), %s462_s20, 9 }
  0x38   : > { %s2922_s9 = scalar_lea.vmem (%p2761_p3), %s3558_s3, %s2400_s21  ;;  %s2927_s8 = scalar_lea.vmem (%p2761_p3), [#allocation5], %s2249_s22 }
  0x39   : > { %v483_v0 = vld [vmem:[%s2922_s9] sm:$0xff] (%p2761_p3)  ;;  %v485_v1 = vld [vmem:[%s2922_s9 + $0x8] sm:$0xff] (%p2761_p3) }
  0x3a   : > { %v487_v2 = vld [vmem:[%s2922_s9 + $0x20] sm:$0xff] (%p2761_p3)  ;;  %484 = vst [vmem:[%s2927_s8] sm:$0xff] (%p2761_p3), %v483_v0  ;;  %486 = vst [vmem:[%s2927_s8 + $0x8] sm:$0xff] (%p2761_p3), %v485_v1  ;;  %v489_v3 = vld [vmem:[%s2922_s9 + $0x28] sm:$0xff] (%p2761_p3) }
  0x3b   : > { %488 = vst [vmem:[%s2927_s8 + $0x10] sm:$0xff] (%p2761_p3), %v487_v2  ;;  %v491_v4 = vld [vmem:[%s2922_s9 + $0x40] sm:$0xff] (%p2761_p3)  ;;  %v493_v5 = vld [vmem:[%s2922_s9 + $0x48] sm:$0xff] (%p2761_p3)  ;;  %490 = vst [vmem:[%s2927_s8 + $0x18] sm:$0xff] (%p2761_p3), %v489_v3 }
  0x3c   : > { %492 = vst [vmem:[%s2927_s8 + $0x20] sm:$0xff] (%p2761_p3), %v491_v4  ;;  %494 = vst [vmem:[%s2927_s8 + $0x28] sm:$0xff] (%p2761_p3), %v493_v5  ;;  %v495_v6 = vld [vmem:[%s2922_s9 + $0x60] sm:$0xff] (%p2761_p3)  ;;  %v497_v7 = vld [vmem:[%s2922_s9 + $0x68] sm:$0xff] (%p2761_p3) }
  0x3d   : > { %v499_v8 = vld [vmem:[%s2922_s9 + $0x80] sm:$0xff]  ;;  %496 = vst [vmem:[%s2927_s8 + $0x30] sm:$0xff] %v495_v6  ;;  %498 = vst [vmem:[%s2927_s8 + $0x38] sm:$0xff] %v497_v7  ;;  %v501_v9 = vld [vmem:[%s2922_s9 + $0x88] sm:$0xff] }
  0x3e   : > { %500 = vst [vmem:[%s2927_s8 + $0x40] sm:$0xff] %v499_v8  ;;  %v503_v10 = vld [vmem:[%s2922_s9 + $0xa0] sm:$0xff]  ;;  %v505_v11 = vld [vmem:[%s2922_s9 + $0xa8] sm:$0xff]  ;;  %502 = vst [vmem:[%s2927_s8 + $0x48] sm:$0xff] %v501_v9 }
  0x3f   : > { %504 = vst [vmem:[%s2927_s8 + $0x50] sm:$0xff] %v503_v10  ;;  %506 = vst [vmem:[%s2927_s8 + $0x58] sm:$0xff] %v505_v11  ;;  %v507_v12 = vld [vmem:[%s2922_s9 + $0xc0] sm:$0xff]  ;;  %v509_v13 = vld [vmem:[%s2922_s9 + $0xc8] sm:$0xff] }
  0x40   : > { %v511_v14 = vld [vmem:[%s2922_s9 + $0xe0] sm:$0xff]  ;;  %508 = vst [vmem:[%s2927_s8 + $0x60] sm:$0xff] %v507_v12  ;;  %510 = vst [vmem:[%s2927_s8 + $0x68] sm:$0xff] %v509_v13  ;;  %v513_v15 = vld [vmem:[%s2922_s9 + $0xe8] sm:$0xff] }
  0x41   : > { %512 = vst [vmem:[%s2927_s8 + $0x70] sm:$0xff] %v511_v14  ;;  %v515_v16 = vld [vmem:[%s2922_s9 + $0x100] sm:$0xff]  ;;  %v517_v17 = vld [vmem:[%s2922_s9 + $0x108] sm:$0xff]  ;;  %514 = vst [vmem:[%s2927_s8 + $0x78] sm:$0xff] %v513_v15 }
  0x42   : > { %516 = vst [vmem:[%s2927_s8 + $0x80] sm:$0xff] %v515_v16  ;;  %518 = vst [vmem:[%s2927_s8 + $0x88] sm:$0xff] %v517_v17  ;;  %v519_v18 = vld [vmem:[%s2922_s9 + $0x120] sm:$0xff]  ;;  %v521_v19 = vld [vmem:[%s2922_s9 + $0x128] sm:$0xff] }
  0x43   : > { %v523_v20 = vld [vmem:[%s2922_s9 + $0x140] sm:$0xff]  ;;  %520 = vst [vmem:[%s2927_s8 + $0x90] sm:$0xff] %v519_v18  ;;  %522 = vst [vmem:[%s2927_s8 + $0x98] sm:$0xff] %v521_v19  ;;  %v525_v21 = vld [vmem:[%s2922_s9 + $0x148] sm:$0xff] }
  0x44   : > { %524 = vst [vmem:[%s2927_s8 + $0xa0] sm:$0xff] %v523_v20  ;;  %v527_v22 = vld [vmem:[%s2922_s9 + $0x160] sm:$0xff]  ;;  %v529_v23 = vld [vmem:[%s2922_s9 + $0x168] sm:$0xff]  ;;  %526 = vst [vmem:[%s2927_s8 + $0xa8] sm:$0xff] %v525_v21 }
  0x45   : > { %528 = vst [vmem:[%s2927_s8 + $0xb0] sm:$0xff] %v527_v22  ;;  %530 = vst [vmem:[%s2927_s8 + $0xb8] sm:$0xff] %v529_v23  ;;  %v531_v24 = vld [vmem:[%s2922_s9 + $0x180] sm:$0xff]  ;;  %v533_v25 = vld [vmem:[%s2922_s9 + $0x188] sm:$0xff] }
  0x46   : > { %v535_v26 = vld [vmem:[%s2922_s9 + $0x1a0] sm:$0xff]  ;;  %532 = vst [vmem:[%s2927_s8 + $0xc0] sm:$0xff] %v531_v24  ;;  %534 = vst [vmem:[%s2927_s8 + $0xc8] sm:$0xff] %v533_v25  ;;  %v537_v27 = vld [vmem:[%s2922_s9 + $0x1a8] sm:$0xff] }
  0x47   : > { %536 = vst [vmem:[%s2927_s8 + $0xd0] sm:$0xff] %v535_v26  ;;  %v539_v28 = vld [vmem:[%s2922_s9 + $0x1c0] sm:$0xff]  ;;  %v541_v29 = vld [vmem:[%s2922_s9 + $0x1c8] sm:$0xff]  ;;  %538 = vst [vmem:[%s2927_s8 + $0xd8] sm:$0xff] %v537_v27 }
  0x48   : > { %540 = vst [vmem:[%s2927_s8 + $0xe0] sm:$0xff] %v539_v28  ;;  %542 = vst [vmem:[%s2927_s8 + $0xe8] sm:$0xff] %v541_v29  ;;  %v543_v30 = vld [vmem:[%s2922_s9 + $0x1e0] sm:$0xff]  ;;  %v545_v31 = vld [vmem:[%s2922_s9 + $0x1e8] sm:$0xff] }
  0x49   : > { %v547_v32 = vld [vmem:[%s2922_s9 + $0x200] sm:$0xff]  ;;  %544 = vst [vmem:[%s2927_s8 + $0xf0] sm:$0xff] %v543_v30  ;;  %546 = vst [vmem:[%s2927_s8 + $0xf8] sm:$0xff] %v545_v31  ;;  %v549_v33 = vld [vmem:[%s2922_s9 + $0x208] sm:$0xff] }
  0x4a   : > { %548 = vst [vmem:[%s2927_s8 + $0x100] sm:$0xff] %v547_v32  ;;  %v551_v34 = vld [vmem:[%s2922_s9 + $0x220] sm:$0xff]  ;;  %v553_v35 = vld [vmem:[%s2922_s9 + $0x228] sm:$0xff]  ;;  %550 = vst [vmem:[%s2927_s8 + $0x108] sm:$0xff] %v549_v33 }
  0x4b   : > { %552 = vst [vmem:[%s2927_s8 + $0x110] sm:$0xff] %v551_v34  ;;  %554 = vst [vmem:[%s2927_s8 + $0x118] sm:$0xff] %v553_v35  ;;  %v555_v36 = vld [vmem:[%s2922_s9 + $0x240] sm:$0xff]  ;;  %v557_v37 = vld [vmem:[%s2922_s9 + $0x248] sm:$0xff] }
  0x4c   : > { %v559_v38 = vld [vmem:[%s2922_s9 + $0x260] sm:$0xff]  ;;  %556 = vst [vmem:[%s2927_s8 + $0x120] sm:$0xff] %v555_v36  ;;  %558 = vst [vmem:[%s2927_s8 + $0x128] sm:$0xff] %v557_v37  ;;  %v561_v39 = vld [vmem:[%s2922_s9 + $0x268] sm:$0xff] }
  0x4d   : > { %560 = vst [vmem:[%s2927_s8 + $0x130] sm:$0xff] %v559_v38  ;;  %v563_v40 = vld [vmem:[%s2922_s9 + $0x280] sm:$0xff]  ;;  %v565_v41 = vld [vmem:[%s2922_s9 + $0x288] sm:$0xff]  ;;  %562 = vst [vmem:[%s2927_s8 + $0x138] sm:$0xff] %v561_v39 }
  0x4e   : > { %564 = vst [vmem:[%s2927_s8 + $0x140] sm:$0xff] %v563_v40  ;;  %566 = vst [vmem:[%s2927_s8 + $0x148] sm:$0xff] %v565_v41  ;;  %v567_v42 = vld [vmem:[%s2922_s9 + $0x2a0] sm:$0xff]  ;;  %v569_v43 = vld [vmem:[%s2922_s9 + $0x2a8] sm:$0xff] }
  0x4f   : > { %v571_v44 = vld [vmem:[%s2922_s9 + $0x2c0] sm:$0xff]  ;;  %568 = vst [vmem:[%s2927_s8 + $0x150] sm:$0xff] %v567_v42  ;;  %570 = vst [vmem:[%s2927_s8 + $0x158] sm:$0xff] %v569_v43  ;;  %v573_v45 = vld [vmem:[%s2922_s9 + $0x2c8] sm:$0xff] }
  0x50   : > { %572 = vst [vmem:[%s2927_s8 + $0x160] sm:$0xff] %v571_v44  ;;  %v575_v46 = vld [vmem:[%s2922_s9 + $0x2e0] sm:$0xff]  ;;  %v577_v47 = vld [vmem:[%s2922_s9 + $0x2e8] sm:$0xff]  ;;  %574 = vst [vmem:[%s2927_s8 + $0x168] sm:$0xff] %v573_v45 }
  0x51   : > { %576 = vst [vmem:[%s2927_s8 + $0x170] sm:$0xff] %v575_v46  ;;  %578 = vst [vmem:[%s2927_s8 + $0x178] sm:$0xff] %v577_v47  ;;  %v579_v48 = vld [vmem:[%s2922_s9 + $0x300] sm:$0xff]  ;;  %v581_v49 = vld [vmem:[%s2922_s9 + $0x308] sm:$0xff] }
  0x52   : > { %v583_v50 = vld [vmem:[%s2922_s9 + $0x320] sm:$0xff]  ;;  %580 = vst [vmem:[%s2927_s8 + $0x180] sm:$0xff] %v579_v48  ;;  %582 = vst [vmem:[%s2927_s8 + $0x188] sm:$0xff] %v581_v49  ;;  %v585_v51 = vld [vmem:[%s2922_s9 + $0x328] sm:$0xff] }
  0x53   : > { %584 = vst [vmem:[%s2927_s8 + $0x190] sm:$0xff] %v583_v50  ;;  %v587_v52 = vld [vmem:[%s2922_s9 + $0x340] sm:$0xff]  ;;  %v589_v53 = vld [vmem:[%s2922_s9 + $0x348] sm:$0xff]  ;;  %586 = vst [vmem:[%s2927_s8 + $0x198] sm:$0xff] %v585_v51 }
  0x54   : > { %588 = vst [vmem:[%s2927_s8 + $0x1a0] sm:$0xff] %v587_v52  ;;  %590 = vst [vmem:[%s2927_s8 + $0x1a8] sm:$0xff] %v589_v53  ;;  %v591_v54 = vld [vmem:[%s2922_s9 + $0x360] sm:$0xff]  ;;  %v593_v55 = vld [vmem:[%s2922_s9 + $0x368] sm:$0xff] }
  0x55   : > { %v595_v56 = vld [vmem:[%s2922_s9 + $0x380] sm:$0xff]  ;;  %592 = vst [vmem:[%s2927_s8 + $0x1b0] sm:$0xff] %v591_v54  ;;  %594 = vst [vmem:[%s2927_s8 + $0x1b8] sm:$0xff] %v593_v55  ;;  %v597_v57 = vld [vmem:[%s2922_s9 + $0x388] sm:$0xff] }
  0x56   : > { %596 = vst [vmem:[%s2927_s8 + $0x1c0] sm:$0xff] %v595_v56  ;;  %v599_v58 = vld [vmem:[%s2922_s9 + $0x3a0] sm:$0xff]  ;;  %v601_v59 = vld [vmem:[%s2922_s9 + $0x3a8] sm:$0xff]  ;;  %598 = vst [vmem:[%s2927_s8 + $0x1c8] sm:$0xff] %v597_v57 }
  0x57   : > { %600 = vst [vmem:[%s2927_s8 + $0x1d0] sm:$0xff] %v599_v58  ;;  %602 = vst [vmem:[%s2927_s8 + $0x1d8] sm:$0xff] %v601_v59  ;;  %v603_v60 = vld [vmem:[%s2922_s9 + $0x3c0] sm:$0xff]  ;;  %v605_v61 = vld [vmem:[%s2922_s9 + $0x3c8] sm:$0xff] }
  0x58   : > { %v607_v62 = vld [vmem:[%s2922_s9 + $0x3e0] sm:$0xff]  ;;  %604 = vst [vmem:[%s2927_s8 + $0x1e0] sm:$0xff] %v603_v60  ;;  %606 = vst [vmem:[%s2927_s8 + $0x1e8] sm:$0xff] %v605_v61  ;;  %v609_v63 = vld [vmem:[%s2922_s9 + $0x3e8] sm:$0xff] }
  0x59   : > { %608 = vst [vmem:[%s2927_s8 + $0x1f0] sm:$0xff] %v607_v62  ;;  %610 = vst [vmem:[%s2927_s8 + $0x1f8] sm:$0xff] %v609_v63 }
  0x5a PF: > { %p2252_p8 = scmp.ge.s32.totalorder %s2687_s28, 1  ;;  %p631_p9 = scmp.lt.s32.totalorder %s2687_s28, 3 }
  0x5c   : > { %p632_p10 = pnand %p2252_p8, %p631_p9 }
  0x5e   : > { %635 = sbr.rel (%p632_p10) target bundleno = 523 (0x20b), region = 82 }
  0x65   : > { %s638_s10 = sand.u32 1, %s2671_s24   ;;  %v3060_v0 = vld [vmem:[%s3555_s0 + $0x4] ss:$8 sps:$4 sm:$0xff]   ;;  %s2257_s30 = sshll.u32 %s2679_s26, 2 }
  0x66   : > { %s3064_s15 = sshll.u32 %s638_s10, 9  ;;  %1203 = vmatprep.mubr.bf16.mxu0 %v3060_v0  ;;  %1246 = vmatprep.mubr.bf16.mxu1 %v3060_v0  ;;  %p740_p11 = scmp.lt.s32.totalorder %s2257_s30, 7 }
  0x67   : > { %s3069_s16 = scalar_lea.vmem [#allocation4], %s3064_s15  ;;  %s3252_s17 = scalar_lea.vmem [#allocation5], %s3064_s15 }
  0x68   : > { %v3072_v1 = vld [vmem:[%s3069_s16 + $0x4] ss:$16 sps:$4 sm:$0xff]   ;;  %v3075_v2 = vld [vmem:[%s3069_s16 + $0xc] ss:$16 sps:$4 sm:$0xff]   ;;  %v3079_v3 = vld [vmem:[%s3069_s16] ss:$16 sps:$4 sm:$0xff]  }
  0x69   : > { %1171 = vmatprep.subr.bf16.mxu0 %v3072_v1  ;;  %v3082_v4 = vld [vmem:[%s3069_s16 + $0x8] ss:$16 sps:$4 sm:$0xff]   ;;  %1214 = vmatprep.subr.bf16.mxu1 %v3075_v2  ;;  %v3086_v5 = vld [vmem:[%s3069_s16 + $0x24] ss:$16 sps:$4 sm:$0xff]   ;;  %v3091_v6 = vld [vmem:[%s3069_s16 + $0x2c] ss:$16 sps:$4 sm:$0xff]  }
  0x6a   : > { %1172 = vmatpush1.bf16.msra.mxu0 %v3079_v3  ;;  %1215 = vmatpush1.bf16.msra.mxu1 %v3082_v4  ;;  %v3094_v7 = vld [vmem:[%s3069_s16 + $0x20] ss:$16 sps:$4 sm:$0xff]   ;;  %v3098_v8 = vld [vmem:[%s3069_s16 + $0x28] ss:$16 sps:$4 sm:$0xff]   ;;  %v3102_v9 = vld [vmem:[%s3069_s16 + $0x44] ss:$16 sps:$4 sm:$0xff]  }
  0x6b   : > { %1173 = vmatprep.subr.bf16.mxu0 %v3086_v5  ;;  %1216 = vmatprep.subr.bf16.mxu1 %v3091_v6  ;;  %v3105_v10 = vld [vmem:[%s3069_s16 + $0x4c] ss:$16 sps:$4 sm:$0xff]   ;;  %v3108_v11 = vld [vmem:[%s3069_s16 + $0x40] ss:$16 sps:$4 sm:$0xff]   ;;  %v3111_v12 = vld [vmem:[%s3069_s16 + $0x48] ss:$16 sps:$4 sm:$0xff]  }
  0x6c   : > { %v3116_v13 = vld [vmem:[%s3069_s16 + $0x64] ss:$16 sps:$4 sm:$0xff]   ;;  %v3121_v14 = vld [vmem:[%s3069_s16 + $0x6c] ss:$16 sps:$4 sm:$0xff]   ;;  %v3124_v15 = vld [vmem:[%s3069_s16 + $0x60] ss:$16 sps:$4 sm:$0xff]  }
  0x6d   : > { %v3129_v16 = vld [vmem:[%s3069_s16 + $0x68] ss:$16 sps:$4 sm:$0xff]   ;;  %v3132_v17 = vld [vmem:[%s3069_s16 + $0x84] ss:$16 sps:$4 sm:$0xff]   ;;  %v3137_v18 = vld [vmem:[%s3069_s16 + $0x8c] ss:$16 sps:$4 sm:$0xff]  }
  0x6e   : > { %1174 = vmatpush1.bf16.msra.mxu0 %v3094_v7  ;;  %1217 = vmatpush1.bf16.msra.mxu1 %v3098_v8  ;;  %v3140_v19 = vld [vmem:[%s3069_s16 + $0x80] ss:$16 sps:$4 sm:$0xff]   ;;  %v3143_v20 = vld [vmem:[%s3069_s16 + $0x88] ss:$16 sps:$4 sm:$0xff]   ;;  %v3148_v21 = vld [vmem:[%s3069_s16 + $0xa4] ss:$16 sps:$4 sm:$0xff]  }
  0x6f   : > { %1175 = vmatprep.subr.bf16.mxu0 %v3102_v9  ;;  %1218 = vmatprep.subr.bf16.mxu1 %v3105_v10  ;;  %v3153_v22 = vld [vmem:[%s3069_s16 + $0xac] ss:$16 sps:$4 sm:$0xff]   ;;  %v3156_v23 = vld [vmem:[%s3069_s16 + $0xa0] ss:$16 sps:$4 sm:$0xff]   ;;  %v3161_v24 = vld [vmem:[%s3069_s16 + $0xa8] ss:$16 sps:$4 sm:$0xff]  }
  0x70   : > { %v3164_v25 = vld [vmem:[%s3069_s16 + $0xc4] ss:$16 sps:$4 sm:$0xff]   ;;  %v3169_v26 = vld [vmem:[%s3069_s16 + $0xcc] ss:$16 sps:$4 sm:$0xff]   ;;  %v3172_v27 = vld [vmem:[%s3069_s16 + $0xc0] ss:$16 sps:$4 sm:$0xff]  }
  0x71   : > { %v3175_v28 = vld [vmem:[%s3069_s16 + $0xc8] ss:$16 sps:$4 sm:$0xff]   ;;  %v3180_v29 = vld [vmem:[%s3069_s16 + $0xe4] ss:$16 sps:$4 sm:$0xff]   ;;  %v3185_v30 = vld [vmem:[%s3069_s16 + $0xec] ss:$16 sps:$4 sm:$0xff]  }
  0x72   : > { %1176 = vmatpush1.bf16.msra.mxu0 %v3108_v11  ;;  %1219 = vmatpush1.bf16.msra.mxu1 %v3111_v12  ;;  %v3188_v31 = vld [vmem:[%s3069_s16 + $0xe0] ss:$16 sps:$4 sm:$0xff]   ;;  %v3193_v32 = vld [vmem:[%s3069_s16 + $0xe8] ss:$16 sps:$4 sm:$0xff]   ;;  %v3196_v33 = vld [vmem:[%s3069_s16 + $0x104] ss:$16 sps:$4 sm:$0xff]  }
  0x73   : > { %1177 = vmatprep.subr.bf16.mxu0 %v3116_v13  ;;  %1220 = vmatprep.subr.bf16.mxu1 %v3121_v14  ;;  %v3201_v34 = vld [vmem:[%s3069_s16 + $0x10c] ss:$16 sps:$4 sm:$0xff]   ;;  %v3204_v35 = vld [vmem:[%s3069_s16 + $0x100] ss:$16 sps:$4 sm:$0xff]   ;;  %v3207_v36 = vld [vmem:[%s3069_s16 + $0x108] ss:$16 sps:$4 sm:$0xff]  }
  0x74   : > { %v3212_v37 = vld [vmem:[%s3069_s16 + $0x124] ss:$16 sps:$4 sm:$0xff]   ;;  %v3217_v38 = vld [vmem:[%s3069_s16 + $0x12c] ss:$16 sps:$4 sm:$0xff]   ;;  %v3220_v39 = vld [vmem:[%s3069_s16 + $0x120] ss:$16 sps:$4 sm:$0xff]  }
  0x75   : > { %v3225_v40 = vld [vmem:[%s3069_s16 + $0x128] ss:$16 sps:$4 sm:$0xff]   ;;  %v3228_v41 = vld [vmem:[%s3069_s16 + $0x144] ss:$16 sps:$4 sm:$0xff]   ;;  %v3233_v42 = vld [vmem:[%s3069_s16 + $0x14c] ss:$16 sps:$4 sm:$0xff]  }
  0x76   : > { %1178 = vmatpush1.bf16.msra.mxu0 %v3124_v15  ;;  %1221 = vmatpush1.bf16.msra.mxu1 %v3129_v16  ;;  %v3236_v43 = vld [vmem:[%s3069_s16 + $0x140] ss:$16 sps:$4 sm:$0xff]   ;;  %v3239_v44 = vld [vmem:[%s3069_s16 + $0x148] ss:$16 sps:$4 sm:$0xff]   ;;  %v3244_v45 = vld [vmem:[%s3069_s16 + $0x164] ss:$16 sps:$4 sm:$0xff]  }
  0x77   : > { %1179 = vmatprep.subr.bf16.mxu0 %v3132_v17  ;;  %1222 = vmatprep.subr.bf16.mxu1 %v3137_v18  ;;  %v3249_v46 = vld [vmem:[%s3069_s16 + $0x16c] ss:$16 sps:$4 sm:$0xff]   ;;  %v3255_v47 = vld [vmem:[%s3069_s16 + $0x160] ss:$16 sps:$4 sm:$0xff]   ;;  %v3258_v48 = vld [vmem:[%s3069_s16 + $0x168] ss:$16 sps:$4 sm:$0xff]  }
  0x78   : > { %v3263_v49 = vld [vmem:[%s3069_s16 + $0x184] ss:$16 sps:$4 sm:$0xff]   ;;  %v3268_v50 = vld [vmem:[%s3069_s16 + $0x18c] ss:$16 sps:$4 sm:$0xff]   ;;  %v3271_v51 = vld [vmem:[%s3069_s16 + $0x180] ss:$16 sps:$4 sm:$0xff]  }
  0x79   : > { %v3274_v52 = vld [vmem:[%s3069_s16 + $0x188] ss:$16 sps:$4 sm:$0xff]   ;;  %v3279_v53 = vld [vmem:[%s3069_s16 + $0x1a4] ss:$16 sps:$4 sm:$0xff]   ;;  %v3284_v54 = vld [vmem:[%s3069_s16 + $0x1ac] ss:$16 sps:$4 sm:$0xff]  }
  0x7a   : > { %1180 = vmatpush1.bf16.msra.mxu0 %v3140_v19  ;;  %1223 = vmatpush1.bf16.msra.mxu1 %v3143_v20  ;;  %3578 = vst [vmem:[#allocation8_spill] sm:$0xff] %v3274_v52  ;;  %3579 = vst [vmem:[#allocation9_spill] sm:$0xff] %v3279_v53  ;;  %v3287_v55 = vld [vmem:[%s3069_s16 + $0x1a0] ss:$16 sps:$4 sm:$0xff]   ;;  %v3290_v56 = vld [vmem:[%s3069_s16 + $0x1a8] ss:$16 sps:$4 sm:$0xff]  }
  0x7b   : > { %1181 = vmatprep.subr.bf16.mxu0 %v3148_v21  ;;  %1224 = vmatprep.subr.bf16.mxu1 %v3153_v22  ;;  %3580 = vst [vmem:[#allocation10_spill] sm:$0xff] %v3284_v54  ;;  %3581 = vst [vmem:[#allocation11_spill] sm:$0xff] %v3287_v55  ;;  %v3295_v57 = vld [vmem:[%s3069_s16 + $0x1c4] ss:$16 sps:$4 sm:$0xff]   ;;  %v3300_v58 = vld [vmem:[%s3069_s16 + $0x1cc] ss:$16 sps:$4 sm:$0xff]  }
  0x7c   : > { %3582 = vst [vmem:[#allocation12_spill] sm:$0xff] %v3290_v56  ;;  %3583 = vst [vmem:[#allocation13_spill] sm:$0xff] %v3295_v57  ;;  %v3303_v59 = vld [vmem:[%s3069_s16 + $0x1c0] ss:$16 sps:$4 sm:$0xff]   ;;  %v3306_v60 = vld [vmem:[%s3069_s16 + $0x1c8] ss:$16 sps:$4 sm:$0xff]  }
  0x7d   : > { %3584 = vst [vmem:[#allocation14_spill] sm:$0xff] %v3300_v58  ;;  %3585 = vst [vmem:[#allocation15_spill] sm:$0xff] %v3303_v59  ;;  %v3311_v61 = vld [vmem:[%s3069_s16 + $0x1e4] ss:$16 sps:$4 sm:$0xff]   ;;  %v3316_v62 = vld [vmem:[%s3069_s16 + $0x1ec] ss:$16 sps:$4 sm:$0xff]  }
  0x7e   : > { %1182 = vmatpush1.bf16.msra.mxu0 %v3156_v23  ;;  %1225 = vmatpush1.bf16.msra.mxu1 %v3161_v24  ;;  %3586 = vst [vmem:[#allocation16_spill] sm:$0xff] %v3306_v60  ;;  %3587 = vst [vmem:[#allocation17_spill] sm:$0xff] %v3311_v61  ;;  %v3319_v63 = vld [vmem:[%s3069_s16 + $0x1e0] ss:$16 sps:$4 sm:$0xff]   ;;  %s3611_s30 = smov (!%p740_p11, %s2257_s30), 7  ;;  %s3484_s14 = sshll.u32 %s638_s10, 6 }
  0x7f   : > { %1183 = vmatprep.subr.bf16.mxu0 %v3164_v25  ;;  %1226 = vmatprep.subr.bf16.mxu1 %v3169_v26  ;;  %3588 = vst [vmem:[#allocation18_spill] sm:$0xff] %v3316_v62  ;;  %3589 = vst [vmem:[#allocation19_spill] sm:$0xff] %v3319_v63  ;;  %s742_s13 = scalar_lea.vmem %s3559_s4, %s3611_s30  ;;  %s3487_s15 = scalar_lea.vmem [#allocation6], %s3484_s14 }
  0x80   : > { %s2401_s18 = sshll.u32 (%p2768_p6), %s2679_s26, 5 }
  0x81   : > { %s1982_s21 = scalar_lea.vmem (%p2768_p6), %s3561_s6, %s2401_s18 }
  0x82   : > { %1184 = vmatpush1.bf16.msra.mxu0 %v3172_v27  ;;  %1227 = vmatpush1.bf16.msra.mxu1 %v3175_v28 }
  0x83   : > { %1185 = vmatprep.subr.bf16.mxu0 %v3180_v29  ;;  %1228 = vmatprep.subr.bf16.mxu1 %v3185_v30 }
  0x86   : > { %1186 = vmatpush1.bf16.msra.mxu0 %v3188_v31  ;;  %1229 = vmatpush1.bf16.msra.mxu1 %v3193_v32 }
  0x87   : > { %1187 = vmatprep.subr.bf16.mxu0 %v3196_v33  ;;  %1230 = vmatprep.subr.bf16.mxu1 %v3201_v34 }
  0x8a   : > { %1188 = vmatpush1.bf16.msra.mxu0 %v3204_v35  ;;  %1231 = vmatpush1.bf16.msra.mxu1 %v3207_v36 }
  0x8b   : > { %1189 = vmatprep.subr.bf16.mxu0 %v3212_v37  ;;  %1232 = vmatprep.subr.bf16.mxu1 %v3217_v38 }
  0x8e   : > { %1190 = vmatpush1.bf16.msra.mxu0 %v3220_v39  ;;  %1233 = vmatpush1.bf16.msra.mxu1 %v3225_v40 }
  0x8f   : > { %1191 = vmatprep.subr.bf16.mxu0 %v3228_v41  ;;  %1234 = vmatprep.subr.bf16.mxu1 %v3233_v42 }
  0x92   : > { %1192 = vmatpush1.bf16.msra.mxu0 %v3236_v43  ;;  %1235 = vmatpush1.bf16.msra.mxu1 %v3239_v44 }
  0x93   : > { %1193 = vmatprep.subr.bf16.mxu0 %v3244_v45  ;;  %1236 = vmatprep.subr.bf16.mxu1 %v3249_v46 }
  0x96   : > { %1194 = vmatpush1.bf16.msra.mxu0 %v3255_v47  ;;  %1237 = vmatpush1.bf16.msra.mxu1 %v3258_v48 }
  0x97   : > { %1195 = vmatprep.subr.bf16.mxu0 %v3263_v49  ;;  %1238 = vmatprep.subr.bf16.mxu1 %v3268_v50 }
  0x9a   : > { %1196 = vmatpush1.bf16.msra.mxu0 %v3271_v51  ;;  %1239 = vmatpush1.bf16.msra.mxu1 %v3274_v52  ;;  %v2579_v52 = vld [vmem:[%s3252_s17 + $0x8c] ss:$16 sps:$4 sm:$0xff]  }
  0x9b   : > { %1197 = vmatprep.subr.bf16.mxu0 %v3279_v53  ;;  %1240 = vmatprep.subr.bf16.mxu1 %v3284_v54  ;;  %v3322_v54 = vld [vmem:[%s3069_s16 + $0x1e8] ss:$16 sps:$4 sm:$0xff]   ;;  %s747_s16 = scalar_lea.vmem %s3560_s5, %s3611_s30 }
  0x9c   : > { %3590 = vst [vmem:[#allocation20_spill] sm:$0xff] %v3322_v54  ;;  %v2553_v53 = vld [vmem:[%s3252_s17 + $0x8] ss:$16 sps:$4 sm:$0xff]  }
  0x9e   : > { %1198 = vmatpush1.bf16.msra.mxu0 %v3287_v55  ;;  %1241 = vmatpush1.bf16.msra.mxu1 %v3290_v56  ;;  %v2552_v56 = vld [vmem:[%s3252_s17 + $0x4] ss:$16 sps:$4 sm:$0xff]   ;;  %v2550_v55 = vld [vmem:[%s3252_s17] ss:$16 sps:$4 sm:$0xff]  }
  0x9f   : > { %1199 = vmatprep.subr.bf16.mxu0 %v3295_v57  ;;  %1242 = vmatprep.subr.bf16.mxu1 %v3300_v58  ;;  %v2555_v57 = vld [vmem:[%s3252_s17 + $0xc] ss:$16 sps:$4 sm:$0xff]   ;;  %v3333_v58 = vld [vmem:[%s3555_s0] ss:$8 sps:$4 sm:$0xff]  }
  0xa2   : > { %1200 = vmatpush1.bf16.msra.mxu0 %v3303_v59  ;;  %1243 = vmatpush1.bf16.msra.mxu1 %v3306_v60  ;;  %v2558_v60 = vld [vmem:[%s3252_s17 + $0x24] ss:$16 sps:$4 sm:$0xff]   ;;  %v2559_v59 = vld [vmem:[%s3252_s17 + $0x28] ss:$16 sps:$4 sm:$0xff]  }
  0xa3   : > { %1201 = vmatprep.subr.bf16.mxu0 %v3311_v61  ;;  %1244 = vmatprep.subr.bf16.mxu1 %v3316_v62  ;;  %v2561_v62 = vld [vmem:[%s3252_s17 + $0x2c] ss:$16 sps:$4 sm:$0xff]   ;;  %v2556_v61 = vld [vmem:[%s3252_s17 + $0x20] ss:$16 sps:$4 sm:$0xff]  }
  0xa6   : > { %1202 = vmatpush1.bf16.msra.mxu0 %v3319_v63  ;;  %1245 = vmatpush1.bf16.msra.mxu1 %v3322_v54  ;;  %v2564_v63 = vld [vmem:[%s3252_s17 + $0x44] ss:$16 sps:$4 sm:$0xff]   ;;  %v2565_v54 = vld [vmem:[%s3252_s17 + $0x48] ss:$16 sps:$4 sm:$0xff]  }
  0xa7   : > { %1641 = vmatprep.subr.bf16.mxu0 %v2552_v56  ;;  %1684 = vmatprep.subr.bf16.mxu1 %v2555_v57  ;;  %v2567_v56 = vld [vmem:[%s3252_s17 + $0x4c] ss:$16 sps:$4 sm:$0xff]   ;;  %v2562_v57 = vld [vmem:[%s3252_s17 + $0x40] ss:$16 sps:$4 sm:$0xff]  }
  0xa9   : > { %1204 = vmatmul.mubr.bf16.vlgmr.msra.gmra.mrb[0].mxu0 %v3333_v58  ;;  %1247 = vmatmul.mubr.bf16.vlgmr.msra.gmra.mrb[0].mxu1 %v3333_v58 }
  0xaa   : > { %1642 = vmatpush1.bf16.msra.mxu0 %v2550_v55  ;;  %1685 = vmatpush1.bf16.msra.mxu1 %v2553_v53  ;;  %v2570_v55 = vld [vmem:[%s3252_s17 + $0x64] ss:$16 sps:$4 sm:$0xff]   ;;  %v2573_v53 = vld [vmem:[%s3252_s17 + $0x6c] ss:$16 sps:$4 sm:$0xff]  }
  0xab   : > { %1643 = vmatprep.subr.bf16.mxu0 %v2558_v60  ;;  %1686 = vmatprep.subr.bf16.mxu1 %v2561_v62  ;;  %v2568_v60 = vld [vmem:[%s3252_s17 + $0x60] ss:$16 sps:$4 sm:$0xff]   ;;  %v2571_v62 = vld [vmem:[%s3252_s17 + $0x68] ss:$16 sps:$4 sm:$0xff]  }
  0xac   : > { %1673 = vmatprep.mubr.bf16.mxu0 %v3060_v0  ;;  %1716 = vmatprep.mubr.bf16.mxu1 %v3060_v0  ;;  %v2576_v0 = vld [vmem:[%s3252_s17 + $0x84] ss:$16 sps:$4 sm:$0xff]  }
  0xae   : > { %1644 = vmatpush1.bf16.msra.mxu0 %v2556_v61  ;;  %1687 = vmatpush1.bf16.msra.mxu1 %v2559_v59  ;;  %v2574_v61 = vld [vmem:[%s3252_s17 + $0x80] ss:$16 sps:$4 sm:$0xff]   ;;  %v2577_v59 = vld [vmem:[%s3252_s17 + $0x88] ss:$16 sps:$4 sm:$0xff]  }
  0xaf   : > { %1645 = vmatprep.subr.bf16.mxu0 %v2564_v63  ;;  %1688 = vmatprep.subr.bf16.mxu1 %v2567_v56  ;;  %v2582_v63 = vld [vmem:[%s3252_s17 + $0xa4] ss:$16 sps:$4 sm:$0xff]   ;;  %v2585_v56 = vld [vmem:[%s3252_s17 + $0xac] ss:$16 sps:$4 sm:$0xff]  }
  0xb2   : > { %1646 = vmatpush1.bf16.msra.mxu0 %v2562_v57  ;;  %1689 = vmatpush1.bf16.msra.mxu1 %v2565_v54  ;;  %v2580_v54 = vld [vmem:[%s3252_s17 + $0xa0] ss:$16 sps:$4 sm:$0xff]   ;;  %v2583_v57 = vld [vmem:[%s3252_s17 + $0xa8] ss:$16 sps:$4 sm:$0xff]  }
  0xb3   : > { %1647 = vmatprep.subr.bf16.mxu0 %v2570_v55  ;;  %1690 = vmatprep.subr.bf16.mxu1 %v2573_v53  ;;  %v2588_v55 = vld [vmem:[%s3252_s17 + $0xc4] ss:$16 sps:$4 sm:$0xff]   ;;  %v2591_v53 = vld [vmem:[%s3252_s17 + $0xcc] ss:$16 sps:$4 sm:$0xff]  }
  0xb6   : > { %1648 = vmatpush1.bf16.msra.mxu0 %v2568_v60  ;;  %1691 = vmatpush1.bf16.msra.mxu1 %v2571_v62  ;;  %v2586_v60 = vld [vmem:[%s3252_s17 + $0xc0] ss:$16 sps:$4 sm:$0xff]   ;;  %v2594_v62 = vld [vmem:[%s3252_s17 + $0xe4] ss:$16 sps:$4 sm:$0xff]  }
  0xb7   : > { %1649 = vmatprep.subr.bf16.mxu0 %v2576_v0  ;;  %1692 = vmatprep.subr.bf16.mxu1 %v2579_v52  ;;  %v2589_v52 = vld [vmem:[%s3252_s17 + $0xc8] ss:$16 sps:$4 sm:$0xff]   ;;  %v2597_v0 = vld [vmem:[%s3252_s17 + $0xec] ss:$16 sps:$4 sm:$0xff]  }
  0xba   : > { %1650 = vmatpush1.bf16.msra.mxu0 %v2574_v61  ;;  %1693 = vmatpush1.bf16.msra.mxu1 %v2577_v59  ;;  %v2592_v61 = vld [vmem:[%s3252_s17 + $0xe0] ss:$16 sps:$4 sm:$0xff]   ;;  %v2595_v59 = vld [vmem:[%s3252_s17 + $0xe8] ss:$16 sps:$4 sm:$0xff]  }
  0xbb   : > { %1651 = vmatprep.subr.bf16.mxu0 %v2582_v63  ;;  %1694 = vmatprep.subr.bf16.mxu1 %v2585_v56  ;;  %v2600_v63 = vld [vmem:[%s3252_s17 + $0x104] ss:$16 sps:$4 sm:$0xff]   ;;  %v2603_v56 = vld [vmem:[%s3252_s17 + $0x10c] ss:$16 sps:$4 sm:$0xff]  }
  0xbe   : > { %1652 = vmatpush1.bf16.msra.mxu0 %v2580_v54  ;;  %1695 = vmatpush1.bf16.msra.mxu1 %v2583_v57  ;;  %v2598_v54 = vld [vmem:[%s3252_s17 + $0x100] ss:$16 sps:$4 sm:$0xff]   ;;  %v2601_v57 = vld [vmem:[%s3252_s17 + $0x108] ss:$16 sps:$4 sm:$0xff]  }
  0xbf   : > { %1653 = vmatprep.subr.bf16.mxu0 %v2588_v55  ;;  %1696 = vmatprep.subr.bf16.mxu1 %v2591_v53  ;;  %v2606_v55 = vld [vmem:[%s3252_s17 + $0x124] ss:$16 sps:$4 sm:$0xff]   ;;  %v2609_v53 = vld [vmem:[%s3252_s17 + $0x12c] ss:$16 sps:$4 sm:$0xff]  }
  0xc2   : > { %1654 = vmatpush1.bf16.msra.mxu0 %v2586_v60  ;;  %1697 = vmatpush1.bf16.msra.mxu1 %v2589_v52  ;;  %v2604_v60 = vld [vmem:[%s3252_s17 + $0x120] ss:$16 sps:$4 sm:$0xff]   ;;  %v2607_v52 = vld [vmem:[%s3252_s17 + $0x128] ss:$16 sps:$4 sm:$0xff]  }
  0xc3   : > { %1655 = vmatprep.subr.bf16.mxu0 %v2594_v62  ;;  %1698 = vmatprep.subr.bf16.mxu1 %v2597_v0  ;;  %v2612_v62 = vld [vmem:[%s3252_s17 + $0x144] ss:$16 sps:$4 sm:$0xff]   ;;  %v2615_v0 = vld [vmem:[%s3252_s17 + $0x14c] ss:$16 sps:$4 sm:$0xff]  }
  0xc6   : > { %1656 = vmatpush1.bf16.msra.mxu0 %v2592_v61  ;;  %1699 = vmatpush1.bf16.msra.mxu1 %v2595_v59  ;;  %v2610_v61 = vld [vmem:[%s3252_s17 + $0x140] ss:$16 sps:$4 sm:$0xff]   ;;  %v2613_v59 = vld [vmem:[%s3252_s17 + $0x148] ss:$16 sps:$4 sm:$0xff]  }
  0xc7   : > { %1657 = vmatprep.subr.bf16.mxu0 %v2600_v63  ;;  %1700 = vmatprep.subr.bf16.mxu1 %v2603_v56  ;;  %v2618_v63 = vld [vmem:[%s3252_s17 + $0x164] ss:$16 sps:$4 sm:$0xff]   ;;  %v2621_v56 = vld [vmem:[%s3252_s17 + $0x16c] ss:$16 sps:$4 sm:$0xff]  }
  0xca   : > { %1658 = vmatpush1.bf16.msra.mxu0 %v2598_v54  ;;  %1701 = vmatpush1.bf16.msra.mxu1 %v2601_v57  ;;  %v2616_v54 = vld [vmem:[%s3252_s17 + $0x160] ss:$16 sps:$4 sm:$0xff]   ;;  %v2619_v57 = vld [vmem:[%s3252_s17 + $0x168] ss:$16 sps:$4 sm:$0xff]  }
  0xcb   : > { %1659 = vmatprep.subr.bf16.mxu0 %v2606_v55  ;;  %1702 = vmatprep.subr.bf16.mxu1 %v2609_v53  ;;  %v2624_v55 = vld [vmem:[%s3252_s17 + $0x184] ss:$16 sps:$4 sm:$0xff]   ;;  %v2627_v53 = vld [vmem:[%s3252_s17 + $0x18c] ss:$16 sps:$4 sm:$0xff]  }
  0xce   : > { %1660 = vmatpush1.bf16.msra.mxu0 %v2604_v60  ;;  %1703 = vmatpush1.bf16.msra.mxu1 %v2607_v52  ;;  %v2622_v60 = vld [vmem:[%s3252_s17 + $0x180] ss:$16 sps:$4 sm:$0xff]   ;;  %v2625_v52 = vld [vmem:[%s3252_s17 + $0x188] ss:$16 sps:$4 sm:$0xff]  }
  0xcf   : > { %1661 = vmatprep.subr.bf16.mxu0 %v2612_v62  ;;  %1704 = vmatprep.subr.bf16.mxu1 %v2615_v0  ;;  %v2630_v62 = vld [vmem:[%s3252_s17 + $0x1a4] ss:$16 sps:$4 sm:$0xff]   ;;  %v2633_v0 = vld [vmem:[%s3252_s17 + $0x1ac] ss:$16 sps:$4 sm:$0xff]  }
  0xd2   : > { %1662 = vmatpush1.bf16.msra.mxu0 %v2610_v61  ;;  %1705 = vmatpush1.bf16.msra.mxu1 %v2613_v59  ;;  %v2628_v61 = vld [vmem:[%s3252_s17 + $0x1a0] ss:$16 sps:$4 sm:$0xff]   ;;  %v2631_v59 = vld [vmem:[%s3252_s17 + $0x1a8] ss:$16 sps:$4 sm:$0xff]  }
  0xd3   : > { %1663 = vmatprep.subr.bf16.mxu0 %v2618_v63  ;;  %1706 = vmatprep.subr.bf16.mxu1 %v2621_v56  ;;  %v2636_v63 = vld [vmem:[%s3252_s17 + $0x1c4] ss:$16 sps:$4 sm:$0xff]   ;;  %v2639_v56 = vld [vmem:[%s3252_s17 + $0x1cc] ss:$16 sps:$4 sm:$0xff]  }
  0xd6   : > { %1664 = vmatpush1.bf16.msra.mxu0 %v2616_v54  ;;  %1707 = vmatpush1.bf16.msra.mxu1 %v2619_v57  ;;  %v2634_v54 = vld [vmem:[%s3252_s17 + $0x1c0] ss:$16 sps:$4 sm:$0xff]   ;;  %v2637_v57 = vld [vmem:[%s3252_s17 + $0x1c8] ss:$16 sps:$4 sm:$0xff]  }
  0xd7   : > { %1665 = vmatprep.subr.bf16.mxu0 %v2624_v55  ;;  %1708 = vmatprep.subr.bf16.mxu1 %v2627_v53  ;;  %v2642_v55 = vld [vmem:[%s3252_s17 + $0x1e4] ss:$16 sps:$4 sm:$0xff]   ;;  %v2645_v53 = vld [vmem:[%s3252_s17 + $0x1ec] ss:$16 sps:$4 sm:$0xff]  }
  0xda   : > { %1666 = vmatpush1.bf16.msra.mxu0 %v2622_v60  ;;  %1709 = vmatpush1.bf16.msra.mxu1 %v2625_v52  ;;  %v2640_v60 = vld [vmem:[%s3252_s17 + $0x1e0] ss:$16 sps:$4 sm:$0xff]   ;;  %v2643_v52 = vld [vmem:[%s3252_s17 + $0x1e8] ss:$16 sps:$4 sm:$0xff]   ;;  %s3502_s17 = scalar_lea.vmem [#allocation7], %s3484_s14 }
  0xdb   : > { %1667 = vmatprep.subr.bf16.mxu0 %v2630_v62  ;;  %1710 = vmatprep.subr.bf16.mxu1 %v2633_v0  ;;  %v2648_v62 = vld [vmem:[%s3556_s1 + $0x4] ss:$8 sps:$4 sm:$0xff]  }
  0xde   : > { %1668 = vmatpush1.bf16.msra.mxu0 %v2628_v61  ;;  %1711 = vmatpush1.bf16.msra.mxu1 %v2631_v59 }
  0xdf   : > { %1669 = vmatprep.subr.bf16.mxu0 %v2636_v63  ;;  %1712 = vmatprep.subr.bf16.mxu1 %v2639_v56 }
  0xe2   : > { %1670 = vmatpush1.bf16.msra.mxu0 %v2634_v54  ;;  %1713 = vmatpush1.bf16.msra.mxu1 %v2637_v57 }
  0xe3   : > { %1671 = vmatprep.subr.bf16.mxu0 %v2642_v55  ;;  %1714 = vmatprep.subr.bf16.mxu1 %v2645_v53 }
  0xe6   : > { %1672 = vmatpush1.bf16.msra.mxu0 %v2640_v60  ;;  %1715 = vmatpush1.bf16.msra.mxu1 %v2643_v52 }
  0xe7   : > { %1769 = vmatprep.subr.bf16.mxu0 %v3072_v1  ;;  %1812 = vmatprep.subr.bf16.mxu1 %v3075_v2  ;;  %v3591_v1 = vld [vmem:[#allocation8_spill] sm:$0xff]  ;;  %v3592_v2 = vld [vmem:[#allocation9_spill] sm:$0xff] }
  0xe9   : > { %1674 = vmatmul.mubr.bf16.vlgmr.msra.gmra.mrb[4].mxu0 %v3333_v58  ;;  %1717 = vmatmul.mubr.bf16.vlgmr.msra.gmra.mrb[4].mxu1 %v3333_v58 }
  0xea   : > { %1770 = vmatpush1.bf16.msra.mxu0 %v3079_v3  ;;  %1813 = vmatpush1.bf16.msra.mxu1 %v3082_v4  ;;  %v3593_v3 = vld [vmem:[#allocation10_spill] sm:$0xff]  ;;  %v3594_v4 = vld [vmem:[#allocation11_spill] sm:$0xff] }
  0xeb   : > { %1771 = vmatprep.subr.bf16.mxu0 %v3086_v5  ;;  %1814 = vmatprep.subr.bf16.mxu1 %v3091_v6  ;;  %v3595_v5 = vld [vmem:[#allocation12_spill] sm:$0xff]  ;;  %v3596_v6 = vld [vmem:[#allocation13_spill] sm:$0xff] }
  0xec   : > { %1801 = vmatprep.mubr.bf16.mxu0 %v2648_v62  ;;  %1844 = vmatprep.mubr.bf16.mxu1 %v2648_v62 }
  0xee   : > { %1772 = vmatpush1.bf16.msra.mxu0 %v3094_v7  ;;  %1815 = vmatpush1.bf16.msra.mxu1 %v3098_v8  ;;  %v3597_v7 = vld [vmem:[#allocation14_spill] sm:$0xff]  ;;  %v3598_v8 = vld [vmem:[#allocation15_spill] sm:$0xff] }
  0xef   : > { %1773 = vmatprep.subr.bf16.mxu0 %v3102_v9  ;;  %1816 = vmatprep.subr.bf16.mxu1 %v3105_v10  ;;  %v3599_v9 = vld [vmem:[#allocation16_spill] sm:$0xff]  ;;  %v3600_v10 = vld [vmem:[#allocation17_spill] sm:$0xff] }
  0xf2   : > { %1774 = vmatpush1.bf16.msra.mxu0 %v3108_v11  ;;  %1817 = vmatpush1.bf16.msra.mxu1 %v3111_v12  ;;  %v3601_v11 = vld [vmem:[#allocation18_spill] sm:$0xff]  ;;  %v2646_v12 = vld [vmem:[%s3556_s1] ss:$8 sps:$4 sm:$0xff]  }
  0xf3   : > { %1775 = vmatprep.subr.bf16.mxu0 %v3116_v13  ;;  %1818 = vmatprep.subr.bf16.mxu1 %v3121_v14  ;;  %v3602_v13 = vld [vmem:[#allocation19_spill] sm:$0xff]  ;;  %v3603_v14 = vld [vmem:[#allocation20_spill] sm:$0xff] }
  0xf6   : > { %1776 = vmatpush1.bf16.msra.mxu0 %v3124_v15  ;;  %1819 = vmatpush1.bf16.msra.mxu1 %v3129_v16  ;;  %v1884_v15 = vlaneseq }
  0xf7   : > { %1777 = vmatprep.subr.bf16.mxu0 %v3132_v17  ;;  %1820 = vmatprep.subr.bf16.mxu1 %v3137_v18 }
  0xf8   : > { %v1885_v16 = vshrl.u32 %v1884_v15, 7 }
  0xfa   : > { %1778 = vmatpush1.bf16.msra.mxu0 %v3140_v19  ;;  %1821 = vmatpush1.bf16.msra.mxu1 %v3143_v20  ;;  %v1886_v17 = vsub.s32 0, %v1885_v16  ;;  %v1894_v18 = vsub.s32 2, %v1885_v16  ;;  %v1882_v19 = vld [vmem:[%s742_s13] sm:$0xf]  ;;  %v1890_v20 = vsub.s32 1, %v1885_v16 }
  0xfb   : > { %1779 = vmatprep.subr.bf16.mxu0 %v3148_v21  ;;  %1822 = vmatprep.subr.bf16.mxu1 %v3153_v22  ;;  %v1898_v21 = vsub.s32 3, %v1885_v16 }
  0xfc   : > { %v1887_v22 = vrot.slane %v1882_v19, %v1886_v17 }
  0xfe   : > { %1780 = vmatpush1.bf16.msra.mxu0 %v3156_v23  ;;  %1823 = vmatpush1.bf16.msra.mxu1 %v3161_v24  ;;  %v1895_v23 = vrot.slane %v1882_v19, %v1894_v18  ;;  %v1891_v24 = vrot.slane %v1882_v19, %v1890_v20 }
  0xff   : > { %1781 = vmatprep.subr.bf16.mxu0 %v3164_v25  ;;  %1824 = vmatprep.subr.bf16.mxu1 %v3169_v26  ;;  %v1899_v25 = vrot.slane %v1882_v19, %v1898_v21 }
 0x102   : > { %1782 = vmatpush1.bf16.msra.mxu0 %v3172_v27  ;;  %1825 = vmatpush1.bf16.msra.mxu1 %v3175_v28 }
 0x103   : > { %1783 = vmatprep.subr.bf16.mxu0 %v3180_v29  ;;  %1826 = vmatprep.subr.bf16.mxu1 %v3185_v30 }
 0x106   : > { %1784 = vmatpush1.bf16.msra.mxu0 %v3188_v31  ;;  %1827 = vmatpush1.bf16.msra.mxu1 %v3193_v32 }
 0x107   : > { %1785 = vmatprep.subr.bf16.mxu0 %v3196_v33  ;;  %1828 = vmatprep.subr.bf16.mxu1 %v3201_v34 }
 0x10a   : > { %1786 = vmatpush1.bf16.msra.mxu0 %v3204_v35  ;;  %1829 = vmatpush1.bf16.msra.mxu1 %v3207_v36 }
 0x10b   : > { %1787 = vmatprep.subr.bf16.mxu0 %v3212_v37  ;;  %1830 = vmatprep.subr.bf16.mxu1 %v3217_v38 }
 0x10e   : > { %1788 = vmatpush1.bf16.msra.mxu0 %v3220_v39  ;;  %1831 = vmatpush1.bf16.msra.mxu1 %v3225_v40 }
 0x10f   : > { %1789 = vmatprep.subr.bf16.mxu0 %v3228_v41  ;;  %1832 = vmatprep.subr.bf16.mxu1 %v3233_v42  ;;  %v1928_v42 = vld [vmem:[%s747_s16] sm:$0xf] }
 0x112   : > { %1790 = vmatpush1.bf16.msra.mxu0 %v3236_v43  ;;  %1833 = vmatpush1.bf16.msra.mxu1 %v3239_v44  ;;  %v1933_v43 = vrot.slane %v1928_v42, %v1886_v17  ;;  %v1941_v44 = vrot.slane %v1928_v42, %v1894_v18 }
 0x113   : > { %1791 = vmatprep.subr.bf16.mxu0 %v3244_v45  ;;  %1834 = vmatprep.subr.bf16.mxu1 %v3249_v46  ;;  %v1937_v45 = vrot.slane %v1928_v42, %v1890_v20  ;;  %v1945_v46 = vrot.slane %v1928_v42, %v1898_v21 }
 0x116   : > { %1792 = vmatpush1.bf16.msra.mxu0 %v3255_v47  ;;  %1835 = vmatpush1.bf16.msra.mxu1 %v3258_v48 }
 0x117   : > { %1793 = vmatprep.subr.bf16.mxu0 %v3263_v49  ;;  %1836 = vmatprep.subr.bf16.mxu1 %v3268_v50 }
 0x11a   : > { %1794 = vmatpush1.bf16.msra.mxu0 %v3271_v51  ;;  %1837 = vmatpush1.bf16.msra.mxu1 %v3591_v1 }
 0x11b   : > { %1795 = vmatprep.subr.bf16.mxu0 %v3592_v2  ;;  %1838 = vmatprep.subr.bf16.mxu1 %v3593_v3 }
 0x11e   : > { %1796 = vmatpush1.bf16.msra.mxu0 %v3594_v4  ;;  %1839 = vmatpush1.bf16.msra.mxu1 %v3595_v5 }
 0x11f   : > { %1797 = vmatprep.subr.bf16.mxu0 %v3596_v6  ;;  %1840 = vmatprep.subr.bf16.mxu1 %v3597_v7 }
 0x122   : > { %1798 = vmatpush1.bf16.msra.mxu0 %v3598_v8  ;;  %1841 = vmatpush1.bf16.msra.mxu1 %v3599_v9 }
 0x123   : > { %1799 = vmatprep.subr.bf16.mxu0 %v3600_v10  ;;  %1842 = vmatprep.subr.bf16.mxu1 %v3601_v11 }
 0x126   : > { %1800 = vmatpush1.bf16.msra.mxu0 %v3602_v13  ;;  %1843 = vmatpush1.bf16.msra.mxu1 %v3603_v14 }
 0x129   : > { %1802 = vmatmul.mubr.bf16.vlgmr.msra.gmra.mrb[4].mxu0 %v2646_v12  ;;  %1845 = vmatmul.mubr.bf16.vlgmr.msra.gmra.mrb[4].mxu1 %v2646_v12 }
 0x17c   : > { %v1205_v26 = vpop.f32.mrb[0].mxu0  ;;  %v1248_v27 = vpop.f32.mrb[0].mxu1 }
 0x17d   : > { %v1904_v28 = vadd.f32 %v1887_v22, %v1205_v26  ;;  %v1906_v29 = vadd.f32 %v1895_v23, %v1248_v27  ;;  %v1207_v30 = vpop.f32.mrb[1].mxu0  ;;  %v1250_v31 = vpop.f32.mrb[1].mxu1 }
 0x17e   : > { %v1905_v32 = vadd.f32 %v1891_v24, %v1207_v30  ;;  %v1907_v33 = vadd.f32 %v1899_v25, %v1250_v31  ;;  %v1209_v34 = vpop.f32.mrb[2].mxu0  ;;  %v1252_v35 = vpop.f32.mrb[2].mxu1 }
 0x17f   : > { %1912 = vst [vmem:[%s3487_s15] sm:$0xff] %v1904_v28  ;;  %1914 = vst [vmem:[%s3487_s15 + $0x10] sm:$0xff] %v1906_v29  ;;  %v1908_v36 = vadd.f32 %v1887_v22, %v1209_v34  ;;  %v1910_v37 = vadd.f32 %v1895_v23, %v1252_v35  ;;  %v1211_v38 = vpop.f32.mrb[3].mxu0  ;;  %v1254_v39 = vpop.f32.mrb[3].mxu1 }
 0x180   : > { %1913 = vst [vmem:[%s3487_s15 + $0x8] sm:$0xff] %v1905_v32  ;;  %1915 = vst [vmem:[%s3487_s15 + $0x18] sm:$0xff] %v1907_v33  ;;  %v1909_v40 = vadd.f32 %v1891_v24, %v1211_v38  ;;  %v1911_v41 = vadd.f32 %v1899_v25, %v1254_v39 }
 0x181   : > { %1916 = vst [vmem:[%s3487_s15 + $0x20] sm:$0xff] %v1908_v36  ;;  %1918 = vst [vmem:[%s3487_s15 + $0x30] sm:$0xff] %v1910_v37 }
 0x182   : > { %1917 = vst [vmem:[%s3487_s15 + $0x28] sm:$0xff] %v1909_v40  ;;  %1919 = vst [vmem:[%s3487_s15 + $0x38] sm:$0xff] %v1911_v41 }
 0x186   : > { %v1995_v52 = vld [vmem:[%s3487_s15] sm:$0xff] (%p2768_p6)  ;;  %v1999_v1 = vld [vmem:[%s3487_s15 + $0x10] sm:$0xff] (%p2768_p6) }
 0x187   : > { %v1997_v62 = vld [vmem:[%s3487_s15 + $0x8] sm:$0xff] (%p2768_p6)  ;;  %v2001_v2 = vld [vmem:[%s3487_s15 + $0x18] sm:$0xff] (%p2768_p6)  ;;  %1996 = vst [vmem:[%s1982_s21] sm:$0xff] (%p2768_p6), %v1995_v52  ;;  %2000 = vst [vmem:[%s1982_s21 + $0x10] sm:$0xff] (%p2768_p6), %v1999_v1 }
 0x188   : > { %v2003_v3 = vld [vmem:[%s3487_s15 + $0x20] sm:$0xff] (%p2768_p6)  ;;  %1998 = vst [vmem:[%s1982_s21 + $0x8] sm:$0xff] (%p2768_p6), %v1997_v62  ;;  %2002 = vst [vmem:[%s1982_s21 + $0x18] sm:$0xff] (%p2768_p6), %v2001_v2  ;;  %v2007_v5 = vld [vmem:[%s3487_s15 + $0x30] sm:$0xff] (%p2768_p6) }
 0x189   : > { %v2005_v4 = vld [vmem:[%s3487_s15 + $0x28] sm:$0xff] (%p2768_p6)  ;;  %2004 = vst [vmem:[%s1982_s21 + $0x40] sm:$0xff] (%p2768_p6), %v2003_v3  ;;  %v2009_v6 = vld [vmem:[%s3487_s15 + $0x38] sm:$0xff] (%p2768_p6)  ;;  %2008 = vst [vmem:[%s1982_s21 + $0x50] sm:$0xff] (%p2768_p6), %v2007_v5 }
 0x18a   : > { %2006 = vst [vmem:[%s1982_s21 + $0x48] sm:$0xff] (%p2768_p6), %v2005_v4  ;;  %2010 = vst [vmem:[%s1982_s21 + $0x58] sm:$0xff] (%p2768_p6), %v2009_v6 }
 0x1fc   : > { %v1803_v47 = vpop.f32.mrb[4].mxu0  ;;  %v1846_v48 = vpop.f32.mrb[4].mxu1  ;;  %1976 = sbr.rel (!%p2768_p6) target bundleno = 515 (0x203), region = 102 }
 0x1fd   : > { %v1950_v49 = vadd.f32 %v1933_v43, %v1803_v47  ;;  %v1952_v50 = vadd.f32 %v1941_v44, %v1846_v48  ;;  %v1805_v51 = vpop.f32.mrb[5].mxu0  ;;  %v1848_v58 = vpop.f32.mrb[5].mxu1 }
 0x1fe   : > { %v1951_v0 = vadd.f32 %v1937_v45, %v1805_v51  ;;  %v1953_v61 = vadd.f32 %v1945_v46, %v1848_v58  ;;  %v1807_v59 = vpop.f32.mrb[6].mxu0  ;;  %v1850_v63 = vpop.f32.mrb[6].mxu1 }
 0x1ff   : > { %1958 = vst [vmem:[%s3502_s17] sm:$0xff] %v1950_v49  ;;  %1960 = vst [vmem:[%s3502_s17 + $0x10] sm:$0xff] %v1952_v50  ;;  %v1954_v56 = vadd.f32 %v1933_v43, %v1807_v59  ;;  %v1956_v54 = vadd.f32 %v1941_v44, %v1850_v63  ;;  %v1809_v57 = vpop.f32.mrb[7].mxu0  ;;  %v1852_v55 = vpop.f32.mrb[7].mxu1 }
 0x200   : > { %1959 = vst [vmem:[%s3502_s17 + $0x8] sm:$0xff] %v1951_v0  ;;  %1961 = vst [vmem:[%s3502_s17 + $0x18] sm:$0xff] %v1953_v61  ;;  %v1955_v53 = vadd.f32 %v1937_v45, %v1809_v57  ;;  %v1957_v60 = vadd.f32 %v1945_v46, %v1852_v55 }
 0x201   : > { %1962 = vst [vmem:[%s3502_s17 + $0x20] sm:$0xff] %v1954_v56  ;;  %1964 = vst [vmem:[%s3502_s17 + $0x30] sm:$0xff] %v1956_v54 }
 0x202   : > { %1963 = vst [vmem:[%s3502_s17 + $0x28] sm:$0xff] %v1955_v53  ;;  %1965 = vst [vmem:[%s3502_s17 + $0x38] sm:$0xff] %v1957_v60 }
 0x203 PF: > { %2016 = sbr.rel (!%p2768_p6) target bundleno = 523 (0x20b), region = 125  ;;  %s2402_s22 = sshll.u32 (%p2768_p6), %s2679_s26, 5 }
 0x204   : > { %s2022_s9 = scalar_lea.vmem (%p2768_p6), %s3562_s7, %s2402_s22 }
 0x206   : > { %v2035_v7 = vld [vmem:[%s3502_s17] sm:$0xff] (%p2768_p6)  ;;  %v2039_v9 = vld [vmem:[%s3502_s17 + $0x10] sm:$0xff] (%p2768_p6) }
 0x207   : > { %v2037_v8 = vld [vmem:[%s3502_s17 + $0x8] sm:$0xff] (%p2768_p6)  ;;  %v2041_v10 = vld [vmem:[%s3502_s17 + $0x18] sm:$0xff] (%p2768_p6)  ;;  %2036 = vst [vmem:[%s2022_s9] sm:$0xff] (%p2768_p6), %v2035_v7  ;;  %2040 = vst [vmem:[%s2022_s9 + $0x10] sm:$0xff] (%p2768_p6), %v2039_v9 }
 0x208   : > { %v2043_v11 = vld [vmem:[%s3502_s17 + $0x20] sm:$0xff] (%p2768_p6)  ;;  %2038 = vst [vmem:[%s2022_s9 + $0x8] sm:$0xff] (%p2768_p6), %v2037_v8  ;;  %2042 = vst [vmem:[%s2022_s9 + $0x18] sm:$0xff] (%p2768_p6), %v2041_v10  ;;  %v2047_v13 = vld [vmem:[%s3502_s17 + $0x30] sm:$0xff] (%p2768_p6) }
 0x209   : > { %v2045_v12 = vld [vmem:[%s3502_s17 + $0x28] sm:$0xff] (%p2768_p6)  ;;  %2044 = vst [vmem:[%s2022_s9 + $0x40] sm:$0xff] (%p2768_p6), %v2043_v11  ;;  %v2049_v14 = vld [vmem:[%s3502_s17 + $0x38] sm:$0xff] (%p2768_p6)  ;;  %2048 = vst [vmem:[%s2022_s9 + $0x50] sm:$0xff] (%p2768_p6), %v2047_v13 }
 0x20a   : > { %2046 = vst [vmem:[%s2022_s9 + $0x48] sm:$0xff] %v2045_v12  ;;  %2050 = vst [vmem:[%s2022_s9 + $0x58] sm:$0xff] %v2049_v14 }
 0x20b PF: > { %s18_s28 = sadd.s32 1, %s2687_s28   ;;  %s3604_s24 = smov %s2675_s25 }
 0x20c   : > { %p15_p12 = scmp.ge.s32.totalorder %s18_s28, 4   ;;  %s3605_s25 = smov %s2773_s12 }
 0x20d   : > { %s3606_s26 = smov %s2683_s27  ;;  %s3607_s27 = smov %s3609_s29 }
 0x20e   :  { %17 = sbr.rel (!%p15_p12) target bundleno = 3 (0x3), region = 211 }

// kernel: jvp__.37
= control target key start
LH: loop header
LB: loop body
LE: loop exit
PB: predicated region body
PF: predicated region fallthrough
CT: control target
= control target key end

     0   :  { %s2441_s24 = smov 0   ;;  %s2443_s25 = smov 0   ;;  %s2966_s0 = inlined_call_operand.vmem [shape: bf16[16,1024], index: 0, kind: input, shape index: {}]   ;;  %s2967_s1 = inlined_call_operand.vmem [shape: bf16[16,1024], index: 1, kind: input, shape index: {}]   ;;  %s2968_s2 = inlined_call_operand.vmem [shape: bf16[1024,256], index: 2, kind: input, shape index: {}]   ;;  %s2969_s3 = inlined_call_operand.vmem [shape: bf16[1024,256], index: 3, kind: input, shape index: {}]   ;;  %s2970_s4 = inlined_call_operand.vmem [shape: f32[1,256], index: 4, kind: input, shape index: {}]   ;;  %s2971_s5 = inlined_call_operand.vmem [shape: f32[1,256], index: 5, kind: input, shape index: {}]   ;;  %s2972_s6 = inlined_call_operand.vmem [shape: f32[16,256], index: 6, kind: output, shape index: {0}]   ;;  %s2973_s7 = inlined_call_operand.vmem [shape: f32[16,256], index: 7, kind: output, shape index: {1}]  }
   0x1   :  { %s2445_s26 = smov 0   ;;  %s2447_s27 = smov 0  }
   0x2   :  { %s2449_s28 = smov 0  }
   0x3 LB: > { %s30_s29 = sadd.s32 1, %s2394_s27  ;;  %p53_p1 = scmp.ne.s32.totalorder %s2386_s25, %s2382_s24  ;;  %s2398_s28 = sphi %s2449_s28, %s18_s28   ;;  %s2394_s27 = sphi %s2447_s27, %s2978_s27   ;;  %s2390_s26 = sphi %s2445_s26, %s2977_s26   ;;  %s2386_s25 = sphi %s2443_s25, %s2976_s25   ;;  %s2382_s24 = sphi %s2441_s24, %s2975_s24  }
   0x4   : > { %p31_p0 = scmp.ge.s32.totalorder %s30_s29, 2  ;;  %p54_p2 = scmp.eq.s32.totalorder %s2398_s28, 0 }
   0x5   : > { %s46_s9 = sadd.s32 1, %s2386_s25  ;;  %p1935_p5 = scmp.ge.s32.totalorder %s2398_s28, 2 }
   0x6   : > { %s2980_s29 = smov (%p31_p0, %s30_s29), 0  ;;  %p2472_p3 = por %p54_p2, %p53_p1 }
   0x7   : > { %s42_s8 = ssub.s32 %s2394_s27, %s2980_s29  ;;  %287 = sbr.rel (%p1935_p5) target bundleno = 28 (0x1c), region = 24 }
   0x8   : > { %p44_p4 = scmp.eq.s32.totalorder %s42_s8, 0 }
   0xa   : > { %s2480_s10 = scalar_select %p44_p4, %s2386_s25, %s46_s9  }
   0xe   : > { %290 = sbr.rel (!%p2472_p3) target bundleno = 21 (0x15), region = 28  ;;  %s292_s11 = sand.u32 (%p2472_p3), 1, %s2386_s25  }
   0xf   : > { %s2095_s12 = sshll.u32 (%p2472_p3), %s2394_s27, 4  ;;  %s1936_s13 = sshll.u32 (%p2472_p3), %s292_s11, 5 }
  0x10   : > { %s300_s16 = scalar_lea.vmem (%p2472_p3), %s2966_s0, %s2095_s12  ;;  %s294_s17 = scalar_lea.vmem (%p2472_p3), [#allocation4], %s1936_s13 }
  0x11   : > { %v313_v0 = vld [vmem:[%s300_s16] sm:$0xff] (%p2472_p3)  ;;  %v315_v1 = vld [vmem:[%s300_s16 + $0x8] sm:$0xff] (%p2472_p3) }
  0x12   : > { %v317_v2 = vld [vmem:[%s300_s16 + $0x20] sm:$0xff] (%p2472_p3)  ;;  %314 = vst [vmem:[%s294_s17] sm:$0xff] (%p2472_p3), %v313_v0  ;;  %316 = vst [vmem:[%s294_s17 + $0x8] sm:$0xff] (%p2472_p3), %v315_v1  ;;  %v319_v3 = vld [vmem:[%s300_s16 + $0x28] sm:$0xff] (%p2472_p3) }
  0x13   : > { %318 = vst [vmem:[%s294_s17 + $0x10] sm:$0xff] (%p2472_p3), %v317_v2  ;;  %320 = vst [vmem:[%s294_s17 + $0x18] sm:$0xff] (%p2472_p3), %v319_v3 }
  0x15 PF: > { %326 = sbr.rel (!%p2472_p3) target bundleno = 28 (0x1c), region = 51  ;;  %s328_s18 = sand.u32 (%p2472_p3), 1, %s2386_s25  }
  0x16   : > { %s2096_s19 = sshll.u32 (%p2472_p3), %s2394_s27, 4  ;;  %s1939_s20 = sshll.u32 (%p2472_p3), %s328_s18, 5 }
  0x17   : > { %s336_s23 = scalar_lea.vmem (%p2472_p3), %s2967_s1, %s2096_s19  ;;  %s330_s8 = scalar_lea.vmem (%p2472_p3), [#allocation5], %s1939_s20 }
  0x18   : > { %v349_v4 = vld [vmem:[%s336_s23] sm:$0xff] (%p2472_p3)  ;;  %v351_v5 = vld [vmem:[%s336_s23 + $0x8] sm:$0xff] (%p2472_p3) }
  0x19   : > { %v353_v6 = vld [vmem:[%s336_s23 + $0x20] sm:$0xff] (%p2472_p3)  ;;  %350 = vst [vmem:[%s330_s8] sm:$0xff] (%p2472_p3), %v349_v4  ;;  %352 = vst [vmem:[%s330_s8 + $0x8] sm:$0xff] (%p2472_p3), %v351_v5  ;;  %v355_v7 = vld [vmem:[%s336_s23 + $0x28] sm:$0xff] (%p2472_p3) }
  0x1a   : > { %354 = vst [vmem:[%s330_s8 + $0x10] sm:$0xff] (%p2472_p3), %v353_v6  ;;  %356 = vst [vmem:[%s330_s8 + $0x18] sm:$0xff] (%p2472_p3), %v355_v7 }
  0x1c PF: > { %p1942_p6 = scmp.ge.s32.totalorder %s2398_s28, 1  ;;  %p391_p7 = scmp.lt.s32.totalorder %s2398_s28, 3 }
  0x1e   : > { %p392_p8 = pnand %p1942_p6, %p391_p7 }
  0x1f   : > { %s398_s30 = sand.u32 (!%p392_p8), 1, %s2382_s24   ;;  %s1945_s9 = sshll.u32 (!%p392_p8), %s2390_s26, 6 }
  0x20   : > { %395 = sbr.rel (%p392_p8) target bundleno = 470 (0x1d6), region = 82  ;;  %s1943_s11 = sshll.u32 (!%p392_p8), %s398_s30, 5 }
  0x21   : > { %p489_p9 = scmp.lt.s32.totalorder (!%p392_p8), %s1945_s9, 127  ;;  %s2511_s19 = scalar_lea.vmem (!%p392_p8), [#allocation4], %s1943_s11 }
  0x22   : > { %s2513_s20 = scalar_lea.vmem (!%p392_p8), [#allocation5], %s1943_s11  ;;  %p1951_p10 = scmp.ne.s32.totalorder (!%p392_p8), %s2390_s26, 0 }
  0x27   : > { %s2982_s9 = smov (!%p489_p9, %s1945_s9), 127  ;;  %548 = sbr.rel (%p1951_p10) target bundleno = 46 (0x2e), region = 94 }
  0x28   : > { %s2097_s12 = sshll.u32 %s2982_s9, 3  ;;  %v2400_v8 = vmov (!%p1951_p10), 0.0  }
  0x29   : > { %s2504_s15 = scalar_lea.vmem %s2968_s2, %s2097_s12  ;;  %s2509_s18 = scalar_lea.vmem %s2969_s3, %s2097_s12  ;;  %549 = vst [vmem:[#allocation2] sm:$0xff] (!%p1951_p10), %v2400_v8  ;;  %550 = vst [vmem:[#allocation2 + $0x8] sm:$0xff] (!%p1951_p10), %v2400_v8 }
  0x2a   : > { %551 = vst [vmem:[#allocation2 + $0x10] sm:$0xff] (!%p1951_p10), %v2400_v8  ;;  %552 = vst [vmem:[#allocation2 + $0x18] sm:$0xff] (!%p1951_p10), %v2400_v8 }
  0x2b   : > { %553 = vst [vmem:[#allocation3] sm:$0xff] (!%p1951_p10), %v2400_v8  ;;  %554 = vst [vmem:[#allocation3 + $0x8] sm:$0xff] (!%p1951_p10), %v2400_v8 }
  0x2c   : > { %555 = vst [vmem:[#allocation3 + $0x10] sm:$0xff] (!%p1951_p10), %v2400_v8  ;;  %556 = vst [vmem:[#allocation3 + $0x18] sm:$0xff] (!%p1951_p10), %v2400_v8 }
  0x2e PF: > { %v2517_v9 = vld [vmem:[%s2504_s15 + $0x4] ss:$8 sps:$4 sm:$0xff]   ;;  %v2522_v11 = vld [vmem:[%s2504_s15] ss:$8 sps:$4 sm:$0xff]   ;;  %v2526_v13 = vld [vmem:[%s2504_s15 + $0x14] ss:$8 sps:$4 sm:$0xff]  }
  0x2f   : > { %v2158_v10 = vld [vmem:[%s2509_s18 + $0x104] ss:$8 sps:$4 sm:$0xff]   ;;  %969 = vmatprep.subr.bf16.mxu0 %v2517_v9  ;;  %v2161_v12 = vld [vmem:[%s2509_s18 + $0x100] ss:$8 sps:$4 sm:$0xff]   ;;  %v2164_v14 = vld [vmem:[%s2509_s18 + $0x114] ss:$8 sps:$4 sm:$0xff]  }
  0x30   : > { %1482 = vmatprep.subr.bf16.mxu1 %v2158_v10  ;;  %970 = vmatpush1.bf16.msra.mxu0 %v2522_v11  ;;  %v2531_v15 = vld [vmem:[%s2504_s15 + $0x10] ss:$8 sps:$4 sm:$0xff]   ;;  %v2536_v17 = vld [vmem:[%s2504_s15 + $0x24] ss:$8 sps:$4 sm:$0xff]   ;;  %v2540_v19 = vld [vmem:[%s2504_s15 + $0x20] ss:$8 sps:$4 sm:$0xff]  }
  0x31   : > { %1483 = vmatpush1.bf16.msra.mxu1 %v2161_v12  ;;  %971 = vmatprep.subr.bf16.mxu0 %v2526_v13  ;;  %v2167_v16 = vld [vmem:[%s2509_s18 + $0x110] ss:$8 sps:$4 sm:$0xff]   ;;  %v2170_v18 = vld [vmem:[%s2509_s18 + $0x124] ss:$8 sps:$4 sm:$0xff]   ;;  %v2173_v20 = vld [vmem:[%s2509_s18 + $0x120] ss:$8 sps:$4 sm:$0xff]  }
  0x32   : > { %1484 = vmatprep.subr.bf16.mxu1 %v2164_v14  ;;  %v2545_v21 = vld [vmem:[%s2504_s15 + $0x34] ss:$8 sps:$4 sm:$0xff]   ;;  %v2550_v23 = vld [vmem:[%s2504_s15 + $0x30] ss:$8 sps:$4 sm:$0xff]   ;;  %v2555_v25 = vld [vmem:[%s2504_s15 + $0x44] ss:$8 sps:$4 sm:$0xff]  }
  0x33   : > { %v2176_v22 = vld [vmem:[%s2509_s18 + $0x134] ss:$8 sps:$4 sm:$0xff]   ;;  %v2179_v24 = vld [vmem:[%s2509_s18 + $0x130] ss:$8 sps:$4 sm:$0xff]   ;;  %v2182_v26 = vld [vmem:[%s2509_s18 + $0x144] ss:$8 sps:$4 sm:$0xff]  }
  0x34   : > { %972 = vmatpush1.bf16.msra.mxu0 %v2531_v15  ;;  %v2560_v27 = vld [vmem:[%s2504_s15 + $0x40] ss:$8 sps:$4 sm:$0xff]   ;;  %v2565_v29 = vld [vmem:[%s2504_s15 + $0x54] ss:$8 sps:$4 sm:$0xff]   ;;  %v2570_v31 = vld [vmem:[%s2504_s15 + $0x50] ss:$8 sps:$4 sm:$0xff]  }
  0x35   : > { %1485 = vmatpush1.bf16.msra.mxu1 %v2167_v16  ;;  %973 = vmatprep.subr.bf16.mxu0 %v2536_v17  ;;  %v2185_v28 = vld [vmem:[%s2509_s18 + $0x140] ss:$8 sps:$4 sm:$0xff]   ;;  %v2188_v30 = vld [vmem:[%s2509_s18 + $0x154] ss:$8 sps:$4 sm:$0xff]   ;;  %v2191_v32 = vld [vmem:[%s2509_s18 + $0x150] ss:$8 sps:$4 sm:$0xff]  }
  0x36   : > { %1486 = vmatprep.subr.bf16.mxu1 %v2170_v18  ;;  %v2575_v33 = vld [vmem:[%s2504_s15 + $0x64] ss:$8 sps:$4 sm:$0xff]   ;;  %v2580_v35 = vld [vmem:[%s2504_s15 + $0x60] ss:$8 sps:$4 sm:$0xff]   ;;  %v2585_v37 = vld [vmem:[%s2504_s15 + $0x74] ss:$8 sps:$4 sm:$0xff]  }
  0x37   : > { %v2194_v34 = vld [vmem:[%s2509_s18 + $0x164] ss:$8 sps:$4 sm:$0xff]   ;;  %v2197_v36 = vld [vmem:[%s2509_s18 + $0x160] ss:$8 sps:$4 sm:$0xff]   ;;  %v2200_v38 = vld [vmem:[%s2509_s18 + $0x174] ss:$8 sps:$4 sm:$0xff]  }
  0x38   : > { %974 = vmatpush1.bf16.msra.mxu0 %v2540_v19  ;;  %v2590_v39 = vld [vmem:[%s2504_s15 + $0x70] ss:$8 sps:$4 sm:$0xff]   ;;  %v2595_v41 = vld [vmem:[%s2504_s15 + $0x84] ss:$8 sps:$4 sm:$0xff]   ;;  %v2600_v43 = vld [vmem:[%s2504_s15 + $0x80] ss:$8 sps:$4 sm:$0xff]  }
  0x39   : > { %1487 = vmatpush1.bf16.msra.mxu1 %v2173_v20  ;;  %975 = vmatprep.subr.bf16.mxu0 %v2545_v21  ;;  %v2203_v40 = vld [vmem:[%s2509_s18 + $0x170] ss:$8 sps:$4 sm:$0xff]   ;;  %v2206_v42 = vld [vmem:[%s2509_s18 + $0x184] ss:$8 sps:$4 sm:$0xff]   ;;  %v2209_v44 = vld [vmem:[%s2509_s18 + $0x180] ss:$8 sps:$4 sm:$0xff]  }
  0x3a   : > { %1488 = vmatprep.subr.bf16.mxu1 %v2176_v22  ;;  %v2605_v45 = vld [vmem:[%s2504_s15 + $0x94] ss:$8 sps:$4 sm:$0xff]   ;;  %v2610_v47 = vld [vmem:[%s2504_s15 + $0x90] ss:$8 sps:$4 sm:$0xff]   ;;  %v2615_v49 = vld [vmem:[%s2504_s15 + $0xa4] ss:$8 sps:$4 sm:$0xff]  }
  0x3b   : > { %v2212_v46 = vld [vmem:[%s2509_s18 + $0x194] ss:$8 sps:$4 sm:$0xff]   ;;  %v2215_v48 = vld [vmem:[%s2509_s18 + $0x190] ss:$8 sps:$4 sm:$0xff]   ;;  %v2218_v50 = vld [vmem:[%s2509_s18 + $0x1a4] ss:$8 sps:$4 sm:$0xff]  }
  0x3c   : > { %976 = vmatpush1.bf16.msra.mxu0 %v2550_v23  ;;  %v2620_v51 = vld [vmem:[%s2504_s15 + $0xa0] ss:$8 sps:$4 sm:$0xff]   ;;  %v2625_v53 = vld [vmem:[%s2504_s15 + $0xb4] ss:$8 sps:$4 sm:$0xff]   ;;  %v2630_v55 = vld [vmem:[%s2504_s15 + $0xb0] ss:$8 sps:$4 sm:$0xff]  }
  0x3d   : > { %1489 = vmatpush1.bf16.msra.mxu1 %v2179_v24  ;;  %977 = vmatprep.subr.bf16.mxu0 %v2555_v25  ;;  %v2221_v52 = vld [vmem:[%s2509_s18 + $0x1a0] ss:$8 sps:$4 sm:$0xff]   ;;  %v2224_v54 = vld [vmem:[%s2509_s18 + $0x1b4] ss:$8 sps:$4 sm:$0xff]   ;;  %v2227_v56 = vld [vmem:[%s2509_s18 + $0x1b0] ss:$8 sps:$4 sm:$0xff]  }
  0x3e   : > { %1490 = vmatprep.subr.bf16.mxu1 %v2182_v26  ;;  %v2634_v57 = vld [vmem:[%s2511_s19 + $0x4] ss:$16 sps:$4 sm:$0xff]   ;;  %v2260_v60 = vld [vmem:[%s2511_s19 + $0xc] ss:$16 sps:$4 sm:$0xff]   ;;  %v2645_v61 = vld [vmem:[%s2504_s15 + $0xc0] ss:$8 sps:$4 sm:$0xff]  }
  0x3f   : > { %v2638_v58 = vld [vmem:[%s2504_s15 + $0xc4] ss:$8 sps:$4 sm:$0xff]   ;;  %1001 = vmatprep.mubr.bf16.mxu0 %v2634_v57  ;;  %v2233_v62 = vld [vmem:[%s2509_s18 + $0x1c0] ss:$8 sps:$4 sm:$0xff]   ;;  %v2650_v63 = vld [vmem:[%s2504_s15 + $0xd4] ss:$8 sps:$4 sm:$0xff]   ;;  %1514 = vmatprep.mubr.bf16.mxu1 %v2260_v60 }
  0x40   : > { %978 = vmatpush1.bf16.msra.mxu0 %v2560_v27  ;;  %v2230_v59 = vld [vmem:[%s2509_s18 + $0x1c4] ss:$8 sps:$4 sm:$0xff]   ;;  %v2236_v0 = vld [vmem:[%s2509_s18 + $0x1d4] ss:$8 sps:$4 sm:$0xff]   ;;  %v2655_v1 = vld [vmem:[%s2504_s15 + $0xd0] ss:$8 sps:$4 sm:$0xff]  }
  0x41   : > { %1491 = vmatpush1.bf16.msra.mxu1 %v2185_v28  ;;  %979 = vmatprep.subr.bf16.mxu0 %v2565_v29  ;;  %v2239_v2 = vld [vmem:[%s2509_s18 + $0x1d0] ss:$8 sps:$4 sm:$0xff]   ;;  %v2660_v3 = vld [vmem:[%s2504_s15 + $0xe4] ss:$8 sps:$4 sm:$0xff]   ;;  %v2665_v5 = vld [vmem:[%s2504_s15 + $0xe0] ss:$8 sps:$4 sm:$0xff]  }
  0x42   : > { %1492 = vmatprep.subr.bf16.mxu1 %v2188_v30  ;;  %v2242_v4 = vld [vmem:[%s2509_s18 + $0x1e4] ss:$8 sps:$4 sm:$0xff]   ;;  %v2245_v6 = vld [vmem:[%s2509_s18 + $0x1e0] ss:$8 sps:$4 sm:$0xff]   ;;  %v2670_v7 = vld [vmem:[%s2504_s15 + $0xf4] ss:$8 sps:$4 sm:$0xff]  }
  0x43   : > { %v2248_v8 = vld [vmem:[%s2509_s18 + $0x1f4] ss:$8 sps:$4 sm:$0xff]   ;;  %v2675_v10 = vld [vmem:[%s2504_s15 + $0xf0] ss:$8 sps:$4 sm:$0xff]   ;;  %v2681_v14 = vld [vmem:[%s2504_s15 + $0x104] ss:$8 sps:$4 sm:$0xff]  }
  0x44   : > { %980 = vmatpush1.bf16.msra.mxu0 %v2570_v31  ;;  %v2251_v12 = vld [vmem:[%s2509_s18 + $0x1f0] ss:$8 sps:$4 sm:$0xff]   ;;  %v2691_v20 = vld [vmem:[%s2504_s15 + $0x100] ss:$8 sps:$4 sm:$0xff]   ;;  %v2696_v22 = vld [vmem:[%s2504_s15 + $0x114] ss:$8 sps:$4 sm:$0xff]  }
  0x45   : > { %1493 = vmatpush1.bf16.msra.mxu1 %v2191_v32  ;;  %981 = vmatprep.subr.bf16.mxu0 %v2575_v33  ;;  %v2684_v16 = vld [vmem:[%s2511_s19] ss:$16 sps:$4 sm:$0xff]   ;;  %v2687_v18 = vld [vmem:[%s2511_s19 + $0x8] ss:$16 sps:$4 sm:$0xff]   ;;  %v2706_v26 = vld [vmem:[%s2504_s15 + $0x124] ss:$8 sps:$4 sm:$0xff]  }
  0x46   : > { %1494 = vmatprep.subr.bf16.mxu1 %v2194_v34  ;;  %v2701_v24 = vld [vmem:[%s2504_s15 + $0x110] ss:$8 sps:$4 sm:$0xff]   ;;  %v2714_v28 = vld [vmem:[%s2504_s15 + $0x120] ss:$8 sps:$4 sm:$0xff]   ;;  %v2769_v30 = vld [vmem:[%s2504_s15 + $0x184] ss:$8 sps:$4 sm:$0xff]  }
  0x47   : > { %v2779_v32 = vld [vmem:[%s2504_s15 + $0x194] ss:$8 sps:$4 sm:$0xff]   ;;  %v2789_v34 = vld [vmem:[%s2504_s15 + $0x1a4] ss:$8 sps:$4 sm:$0xff]   ;;  %p2088_p11 = scmp.ne.s32.totalorder %s2390_s26, 1 }
  0x48   : > { %982 = vmatpush1.bf16.msra.mxu0 %v2580_v35 }
  0x49   : > { %1495 = vmatpush1.bf16.msra.mxu1 %v2197_v36  ;;  %983 = vmatprep.subr.bf16.mxu0 %v2585_v37  ;;  %v2799_v36 = vld [vmem:[%s2504_s15 + $0x1b4] ss:$8 sps:$4 sm:$0xff]  }
  0x4a   : > { %1496 = vmatprep.subr.bf16.mxu1 %v2200_v38  ;;  %v2809_v38 = vld [vmem:[%s2504_s15 + $0x1c4] ss:$8 sps:$4 sm:$0xff]  }
  0x4c   : > { %984 = vmatpush1.bf16.msra.mxu0 %v2590_v39 }
  0x4d   : > { %1497 = vmatpush1.bf16.msra.mxu1 %v2203_v40  ;;  %985 = vmatprep.subr.bf16.mxu0 %v2595_v41  ;;  %v2819_v40 = vld [vmem:[%s2504_s15 + $0x1d4] ss:$8 sps:$4 sm:$0xff]  }
  0x4e   : > { %1498 = vmatprep.subr.bf16.mxu1 %v2206_v42  ;;  %v2829_v42 = vld [vmem:[%s2504_s15 + $0x1e4] ss:$8 sps:$4 sm:$0xff]  }
  0x50   : > { %986 = vmatpush1.bf16.msra.mxu0 %v2600_v43 }
  0x51   : > { %1499 = vmatpush1.bf16.msra.mxu1 %v2209_v44  ;;  %987 = vmatprep.subr.bf16.mxu0 %v2605_v45  ;;  %v2839_v44 = vld [vmem:[%s2504_s15 + $0x1f4] ss:$8 sps:$4 sm:$0xff]  }
  0x52   : > { %1500 = vmatprep.subr.bf16.mxu1 %v2212_v46  ;;  %v2308_v46 = vld [vmem:[%s2509_s18 + $0x4] ss:$8 sps:$4 sm:$0xff]  }
  0x54   : > { %988 = vmatpush1.bf16.msra.mxu0 %v2610_v47 }
  0x55   : > { %1501 = vmatpush1.bf16.msra.mxu1 %v2215_v48  ;;  %989 = vmatprep.subr.bf16.mxu0 %v2615_v49  ;;  %v2306_v48 = vld [vmem:[%s2509_s18] ss:$8 sps:$4 sm:$0xff]  }
  0x56   : > { %1502 = vmatprep.subr.bf16.mxu1 %v2218_v50  ;;  %v2359_v50 = vld [vmem:[%s2513_s20 + $0xc] ss:$16 sps:$4 sm:$0xff]  }
  0x58   : > { %990 = vmatpush1.bf16.msra.mxu0 %v2620_v51 }
  0x59   : > { %1503 = vmatpush1.bf16.msra.mxu1 %v2221_v52  ;;  %991 = vmatprep.subr.bf16.mxu0 %v2625_v53  ;;  %v2317_v52 = vld [vmem:[%s2509_s18 + $0x24] ss:$8 sps:$4 sm:$0xff]  }
  0x5a   : > { %1504 = vmatprep.subr.bf16.mxu1 %v2224_v54  ;;  %v2320_v54 = vld [vmem:[%s2509_s18 + $0x34] ss:$8 sps:$4 sm:$0xff]  }
  0x5c   : > { %992 = vmatpush1.bf16.msra.mxu0 %v2630_v55 }
  0x5d   : > { %1505 = vmatpush1.bf16.msra.mxu1 %v2227_v56  ;;  %993 = vmatprep.subr.bf16.mxu0 %v2638_v58  ;;  %v2323_v56 = vld [vmem:[%s2509_s18 + $0x44] ss:$8 sps:$4 sm:$0xff]  }
  0x5e   : > { %1506 = vmatprep.subr.bf16.mxu1 %v2230_v59  ;;  %v2324_v59 = vld [vmem:[%s2509_s18 + $0x50] ss:$8 sps:$4 sm:$0xff]  }
  0x60   : > { %994 = vmatpush1.bf16.msra.mxu0 %v2645_v61 }
  0x61   : > { %1507 = vmatpush1.bf16.msra.mxu1 %v2233_v62  ;;  %995 = vmatprep.subr.bf16.mxu0 %v2650_v63  ;;  %v2332_v62 = vld [vmem:[%s2509_s18 + $0x74] ss:$8 sps:$4 sm:$0xff]  }
  0x62   : > { %1508 = vmatprep.subr.bf16.mxu1 %v2236_v0  ;;  %v2335_v0 = vld [vmem:[%s2509_s18 + $0x84] ss:$8 sps:$4 sm:$0xff]  }
  0x64   : > { %996 = vmatpush1.bf16.msra.mxu0 %v2655_v1 }
  0x65   : > { %1509 = vmatpush1.bf16.msra.mxu1 %v2239_v2  ;;  %997 = vmatprep.subr.bf16.mxu0 %v2660_v3  ;;  %v2338_v2 = vld [vmem:[%s2509_s18 + $0x94] ss:$8 sps:$4 sm:$0xff]  }
  0x66   : > { %1510 = vmatprep.subr.bf16.mxu1 %v2242_v4  ;;  %v2341_v4 = vld [vmem:[%s2509_s18 + $0xa4] ss:$8 sps:$4 sm:$0xff]  }
  0x68   : > { %998 = vmatpush1.bf16.msra.mxu0 %v2665_v5 }
  0x69   : > { %1511 = vmatpush1.bf16.msra.mxu1 %v2245_v6  ;;  %999 = vmatprep.subr.bf16.mxu0 %v2670_v7  ;;  %v2344_v6 = vld [vmem:[%s2509_s18 + $0xb4] ss:$8 sps:$4 sm:$0xff]  }
  0x6a   : > { %1512 = vmatprep.subr.bf16.mxu1 %v2248_v8  ;;  %v2347_v8 = vld [vmem:[%s2509_s18 + $0xc4] ss:$8 sps:$4 sm:$0xff]  }
  0x6c   : > { %1000 = vmatpush1.bf16.msra.mxu0 %v2675_v10 }
  0x6d   : > { %1513 = vmatpush1.bf16.msra.mxu1 %v2251_v12  ;;  %1012 = vmatprep.subr.bf16.mxu0 %v2681_v14  ;;  %v2350_v12 = vld [vmem:[%s2509_s18 + $0xd4] ss:$8 sps:$4 sm:$0xff]  }
  0x6e   : > { %1561 = vmatprep.subr.bf16.mxu1 %v2517_v9  ;;  %v2311_v9 = vld [vmem:[%s2513_s20 + $0x4] ss:$16 sps:$4 sm:$0xff]  }
  0x6f   : > { %1002 = vmatmul.mubr.bf16.vlgmr.msra.gmra.mrb[0].mxu0 %v2684_v16 }
  0x70   : > { %1515 = vmatmul.mubr.bf16.vlgmr.msra.gmra.mrb[0].mxu1 %v2687_v18  ;;  %1013 = vmatpush1.bf16.msra.mxu0 %v2691_v20 }
  0x71   : > { %1562 = vmatpush1.bf16.msra.mxu1 %v2522_v11  ;;  %1014 = vmatprep.subr.bf16.mxu0 %v2696_v22  ;;  %v2719_v11 = vld [vmem:[%s2504_s15 + $0x134] ss:$8 sps:$4 sm:$0xff]  }
  0x72   : > { %1563 = vmatprep.subr.bf16.mxu1 %v2526_v13  ;;  %1044 = vmatprep.mubr.bf16.mxu0 %v2260_v60  ;;  %v2724_v13 = vld [vmem:[%s2504_s15 + $0x130] ss:$8 sps:$4 sm:$0xff]   ;;  %v2329_v60 = vld [vmem:[%s2509_s18 + $0x64] ss:$8 sps:$4 sm:$0xff]  }
  0x73   : > { %1593 = vmatprep.mubr.bf16.mxu1 %v2311_v9  ;;  %v1525_v9 = vld [vmem:[#allocation2] sm:$0xff] }
  0x74   : > { %1015 = vmatpush1.bf16.msra.mxu0 %v2701_v24 }
  0x75   : > { %1564 = vmatpush1.bf16.msra.mxu1 %v2531_v15  ;;  %1016 = vmatprep.subr.bf16.mxu0 %v2706_v26  ;;  %v2729_v15 = vld [vmem:[%s2504_s15 + $0x144] ss:$8 sps:$4 sm:$0xff]  }
  0x76   : > { %1565 = vmatprep.subr.bf16.mxu1 %v2536_v17  ;;  %v2734_v17 = vld [vmem:[%s2504_s15 + $0x140] ss:$8 sps:$4 sm:$0xff]  }
  0x78   : > { %1017 = vmatpush1.bf16.msra.mxu0 %v2714_v28 }
  0x79   : > { %1566 = vmatpush1.bf16.msra.mxu1 %v2540_v19  ;;  %1018 = vmatprep.subr.bf16.mxu0 %v2719_v11  ;;  %v2739_v19 = vld [vmem:[%s2504_s15 + $0x154] ss:$8 sps:$4 sm:$0xff]  }
  0x7a   : > { %1567 = vmatprep.subr.bf16.mxu1 %v2545_v21  ;;  %v2744_v21 = vld [vmem:[%s2504_s15 + $0x150] ss:$8 sps:$4 sm:$0xff]  }
  0x7c   : > { %1019 = vmatpush1.bf16.msra.mxu0 %v2724_v13 }
  0x7d   : > { %1568 = vmatpush1.bf16.msra.mxu1 %v2550_v23  ;;  %1020 = vmatprep.subr.bf16.mxu0 %v2729_v15  ;;  %v2749_v23 = vld [vmem:[%s2504_s15 + $0x164] ss:$8 sps:$4 sm:$0xff]  }
  0x7e   : > { %1569 = vmatprep.subr.bf16.mxu1 %v2555_v25  ;;  %v2754_v25 = vld [vmem:[%s2504_s15 + $0x160] ss:$8 sps:$4 sm:$0xff]  }
  0x80   : > { %1021 = vmatpush1.bf16.msra.mxu0 %v2734_v17 }
  0x81   : > { %1570 = vmatpush1.bf16.msra.mxu1 %v2560_v27  ;;  %1022 = vmatprep.subr.bf16.mxu0 %v2739_v19  ;;  %v2759_v27 = vld [vmem:[%s2504_s15 + $0x174] ss:$8 sps:$4 sm:$0xff]  }
  0x82   : > { %1571 = vmatprep.subr.bf16.mxu1 %v2565_v29  ;;  %v2764_v29 = vld [vmem:[%s2504_s15 + $0x170] ss:$8 sps:$4 sm:$0xff]  }
  0x84   : > { %1023 = vmatpush1.bf16.msra.mxu0 %v2744_v21 }
  0x85   : > { %1572 = vmatpush1.bf16.msra.mxu1 %v2570_v31  ;;  %1024 = vmatprep.subr.bf16.mxu0 %v2749_v23  ;;  %v2774_v31 = vld [vmem:[%s2504_s15 + $0x180] ss:$8 sps:$4 sm:$0xff]  }
  0x86   : > { %1573 = vmatprep.subr.bf16.mxu1 %v2575_v33  ;;  %v2784_v33 = vld [vmem:[%s2504_s15 + $0x190] ss:$8 sps:$4 sm:$0xff]  }
  0x88   : > { %1025 = vmatpush1.bf16.msra.mxu0 %v2754_v25 }
  0x89   : > { %1574 = vmatpush1.bf16.msra.mxu1 %v2580_v35  ;;  %1026 = vmatprep.subr.bf16.mxu0 %v2759_v27  ;;  %v2794_v35 = vld [vmem:[%s2504_s15 + $0x1a0] ss:$8 sps:$4 sm:$0xff]  }
  0x8a   : > { %1575 = vmatprep.subr.bf16.mxu1 %v2585_v37  ;;  %v2804_v37 = vld [vmem:[%s2504_s15 + $0x1b0] ss:$8 sps:$4 sm:$0xff]  }
  0x8c   : > { %1027 = vmatpush1.bf16.msra.mxu0 %v2764_v29 }
  0x8d   : > { %1576 = vmatpush1.bf16.msra.mxu1 %v2590_v39  ;;  %1028 = vmatprep.subr.bf16.mxu0 %v2769_v30  ;;  %v2814_v39 = vld [vmem:[%s2504_s15 + $0x1c0] ss:$8 sps:$4 sm:$0xff]  }
  0x8e   : > { %1577 = vmatprep.subr.bf16.mxu1 %v2595_v41  ;;  %v2824_v41 = vld [vmem:[%s2504_s15 + $0x1d0] ss:$8 sps:$4 sm:$0xff]  }
  0x90   : > { %1029 = vmatpush1.bf16.msra.mxu0 %v2774_v31 }
  0x91   : > { %1578 = vmatpush1.bf16.msra.mxu1 %v2600_v43  ;;  %1030 = vmatprep.subr.bf16.mxu0 %v2779_v32  ;;  %v2834_v43 = vld [vmem:[%s2504_s15 + $0x1e0] ss:$8 sps:$4 sm:$0xff]  }
  0x92   : > { %1579 = vmatprep.subr.bf16.mxu1 %v2605_v45  ;;  %v2844_v45 = vld [vmem:[%s2504_s15 + $0x1f0] ss:$8 sps:$4 sm:$0xff]  }
  0x94   : > { %1031 = vmatpush1.bf16.msra.mxu0 %v2784_v33 }
  0x95   : > { %1580 = vmatpush1.bf16.msra.mxu1 %v2610_v47  ;;  %1032 = vmatprep.subr.bf16.mxu0 %v2789_v34  ;;  %v2309_v47 = vld [vmem:[%s2513_s20] ss:$16 sps:$4 sm:$0xff]  }
  0x96   : > { %1581 = vmatprep.subr.bf16.mxu1 %v2615_v49  ;;  %v2314_v49 = vld [vmem:[%s2509_s18 + $0x14] ss:$8 sps:$4 sm:$0xff]  }
  0x98   : > { %1033 = vmatpush1.bf16.msra.mxu0 %v2794_v35 }
  0x99   : > { %1582 = vmatpush1.bf16.msra.mxu1 %v2620_v51  ;;  %1034 = vmatprep.subr.bf16.mxu0 %v2799_v36  ;;  %v2312_v51 = vld [vmem:[%s2509_s18 + $0x10] ss:$8 sps:$4 sm:$0xff]  }
  0x9a   : > { %1583 = vmatprep.subr.bf16.mxu1 %v2625_v53  ;;  %v2315_v53 = vld [vmem:[%s2509_s18 + $0x20] ss:$8 sps:$4 sm:$0xff]  }
  0x9c   : > { %1035 = vmatpush1.bf16.msra.mxu0 %v2804_v37 }
  0x9d   : > { %1584 = vmatpush1.bf16.msra.mxu1 %v2630_v55  ;;  %1036 = vmatprep.subr.bf16.mxu0 %v2809_v38  ;;  %v2318_v55 = vld [vmem:[%s2509_s18 + $0x30] ss:$8 sps:$4 sm:$0xff]  }
  0x9e   : > { %1585 = vmatprep.subr.bf16.mxu1 %v2638_v58  ;;  %v2326_v58 = vld [vmem:[%s2509_s18 + $0x54] ss:$8 sps:$4 sm:$0xff]  }
  0xa0   : > { %1037 = vmatpush1.bf16.msra.mxu0 %v2814_v39 }
  0xa1   : > { %1586 = vmatpush1.bf16.msra.mxu1 %v2645_v61  ;;  %1038 = vmatprep.subr.bf16.mxu0 %v2819_v40  ;;  %v2327_v61 = vld [vmem:[%s2509_s18 + $0x60] ss:$8 sps:$4 sm:$0xff]  }
  0xa2   : > { %1587 = vmatprep.subr.bf16.mxu1 %v2650_v63  ;;  %v2330_v63 = vld [vmem:[%s2509_s18 + $0x70] ss:$8 sps:$4 sm:$0xff]  }
  0xa4   : > { %1039 = vmatpush1.bf16.msra.mxu0 %v2824_v41 }
  0xa5   : > { %1588 = vmatpush1.bf16.msra.mxu1 %v2655_v1  ;;  %1040 = vmatprep.subr.bf16.mxu0 %v2829_v42  ;;  %v2333_v1 = vld [vmem:[%s2509_s18 + $0x80] ss:$8 sps:$4 sm:$0xff]  }
  0xa6   : > { %1589 = vmatprep.subr.bf16.mxu1 %v2660_v3  ;;  %v2336_v3 = vld [vmem:[%s2509_s18 + $0x90] ss:$8 sps:$4 sm:$0xff]  }
  0xa8   : > { %1041 = vmatpush1.bf16.msra.mxu0 %v2834_v43 }
  0xa9   : > { %1590 = vmatpush1.bf16.msra.mxu1 %v2665_v5  ;;  %1042 = vmatprep.subr.bf16.mxu0 %v2839_v44  ;;  %v2339_v5 = vld [vmem:[%s2509_s18 + $0xa0] ss:$8 sps:$4 sm:$0xff]  }
  0xaa   : > { %1591 = vmatprep.subr.bf16.mxu1 %v2670_v7  ;;  %v2342_v7 = vld [vmem:[%s2509_s18 + $0xb0] ss:$8 sps:$4 sm:$0xff]  }
  0xac   : > { %1043 = vmatpush1.bf16.msra.mxu0 %v2844_v45 }
  0xad   : > { %1592 = vmatpush1.bf16.msra.mxu1 %v2675_v10  ;;  %1439 = vmatprep.subr.bf16.mxu0 %v2308_v46  ;;  %v2345_v10 = vld [vmem:[%s2509_s18 + $0xc0] ss:$8 sps:$4 sm:$0xff]  }
  0xae   : > { %1604 = vmatprep.subr.bf16.mxu1 %v2681_v14  ;;  %v2348_v14 = vld [vmem:[%s2509_s18 + $0xd0] ss:$8 sps:$4 sm:$0xff]  }
  0xaf   : > { %1045 = vmatmul.mubr.bf16.vlgmr.msra.gmra.mrb[0].mxu0 %v2687_v18  ;;  %v2353_v18 = vld [vmem:[%s2509_s18 + $0xe4] ss:$8 sps:$4 sm:$0xff]  }
  0xb0   : > { %1594 = vmatmul.mubr.bf16.vlgmr.msra.gmra.mrb[0].mxu1 %v2309_v47  ;;  %1440 = vmatpush1.bf16.msra.mxu0 %v2306_v48 }
  0xb1   : > { %1605 = vmatpush1.bf16.msra.mxu1 %v2691_v20  ;;  %1441 = vmatprep.subr.bf16.mxu0 %v2314_v49  ;;  %v2351_v20 = vld [vmem:[%s2509_s18 + $0xe0] ss:$8 sps:$4 sm:$0xff]   ;;  %v1665_v49 = vlaneseq (!%p2088_p11) }
  0xb2   : > { %1606 = vmatprep.subr.bf16.mxu1 %v2696_v22  ;;  %1471 = vmatprep.mubr.bf16.mxu0 %v2634_v57  ;;  %v2321_v57 = vld [vmem:[%s2509_s18 + $0x40] ss:$8 sps:$4 sm:$0xff]   ;;  %v2356_v22 = vld [vmem:[%s2509_s18 + $0xf4] ss:$8 sps:$4 sm:$0xff]  }
  0xb3   : > { %1636 = vmatprep.mubr.bf16.mxu1 %v2359_v50  ;;  %v1666_v50 = vshrl.u32 (!%p2088_p11), %v1665_v49, 7 }
  0xb4   : > { %1442 = vmatpush1.bf16.msra.mxu0 %v2312_v51  ;;  %v1663_v51 = vld [vmem:[%s2970_s4] sm:$0x3] (!%p2088_p11) }
  0xb5   : > { %1607 = vmatpush1.bf16.msra.mxu1 %v2701_v24  ;;  %1443 = vmatprep.subr.bf16.mxu0 %v2317_v52  ;;  %v2354_v24 = vld [vmem:[%s2509_s18 + $0xf0] ss:$8 sps:$4 sm:$0xff]   ;;  %v1687_v52 = vld [vmem:[%s2971_s5] sm:$0x3] (!%p2088_p11) }
  0xb6   : > { %1608 = vmatprep.subr.bf16.mxu1 %v2706_v26  ;;  %v2357_v26 = vld [vmem:[%s2513_s20 + $0x8] ss:$16 sps:$4 sm:$0xff]  }
  0xb8   : > { %1444 = vmatpush1.bf16.msra.mxu0 %v2315_v53 }
  0xb9   : > { %1609 = vmatpush1.bf16.msra.mxu1 %v2714_v28  ;;  %1445 = vmatprep.subr.bf16.mxu0 %v2320_v54  ;;  %v1526_v28 = vld [vmem:[#allocation2 + $0x8] sm:$0xff]  ;;  %v1667_v54 = vsub.s32 (!%p2088_p11), 0, %v1666_v50 }
  0xba   : > { %1610 = vmatprep.subr.bf16.mxu1 %v2719_v11 }
  0xbc   : > { %1446 = vmatpush1.bf16.msra.mxu0 %v2318_v55 }
  0xbd   : > { %1611 = vmatpush1.bf16.msra.mxu1 %v2724_v13  ;;  %1447 = vmatprep.subr.bf16.mxu0 %v2323_v56  ;;  %v1527_v13 = vld [vmem:[#allocation2 + $0x10] sm:$0xff]  ;;  %v1671_v56 = vsub.s32 (!%p2088_p11), 1, %v1666_v50 }
  0xbe   : > { %1612 = vmatprep.subr.bf16.mxu1 %v2729_v15 }
  0xc0   : > { %1448 = vmatpush1.bf16.msra.mxu0 %v2321_v57 }
  0xc1   : > { %1613 = vmatpush1.bf16.msra.mxu1 %v2734_v17  ;;  %1449 = vmatprep.subr.bf16.mxu0 %v2326_v58 }
  0xc2   : > { %1614 = vmatprep.subr.bf16.mxu1 %v2739_v19  ;;  %v1528_v19 = vld [vmem:[#allocation2 + $0x18] sm:$0xff] }
  0xc4   : > { %1450 = vmatpush1.bf16.msra.mxu0 %v2324_v59 }
  0xc5   : > { %1615 = vmatpush1.bf16.msra.mxu1 %v2744_v21  ;;  %1451 = vmatprep.subr.bf16.mxu0 %v2329_v60  ;;  %v1668_v60 = vrot.slane (!%p2088_p11), %v1663_v51, %v1667_v54 }
  0xc6   : > { %1616 = vmatprep.subr.bf16.mxu1 %v2749_v23 }
  0xc8   : > { %1452 = vmatpush1.bf16.msra.mxu0 %v2327_v61  ;;  %v1672_v61 = vrot.slane (!%p2088_p11), %v1663_v51, %v1671_v56 }
  0xc9   : > { %1617 = vmatpush1.bf16.msra.mxu1 %v2754_v25  ;;  %1453 = vmatprep.subr.bf16.mxu0 %v2332_v62  ;;  %v1692_v62 = vrot.slane (!%p2088_p11), %v1687_v52, %v1667_v54 }
  0xca   : > { %1618 = vmatprep.subr.bf16.mxu1 %v2759_v27 }
  0xcc   : > { %1454 = vmatpush1.bf16.msra.mxu0 %v2330_v63 }
  0xcd   : > { %1619 = vmatpush1.bf16.msra.mxu1 %v2764_v29  ;;  %1455 = vmatprep.subr.bf16.mxu0 %v2335_v0  ;;  %v1696_v0 = vrot.slane (!%p2088_p11), %v1687_v52, %v1671_v56 }
  0xce   : > { %1620 = vmatprep.subr.bf16.mxu1 %v2769_v30 }
  0xd0   : > { %1456 = vmatpush1.bf16.msra.mxu0 %v2333_v1 }
  0xd1   : > { %1621 = vmatpush1.bf16.msra.mxu1 %v2774_v31  ;;  %1457 = vmatprep.subr.bf16.mxu0 %v2338_v2  ;;  %v1537_v31 = vld [vmem:[#allocation3] sm:$0xff] }
  0xd2   : > { %1622 = vmatprep.subr.bf16.mxu1 %v2779_v32 }
  0xd4   : > { %1458 = vmatpush1.bf16.msra.mxu0 %v2336_v3 }
  0xd5   : > { %1623 = vmatpush1.bf16.msra.mxu1 %v2784_v33  ;;  %1459 = vmatprep.subr.bf16.mxu0 %v2341_v4 }
  0xd6   : > { %1624 = vmatprep.subr.bf16.mxu1 %v2789_v34  ;;  %v1538_v34 = vld [vmem:[#allocation3 + $0x8] sm:$0xff] }
  0xd8   : > { %1460 = vmatpush1.bf16.msra.mxu0 %v2339_v5 }
  0xd9   : > { %1625 = vmatpush1.bf16.msra.mxu1 %v2794_v35  ;;  %1461 = vmatprep.subr.bf16.mxu0 %v2344_v6 }
  0xda   : > { %1626 = vmatprep.subr.bf16.mxu1 %v2799_v36 }
  0xdc   : > { %1462 = vmatpush1.bf16.msra.mxu0 %v2342_v7 }
  0xdd   : > { %1627 = vmatpush1.bf16.msra.mxu1 %v2804_v37  ;;  %1463 = vmatprep.subr.bf16.mxu0 %v2347_v8 }
  0xde   : > { %1628 = vmatprep.subr.bf16.mxu1 %v2809_v38  ;;  %v1539_v38 = vld [vmem:[#allocation3 + $0x10] sm:$0xff] }
  0xe0   : > { %1464 = vmatpush1.bf16.msra.mxu0 %v2345_v10 }
  0xe1   : > { %1629 = vmatpush1.bf16.msra.mxu1 %v2814_v39  ;;  %1465 = vmatprep.subr.bf16.mxu0 %v2350_v12 }
  0xe2   : > { %1630 = vmatprep.subr.bf16.mxu1 %v2819_v40 }
  0xe4   : > { %1466 = vmatpush1.bf16.msra.mxu0 %v2348_v14 }
  0xe5   : > { %1631 = vmatpush1.bf16.msra.mxu1 %v2824_v41  ;;  %1467 = vmatprep.subr.bf16.mxu0 %v2353_v18 }
  0xe6   : > { %1632 = vmatprep.subr.bf16.mxu1 %v2829_v42 }
  0xe8   : > { %1468 = vmatpush1.bf16.msra.mxu0 %v2351_v20 }
  0xe9   : > { %1633 = vmatpush1.bf16.msra.mxu1 %v2834_v43  ;;  %1469 = vmatprep.subr.bf16.mxu0 %v2356_v22  ;;  %v1540_v43 = vld [vmem:[#allocation3 + $0x18] sm:$0xff] }
  0xea   : > { %1634 = vmatprep.subr.bf16.mxu1 %v2839_v44 }
  0xec   : > { %1470 = vmatpush1.bf16.msra.mxu0 %v2354_v24 }
  0xed   : > { %1635 = vmatpush1.bf16.msra.mxu1 %v2844_v45 }
  0xef   : > { %1472 = vmatmul.mubr.bf16.vlgmr.msra.gmra.mrb[4].mxu0 %v2684_v16 }
  0xf0   : > { %1637 = vmatmul.mubr.bf16.vlgmr.msra.gmra.mrb[0].mxu1 %v2357_v26 }
 0x182   : > { %v1046_v11 = vpop.f32.mrb[0].mxu0 }
 0x183   : > { %v1529_v15 = vadd.f32 %v1525_v9, %v1046_v11  ;;  %v1048_v17 = vpop.f32.mrb[1].mxu0 }
 0x184   : > { %v1530_v21 = vadd.f32 %v1526_v28, %v1048_v17  ;;  %v1050_v23 = vpop.f32.mrb[2].mxu0 }
 0x185   : > { %1533 = vst [vmem:[#allocation2] sm:$0xff] %v1529_v15  ;;  %v1531_v25 = vadd.f32 %v1527_v13, %v1050_v23  ;;  %v1052_v27 = vpop.f32.mrb[3].mxu0 }
 0x186   : > { %1534 = vst [vmem:[#allocation2 + $0x8] sm:$0xff] %v1530_v21  ;;  %v1532_v29 = vadd.f32 %v1528_v19, %v1052_v27 }
 0x187   : > { %1535 = vst [vmem:[#allocation2 + $0x10] sm:$0xff] %v1531_v25 }
 0x188   : > { %1536 = vst [vmem:[#allocation2 + $0x18] sm:$0xff] %v1532_v29 }
 0x18c   : > { %v1659_v53 = vld [vmem:[#allocation2] sm:$0xff] (!%p2088_p11) }
 0x18d   : > { %v1660_v55 = vld [vmem:[#allocation2 + $0x8] sm:$0xff] (!%p2088_p11)  ;;  %v1675_v3 = vadd.f32 (!%p2088_p11), %v1668_v60, %v1659_v53 }
 0x18e   : > { %v1661_v57 = vld [vmem:[#allocation2 + $0x10] sm:$0xff] (!%p2088_p11)  ;;  %v1676_v4 = vadd.f32 (!%p2088_p11), %v1672_v61, %v1660_v55 }
 0x18f   : > { %v1662_v58 = vld [vmem:[#allocation2 + $0x18] sm:$0xff] (!%p2088_p11)  ;;  %v1677_v5 = vadd.f32 (!%p2088_p11), %v1668_v60, %v1661_v57  ;;  %1679 = vst [vmem:[%s2972_s6] sm:$0xff] (!%p2088_p11), %v1675_v3 }
 0x190   : > { %v1678_v6 = vadd.f32 (!%p2088_p11), %v1672_v61, %v1662_v58  ;;  %1680 = vst [vmem:[%s2972_s6 + $0x8] sm:$0xff] (!%p2088_p11), %v1676_v4 }
 0x191   : > { %1681 = vst [vmem:[%s2972_s6 + $0x10] sm:$0xff] (!%p2088_p11), %v1677_v5 }
 0x192   : > { %1682 = vst [vmem:[%s2972_s6 + $0x18] sm:$0xff] (!%p2088_p11), %v1678_v6 }
 0x1c2   : > { %v1473_v30 = vpop.f32.mrb[4].mxu0 }
 0x1c3   : > { %v1638_v16 = vpop.f32.mrb[0].mxu1  ;;  %v1475_v33 = vpop.f32.mrb[5].mxu0 }
 0x1c4   : > { %v2099_v32 = vadd.f32 %v1638_v16, %v1473_v30  ;;  %v1640_v35 = vpop.f32.mrb[1].mxu1  ;;  %v1477_v37 = vpop.f32.mrb[6].mxu0 }
 0x1c5   : > { %v2100_v36 = vadd.f32 %v1640_v35, %v1475_v33  ;;  %v1642_v39 = vpop.f32.mrb[2].mxu1  ;;  %v1479_v42 = vpop.f32.mrb[7].mxu0  ;;  %1658 = sbr.rel (%p2088_p11) target bundleno = 470 (0x1d6), region = 98 }
 0x1c6   : > { %v1647_v40 = vadd.f32 %v2099_v32, %v1537_v31  ;;  %v2101_v41 = vadd.f32 %v1642_v39, %v1477_v37  ;;  %v1644_v44 = vpop.f32.mrb[3].mxu1 }
 0x1c7   : > { %v1648_v45 = vadd.f32 %v2100_v36, %v1538_v34  ;;  %v2102_v46 = vadd.f32 %v1644_v44, %v1479_v42 }
 0x1c8   : > { %1651 = vst [vmem:[#allocation3] sm:$0xff] %v1647_v40  ;;  %v1649_v47 = vadd.f32 %v2101_v41, %v1539_v38 }
 0x1c9   : > { %1652 = vst [vmem:[#allocation3 + $0x8] sm:$0xff] %v1648_v45  ;;  %v1650_v48 = vadd.f32 %v2102_v46, %v1540_v43 }
 0x1ca   : > { %1653 = vst [vmem:[#allocation3 + $0x10] sm:$0xff] %v1649_v47 }
 0x1cb   : > { %1654 = vst [vmem:[#allocation3 + $0x18] sm:$0xff] %v1650_v48 }
 0x1cf   : > { %v1683_v59 = vld [vmem:[#allocation3] sm:$0xff] }
 0x1d0   : > { %v1684_v63 = vld [vmem:[#allocation3 + $0x8] sm:$0xff]  ;;  %v1699_v7 = vadd.f32 %v1692_v62, %v1683_v59 }
 0x1d1   : > { %v1685_v1 = vld [vmem:[#allocation3 + $0x10] sm:$0xff]  ;;  %v1700_v8 = vadd.f32 %v1696_v0, %v1684_v63 }
 0x1d2   : > { %v1686_v2 = vld [vmem:[#allocation3 + $0x18] sm:$0xff]  ;;  %v1701_v10 = vadd.f32 %v1692_v62, %v1685_v1  ;;  %1703 = vst [vmem:[%s2973_s7] sm:$0xff] %v1699_v7 }
 0x1d3   : > { %v1702_v12 = vadd.f32 %v1696_v0, %v1686_v2  ;;  %1704 = vst [vmem:[%s2973_s7 + $0x8] sm:$0xff] %v1700_v8 }
 0x1d4   : > { %1705 = vst [vmem:[%s2973_s7 + $0x10] sm:$0xff] %v1701_v10 }
 0x1d5   : > { %1706 = vst [vmem:[%s2973_s7 + $0x18] sm:$0xff] %v1702_v12 }
 0x1d6 PF: > { %s18_s28 = sadd.s32 1, %s2398_s28   ;;  %s2975_s24 = smov %s2386_s25 }
 0x1d7   : > { %p15_p12 = scmp.ge.s32.totalorder %s18_s28, 4   ;;  %s2976_s25 = smov %s2480_s10 }
 0x1d8   : > { %s2977_s26 = smov %s2394_s27  ;;  %s2978_s27 = smov %s2980_s29 }
 0x1d9   :  { %17 = sbr.rel (!%p15_p12) target bundleno = 3 (0x3), region = 165 }

// kernel: jvp__.43
= control target key start
LH: loop header
LB: loop body
LE: loop exit
PB: predicated region body
PF: predicated region fallthrough
CT: control target
= control target key end

     0   :  { %s1805_s0 = inlined_call_operand.vmem [shape: bf16[16,256], index: 0, kind: input, shape index: {}]   ;;  %s1806_s1 = inlined_call_operand.vmem [shape: bf16[16,256], index: 1, kind: input, shape index: {}]   ;;  %s1807_s2 = inlined_call_operand.vmem [shape: bf16[347,256], index: 2, kind: input, shape index: {}]   ;;  %s1808_s3 = inlined_call_operand.vmem [shape: bf16[347,256], index: 3, kind: input, shape index: {}]   ;;  %s1809_s4 = inlined_call_operand.vmem [shape: f32[1,347], index: 4, kind: input, shape index: {}, may-alias: {4,5}]   ;;  %s1810_s5 = inlined_call_operand.vmem [shape: f32[1,347], index: 5, kind: input, shape index: {}, may-alias: {4,5}]   ;;  %s1811_s6 = inlined_call_operand.hbm [shape: f32[16,347], index: 6, kind: output, shape index: {0}]   ;;  %s1812_s7 = inlined_call_operand.vmem [shape: f32[16,347], index: 7, kind: output, shape index: {1}]  }
   0x1   :  { %v1287_v0 = vld [vmem:[%s1807_s2 + $0x4] ss:$8 sps:$4 sm:$0xff]   ;;  %v1296_v2 = vld [vmem:[%s1807_s2] ss:$8 sps:$4 sm:$0xff]   ;;  %v1304_v4 = vld [vmem:[%s1807_s2 + $0x14] ss:$8 sps:$4 sm:$0xff]  }
   0x2   :  { %v1080_v1 = vld [vmem:[%s1808_s3 + $0x4] ss:$8 sps:$4 sm:$0xff]   ;;  %322 = vmatprep.subr.bf16.mxu0 %v1287_v0  ;;  %v1083_v3 = vld [vmem:[%s1808_s3] ss:$8 sps:$4 sm:$0xff]   ;;  %v1086_v5 = vld [vmem:[%s1808_s3 + $0x14] ss:$8 sps:$4 sm:$0xff]  }
   0x3   :  { %670 = vmatprep.subr.bf16.mxu1 %v1080_v1  ;;  %323 = vmatpush1.bf16.xpose.msra.mxu0 %v1296_v2  ;;  %v1314_v6 = vld [vmem:[%s1807_s2 + $0x10] ss:$8 sps:$4 sm:$0xff]   ;;  %v1322_v8 = vld [vmem:[%s1807_s2 + $0x24] ss:$8 sps:$4 sm:$0xff]   ;;  %v1332_v10 = vld [vmem:[%s1807_s2 + $0x20] ss:$8 sps:$4 sm:$0xff]  }
   0x4   :  { %671 = vmatpush1.bf16.xpose.msra.mxu1 %v1083_v3  ;;  %324 = vmatprep.subr.bf16.mxu0 %v1304_v4  ;;  %v1089_v7 = vld [vmem:[%s1808_s3 + $0x10] ss:$8 sps:$4 sm:$0xff]   ;;  %v1092_v9 = vld [vmem:[%s1808_s3 + $0x24] ss:$8 sps:$4 sm:$0xff]   ;;  %v1095_v11 = vld [vmem:[%s1808_s3 + $0x20] ss:$8 sps:$4 sm:$0xff]  }
   0x5   :  { %672 = vmatprep.subr.bf16.mxu1 %v1086_v5  ;;  %v1340_v12 = vld [vmem:[%s1807_s2 + $0x34] ss:$8 sps:$4 sm:$0xff]   ;;  %v1350_v14 = vld [vmem:[%s1807_s2 + $0x30] ss:$8 sps:$4 sm:$0xff]   ;;  %v1358_v16 = vld [vmem:[%s1807_s2 + $0x44] ss:$8 sps:$4 sm:$0xff]  }
   0x6   :  { %v1098_v13 = vld [vmem:[%s1808_s3 + $0x34] ss:$8 sps:$4 sm:$0xff]   ;;  %v1101_v15 = vld [vmem:[%s1808_s3 + $0x30] ss:$8 sps:$4 sm:$0xff]   ;;  %v1104_v17 = vld [vmem:[%s1808_s3 + $0x44] ss:$8 sps:$4 sm:$0xff]  }
   0x7   :  { %v1368_v18 = vld [vmem:[%s1807_s2 + $0x40] ss:$8 sps:$4 sm:$0xff]   ;;  %v1376_v20 = vld [vmem:[%s1807_s2 + $0x54] ss:$8 sps:$4 sm:$0xff]   ;;  %v1386_v22 = vld [vmem:[%s1807_s2 + $0x50] ss:$8 sps:$4 sm:$0xff]  }
   0x8   :  { %v1107_v19 = vld [vmem:[%s1808_s3 + $0x40] ss:$8 sps:$4 sm:$0xff]   ;;  %v1110_v21 = vld [vmem:[%s1808_s3 + $0x54] ss:$8 sps:$4 sm:$0xff]   ;;  %v1113_v23 = vld [vmem:[%s1808_s3 + $0x50] ss:$8 sps:$4 sm:$0xff]  }
   0x9   :  { %v1394_v24 = vld [vmem:[%s1807_s2 + $0x64] ss:$8 sps:$4 sm:$0xff]   ;;  %v1411_v27 = vld [vmem:[%s1807_s2 + $0x60] ss:$8 sps:$4 sm:$0xff]   ;;  %v1419_v29 = vld [vmem:[%s1807_s2 + $0x74] ss:$8 sps:$4 sm:$0xff]  }
   0xa   :  { %v1116_v25 = vld [vmem:[%s1808_s3 + $0x64] ss:$8 sps:$4 sm:$0xff]   ;;  %v1119_v28 = vld [vmem:[%s1808_s3 + $0x60] ss:$8 sps:$4 sm:$0xff]   ;;  %v1122_v30 = vld [vmem:[%s1808_s3 + $0x74] ss:$8 sps:$4 sm:$0xff]  }
   0xb   :  { %325 = vmatpush1.bf16.xpose.msra.mxu0 %v1314_v6  ;;  %v1402_v26 = vld [vmem:[%s1805_s0 + $0x4] ss:$8 sps:$4 sm:$0xff]   ;;  %v1429_v31 = vld [vmem:[%s1807_s2 + $0x70] ss:$8 sps:$4 sm:$0xff]  }
   0xc   :  { %673 = vmatpush1.bf16.xpose.msra.mxu1 %v1089_v7  ;;  %326 = vmatprep.subr.bf16.mxu0 %v1322_v8  ;;  %v1125_v32 = vld [vmem:[%s1808_s3 + $0x70] ss:$8 sps:$4 sm:$0xff]   ;;  %v1437_v33 = vld [vmem:[%s1807_s2 + $0x84] ss:$8 sps:$4 sm:$0xff]  }
   0xd   :  { %674 = vmatprep.subr.bf16.mxu1 %v1092_v9  ;;  %354 = vmatprep.mubr.bf16.mxu0 %v1402_v26  ;;  %v1128_v34 = vld [vmem:[%s1808_s3 + $0x84] ss:$8 sps:$4 sm:$0xff]  }
   0xe   :  { %702 = vmatprep.mubr.bf16.mxu1 %v1402_v26 }
  0x13   :  { %327 = vmatpush1.bf16.xpose.msra.mxu0 %v1332_v10 }
  0x14   :  { %675 = vmatpush1.bf16.xpose.msra.mxu1 %v1095_v11  ;;  %328 = vmatprep.subr.bf16.mxu0 %v1340_v12 }
  0x15   :  { %676 = vmatprep.subr.bf16.mxu1 %v1098_v13 }
  0x1b   :  { %329 = vmatpush1.bf16.xpose.msra.mxu0 %v1350_v14 }
  0x1c   :  { %677 = vmatpush1.bf16.xpose.msra.mxu1 %v1101_v15  ;;  %330 = vmatprep.subr.bf16.mxu0 %v1358_v16 }
  0x1d   :  { %678 = vmatprep.subr.bf16.mxu1 %v1104_v17 }
  0x23   :  { %331 = vmatpush1.bf16.xpose.msra.mxu0 %v1368_v18 }
  0x24   :  { %679 = vmatpush1.bf16.xpose.msra.mxu1 %v1107_v19  ;;  %332 = vmatprep.subr.bf16.mxu0 %v1376_v20 }
  0x25   :  { %680 = vmatprep.subr.bf16.mxu1 %v1110_v21 }
  0x2b   :  { %333 = vmatpush1.bf16.xpose.msra.mxu0 %v1386_v22 }
  0x2c   :  { %681 = vmatpush1.bf16.xpose.msra.mxu1 %v1113_v23  ;;  %334 = vmatprep.subr.bf16.mxu0 %v1394_v24 }
  0x2d   :  { %682 = vmatprep.subr.bf16.mxu1 %v1116_v25 }
  0x33   :  { %335 = vmatpush1.bf16.xpose.msra.mxu0 %v1411_v27 }
  0x34   :  { %683 = vmatpush1.bf16.xpose.msra.mxu1 %v1119_v28  ;;  %336 = vmatprep.subr.bf16.mxu0 %v1419_v29 }
  0x35   :  { %684 = vmatprep.subr.bf16.mxu1 %v1122_v30 }
  0x36   :  { %13 = vsyncpa [#allocation5], 0  ;;  %v1447_v35 = vld [vmem:[%s1807_s2 + $0x80] ss:$8 sps:$4 sm:$0xff]   ;;  %v1455_v37 = vld [vmem:[%s1807_s2 + $0x94] ss:$8 sps:$4 sm:$0xff]  }
  0x37   :  { %v1131_v36 = vld [vmem:[%s1808_s3 + $0x80] ss:$8 sps:$4 sm:$0xff]   ;;  %v1134_v38 = vld [vmem:[%s1808_s3 + $0x94] ss:$8 sps:$4 sm:$0xff]   ;;  %v1465_v39 = vld [vmem:[%s1807_s2 + $0x90] ss:$8 sps:$4 sm:$0xff]  }
  0x38   :  { %v1137_v40 = vld [vmem:[%s1808_s3 + $0x90] ss:$8 sps:$4 sm:$0xff]   ;;  %v1473_v41 = vld [vmem:[%s1807_s2 + $0xa4] ss:$8 sps:$4 sm:$0xff]   ;;  %v1483_v43 = vld [vmem:[%s1807_s2 + $0xa0] ss:$8 sps:$4 sm:$0xff]  }
  0x39   :  { %v1140_v42 = vld [vmem:[%s1808_s3 + $0xa4] ss:$8 sps:$4 sm:$0xff]   ;;  %v1143_v44 = vld [vmem:[%s1808_s3 + $0xa0] ss:$8 sps:$4 sm:$0xff]   ;;  %v1491_v45 = vld [vmem:[%s1807_s2 + $0xb4] ss:$8 sps:$4 sm:$0xff]  }
  0x3a   :  { %v1146_v46 = vld [vmem:[%s1808_s3 + $0xb4] ss:$8 sps:$4 sm:$0xff]   ;;  %v1501_v47 = vld [vmem:[%s1807_s2 + $0xb0] ss:$8 sps:$4 sm:$0xff]   ;;  %v1509_v49 = vld [vmem:[%s1807_s2 + $0xc4] ss:$8 sps:$4 sm:$0xff]  }
  0x3b   :  { %337 = vmatpush1.bf16.xpose.msra.mxu0 %v1429_v31  ;;  %v1149_v48 = vld [vmem:[%s1808_s3 + $0xb0] ss:$8 sps:$4 sm:$0xff]   ;;  %v1152_v50 = vld [vmem:[%s1808_s3 + $0xc4] ss:$8 sps:$4 sm:$0xff]   ;;  %v1519_v51 = vld [vmem:[%s1807_s2 + $0xc0] ss:$8 sps:$4 sm:$0xff]  }
  0x3c   :  { %685 = vmatpush1.bf16.xpose.msra.mxu1 %v1125_v32  ;;  %338 = vmatprep.subr.bf16.mxu0 %v1437_v33  ;;  %v1155_v52 = vld [vmem:[%s1808_s3 + $0xc0] ss:$8 sps:$4 sm:$0xff]   ;;  %v1527_v53 = vld [vmem:[%s1807_s2 + $0xd4] ss:$8 sps:$4 sm:$0xff]   ;;  %v1537_v55 = vld [vmem:[%s1807_s2 + $0xd0] ss:$8 sps:$4 sm:$0xff]  }
  0x3d   :  { %686 = vmatprep.subr.bf16.mxu1 %v1128_v34  ;;  %v1158_v54 = vld [vmem:[%s1808_s3 + $0xd4] ss:$8 sps:$4 sm:$0xff]   ;;  %v1161_v56 = vld [vmem:[%s1808_s3 + $0xd0] ss:$8 sps:$4 sm:$0xff]   ;;  %v1545_v57 = vld [vmem:[%s1807_s2 + $0xe4] ss:$8 sps:$4 sm:$0xff]  }
  0x3e   :  { %v1164_v58 = vld [vmem:[%s1808_s3 + $0xe4] ss:$8 sps:$4 sm:$0xff]   ;;  %v1555_v59 = vld [vmem:[%s1807_s2 + $0xe0] ss:$8 sps:$4 sm:$0xff]   ;;  %v1563_v61 = vld [vmem:[%s1807_s2 + $0xf4] ss:$8 sps:$4 sm:$0xff]  }
  0x3f   :  { %v1167_v60 = vld [vmem:[%s1808_s3 + $0xe0] ss:$8 sps:$4 sm:$0xff]   ;;  %v1170_v62 = vld [vmem:[%s1808_s3 + $0xf4] ss:$8 sps:$4 sm:$0xff]   ;;  %v1573_v63 = vld [vmem:[%s1807_s2 + $0xf0] ss:$8 sps:$4 sm:$0xff]  }
  0x40   :  { %v1173_v1 = vld [vmem:[%s1808_s3 + $0xf0] ss:$8 sps:$4 sm:$0xff]   ;;  %v1581_v3 = vld [vmem:[%s1807_s2 + $0x104] ss:$8 sps:$4 sm:$0xff]   ;;  %v1589_v5 = vld [vmem:[%s1805_s0] ss:$8 sps:$4 sm:$0xff]  }
  0x41   :  { %v1594_v7 = vld [vmem:[%s1807_s2 + $0x100] ss:$8 sps:$4 sm:$0xff]   ;;  %v1599_v9 = vld [vmem:[%s1807_s2 + $0x114] ss:$8 sps:$4 sm:$0xff]   ;;  %v1604_v11 = vld [vmem:[%s1806_s1 + $0x4] ss:$8 sps:$4 sm:$0xff]  }
  0x42   :  { %v1622_v13 = vld [vmem:[%s1807_s2 + $0x124] ss:$8 sps:$4 sm:$0xff]   ;;  %v1200_v17 = vld [vmem:[%s1808_s3 + $0x114] ss:$8 sps:$4 sm:$0xff]   ;;  %vm33_vm0 = vcmask 744448  }
  0x43   :  { %339 = vmatpush1.bf16.xpose.msra.mxu0 %v1447_v35  ;;  %v1197_v15 = vld [vmem:[%s1808_s3 + $0x104] ss:$8 sps:$4 sm:$0xff]   ;;  %v1206_v21 = vld [vmem:[%s1808_s3 + $0x134] ss:$8 sps:$4 sm:$0xff]   ;;  %v1213_v28 = vld [vmem:[%s1806_s1] ss:$8 sps:$4 sm:$0xff]  }
  0x44   :  { %687 = vmatpush1.bf16.xpose.msra.mxu1 %v1131_v36  ;;  %340 = vmatprep.subr.bf16.mxu0 %v1455_v37  ;;  %v1203_v19 = vld [vmem:[%s1808_s3 + $0x124] ss:$8 sps:$4 sm:$0xff]   ;;  %v1212_v25 = vld [vmem:[%s1808_s3 + $0x154] ss:$8 sps:$4 sm:$0x3f]   ;;  %s1241_s1 = smov [#allocation4]  }
  0x45   :  { %688 = vmatprep.subr.bf16.mxu1 %v1134_v38  ;;  %v1209_v23 = vld [vmem:[%s1808_s3 + $0x144] ss:$8 sps:$4 sm:$0xff]   ;;  %v894_v32 = vld [vmem:[%s1809_s4] sm:$0x7]  ;;  %s963_s4 = sshll.u32 %s1241_s1, 4  ;;  %s964_s4 = int_to_ptr.vmem [resolvable:$true] %s963_s4 }
  0x46   :  { %s1216_s22 = scalar_lea.vmem %s964_s4, 768  ;;  %p1221_p1 = scmp.lt.s32.totalorder %s964_s4, %s964_s4 }
  0x47   :  { %p1217_p0 = scmp.ne.s32.totalorder %s964_s4, %s1216_s22  ;;  %p1222_p2 = scmp.lt.s32.totalorder %s1216_s22, %s1216_s22 }
  0x49   :  { %p1223_p3 = por %p1222_p2, %p1221_p1 }
  0x4b   :  { %341 = vmatpush1.bf16.xpose.msra.mxu0 %v1465_v39  ;;  %p1224_p4 = pnand %p1223_p3, %p1217_p0 }
  0x4c   :  { %689 = vmatpush1.bf16.xpose.msra.mxu1 %v1137_v40  ;;  %342 = vmatprep.subr.bf16.mxu0 %v1473_v41 }
  0x4d   :  { %690 = vmatprep.subr.bf16.mxu1 %v1140_v42 }
  0x53   :  { %343 = vmatpush1.bf16.xpose.msra.mxu0 %v1483_v43 }
  0x54   :  { %691 = vmatpush1.bf16.xpose.msra.mxu1 %v1143_v44  ;;  %344 = vmatprep.subr.bf16.mxu0 %v1491_v45 }
  0x55   :  { %692 = vmatprep.subr.bf16.mxu1 %v1146_v46 }
  0x5b   :  { %345 = vmatpush1.bf16.xpose.msra.mxu0 %v1501_v47 }
  0x5c   :  { %693 = vmatpush1.bf16.xpose.msra.mxu1 %v1149_v48  ;;  %346 = vmatprep.subr.bf16.mxu0 %v1509_v49 }
  0x5d   :  { %694 = vmatprep.subr.bf16.mxu1 %v1152_v50 }
  0x63   :  { %347 = vmatpush1.bf16.xpose.msra.mxu0 %v1519_v51 }
  0x64   :  { %695 = vmatpush1.bf16.xpose.msra.mxu1 %v1155_v52  ;;  %348 = vmatprep.subr.bf16.mxu0 %v1527_v53 }
  0x65   :  { %696 = vmatprep.subr.bf16.mxu1 %v1158_v54 }
  0x6b   :  { %349 = vmatpush1.bf16.xpose.msra.mxu0 %v1537_v55 }
  0x6c   :  { %697 = vmatpush1.bf16.xpose.msra.mxu1 %v1161_v56  ;;  %350 = vmatprep.subr.bf16.mxu0 %v1545_v57 }
  0x6d   :  { %698 = vmatprep.subr.bf16.mxu1 %v1164_v58 }
  0x73   :  { %351 = vmatpush1.bf16.xpose.msra.mxu0 %v1555_v59 }
  0x74   :  { %699 = vmatpush1.bf16.xpose.msra.mxu1 %v1167_v60  ;;  %352 = vmatprep.subr.bf16.mxu0 %v1563_v61 }
  0x75   :  { %700 = vmatprep.subr.bf16.mxu1 %v1170_v62 }
  0x7b   :  { %353 = vmatpush1.bf16.xpose.msra.mxu0 %v1573_v63 }
  0x7c   :  { %701 = vmatpush1.bf16.xpose.msra.mxu1 %v1173_v1  ;;  %365 = vmatprep.subr.bf16.mxu0 %v1581_v3 }
  0x7d   :  { %789 = vmatprep.subr.bf16.mxu1 %v1287_v0  ;;  %v1617_v0 = vld [vmem:[%s1807_s2 + $0x110] ss:$8 sps:$4 sm:$0xff]  }
  0x82   :  { %355 = vmatmul.mubr.bf16.vlgmr.msra.gmra.mrb[0].mxu0 %v1589_v5 }
  0x83   :  { %703 = vmatmul.mubr.bf16.vlgmr.msra.gmra.mrb[0].mxu1 %v1589_v5  ;;  %366 = vmatpush1.bf16.xpose.msra.mxu0 %v1594_v7 }
  0x84   :  { %790 = vmatpush1.bf16.xpose.msra.mxu1 %v1296_v2  ;;  %367 = vmatprep.subr.bf16.mxu0 %v1599_v9  ;;  %v1631_v2 = vld [vmem:[%s1807_s2 + $0x120] ss:$8 sps:$4 sm:$0xff]  }
  0x85   :  { %791 = vmatprep.subr.bf16.mxu1 %v1304_v4  ;;  %397 = vmatprep.mubr.bf16.mxu0 %v1402_v26  ;;  %v1636_v4 = vld [vmem:[%s1807_s2 + $0x134] ss:$8 sps:$4 sm:$0xff]  }
  0x86   :  { %821 = vmatprep.mubr.bf16.mxu1 %v1604_v11 }
  0x8b   :  { %368 = vmatpush1.bf16.xpose.msra.mxu0 %v1617_v0 }
  0x8c   :  { %792 = vmatpush1.bf16.xpose.msra.mxu1 %v1314_v6  ;;  %369 = vmatprep.subr.bf16.mxu0 %v1622_v13  ;;  %v1645_v6 = vld [vmem:[%s1807_s2 + $0x130] ss:$8 sps:$4 sm:$0xff]  }
  0x8d   :  { %793 = vmatprep.subr.bf16.mxu1 %v1322_v8  ;;  %v1650_v8 = vld [vmem:[%s1807_s2 + $0x144] ss:$8 sps:$4 sm:$0xff]  }
  0x93   :  { %370 = vmatpush1.bf16.xpose.msra.mxu0 %v1631_v2 }
  0x94   :  { %794 = vmatpush1.bf16.xpose.msra.mxu1 %v1332_v10  ;;  %371 = vmatprep.subr.bf16.mxu0 %v1636_v4  ;;  %v1659_v10 = vld [vmem:[%s1807_s2 + $0x140] ss:$8 sps:$4 sm:$0xff]  }
  0x95   :  { %795 = vmatprep.subr.bf16.mxu1 %v1340_v12  ;;  %v1664_v12 = vld [vmem:[%s1807_s2 + $0x154] ss:$8 sps:$4 sm:$0x3f]  }
  0x9b   :  { %372 = vmatpush1.bf16.xpose.msra.mxu0 %v1645_v6 }
  0x9c   :  { %796 = vmatpush1.bf16.xpose.msra.mxu1 %v1350_v14  ;;  %373 = vmatprep.subr.bf16.mxu0 %v1650_v8  ;;  %v1673_v14 = vld [vmem:[%s1807_s2 + $0x150] ss:$8 sps:$4 sm:$0x3f]  }
  0x9d   :  { %797 = vmatprep.subr.bf16.mxu1 %v1358_v16  ;;  %v1195_v16 = vld [vmem:[%s1808_s3 + $0x100] ss:$8 sps:$4 sm:$0xff]  }
  0xa3   :  { %374 = vmatpush1.bf16.xpose.msra.mxu0 %v1659_v10 }
  0xa4   :  { %798 = vmatpush1.bf16.xpose.msra.mxu1 %v1368_v18  ;;  %375 = vmatprep.subr.bf16.mxu0 %v1664_v12  ;;  %v1198_v18 = vld [vmem:[%s1808_s3 + $0x110] ss:$8 sps:$4 sm:$0xff]  }
  0xa5   :  { %799 = vmatprep.subr.bf16.mxu1 %v1376_v20  ;;  %v1201_v20 = vld [vmem:[%s1808_s3 + $0x120] ss:$8 sps:$4 sm:$0xff]  }
  0xab   :  { %376 = vmatpush1.bf16.xpose.msra.mxu0 %v1673_v14 }
  0xac   :  { %800 = vmatpush1.bf16.xpose.msra.mxu1 %v1386_v22  ;;  %713 = vmatprep.subr.bf16.mxu0 %v1197_v15  ;;  %v1204_v22 = vld [vmem:[%s1808_s3 + $0x130] ss:$8 sps:$4 sm:$0xff]  }
  0xad   :  { %801 = vmatprep.subr.bf16.mxu1 %v1394_v24  ;;  %v1207_v24 = vld [vmem:[%s1808_s3 + $0x140] ss:$8 sps:$4 sm:$0xff]  }
  0xb2   :  { %398 = vmatmul.mubr.bf16.vlgmr.msra.gmra.mrb[4].mxu0 %v1589_v5 }
  0xb3   :  { %714 = vmatpush1.bf16.xpose.msra.mxu0 %v1195_v16  ;;  %745 = vmatprep.mubr.bf16.mxu0 %v1402_v26  ;;  %v1210_v26 = vld [vmem:[%s1808_s3 + $0x150] ss:$8 sps:$4 sm:$0x3f]  }
  0xb4   :  { %802 = vmatpush1.bf16.xpose.msra.mxu1 %v1411_v27  ;;  %715 = vmatprep.subr.bf16.mxu0 %v1200_v17  ;;  %v1240_v27 = vmov 0.0  }
  0xb5   :  { %803 = vmatprep.subr.bf16.mxu1 %v1419_v29  ;;  %34 = vst.msk [vmem:[#allocation2 + $0x10] sm:$0xff] %vm33_vm0, %v1240_v27  ;;  %37 = vst.msk [vmem:[#allocation2 + $0x28] sm:$0xff] %vm33_vm0, %v1240_v27  ;;  %v896_v29 = vlaneseq }
  0xb6   :  { %40 = vst.msk [vmem:[#allocation3 + $0x10] sm:$0xff] %vm33_vm0, %v1240_v27  ;;  %43 = vst.msk [vmem:[#allocation3 + $0x28] sm:$0xff] %vm33_vm0, %v1240_v27 }
  0xb7   :  { %v1756_v30 = vshrl.u32 %v896_v29, 7 }
  0xb9   :  { %v906_v52 = vsub.s32 2, %v1756_v30 }
  0xbb   :  { %716 = vmatpush1.bf16.xpose.msra.mxu0 %v1198_v18 }
  0xbc   :  { %804 = vmatpush1.bf16.xpose.msra.mxu1 %v1429_v31  ;;  %717 = vmatprep.subr.bf16.mxu0 %v1203_v19  ;;  %v898_v31 = vsub.s32 0, %v1756_v30  ;;  %v756_v44 = vld [vmem:[#allocation2 + $0x10] sm:$0xff]  ;;  %v759_v46 = vld [vmem:[#allocation2 + $0x28] sm:$0xff] }
  0xbd   :  { %805 = vmatprep.subr.bf16.mxu1 %v1437_v33  ;;  %v902_v33 = vsub.s32 1, %v1756_v30 }
  0xbe   :  { %v899_v34 = vrot.slane %v894_v32, %v898_v31 }
  0xbf   :  { %v903_v36 = vrot.slane %v894_v32, %v902_v33 }
  0xc3   :  { %718 = vmatpush1.bf16.xpose.msra.mxu0 %v1201_v20 }
  0xc4   :  { %806 = vmatpush1.bf16.xpose.msra.mxu1 %v1447_v35  ;;  %719 = vmatprep.subr.bf16.mxu0 %v1206_v21 }
  0xc5   :  { %807 = vmatprep.subr.bf16.mxu1 %v1455_v37 }
  0xcb   :  { %720 = vmatpush1.bf16.xpose.msra.mxu0 %v1204_v22 }
  0xcc   :  { %808 = vmatpush1.bf16.xpose.msra.mxu1 %v1465_v39  ;;  %721 = vmatprep.subr.bf16.mxu0 %v1209_v23 }
  0xcd   :  { %809 = vmatprep.subr.bf16.mxu1 %v1473_v41 }
  0xd3   :  { %722 = vmatpush1.bf16.xpose.msra.mxu0 %v1207_v24 }
  0xd4   :  { %810 = vmatpush1.bf16.xpose.msra.mxu1 %v1483_v43  ;;  %723 = vmatprep.subr.bf16.mxu0 %v1212_v25 }
  0xd5   :  { %811 = vmatprep.subr.bf16.mxu1 %v1491_v45 }
  0xdb   :  { %724 = vmatpush1.bf16.xpose.msra.mxu0 %v1210_v26 }
  0xdc   :  { %812 = vmatpush1.bf16.xpose.msra.mxu1 %v1501_v47  ;;  %832 = vmatprep.subr.bf16.mxu0 %v1581_v3 }
  0xdd   :  { %813 = vmatprep.subr.bf16.mxu1 %v1509_v49 }
  0xe2   :  { %746 = vmatmul.mubr.bf16.vlgmr.msra.gmra.mrb[8].mxu0 %v1589_v5 }
  0xe3   :  { %833 = vmatpush1.bf16.xpose.msra.mxu0 %v1594_v7  ;;  %864 = vmatprep.mubr.bf16.mxu0 %v1604_v11 }
  0xe4   :  { %814 = vmatpush1.bf16.xpose.msra.mxu1 %v1519_v51  ;;  %834 = vmatprep.subr.bf16.mxu0 %v1599_v9 }
  0xe5   :  { %815 = vmatprep.subr.bf16.mxu1 %v1527_v53  ;;  %v907_v53 = vrot.slane %v894_v32, %v906_v52 }
  0xeb   :  { %835 = vmatpush1.bf16.xpose.msra.mxu0 %v1617_v0 }
  0xec   :  { %816 = vmatpush1.bf16.xpose.msra.mxu1 %v1537_v55  ;;  %836 = vmatprep.subr.bf16.mxu0 %v1622_v13 }
  0xed   :  { %817 = vmatprep.subr.bf16.mxu1 %v1545_v57 }
  0xf3   :  { %837 = vmatpush1.bf16.xpose.msra.mxu0 %v1631_v2 }
  0xf4   :  { %818 = vmatpush1.bf16.xpose.msra.mxu1 %v1555_v59  ;;  %838 = vmatprep.subr.bf16.mxu0 %v1636_v4 }
  0xf5   :  { %819 = vmatprep.subr.bf16.mxu1 %v1563_v61 }
  0xfb   :  { %839 = vmatpush1.bf16.xpose.msra.mxu0 %v1645_v6 }
  0xfc   :  { %820 = vmatpush1.bf16.xpose.msra.mxu1 %v1573_v63  ;;  %840 = vmatprep.subr.bf16.mxu0 %v1650_v8 }
 0x103   :  { %822 = vmatmul.mubr.bf16.vlgmr.msra.gmra.mrb[0].mxu1 %v1213_v28  ;;  %841 = vmatpush1.bf16.xpose.msra.mxu0 %v1659_v10 }
 0x104   :  { %842 = vmatprep.subr.bf16.mxu0 %v1664_v12 }
 0x10b   :  { %843 = vmatpush1.bf16.xpose.msra.mxu0 %v1673_v14 }
 0x112   :  { %865 = vmatmul.mubr.bf16.vlgmr.msra.gmra.mrb[12].mxu0 %v1213_v28 }
 0x155   :  { %v356_v35 = vpop.f32.mrb[0].mxu0 }
 0x156   :  { %v358_v37 = vpop.f32.mrb[1].mxu0  ;;  %v911_v40 = vadd.f32 %v899_v34, %v356_v35 }
 0x157   :  { %v360_v38 = vpop.f32.mrb[2].mxu0  ;;  %v912_v41 = vadd.f32 %v903_v36, %v358_v37 }
 0x158   :  { %v362_v39 = vpop.f32.mrb[3].mxu0  ;;  %v914_v42 = vadd.f32 %v899_v34, %v360_v38  ;;  %917 = vst [vmem:[#allocation4] sm:$0xff] %v911_v40 }
 0x159   :  { %v915_v43 = vadd.f32 %v903_v36, %v362_v39  ;;  %918 = vst [vmem:[#allocation4 + $0x8] sm:$0xff] %v912_v41 }
 0x15a   :  { %920 = vst [vmem:[#allocation4 + $0x18] sm:$0xff] %v914_v42 }
 0x15b   :  { %921 = vst [vmem:[#allocation4 + $0x20] sm:$0xff] %v915_v43 }
 0x185   :  { %v399_v45 = vpop.f32.mrb[4].mxu0 }
 0x186   :  { %v762_v47 = vadd.f32 %v756_v44, %v399_v45  ;;  %v401_v48 = vpop.f32.mrb[5].mxu0 }
 0x187   :  { %v402_v49 = vpop.f32.mrb[6].mxu0 }
 0x188   :  { %769 = vst.msk [vmem:[#allocation2 + $0x10] sm:$0xff] %vm33_vm0, %v762_v47  ;;  %v765_v50 = vadd.f32 %v759_v46, %v402_v49  ;;  %v404_v51 = vpop.f32.mrb[7].mxu0 }
 0x18a   :  { %772 = vst.msk [vmem:[#allocation2 + $0x28] sm:$0xff] %vm33_vm0, %v765_v50 }
 0x18f   :  { %v890_v54 = vld [vmem:[#allocation2 + $0x10] sm:$0xff] }
 0x190   :  { %v913_v55 = vadd.f32 %v907_v53, %v890_v54 }
 0x191   :  { %v893_v56 = vld [vmem:[#allocation2 + $0x28] sm:$0xff] }
 0x192   :  { %v916_v57 = vadd.f32 %v907_v53, %v893_v56  ;;  %919 = vst.msk [vmem:[#allocation4 + $0x10] sm:$0xff] %vm33_vm0, %v913_v55 }
 0x194   :  { %922 = vst.msk [vmem:[#allocation4 + $0x28] sm:$0xff] %vm33_vm0, %v916_v57 }
 0x195   :  { %1227 = shalt.err (!%p1224_p4)
}
 0x196   :  { %s1228_s25 = scalar_lea.hbm %s1811_s6, 768 }
 0x197   :  { %p1229_p5 = scmp.ne.s32.totalorder %s1811_s6, %s1228_s25  ;;  %p1232_p6 = scmp.lt.u32.totalorder %s1228_s25, %s1811_s6 }
 0x199   :  { %p1234_p7 = pnand %p1232_p6, %p1229_p5 }
 0x19b   :  { %1237 = shalt.err (!%p1234_p7)
}
 0x19c   :  { %s1242_s28 = smov 384   ;;  %s1243_s29 = smov 24   ;;  %v929_v62 = vld [vmem:[%s1810_s5] sm:$0x7]  ;;  %v778_v12 = vld [vmem:[#allocation3 + $0x28] sm:$0xff] }
 0x19d   :  { %969 = dma.vmem_to_hbm [thread:$0]  %s964_s4, 768, %s1811_s6, [#allocation5], %s1242_s28, %s1242_s28, %s1243_s29   ;;  %v934_v63 = vrot.slane %v929_v62, %v898_v31  ;;  %v938_v3 = vrot.slane %v929_v62, %v902_v33  ;;  %v775_v4 = vld [vmem:[#allocation3 + $0x10] sm:$0xff]  ;;  %v942_v19 = vrot.slane %v929_v62, %v906_v52 }
 0x1b5   :  { %v747_v58 = vpop.f32.mrb[8].mxu0 }
 0x1b6   :  { %v749_v59 = vpop.f32.mrb[9].mxu0 }
 0x1b7   :  { %v750_v60 = vpop.f32.mrb[10].mxu0 }
 0x1b8   :  { %v752_v61 = vpop.f32.mrb[11].mxu0 }
 0x1d6   :  { %v823_v1 = vpop.f32.mrb[0].mxu1 }
 0x1d7   :  { %v825_v5 = vpop.f32.mrb[1].mxu1  ;;  %v946_v11 = vadd.f32 %v934_v63, %v823_v1 }
 0x1d8   :  { %v827_v7 = vpop.f32.mrb[2].mxu1  ;;  %v947_v0 = vadd.f32 %v938_v3, %v825_v5 }
 0x1d9   :  { %v829_v9 = vpop.f32.mrb[3].mxu1  ;;  %v949_v13 = vadd.f32 %v934_v63, %v827_v7  ;;  %952 = vst [vmem:[%s1812_s7] sm:$0xff] %v946_v11 }
 0x1da   :  { %v950_v2 = vadd.f32 %v938_v3, %v829_v9  ;;  %953 = vst [vmem:[%s1812_s7 + $0x8] sm:$0xff] %v947_v0 }
 0x1db   :  { %955 = vst [vmem:[%s1812_s7 + $0x18] sm:$0xff] %v949_v13 }
 0x1dc   :  { %956 = vst [vmem:[%s1812_s7 + $0x20] sm:$0xff] %v950_v2 }
 0x1e5   :  { %v866_v6 = vpop.f32.mrb[12].mxu0 }
 0x1e6   :  { %v867_v8 = vadd.f32 %v866_v6, %v747_v58  ;;  %v868_v10 = vpop.f32.mrb[13].mxu0 }
 0x1e7   :  { %v869_v14 = vpop.f32.mrb[14].mxu0 }
 0x1e8   :  { %v875_v15 = vadd.f32 %v867_v8, %v775_v4  ;;  %v870_v16 = vadd.f32 %v869_v14, %v750_v60  ;;  %v871_v17 = vpop.f32.mrb[15].mxu0 }
 0x1ea   :  { %881 = vst.msk [vmem:[#allocation3 + $0x10] sm:$0xff] %vm33_vm0, %v875_v15  ;;  %v878_v18 = vadd.f32 %v870_v16, %v778_v12 }
 0x1ec   :  { %884 = vst.msk [vmem:[#allocation3 + $0x28] sm:$0xff] %vm33_vm0, %v878_v18 }
 0x1f1   :  { %v925_v20 = vld [vmem:[#allocation3 + $0x10] sm:$0xff] }
 0x1f2   :  { %v948_v21 = vadd.f32 %v942_v19, %v925_v20 }
 0x1f3   :  { %v928_v22 = vld [vmem:[#allocation3 + $0x28] sm:$0xff] }
 0x1f4   :  { %v951_v23 = vadd.f32 %v942_v19, %v928_v22  ;;  %954 = vst.msk [vmem:[%s1812_s7 + $0x10] sm:$0xff] %vm33_vm0, %v948_v21 }
 0x1f6   :  { %957 = vst.msk [vmem:[%s1812_s7 + $0x28] sm:$0xff] %vm33_vm0, %v951_v23 }
 0x1f7   :  { %1238 = dma.done.wait [#allocation5], 768  }
 0x1f8   :  { %1239 = vsyncadd [#allocation5], 4294966528 }
 0x1f9   :  { %977 = vsyncpa [#allocation5], 1 }

// kernel: jvp__.32
= control target key start
LH: loop header
LB: loop body
LE: loop exit
PB: predicated region body
PF: predicated region fallthrough
CT: control target
= control target key end

     0   :  { %vm32_vm0 = vcmask 744448   ;;  %s1768_s2 = inlined_call_operand.vmem [shape: bf16[347,256], index: 2, kind: input, shape index: {}]   ;;  %s1769_s3 = inlined_call_operand.vmem [shape: bf16[347,256], index: 3, kind: input, shape index: {}]   ;;  %s1770_s0 = inlined_call_operand.vmem [shape: bf16[16,256], index: 0, kind: input, shape index: {}]   ;;  %s1771_s1 = inlined_call_operand.vmem [shape: bf16[16,256], index: 1, kind: input, shape index: {}]   ;;  %s1772_s4 = inlined_call_operand.vmem [shape: f32[1,347], index: 4, kind: input, shape index: {}, may-alias: {4,5}]   ;;  %s1773_s6 = inlined_call_operand.vmem [shape: f32[16,347], index: 6, kind: output, shape index: {0}]   ;;  %s1774_s5 = inlined_call_operand.vmem [shape: f32[1,347], index: 5, kind: input, shape index: {}, may-alias: {4,5}]   ;;  %s1775_s7 = inlined_call_operand.vmem [shape: f32[16,347], index: 7, kind: output, shape index: {1}]  }
   0x1   :  { %v1244_v0 = vld [vmem:[%s1768_s2 + $0x4] ss:$8 sps:$4 sm:$0xff]   ;;  %v1253_v2 = vld [vmem:[%s1768_s2] ss:$8 sps:$4 sm:$0xff]   ;;  %v1261_v4 = vld [vmem:[%s1768_s2 + $0x14] ss:$8 sps:$4 sm:$0xff]  }
   0x2   :  { %v1064_v1 = vld [vmem:[%s1769_s3 + $0x4] ss:$8 sps:$4 sm:$0xff]   ;;  %321 = vmatprep.subr.bf16.mxu0 %v1244_v0  ;;  %v1067_v3 = vld [vmem:[%s1769_s3] ss:$8 sps:$4 sm:$0xff]   ;;  %v1070_v5 = vld [vmem:[%s1769_s3 + $0x14] ss:$8 sps:$4 sm:$0xff]  }
   0x3   :  { %669 = vmatprep.subr.bf16.mxu1 %v1064_v1  ;;  %322 = vmatpush1.bf16.xpose.msra.mxu0 %v1253_v2  ;;  %v1271_v6 = vld [vmem:[%s1768_s2 + $0x10] ss:$8 sps:$4 sm:$0xff]   ;;  %v1279_v8 = vld [vmem:[%s1768_s2 + $0x24] ss:$8 sps:$4 sm:$0xff]   ;;  %v1289_v10 = vld [vmem:[%s1768_s2 + $0x20] ss:$8 sps:$4 sm:$0xff]  }
   0x4   :  { %670 = vmatpush1.bf16.xpose.msra.mxu1 %v1067_v3  ;;  %323 = vmatprep.subr.bf16.mxu0 %v1261_v4  ;;  %v1073_v7 = vld [vmem:[%s1769_s3 + $0x10] ss:$8 sps:$4 sm:$0xff]   ;;  %v1076_v9 = vld [vmem:[%s1769_s3 + $0x24] ss:$8 sps:$4 sm:$0xff]   ;;  %v1079_v11 = vld [vmem:[%s1769_s3 + $0x20] ss:$8 sps:$4 sm:$0xff]  }
   0x5   :  { %671 = vmatprep.subr.bf16.mxu1 %v1070_v5  ;;  %v1297_v12 = vld [vmem:[%s1768_s2 + $0x34] ss:$8 sps:$4 sm:$0xff]   ;;  %v1307_v14 = vld [vmem:[%s1768_s2 + $0x30] ss:$8 sps:$4 sm:$0xff]   ;;  %v1315_v16 = vld [vmem:[%s1768_s2 + $0x44] ss:$8 sps:$4 sm:$0xff]  }
   0x6   :  { %v1082_v13 = vld [vmem:[%s1769_s3 + $0x34] ss:$8 sps:$4 sm:$0xff]   ;;  %v1085_v15 = vld [vmem:[%s1769_s3 + $0x30] ss:$8 sps:$4 sm:$0xff]   ;;  %v1088_v17 = vld [vmem:[%s1769_s3 + $0x44] ss:$8 sps:$4 sm:$0xff]  }
   0x7   :  { %v1325_v18 = vld [vmem:[%s1768_s2 + $0x40] ss:$8 sps:$4 sm:$0xff]   ;;  %v1333_v20 = vld [vmem:[%s1768_s2 + $0x54] ss:$8 sps:$4 sm:$0xff]   ;;  %v1343_v22 = vld [vmem:[%s1768_s2 + $0x50] ss:$8 sps:$4 sm:$0xff]  }
   0x8   :  { %v1091_v19 = vld [vmem:[%s1769_s3 + $0x40] ss:$8 sps:$4 sm:$0xff]   ;;  %v1094_v21 = vld [vmem:[%s1769_s3 + $0x54] ss:$8 sps:$4 sm:$0xff]   ;;  %v1097_v23 = vld [vmem:[%s1769_s3 + $0x50] ss:$8 sps:$4 sm:$0xff]  }
   0x9   :  { %v1351_v24 = vld [vmem:[%s1768_s2 + $0x64] ss:$8 sps:$4 sm:$0xff]   ;;  %v1368_v27 = vld [vmem:[%s1768_s2 + $0x60] ss:$8 sps:$4 sm:$0xff]   ;;  %v1376_v29 = vld [vmem:[%s1768_s2 + $0x74] ss:$8 sps:$4 sm:$0xff]  }
   0xa   :  { %v1100_v25 = vld [vmem:[%s1769_s3 + $0x64] ss:$8 sps:$4 sm:$0xff]   ;;  %v1103_v28 = vld [vmem:[%s1769_s3 + $0x60] ss:$8 sps:$4 sm:$0xff]   ;;  %v1106_v30 = vld [vmem:[%s1769_s3 + $0x74] ss:$8 sps:$4 sm:$0xff]  }
   0xb   :  { %324 = vmatpush1.bf16.xpose.msra.mxu0 %v1271_v6  ;;  %v1359_v26 = vld [vmem:[%s1770_s0 + $0x4] ss:$8 sps:$4 sm:$0xff]   ;;  %v1386_v31 = vld [vmem:[%s1768_s2 + $0x70] ss:$8 sps:$4 sm:$0xff]   ;;  %v1404_v35 = vld [vmem:[%s1768_s2 + $0x80] ss:$8 sps:$4 sm:$0xff]  }
   0xc   :  { %672 = vmatpush1.bf16.xpose.msra.mxu1 %v1073_v7  ;;  %325 = vmatprep.subr.bf16.mxu0 %v1279_v8  ;;  %v1109_v32 = vld [vmem:[%s1769_s3 + $0x70] ss:$8 sps:$4 sm:$0xff]   ;;  %v1394_v33 = vld [vmem:[%s1768_s2 + $0x84] ss:$8 sps:$4 sm:$0xff]   ;;  %v1115_v36 = vld [vmem:[%s1769_s3 + $0x80] ss:$8 sps:$4 sm:$0xff]  }
   0xd   :  { %673 = vmatprep.subr.bf16.mxu1 %v1076_v9  ;;  %353 = vmatprep.mubr.bf16.mxu0 %v1359_v26  ;;  %v1112_v34 = vld [vmem:[%s1769_s3 + $0x84] ss:$8 sps:$4 sm:$0xff]   ;;  %v1412_v37 = vld [vmem:[%s1768_s2 + $0x94] ss:$8 sps:$4 sm:$0xff]   ;;  %v1422_v39 = vld [vmem:[%s1768_s2 + $0x90] ss:$8 sps:$4 sm:$0xff]  }
   0xe   :  { %701 = vmatprep.mubr.bf16.mxu1 %v1359_v26  ;;  %v1118_v38 = vld [vmem:[%s1769_s3 + $0x94] ss:$8 sps:$4 sm:$0xff]   ;;  %v1121_v40 = vld [vmem:[%s1769_s3 + $0x90] ss:$8 sps:$4 sm:$0xff]   ;;  %v1430_v41 = vld [vmem:[%s1768_s2 + $0xa4] ss:$8 sps:$4 sm:$0xff]  }
   0xf   :  { %v1124_v42 = vld [vmem:[%s1769_s3 + $0xa4] ss:$8 sps:$4 sm:$0xff]   ;;  %v1440_v43 = vld [vmem:[%s1768_s2 + $0xa0] ss:$8 sps:$4 sm:$0xff]   ;;  %v1448_v45 = vld [vmem:[%s1768_s2 + $0xb4] ss:$8 sps:$4 sm:$0xff]  }
  0x10   :  { %v1127_v44 = vld [vmem:[%s1769_s3 + $0xa0] ss:$8 sps:$4 sm:$0xff]   ;;  %v1130_v46 = vld [vmem:[%s1769_s3 + $0xb4] ss:$8 sps:$4 sm:$0xff]   ;;  %v1458_v47 = vld [vmem:[%s1768_s2 + $0xb0] ss:$8 sps:$4 sm:$0xff]  }
  0x11   :  { %v1133_v48 = vld [vmem:[%s1769_s3 + $0xb0] ss:$8 sps:$4 sm:$0xff]   ;;  %v1466_v49 = vld [vmem:[%s1768_s2 + $0xc4] ss:$8 sps:$4 sm:$0xff]   ;;  %v1476_v51 = vld [vmem:[%s1768_s2 + $0xc0] ss:$8 sps:$4 sm:$0xff]  }
  0x12   :  { %v1136_v50 = vld [vmem:[%s1769_s3 + $0xc4] ss:$8 sps:$4 sm:$0xff]   ;;  %v1139_v52 = vld [vmem:[%s1769_s3 + $0xc0] ss:$8 sps:$4 sm:$0xff]   ;;  %v1484_v53 = vld [vmem:[%s1768_s2 + $0xd4] ss:$8 sps:$4 sm:$0xff]  }
  0x13   :  { %326 = vmatpush1.bf16.xpose.msra.mxu0 %v1289_v10  ;;  %v1142_v54 = vld [vmem:[%s1769_s3 + $0xd4] ss:$8 sps:$4 sm:$0xff]   ;;  %v1494_v55 = vld [vmem:[%s1768_s2 + $0xd0] ss:$8 sps:$4 sm:$0xff]   ;;  %v1502_v57 = vld [vmem:[%s1768_s2 + $0xe4] ss:$8 sps:$4 sm:$0xff]  }
  0x14   :  { %674 = vmatpush1.bf16.xpose.msra.mxu1 %v1079_v11  ;;  %327 = vmatprep.subr.bf16.mxu0 %v1297_v12  ;;  %v1145_v56 = vld [vmem:[%s1769_s3 + $0xd0] ss:$8 sps:$4 sm:$0xff]   ;;  %v1148_v58 = vld [vmem:[%s1769_s3 + $0xe4] ss:$8 sps:$4 sm:$0xff]   ;;  %v1512_v59 = vld [vmem:[%s1768_s2 + $0xe0] ss:$8 sps:$4 sm:$0xff]  }
  0x15   :  { %675 = vmatprep.subr.bf16.mxu1 %v1082_v13  ;;  %v1151_v60 = vld [vmem:[%s1769_s3 + $0xe0] ss:$8 sps:$4 sm:$0xff]   ;;  %v1520_v61 = vld [vmem:[%s1768_s2 + $0xf4] ss:$8 sps:$4 sm:$0xff]   ;;  %v1530_v63 = vld [vmem:[%s1768_s2 + $0xf0] ss:$8 sps:$4 sm:$0xff]  }
  0x16   :  { %v1154_v62 = vld [vmem:[%s1769_s3 + $0xf4] ss:$8 sps:$4 sm:$0xff]   ;;  %v1157_v1 = vld [vmem:[%s1769_s3 + $0xf0] ss:$8 sps:$4 sm:$0xff]   ;;  %v1538_v3 = vld [vmem:[%s1768_s2 + $0x104] ss:$8 sps:$4 sm:$0xff]  }
  0x17   :  { %v1546_v5 = vld [vmem:[%s1770_s0] ss:$8 sps:$4 sm:$0xff]   ;;  %v1556_v9 = vld [vmem:[%s1768_s2 + $0x114] ss:$8 sps:$4 sm:$0xff]   ;;  %v1561_v11 = vld [vmem:[%s1771_s1 + $0x4] ss:$8 sps:$4 sm:$0xff]  }
  0x18   :  { %v1551_v7 = vld [vmem:[%s1768_s2 + $0x100] ss:$8 sps:$4 sm:$0xff]   ;;  %v1579_v13 = vld [vmem:[%s1768_s2 + $0x124] ss:$8 sps:$4 sm:$0xff]  }
  0x1b   :  { %328 = vmatpush1.bf16.xpose.msra.mxu0 %v1307_v14 }
  0x1c   :  { %676 = vmatpush1.bf16.xpose.msra.mxu1 %v1085_v15  ;;  %329 = vmatprep.subr.bf16.mxu0 %v1315_v16  ;;  %v1181_v15 = vld [vmem:[%s1769_s3 + $0x104] ss:$8 sps:$4 sm:$0xff]  }
  0x1d   :  { %677 = vmatprep.subr.bf16.mxu1 %v1088_v17  ;;  %v1184_v17 = vld [vmem:[%s1769_s3 + $0x114] ss:$8 sps:$4 sm:$0xff]  }
  0x23   :  { %330 = vmatpush1.bf16.xpose.msra.mxu0 %v1325_v18 }
  0x24   :  { %678 = vmatpush1.bf16.xpose.msra.mxu1 %v1091_v19  ;;  %331 = vmatprep.subr.bf16.mxu0 %v1333_v20  ;;  %v1187_v19 = vld [vmem:[%s1769_s3 + $0x124] ss:$8 sps:$4 sm:$0xff]  }
  0x25   :  { %679 = vmatprep.subr.bf16.mxu1 %v1094_v21  ;;  %v1190_v21 = vld [vmem:[%s1769_s3 + $0x134] ss:$8 sps:$4 sm:$0xff]  }
  0x2b   :  { %332 = vmatpush1.bf16.xpose.msra.mxu0 %v1343_v22 }
  0x2c   :  { %680 = vmatpush1.bf16.xpose.msra.mxu1 %v1097_v23  ;;  %333 = vmatprep.subr.bf16.mxu0 %v1351_v24  ;;  %v1193_v23 = vld [vmem:[%s1769_s3 + $0x144] ss:$8 sps:$4 sm:$0xff]  }
  0x2d   :  { %681 = vmatprep.subr.bf16.mxu1 %v1100_v25  ;;  %v1196_v25 = vld [vmem:[%s1769_s3 + $0x154] ss:$8 sps:$4 sm:$0x3f]  }
  0x33   :  { %334 = vmatpush1.bf16.xpose.msra.mxu0 %v1368_v27 }
  0x34   :  { %682 = vmatpush1.bf16.xpose.msra.mxu1 %v1103_v28  ;;  %335 = vmatprep.subr.bf16.mxu0 %v1376_v29  ;;  %v1197_v28 = vld [vmem:[%s1771_s1] ss:$8 sps:$4 sm:$0xff]  }
  0x35   :  { %683 = vmatprep.subr.bf16.mxu1 %v1106_v30 }
  0x3b   :  { %336 = vmatpush1.bf16.xpose.msra.mxu0 %v1386_v31 }
  0x3c   :  { %684 = vmatpush1.bf16.xpose.msra.mxu1 %v1109_v32  ;;  %337 = vmatprep.subr.bf16.mxu0 %v1394_v33  ;;  %v893_v32 = vld [vmem:[%s1772_s4] sm:$0x7] }
  0x3d   :  { %685 = vmatprep.subr.bf16.mxu1 %v1112_v34 }
  0x43   :  { %338 = vmatpush1.bf16.xpose.msra.mxu0 %v1404_v35 }
  0x44   :  { %686 = vmatpush1.bf16.xpose.msra.mxu1 %v1115_v36  ;;  %339 = vmatprep.subr.bf16.mxu0 %v1412_v37 }
  0x45   :  { %687 = vmatprep.subr.bf16.mxu1 %v1118_v38 }
  0x4b   :  { %340 = vmatpush1.bf16.xpose.msra.mxu0 %v1422_v39 }
  0x4c   :  { %688 = vmatpush1.bf16.xpose.msra.mxu1 %v1121_v40  ;;  %341 = vmatprep.subr.bf16.mxu0 %v1430_v41 }
  0x4d   :  { %689 = vmatprep.subr.bf16.mxu1 %v1124_v42 }
  0x53   :  { %342 = vmatpush1.bf16.xpose.msra.mxu0 %v1440_v43 }
  0x54   :  { %690 = vmatpush1.bf16.xpose.msra.mxu1 %v1127_v44  ;;  %343 = vmatprep.subr.bf16.mxu0 %v1448_v45 }
  0x55   :  { %691 = vmatprep.subr.bf16.mxu1 %v1130_v46 }
  0x5b   :  { %344 = vmatpush1.bf16.xpose.msra.mxu0 %v1458_v47 }
  0x5c   :  { %692 = vmatpush1.bf16.xpose.msra.mxu1 %v1133_v48  ;;  %345 = vmatprep.subr.bf16.mxu0 %v1466_v49 }
  0x5d   :  { %693 = vmatprep.subr.bf16.mxu1 %v1136_v50 }
  0x63   :  { %346 = vmatpush1.bf16.xpose.msra.mxu0 %v1476_v51 }
  0x64   :  { %694 = vmatpush1.bf16.xpose.msra.mxu1 %v1139_v52  ;;  %347 = vmatprep.subr.bf16.mxu0 %v1484_v53 }
  0x65   :  { %695 = vmatprep.subr.bf16.mxu1 %v1142_v54 }
  0x6b   :  { %348 = vmatpush1.bf16.xpose.msra.mxu0 %v1494_v55 }
  0x6c   :  { %696 = vmatpush1.bf16.xpose.msra.mxu1 %v1145_v56  ;;  %349 = vmatprep.subr.bf16.mxu0 %v1502_v57 }
  0x6d   :  { %697 = vmatprep.subr.bf16.mxu1 %v1148_v58 }
  0x73   :  { %350 = vmatpush1.bf16.xpose.msra.mxu0 %v1512_v59 }
  0x74   :  { %698 = vmatpush1.bf16.xpose.msra.mxu1 %v1151_v60  ;;  %351 = vmatprep.subr.bf16.mxu0 %v1520_v61 }
  0x75   :  { %699 = vmatprep.subr.bf16.mxu1 %v1154_v62  ;;  %v928_v62 = vld [vmem:[%s1774_s5] sm:$0x7] }
  0x7b   :  { %352 = vmatpush1.bf16.xpose.msra.mxu0 %v1530_v63 }
  0x7c   :  { %700 = vmatpush1.bf16.xpose.msra.mxu1 %v1157_v1  ;;  %364 = vmatprep.subr.bf16.mxu0 %v1538_v3 }
  0x7d   :  { %788 = vmatprep.subr.bf16.mxu1 %v1244_v0  ;;  %v1574_v0 = vld [vmem:[%s1768_s2 + $0x110] ss:$8 sps:$4 sm:$0xff]  }
  0x82   :  { %354 = vmatmul.mubr.bf16.vlgmr.msra.gmra.mrb[0].mxu0 %v1546_v5 }
  0x83   :  { %702 = vmatmul.mubr.bf16.vlgmr.msra.gmra.mrb[0].mxu1 %v1546_v5  ;;  %365 = vmatpush1.bf16.xpose.msra.mxu0 %v1551_v7 }
  0x84   :  { %789 = vmatpush1.bf16.xpose.msra.mxu1 %v1253_v2  ;;  %366 = vmatprep.subr.bf16.mxu0 %v1556_v9  ;;  %v1588_v2 = vld [vmem:[%s1768_s2 + $0x120] ss:$8 sps:$4 sm:$0xff]  }
  0x85   :  { %790 = vmatprep.subr.bf16.mxu1 %v1261_v4  ;;  %396 = vmatprep.mubr.bf16.mxu0 %v1359_v26  ;;  %v1593_v4 = vld [vmem:[%s1768_s2 + $0x134] ss:$8 sps:$4 sm:$0xff]  }
  0x86   :  { %820 = vmatprep.mubr.bf16.mxu1 %v1561_v11 }
  0x8b   :  { %367 = vmatpush1.bf16.xpose.msra.mxu0 %v1574_v0 }
  0x8c   :  { %791 = vmatpush1.bf16.xpose.msra.mxu1 %v1271_v6  ;;  %368 = vmatprep.subr.bf16.mxu0 %v1579_v13  ;;  %v1602_v6 = vld [vmem:[%s1768_s2 + $0x130] ss:$8 sps:$4 sm:$0xff]  }
  0x8d   :  { %792 = vmatprep.subr.bf16.mxu1 %v1279_v8  ;;  %v1607_v8 = vld [vmem:[%s1768_s2 + $0x144] ss:$8 sps:$4 sm:$0xff]  }
  0x93   :  { %369 = vmatpush1.bf16.xpose.msra.mxu0 %v1588_v2 }
  0x94   :  { %793 = vmatpush1.bf16.xpose.msra.mxu1 %v1289_v10  ;;  %370 = vmatprep.subr.bf16.mxu0 %v1593_v4  ;;  %v1616_v10 = vld [vmem:[%s1768_s2 + $0x140] ss:$8 sps:$4 sm:$0xff]  }
  0x95   :  { %794 = vmatprep.subr.bf16.mxu1 %v1297_v12  ;;  %v1621_v12 = vld [vmem:[%s1768_s2 + $0x154] ss:$8 sps:$4 sm:$0x3f]  }
  0x9b   :  { %371 = vmatpush1.bf16.xpose.msra.mxu0 %v1602_v6 }
  0x9c   :  { %795 = vmatpush1.bf16.xpose.msra.mxu1 %v1307_v14  ;;  %372 = vmatprep.subr.bf16.mxu0 %v1607_v8  ;;  %v1630_v14 = vld [vmem:[%s1768_s2 + $0x150] ss:$8 sps:$4 sm:$0x3f]  }
  0x9d   :  { %796 = vmatprep.subr.bf16.mxu1 %v1315_v16  ;;  %v1179_v16 = vld [vmem:[%s1769_s3 + $0x100] ss:$8 sps:$4 sm:$0xff]  }
  0xa3   :  { %373 = vmatpush1.bf16.xpose.msra.mxu0 %v1616_v10 }
  0xa4   :  { %797 = vmatpush1.bf16.xpose.msra.mxu1 %v1325_v18  ;;  %374 = vmatprep.subr.bf16.mxu0 %v1621_v12  ;;  %v1182_v18 = vld [vmem:[%s1769_s3 + $0x110] ss:$8 sps:$4 sm:$0xff]  }
  0xa5   :  { %798 = vmatprep.subr.bf16.mxu1 %v1333_v20  ;;  %v1185_v20 = vld [vmem:[%s1769_s3 + $0x120] ss:$8 sps:$4 sm:$0xff]  }
  0xab   :  { %375 = vmatpush1.bf16.xpose.msra.mxu0 %v1630_v14 }
  0xac   :  { %799 = vmatpush1.bf16.xpose.msra.mxu1 %v1343_v22  ;;  %712 = vmatprep.subr.bf16.mxu0 %v1181_v15  ;;  %v1188_v22 = vld [vmem:[%s1769_s3 + $0x130] ss:$8 sps:$4 sm:$0xff]  }
  0xad   :  { %800 = vmatprep.subr.bf16.mxu1 %v1351_v24  ;;  %v1191_v24 = vld [vmem:[%s1769_s3 + $0x140] ss:$8 sps:$4 sm:$0xff]  }
  0xb2   :  { %397 = vmatmul.mubr.bf16.vlgmr.msra.gmra.mrb[4].mxu0 %v1546_v5 }
  0xb3   :  { %713 = vmatpush1.bf16.xpose.msra.mxu0 %v1179_v16  ;;  %744 = vmatprep.mubr.bf16.mxu0 %v1359_v26  ;;  %v1194_v26 = vld [vmem:[%s1769_s3 + $0x150] ss:$8 sps:$4 sm:$0x3f]  }
  0xb4   :  { %801 = vmatpush1.bf16.xpose.msra.mxu1 %v1368_v27  ;;  %714 = vmatprep.subr.bf16.mxu0 %v1184_v17  ;;  %v1200_v27 = vmov 0.0  }
  0xb5   :  { %802 = vmatprep.subr.bf16.mxu1 %v1376_v29  ;;  %33 = vst.msk [vmem:[#allocation2 + $0x10] sm:$0xff] %vm32_vm0, %v1200_v27  ;;  %36 = vst.msk [vmem:[#allocation2 + $0x28] sm:$0xff] %vm32_vm0, %v1200_v27  ;;  %v895_v29 = vlaneseq }
  0xb6   :  { %39 = vst.msk [vmem:[#allocation3 + $0x10] sm:$0xff] %vm32_vm0, %v1200_v27  ;;  %42 = vst.msk [vmem:[#allocation3 + $0x28] sm:$0xff] %vm32_vm0, %v1200_v27 }
  0xb7   :  { %v1713_v30 = vshrl.u32 %v895_v29, 7 }
  0xb9   :  { %v905_v50 = vsub.s32 2, %v1713_v30 }
  0xbb   :  { %715 = vmatpush1.bf16.xpose.msra.mxu0 %v1182_v18 }
  0xbc   :  { %803 = vmatpush1.bf16.xpose.msra.mxu1 %v1386_v31  ;;  %716 = vmatprep.subr.bf16.mxu0 %v1187_v19  ;;  %v897_v31 = vsub.s32 0, %v1713_v30  ;;  %v755_v44 = vld [vmem:[#allocation2 + $0x10] sm:$0xff]  ;;  %v758_v46 = vld [vmem:[#allocation2 + $0x28] sm:$0xff]  ;;  %v941_v19 = vrot.slane %v928_v62, %v905_v50 }
  0xbd   :  { %804 = vmatprep.subr.bf16.mxu1 %v1394_v33  ;;  %v901_v33 = vsub.s32 1, %v1713_v30 }
  0xbe   :  { %v898_v34 = vrot.slane %v893_v32, %v897_v31 }
  0xbf   :  { %v902_v36 = vrot.slane %v893_v32, %v901_v33 }
  0xc3   :  { %717 = vmatpush1.bf16.xpose.msra.mxu0 %v1185_v20 }
  0xc4   :  { %805 = vmatpush1.bf16.xpose.msra.mxu1 %v1404_v35  ;;  %718 = vmatprep.subr.bf16.mxu0 %v1190_v21 }
  0xc5   :  { %806 = vmatprep.subr.bf16.mxu1 %v1412_v37 }
  0xcb   :  { %719 = vmatpush1.bf16.xpose.msra.mxu0 %v1188_v22 }
  0xcc   :  { %807 = vmatpush1.bf16.xpose.msra.mxu1 %v1422_v39  ;;  %720 = vmatprep.subr.bf16.mxu0 %v1193_v23 }
  0xcd   :  { %808 = vmatprep.subr.bf16.mxu1 %v1430_v41 }
  0xd3   :  { %721 = vmatpush1.bf16.xpose.msra.mxu0 %v1191_v24 }
  0xd4   :  { %809 = vmatpush1.bf16.xpose.msra.mxu1 %v1440_v43  ;;  %722 = vmatprep.subr.bf16.mxu0 %v1196_v25 }
  0xd5   :  { %810 = vmatprep.subr.bf16.mxu1 %v1448_v45 }
  0xdb   :  { %723 = vmatpush1.bf16.xpose.msra.mxu0 %v1194_v26 }
  0xdc   :  { %811 = vmatpush1.bf16.xpose.msra.mxu1 %v1458_v47  ;;  %831 = vmatprep.subr.bf16.mxu0 %v1538_v3  ;;  %v937_v3 = vrot.slane %v928_v62, %v901_v33 }
  0xdd   :  { %812 = vmatprep.subr.bf16.mxu1 %v1466_v49 }
  0xe2   :  { %745 = vmatmul.mubr.bf16.vlgmr.msra.gmra.mrb[8].mxu0 %v1546_v5 }
  0xe3   :  { %832 = vmatpush1.bf16.xpose.msra.mxu0 %v1551_v7  ;;  %863 = vmatprep.mubr.bf16.mxu0 %v1561_v11 }
  0xe4   :  { %813 = vmatpush1.bf16.xpose.msra.mxu1 %v1476_v51  ;;  %833 = vmatprep.subr.bf16.mxu0 %v1556_v9 }
  0xe5   :  { %814 = vmatprep.subr.bf16.mxu1 %v1484_v53  ;;  %v906_v53 = vrot.slane %v893_v32, %v905_v50 }
  0xeb   :  { %834 = vmatpush1.bf16.xpose.msra.mxu0 %v1574_v0 }
  0xec   :  { %815 = vmatpush1.bf16.xpose.msra.mxu1 %v1494_v55  ;;  %835 = vmatprep.subr.bf16.mxu0 %v1579_v13 }
  0xed   :  { %816 = vmatprep.subr.bf16.mxu1 %v1502_v57 }
  0xf3   :  { %836 = vmatpush1.bf16.xpose.msra.mxu0 %v1588_v2 }
  0xf4   :  { %817 = vmatpush1.bf16.xpose.msra.mxu1 %v1512_v59  ;;  %837 = vmatprep.subr.bf16.mxu0 %v1593_v4  ;;  %v774_v4 = vld [vmem:[#allocation3 + $0x10] sm:$0xff] }
  0xf5   :  { %818 = vmatprep.subr.bf16.mxu1 %v1520_v61 }
  0xfb   :  { %838 = vmatpush1.bf16.xpose.msra.mxu0 %v1602_v6 }
  0xfc   :  { %819 = vmatpush1.bf16.xpose.msra.mxu1 %v1530_v63  ;;  %839 = vmatprep.subr.bf16.mxu0 %v1607_v8  ;;  %v933_v63 = vrot.slane %v928_v62, %v897_v31 }
 0x103   :  { %821 = vmatmul.mubr.bf16.vlgmr.msra.gmra.mrb[0].mxu1 %v1197_v28  ;;  %840 = vmatpush1.bf16.xpose.msra.mxu0 %v1616_v10 }
 0x104   :  { %841 = vmatprep.subr.bf16.mxu0 %v1621_v12  ;;  %v777_v12 = vld [vmem:[#allocation3 + $0x28] sm:$0xff] }
 0x10b   :  { %842 = vmatpush1.bf16.xpose.msra.mxu0 %v1630_v14 }
 0x112   :  { %864 = vmatmul.mubr.bf16.vlgmr.msra.gmra.mrb[12].mxu0 %v1197_v28 }
 0x155   :  { %v355_v35 = vpop.f32.mrb[0].mxu0 }
 0x156   :  { %v357_v37 = vpop.f32.mrb[1].mxu0  ;;  %v910_v39 = vadd.f32 %v898_v34, %v355_v35 }
 0x157   :  { %v359_v38 = vpop.f32.mrb[2].mxu0  ;;  %v911_v41 = vadd.f32 %v902_v36, %v357_v37 }
 0x158   :  { %v361_v40 = vpop.f32.mrb[3].mxu0  ;;  %916 = vst [vmem:[%s1773_s6] sm:$0xff] %v910_v39  ;;  %v913_v42 = vadd.f32 %v898_v34, %v359_v38 }
 0x159   :  { %917 = vst [vmem:[%s1773_s6 + $0x8] sm:$0xff] %v911_v41  ;;  %v914_v43 = vadd.f32 %v902_v36, %v361_v40 }
 0x15a   :  { %919 = vst [vmem:[%s1773_s6 + $0x18] sm:$0xff] %v913_v42 }
 0x15b   :  { %920 = vst [vmem:[%s1773_s6 + $0x20] sm:$0xff] %v914_v43 }
 0x185   :  { %v398_v45 = vpop.f32.mrb[4].mxu0 }
 0x186   :  { %v761_v47 = vadd.f32 %v755_v44, %v398_v45  ;;  %v400_v48 = vpop.f32.mrb[5].mxu0 }
 0x187   :  { %v401_v49 = vpop.f32.mrb[6].mxu0 }
 0x188   :  { %768 = vst.msk [vmem:[#allocation2 + $0x10] sm:$0xff] %vm32_vm0, %v761_v47  ;;  %v764_v51 = vadd.f32 %v758_v46, %v401_v49  ;;  %v403_v52 = vpop.f32.mrb[7].mxu0 }
 0x18a   :  { %771 = vst.msk [vmem:[#allocation2 + $0x28] sm:$0xff] %vm32_vm0, %v764_v51 }
 0x18f   :  { %v889_v54 = vld [vmem:[#allocation2 + $0x10] sm:$0xff] }
 0x190   :  { %v912_v55 = vadd.f32 %v906_v53, %v889_v54 }
 0x191   :  { %v892_v56 = vld [vmem:[#allocation2 + $0x28] sm:$0xff] }
 0x192   :  { %918 = vst.msk [vmem:[%s1773_s6 + $0x10] sm:$0xff] %vm32_vm0, %v912_v55  ;;  %v915_v57 = vadd.f32 %v906_v53, %v892_v56 }
 0x194   :  { %921 = vst.msk [vmem:[%s1773_s6 + $0x28] sm:$0xff] %vm32_vm0, %v915_v57 }
 0x1b5   :  { %v746_v58 = vpop.f32.mrb[8].mxu0 }
 0x1b6   :  { %v748_v59 = vpop.f32.mrb[9].mxu0 }
 0x1b7   :  { %v749_v60 = vpop.f32.mrb[10].mxu0 }
 0x1b8   :  { %v751_v61 = vpop.f32.mrb[11].mxu0 }
 0x1d6   :  { %v822_v1 = vpop.f32.mrb[0].mxu1 }
 0x1d7   :  { %v824_v5 = vpop.f32.mrb[1].mxu1  ;;  %v945_v9 = vadd.f32 %v933_v63, %v822_v1 }
 0x1d8   :  { %v826_v7 = vpop.f32.mrb[2].mxu1  ;;  %v946_v0 = vadd.f32 %v937_v3, %v824_v5 }
 0x1d9   :  { %v828_v11 = vpop.f32.mrb[3].mxu1  ;;  %951 = vst [vmem:[%s1775_s7] sm:$0xff] %v945_v9  ;;  %v948_v13 = vadd.f32 %v933_v63, %v826_v7 }
 0x1da   :  { %952 = vst [vmem:[%s1775_s7 + $0x8] sm:$0xff] %v946_v0  ;;  %v949_v2 = vadd.f32 %v937_v3, %v828_v11 }
 0x1db   :  { %954 = vst [vmem:[%s1775_s7 + $0x18] sm:$0xff] %v948_v13 }
 0x1dc   :  { %955 = vst [vmem:[%s1775_s7 + $0x20] sm:$0xff] %v949_v2 }
 0x1e5   :  { %v865_v6 = vpop.f32.mrb[12].mxu0 }
 0x1e6   :  { %v866_v8 = vadd.f32 %v865_v6, %v746_v58  ;;  %v867_v10 = vpop.f32.mrb[13].mxu0 }
 0x1e7   :  { %v868_v14 = vpop.f32.mrb[14].mxu0 }
 0x1e8   :  { %v874_v15 = vadd.f32 %v866_v8, %v774_v4  ;;  %v869_v16 = vadd.f32 %v868_v14, %v749_v60  ;;  %v870_v17 = vpop.f32.mrb[15].mxu0 }
 0x1ea   :  { %880 = vst.msk [vmem:[#allocation3 + $0x10] sm:$0xff] %vm32_vm0, %v874_v15  ;;  %v877_v18 = vadd.f32 %v869_v16, %v777_v12 }
 0x1ec   :  { %883 = vst.msk [vmem:[#allocation3 + $0x28] sm:$0xff] %vm32_vm0, %v877_v18 }
 0x1f1   :  { %v924_v20 = vld [vmem:[#allocation3 + $0x10] sm:$0xff] }
 0x1f2   :  { %v947_v21 = vadd.f32 %v941_v19, %v924_v20 }
 0x1f3   :  { %v927_v22 = vld [vmem:[#allocation3 + $0x28] sm:$0xff] }
 0x1f4   :  { %953 = vst.msk [vmem:[%s1775_s7 + $0x10] sm:$0xff] %vm32_vm0, %v947_v21  ;;  %v950_v23 = vadd.f32 %v941_v19, %v927_v22 }
 0x1f6   :  { %956 = vst.msk [vmem:[%s1775_s7 + $0x28] sm:$0xff] %vm32_vm0, %v950_v23 }

</bundles_post_ra>
